<compile_context>
chip_gen: v7x
topology: tpu7x:2x2x1
jax: 0.10.0
libtpu: 0.0.40
codegen_flags: <defaults>
</compile_context>

<pallas_src>
import functools

import jax
import jax.numpy as jnp
from jax import lax
from jax.experimental import pallas as pl
from jax.experimental.pallas import tpu as pltpu

PAD = 128            # lane-dense padded width for channels / hidden dims
NB = 8               # samples per grid step (multiple of 8 sublanes)
N_TAPS = 9           # 3x3 conv taps
BF16 = jnp.bfloat16


# ------------------------------ fused kernel ------------------------------

def _rn_fused_kernel(cols1_ref, qproj_ref, w1_ref, b1_ref, wcat_ref, b2_ref,
                     sbig_ref, pos_ref, wab_ref, wg2_ref, bg2_ref,
                     wf1_ref, bf1_ref, wf2_ref, bf2_ref, wc_ref, bc_ref,
                     out_ref, *, nb, hw1, hw2, num_cat):
    """Entire RN forward for one block of `nb` batch elements."""
    f32 = jnp.float32
    bf16 = jnp.bfloat16

    # ---- conv1 (host im2col'ed) + folded BN + ReLU: (nb*hw1, 128) ----
    cols1 = cols1_ref[...].reshape(nb * hw1, PAD)
    h1 = jnp.dot(cols1, w1_ref[...], preferred_element_type=f32)
    h1 = jnp.maximum(h1 + b1_ref[...], 0.0).astype(bf16)

    # ---- conv2: one wide weight matmul + one batched selection matmul ----
    h_all = jnp.dot(h1, wcat_ref[...], preferred_element_type=f32)
    h_all = h_all.astype(bf16)                                # (nb*hw1, 9*128)
    # restack tap blocks along rows (lane-aligned 128-wide slices)
    h_stack = jnp.concatenate(
        [h_all[:, k * PAD:(k + 1) * PAD] for k in range(N_TAPS)], axis=0)
    conv2 = jnp.dot(sbig_ref[...], h_stack, preferred_element_type=f32)
    conv2 = jnp.maximum(conv2 + b2_ref[...], 0.0)             # (nb*hw2, 128)
    # positional encoding lives in (otherwise-zero) padded channels 8,9
    xf = conv2.reshape(nb, hw2, PAD) + pos_ref[...][None, :, :]
    xfb = xf.reshape(nb * hw2, PAD).astype(bf16)

    # ---- RN g layer 1 split:  [a_proj | b_proj] = x @ W_ab  (N=256) ----
    proj = jnp.dot(xfb, wab_ref[...], preferred_element_type=f32)  # (nb*hw2,256)
    a_proj = proj[:, :PAD].reshape(nb, hw2, PAD)
    base = proj[:, PAD:].reshape(nb, hw2, PAD) + qproj_ref[...][:, None, :]
    # all hw2*hw2 pairs per sample via a bf16 broadcast add, then ReLU
    hp = jnp.maximum(a_proj.astype(bf16)[:, :, None, :]
                     + base.astype(bf16)[:, None, :, :], 0)   # (nb,hw2,hw2,128)
    hp = hp.reshape(nb * hw2 * hw2, PAD)

    # ---- RN g layer 2 + per-sample sum over pairs ----
    h2 = jnp.dot(hp, wg2_ref[...], preferred_element_type=f32) + bg2_ref[...]
    h2 = jnp.maximum(h2, 0.0)
    g_sum = jnp.sum(h2.reshape(nb, hw2 * hw2, PAD), axis=1)   # (nb, 128)

    # ---- RN f MLP + classifier + log_softmax (fp32 epilogue) ----
    f1 = jnp.maximum(jnp.dot(g_sum.astype(bf16), wf1_ref[...],
                             preferred_element_type=f32) + bf1_ref[...], 0.0)
    f2 = jnp.maximum(jnp.dot(f1.astype(bf16), wf2_ref[...],
                             preferred_element_type=f32) + bf2_ref[...], 0.0)
    logits = jnp.dot(f2.astype(bf16), wc_ref[...],
                     preferred_element_type=f32) + bc_ref[...]   # (nb, 128)
    col = lax.broadcasted_iota(jnp.int32, logits.shape, 1)
    logits = jnp.where(col < num_cat, logits, -1e30)
    m = jnp.max(logits, axis=1, keepdims=True)
    z = logits - m
    lse = jnp.log(jnp.sum(jnp.exp(z), axis=1, keepdims=True))
    out_ref[...] = z - lse


# ------------------------------- host glue --------------------------------

def pad_to(a, shape):
    out = jnp.zeros(shape, a.dtype)
    return out.at[tuple(slice(0, s) for s in a.shape)].set(a)


def im2col_conv1(img, k=3, stride=2, pad=1):
    """3x3/s2/p1 patches of the (NCHW) input image -> (N, Ho*Wo, Cin*9)."""
    n, c, h, w = img.shape
    xp = jnp.pad(img, ((0, 0), (0, 0), (pad, pad), (pad, pad)))
    ho = (h + 2 * pad - k) // stride + 1
    wo = (w + 2 * pad - k) // stride + 1
    patches = []
    for di in range(k):
        for dj in range(k):
            patches.append(xp[:, :, di:di + stride * ho:stride,
                              dj:dj + stride * wo:stride])
    cols = jnp.stack(patches, axis=2)                 # (N, C, 9, Ho, Wo)
    cols = cols.reshape(n, c * k * k, ho, wo)         # channel-major (c*9 + tap)
    cols = cols.transpose(0, 2, 3, 1).reshape(n, ho * wo, c * k * k)
    return cols, ho, wo


def conv_select_mats(hi, wi, ho, wo, k=3, stride=2, pad=1):
    """0/1 selection matrices (k*k, Ho*Wo, Hi*Wi) for an in-kernel conv."""
    p_out = jnp.arange(ho * wo)
    oy = p_out // wo
    ox = p_out % wo
    p_in_all = jnp.arange(hi * wi)
    mats = []
    for di in range(k):
        for dj in range(k):
            iy = oy * stride + di - pad
            ix = ox * stride + dj - pad
            valid = (iy >= 0) & (iy < hi) & (ix >= 0) & (ix < wi)
            p_in = jnp.clip(iy, 0, hi - 1) * wi + jnp.clip(ix, 0, wi - 1)
            m = (p_in[:, None] == p_in_all[None, :]) & valid[:, None]
            mats.append(m.astype(jnp.float32))
    return jnp.stack(mats, axis=0)


def positional_encoding_padded(h, w, col0, width):
    xs = jnp.linspace(-1.0, 1.0, w)
    ys = jnp.linspace(-1.0, 1.0, h)
    cx, cy = jnp.meshgrid(xs, ys)                     # (h, w) each
    pos = jnp.zeros((h * w, width), jnp.float32)
    pos = pos.at[:, col0].set(cx.reshape(-1))
    pos = pos.at[:, col0 + 1].set(cy.reshape(-1))
    return pos


def init_params(key, cnn_chs, qst_dim, rn_g_chs, rn_f_chs, num_cat):
    """Raw fp32 parameters mirroring the PyTorch module (eval-mode BN)."""
    keys = iter(jax.random.split(key, 16))
    raw = {"conv": []}
    ch_i = 3
    for ch_o in cnn_chs:
        w = 0.1 * jax.random.normal(next(keys), (ch_o, ch_i, 3, 3), jnp.float32)
        gamma = jnp.ones((ch_o,), jnp.float32)
        beta = jnp.zeros((ch_o,), jnp.float32)
        mean = jnp.zeros((ch_o,), jnp.float32)
        var = jnp.ones((ch_o,), jnp.float32)
        raw["conv"].append((w, gamma, beta, mean, var))
        ch_i = ch_o

    def lin(k_, din, dout):
        return (0.1 * jax.random.normal(k_, (din, dout), jnp.float32),
                jnp.zeros((dout,), jnp.float32))

    g_in = (cnn_chs[-1] + 2) * 2 + qst_dim
    raw["g1"] = lin(next(keys), g_in, rn_g_chs[0])
    raw["g2"] = lin(next(keys), rn_g_chs[0], rn_g_chs[1])
    raw["f1"] = lin(next(keys), rn_g_chs[1], rn_f_chs[0])
    raw["f2"] = lin(next(keys), rn_f_chs[0], rn_f_chs[1])
    raw["cls"] = lin(next(keys), rn_f_chs[1], num_cat)
    return raw


def prepare_kernel_params(raw, cnn_chs, qst_dim):
    """Fold BN, fuse/split weights, pad to 128 lanes, cast matmul weights bf16."""
    eps = 1e-5
    kp = {}

    # conv1: fold BN scale into the weight columns
    w, gamma, beta, mean, var = raw["conv"][0]
    co, ci = w.shape[0], w.shape[1]
    scale = gamma / jnp.sqrt(var + eps)
    w_mat = w.reshape(co, ci * 9).T * scale[None, :]          # (Cin*9, Cout)
    kp["w1"] = pad_to(w_mat, (PAD, PAD)).astype(BF16)
    kp["b1"] = pad_to((beta - mean * scale)[None, :], (1, PAD))

    # conv2: folded (Cin, Cout) matrix per 3x3 tap, concatenated along lanes
    w, gamma, beta, mean, var = raw["conv"][1]
    scale2 = gamma / jnp.sqrt(var + eps)
    taps = []
    for di in range(3):
        for dj in range(3):
            wk = w[:, :, di, dj].T * scale2[None, :]          # (Cin, Cout)
            taps.append(pad_to(wk, (PAD, PAD)))
    kp["wcat"] = jnp.concatenate(taps, axis=1).astype(BF16)   # (128, 9*128)
    kp["b2"] = pad_to((beta - mean * scale2)[None, :], (1, PAD))

    # g layer 1 split: x_i / x_j blocks fused into one (128, 256) weight;
    # the qst block stays on the host.
    c_tot = cnn_chs[-1] + 2
    wg1, bg1 = raw["g1"]
    w1a = pad_to(wg1[:c_tot], (PAD, PAD))
    w1b = pad_to(wg1[c_tot:2 * c_tot], (PAD, PAD))
    kp["wab"] = jnp.concatenate([w1a, w1b], axis=1).astype(BF16)  # (128, 256)
    kp["w1q_host"] = wg1[2 * c_tot:]                          # (qst_dim, g1_out)
    kp["bg1_host"] = bg1

    wg2, bg2 = raw["g2"]
    kp["wg2"] = pad_to(wg2, (PAD, PAD)).astype(BF16)
    kp["bg2"] = pad_to(bg2[None, :], (1, PAD))

    wf1, bias_f1 = raw["f1"]
    wf2, bias_f2 = raw["f2"]
    wc, bias_c = raw["cls"]
    kp["wf1"] = pad_to(wf1, (PAD, PAD)).astype(BF16)
    kp["bf1"] = pad_to(bias_f1[None, :], (1, PAD))
    kp["wf2"] = pad_to(wf2, (PAD, PAD)).astype(BF16)
    kp["bf2"] = pad_to(bias_f2[None, :], (1, PAD))
    kp["wc"] = pad_to(wc, (PAD, PAD)).astype(BF16)
    kp["bc"] = pad_to(bias_c[None, :], (1, PAD))
    return kp


def _full_spec(a):
    return pl.BlockSpec(a.shape, lambda i: (0,) * a.ndim)


def rn_forward(kp, img, qst, cnn_chs, num_cat):
    n = img.shape[0]
    n_pad = ((n + NB - 1) // NB) * NB
    if n_pad != n:
        img = jnp.pad(img, ((0, n_pad - n), (0, 0), (0, 0), (0, 0)))
        qst = jnp.pad(qst, ((0, n_pad - n), (0, 0)))

    # conv1 patch extraction on the host (depends only on the raw input image)
    cols1, h1s, w1s = im2col_conv1(img)                        # (N, HW1, 27)
    hw1 = h1s * w1s
    cols1 = pad_to(cols1, (n_pad, hw1, PAD)).astype(BF16)

    h2s = (h1s + 2 - 3) // 2 + 1
    w2s = (w1s + 2 - 3) // 2 + 1
    hw2 = h2s * w2s

    # batched (block-diag over the NB samples in a block) conv2 selection
    # matrix: one 3x3-tap block per 128-lane slice of h1 @ W_cat.
    s_taps = conv_select_mats(h1s, w1s, h2s, w2s)              # (9, HW2, HW1)
    eye = jnp.eye(NB, dtype=jnp.float32)
    s_big = jnp.concatenate([jnp.kron(eye, s_taps[k]) for k in range(N_TAPS)],
                            axis=1).astype(BF16)               # (NB*HW2, 9*NB*HW1)

    pos = positional_encoding_padded(h2s, w2s, cnn_chs[-1], PAD)

    # question projection (+ g1 bias) precomputed in fp32, batched over N
    qproj = pad_to(qst @ kp["w1q_host"] + kp["bg1_host"][None, :],
                   (n_pad, PAD))

    n_blk = n_pad // NB
    kernel = functools.partial(_rn_fused_kernel, nb=NB, hw1=hw1, hw2=hw2,
                               num_cat=num_cat)

    # advisory cost estimate so XLA overlaps host-side im2col/pad with the kernel
    m1 = NB * hw1
    flops_blk = 2 * (m1 * PAD * PAD                       # conv1
                     + m1 * PAD * N_TAPS * PAD            # conv2 weights
                     + NB * hw2 * N_TAPS * m1 * PAD       # conv2 selection
                     + NB * hw2 * PAD * 2 * PAD           # g1 projections
                     + NB * hw2 * hw2 * PAD * PAD         # g2
                     + 3 * NB * PAD * PAD)                # f-MLP + classifier
    weight_bytes = sum(int(kp[k].size) * kp[k].dtype.itemsize
                       for k in ("w1", "b1", "wcat", "b2", "wab", "wg2", "bg2",
                                 "wf1", "bf1", "wf2", "bf2", "wc", "bc"))
    bytes_accessed = (int(cols1.size) * 2 + int(qproj.size) * 4
                      + int(s_big.size) * 2 + int(pos.size) * 4
                      + n_pad * PAD * 4 + weight_bytes)
    cost = pl.CostEstimate(flops=int(flops_blk) * int(n_blk),
                           transcendentals=int(n_pad * (PAD + 1)),
                           bytes_accessed=int(bytes_accessed))

    out_pad = pl.pallas_call(
        kernel,
        out_shape=jax.ShapeDtypeStruct((n_pad, PAD), jnp.float32),
        grid=(n_blk,),
        in_specs=[
            pl.BlockSpec((NB, hw1, PAD), lambda i: (i, 0, 0)),  # cols1
            pl.BlockSpec((NB, PAD), lambda i: (i, 0)),          # qproj
            _full_spec(kp["w1"]), _full_spec(kp["b1"]),
            _full_spec(kp["wcat"]), _full_spec(kp["b2"]),
            _full_spec(s_big), _full_spec(pos),
            _full_spec(kp["wab"]),
            _full_spec(kp["wg2"]), _full_spec(kp["bg2"]),
            _full_spec(kp["wf1"]), _full_spec(kp["bf1"]),
            _full_spec(kp["wf2"]), _full_spec(kp["bf2"]),
            _full_spec(kp["wc"]), _full_spec(kp["bc"]),
        ],
        out_specs=pl.BlockSpec((NB, PAD), lambda i: (i, 0)),
        compiler_params=pltpu.CompilerParams(
            dimension_semantics=("parallel",)),
        cost_estimate=cost,
    )(cols1, qproj, kp["w1"], kp["b1"], kp["wcat"], kp["b2"], s_big, pos,
      kp["wab"], kp["wg2"], kp["bg2"], kp["wf1"], kp["bf1"], kp["wf2"],
      kp["bf2"], kp["wc"], kp["bc"])

    return out_pad[:n, :num_cat], None


# --------------------------------- driver ---------------------------------

if __name__ == "__main__":
    # args-equivalent config
    cnn_chs = [8, 8]        # "8,8"
    qst_dim = 8
    rn_g_chs = [32, 32]     # "32,32"
    rn_f_chs = [32, 16]     # "32,16"
    num_cat = 10

    key = jax.random.PRNGKey(0)
    k_params, k_img, k_qst = jax.random.split(key, 3)

    raw = init_params(k_params, cnn_chs, qst_dim, rn_g_chs, rn_f_chs, num_cat)
    kp = prepare_kernel_params(raw, cnn_chs, qst_dim)

    img = jax.random.normal(k_img, (2, 3, 16, 16), jnp.float32)   # NCHW
    qst = jax.random.normal(k_qst, (2, qst_dim), jnp.float32)

    fwd = jax.jit(functools.partial(rn_forward, cnn_chs=cnn_chs,
                                    num_cat=num_cat))
    cls_prob, _ = fwd(kp, img, qst)
    cls_prob = jax.block_until_ready(cls_prob)

    assert cls_prob.shape == (2, num_cat)
    # log_softmax rows should exponentiate-sum to ~1
    assert bool(jnp.allclose(jnp.sum(jnp.exp(cls_prob), axis=1), 1.0, atol=1e-4))
    print("KERNEL_OK")
</pallas_src>

<mosaic_0001>
module attributes {stable_mosaic.version = 11 : i64} {
  func.func @_rn_fused_kernel(%arg0: i32, %arg1: memref<8x64x128xbf16, #tpu.memory_space<vmem>>, %arg2: memref<8x128xf32, #tpu.memory_space<vmem>>, %arg3: memref<128x128xbf16, #tpu.memory_space<vmem>>, %arg4: memref<1x128xf32, #tpu.memory_space<vmem>>, %arg5: memref<128x1152xbf16, #tpu.memory_space<vmem>>, %arg6: memref<1x128xf32, #tpu.memory_space<vmem>>, %arg7: memref<128x4608xbf16, #tpu.memory_space<vmem>>, %arg8: memref<16x128xf32, #tpu.memory_space<vmem>>, %arg9: memref<128x256xbf16, #tpu.memory_space<vmem>>, %arg10: memref<128x128xbf16, #tpu.memory_space<vmem>>, %arg11: memref<1x128xf32, #tpu.memory_space<vmem>>, %arg12: memref<128x128xbf16, #tpu.memory_space<vmem>>, %arg13: memref<1x128xf32, #tpu.memory_space<vmem>>, %arg14: memref<128x128xbf16, #tpu.memory_space<vmem>>, %arg15: memref<1x128xf32, #tpu.memory_space<vmem>>, %arg16: memref<128x128xbf16, #tpu.memory_space<vmem>>, %arg17: memref<1x128xf32, #tpu.memory_space<vmem>>, %arg18: memref<8x128xf32, #tpu.memory_space<vmem>>) attributes {dimension_semantics = [#tpu.dimension_semantics<parallel>], iteration_bounds = array<i64: 1>, scalar_prefetch = 0 : i64, scratch_operands = 0 : i64, tpu.core_type = #tpu.core_type<tc>, window_params = [{transform_indices = @transform_0, window_bounds = array<i64: 8, 64, 128>}, {transform_indices = @transform_1, window_bounds = array<i64: 8, 128>}, {pipeline_mode = #tpu.pipeline_mode<synchronous>, transform_indices = @transform_2, window_bounds = array<i64: 128, 128>}, {pipeline_mode = #tpu.pipeline_mode<synchronous>, transform_indices = @transform_3, window_bounds = array<i64: 1, 128>}, {pipeline_mode = #tpu.pipeline_mode<synchronous>, transform_indices = @transform_4, window_bounds = array<i64: 128, 1152>}, {pipeline_mode = #tpu.pipeline_mode<synchronous>, transform_indices = @transform_5, window_bounds = array<i64: 1, 128>}, {pipeline_mode = #tpu.pipeline_mode<synchronous>, transform_indices = @transform_6, window_bounds = array<i64: 128, 4608>}, {pipeline_mode = #tpu.pipeline_mode<synchronous>, transform_indices = @transform_7, window_bounds = array<i64: 16, 128>}, {pipeline_mode = #tpu.pipeline_mode<synchronous>, transform_indices = @transform_8, window_bounds = array<i64: 128, 256>}, {pipeline_mode = #tpu.pipeline_mode<synchronous>, transform_indices = @transform_9, window_bounds = array<i64: 128, 128>}, {pipeline_mode = #tpu.pipeline_mode<synchronous>, transform_indices = @transform_10, window_bounds = array<i64: 1, 128>}, {pipeline_mode = #tpu.pipeline_mode<synchronous>, transform_indices = @transform_11, window_bounds = array<i64: 128, 128>}, {pipeline_mode = #tpu.pipeline_mode<synchronous>, transform_indices = @transform_12, window_bounds = array<i64: 1, 128>}, {pipeline_mode = #tpu.pipeline_mode<synchronous>, transform_indices = @transform_13, window_bounds = array<i64: 128, 128>}, {pipeline_mode = #tpu.pipeline_mode<synchronous>, transform_indices = @transform_14, window_bounds = array<i64: 1, 128>}, {pipeline_mode = #tpu.pipeline_mode<synchronous>, transform_indices = @transform_15, window_bounds = array<i64: 128, 128>}, {pipeline_mode = #tpu.pipeline_mode<synchronous>, transform_indices = @transform_16, window_bounds = array<i64: 1, 128>}, {transform_indices = @transform_17, window_bounds = array<i64: 8, 128>}]} {
    %c0 = arith.constant 0 : index
    %c0_0 = arith.constant 0 : index
    %c0_1 = arith.constant 0 : index
    %0 = vector.load %arg1[%c0, %c0_0, %c0_1] : memref<8x64x128xbf16, #tpu.memory_space<vmem>>, vector<8x64x128xbf16>
    %1 = vector.shape_cast %0 : vector<8x64x128xbf16> to vector<512x128xbf16>
    %c0_2 = arith.constant 0 : index
    %c0_3 = arith.constant 0 : index
    %2 = vector.load %arg3[%c0_2, %c0_3] : memref<128x128xbf16, #tpu.memory_space<vmem>>, vector<128x128xbf16>
    %cst = arith.constant dense<0.000000e+00> : vector<512x128xf32>
    %3 = tpu.matmul %1, %2, %cst {dimension_numbers = #tpu.dot_dimension_numbers<[1], [0], [0], [1], [0, 0, 1, 1], [], []>} : vector<512x128xbf16>, vector<128x128xbf16>, vector<512x128xf32> -> vector<512x128xf32>
    %c0_4 = arith.constant 0 : index
    %c0_5 = arith.constant 0 : index
    %4 = vector.load %arg4[%c0_4, %c0_5] : memref<1x128xf32, #tpu.memory_space<vmem>>, vector<1x128xf32>
    %5 = vector.broadcast %4 : vector<1x128xf32> to vector<512x128xf32>
    %6 = arith.addf %3, %5 : vector<512x128xf32>
    %cst_6 = arith.constant 0.000000e+00 : f32
    %7 = vector.broadcast %cst_6 : f32 to vector<512x128xf32>
    %8 = arith.maximumf %6, %7 : vector<512x128xf32>
    %9 = arith.truncf %8 : vector<512x128xf32> to vector<512x128xbf16>
    %c0_7 = arith.constant 0 : index
    %c0_8 = arith.constant 0 : index
    %10 = vector.load %arg5[%c0_7, %c0_8] : memref<128x1152xbf16, #tpu.memory_space<vmem>>, vector<128x1152xbf16>
    %cst_9 = arith.constant dense<0.000000e+00> : vector<512x1152xf32>
    %11 = tpu.matmul %9, %10, %cst_9 {dimension_numbers = #tpu.dot_dimension_numbers<[1], [0], [0], [1], [0, 0, 1, 1], [], []>} : vector<512x128xbf16>, vector<128x1152xbf16>, vector<512x1152xf32> -> vector<512x1152xf32>
    %12 = arith.truncf %11 : vector<512x1152xf32> to vector<512x1152xbf16>
    %13 = vector.extract_strided_slice %12 {offsets = [0, 0], sizes = [512, 128], strides = [1, 1]} : vector<512x1152xbf16> to vector<512x128xbf16>
    %14 = vector.extract_strided_slice %12 {offsets = [0, 128], sizes = [512, 128], strides = [1, 1]} : vector<512x1152xbf16> to vector<512x128xbf16>
    %15 = vector.extract_strided_slice %12 {offsets = [0, 256], sizes = [512, 128], strides = [1, 1]} : vector<512x1152xbf16> to vector<512x128xbf16>
    %16 = vector.extract_strided_slice %12 {offsets = [0, 384], sizes = [512, 128], strides = [1, 1]} : vector<512x1152xbf16> to vector<512x128xbf16>
    %17 = vector.extract_strided_slice %12 {offsets = [0, 512], sizes = [512, 128], strides = [1, 1]} : vector<512x1152xbf16> to vector<512x128xbf16>
    %18 = vector.extract_strided_slice %12 {offsets = [0, 640], sizes = [512, 128], strides = [1, 1]} : vector<512x1152xbf16> to vector<512x128xbf16>
    %19 = vector.extract_strided_slice %12 {offsets = [0, 768], sizes = [512, 128], strides = [1, 1]} : vector<512x1152xbf16> to vector<512x128xbf16>
    %20 = vector.extract_strided_slice %12 {offsets = [0, 896], sizes = [512, 128], strides = [1, 1]} : vector<512x1152xbf16> to vector<512x128xbf16>
    %21 = vector.extract_strided_slice %12 {offsets = [0, 1024], sizes = [512, 128], strides = [1, 1]} : vector<512x1152xbf16> to vector<512x128xbf16>
    %22 = tpu.concatenate %13, %14, %15, %16, %17, %18, %19, %20, %21 in 0 : vector<512x128xbf16>, vector<512x128xbf16>, vector<512x128xbf16>, vector<512x128xbf16>, vector<512x128xbf16>, vector<512x128xbf16>, vector<512x128xbf16>, vector<512x128xbf16>, vector<512x128xbf16> -> vector<4608x128xbf16>
    %c0_10 = arith.constant 0 : index
    %c0_11 = arith.constant 0 : index
    %23 = vector.load %arg7[%c0_10, %c0_11] : memref<128x4608xbf16, #tpu.memory_space<vmem>>, vector<128x4608xbf16>
    %cst_12 = arith.constant dense<0.000000e+00> : vector<128x128xf32>
    %24 = tpu.matmul %23, %22, %cst_12 {dimension_numbers = #tpu.dot_dimension_numbers<[1], [0], [0], [1], [0, 0, 1, 1], [], []>} : vector<128x4608xbf16>, vector<4608x128xbf16>, vector<128x128xf32> -> vector<128x128xf32>
    %c0_13 = arith.constant 0 : index
    %c0_14 = arith.constant 0 : index
    %25 = vector.load %arg6[%c0_13, %c0_14] : memref<1x128xf32, #tpu.memory_space<vmem>>, vector<1x128xf32>
    %26 = vector.broadcast %25 : vector<1x128xf32> to vector<128x128xf32>
    %27 = arith.addf %24, %26 : vector<128x128xf32>
    %cst_15 = arith.constant 0.000000e+00 : f32
    %28 = vector.broadcast %cst_15 : f32 to vector<128x128xf32>
    %29 = arith.maximumf %27, %28 : vector<128x128xf32>
    %30 = vector.shape_cast %29 : vector<128x128xf32> to vector<8x16x128xf32>
    %c0_16 = arith.constant 0 : index
    %c0_17 = arith.constant 0 : index
    %31 = vector.load %arg8[%c0_16, %c0_17] : memref<16x128xf32, #tpu.memory_space<vmem>>, vector<16x128xf32>
    %32 = vector.shape_cast %31 : vector<16x128xf32> to vector<1x16x128xf32>
    %33 = vector.broadcast %32 : vector<1x16x128xf32> to vector<8x16x128xf32>
    %34 = arith.addf %30, %33 : vector<8x16x128xf32>
    %35 = vector.shape_cast %34 : vector<8x16x128xf32> to vector<128x128xf32>
    %36 = arith.truncf %35 : vector<128x128xf32> to vector<128x128xbf16>
    %c0_18 = arith.constant 0 : index
    %c0_19 = arith.constant 0 : index
    %37 = vector.load %arg9[%c0_18, %c0_19] : memref<128x256xbf16, #tpu.memory_space<vmem>>, vector<128x256xbf16>
    %cst_20 = arith.constant dense<0.000000e+00> : vector<128x256xf32>
    %38 = tpu.matmul %36, %37, %cst_20 {dimension_numbers = #tpu.dot_dimension_numbers<[1], [0], [0], [1], [0, 0, 1, 1], [], []>} : vector<128x128xbf16>, vector<128x256xbf16>, vector<128x256xf32> -> vector<128x256xf32>
    %39 = vector.extract_strided_slice %38 {offsets = [0, 0], sizes = [128, 128], strides = [1, 1]} : vector<128x256xf32> to vector<128x128xf32>
    %40 = vector.shape_cast %39 : vector<128x128xf32> to vector<8x16x128xf32>
    %41 = vector.extract_strided_slice %38 {offsets = [0, 128], sizes = [128, 128], strides = [1, 1]} : vector<128x256xf32> to vector<128x128xf32>
    %42 = vector.shape_cast %41 : vector<128x128xf32> to vector<8x16x128xf32>
    %c0_21 = arith.constant 0 : index
    %c0_22 = arith.constant 0 : index
    %43 = vector.load %arg2[%c0_21, %c0_22] : memref<8x128xf32, #tpu.memory_space<vmem>>, vector<8x128xf32>
    %44 = vector.shape_cast %43 : vector<8x128xf32> to vector<8x1x128xf32>
    %45 = vector.broadcast %44 : vector<8x1x128xf32> to vector<8x16x128xf32>
    %46 = arith.addf %42, %45 : vector<8x16x128xf32>
    %47 = arith.truncf %40 : vector<8x16x128xf32> to vector<8x16x128xbf16>
    %48 = vector.shape_cast %47 : vector<8x16x128xbf16> to vector<8x16x1x128xbf16>
    %49 = arith.truncf %46 : vector<8x16x128xf32> to vector<8x16x128xbf16>
    %50 = vector.shape_cast %49 : vector<8x16x128xbf16> to vector<8x1x16x128xbf16>
    %51 = vector.broadcast %48 : vector<8x16x1x128xbf16> to vector<8x16x16x128xbf16>
    %52 = vector.broadcast %50 : vector<8x1x16x128xbf16> to vector<8x16x16x128xbf16>
    %53 = arith.addf %51, %52 : vector<8x16x16x128xbf16>
    %cst_23 = arith.constant 0.000000e+00 : bf16
    %54 = vector.broadcast %cst_23 : bf16 to vector<8x16x16x128xbf16>
    %55 = arith.maximumf %53, %54 : vector<8x16x16x128xbf16>
    %56 = vector.shape_cast %55 : vector<8x16x16x128xbf16> to vector<2048x128xbf16>
    %c0_24 = arith.constant 0 : index
    %c0_25 = arith.constant 0 : index
    %57 = vector.load %arg10[%c0_24, %c0_25] : memref<128x128xbf16, #tpu.memory_space<vmem>>, vector<128x128xbf16>
    %cst_26 = arith.constant dense<0.000000e+00> : vector<2048x128xf32>
    %58 = tpu.matmul %56, %57, %cst_26 {dimension_numbers = #tpu.dot_dimension_numbers<[1], [0], [0], [1], [0, 0, 1, 1], [], []>} : vector<2048x128xbf16>, vector<128x128xbf16>, vector<2048x128xf32> -> vector<2048x128xf32>
    %c0_27 = arith.constant 0 : index
    %c0_28 = arith.constant 0 : index
    %59 = vector.load %arg11[%c0_27, %c0_28] : memref<1x128xf32, #tpu.memory_space<vmem>>, vector<1x128xf32>
    %60 = vector.broadcast %59 : vector<1x128xf32> to vector<2048x128xf32>
    %61 = arith.addf %58, %60 : vector<2048x128xf32>
    %cst_29 = arith.constant 0.000000e+00 : f32
    %62 = vector.broadcast %cst_29 : f32 to vector<2048x128xf32>
    %63 = arith.maximumf %61, %62 : vector<2048x128xf32>
    %64 = vector.shape_cast %63 : vector<2048x128xf32> to vector<8x256x128xf32>
    %cst_30 = arith.constant dense<0.000000e+00> : vector<8x128xf32>
    %65 = vector.multi_reduction <add>, %64, %cst_30 [1] : vector<8x256x128xf32> to vector<8x128xf32>
    %66 = arith.truncf %65 : vector<8x128xf32> to vector<8x128xbf16>
    %c0_31 = arith.constant 0 : index
    %c0_32 = arith.constant 0 : index
    %67 = vector.load %arg12[%c0_31, %c0_32] : memref<128x128xbf16, #tpu.memory_space<vmem>>, vector<128x128xbf16>
    %cst_33 = arith.constant dense<0.000000e+00> : vector<8x128xf32>
    %68 = tpu.matmul %66, %67, %cst_33 {dimension_numbers = #tpu.dot_dimension_numbers<[1], [0], [0], [1], [0, 0, 1, 1], [], []>} : vector<8x128xbf16>, vector<128x128xbf16>, vector<8x128xf32> -> vector<8x128xf32>
    %c0_34 = arith.constant 0 : index
    %c0_35 = arith.constant 0 : index
    %69 = vector.load %arg13[%c0_34, %c0_35] : memref<1x128xf32, #tpu.memory_space<vmem>>, vector<1x128xf32>
    %70 = vector.broadcast %69 : vector<1x128xf32> to vector<8x128xf32>
    %71 = arith.addf %68, %70 : vector<8x128xf32>
    %cst_36 = arith.constant 0.000000e+00 : f32
    %72 = vector.broadcast %cst_36 : f32 to vector<8x128xf32>
    %73 = arith.maximumf %71, %72 : vector<8x128xf32>
    %74 = arith.truncf %73 : vector<8x128xf32> to vector<8x128xbf16>
    %c0_37 = arith.constant 0 : index
    %c0_38 = arith.constant 0 : index
    %75 = vector.load %arg14[%c0_37, %c0_38] : memref<128x128xbf16, #tpu.memory_space<vmem>>, vector<128x128xbf16>
    %cst_39 = arith.constant dense<0.000000e+00> : vector<8x128xf32>
    %76 = tpu.matmul %74, %75, %cst_39 {dimension_numbers = #tpu.dot_dimension_numbers<[1], [0], [0], [1], [0, 0, 1, 1], [], []>} : vector<8x128xbf16>, vector<128x128xbf16>, vector<8x128xf32> -> vector<8x128xf32>
    %c0_40 = arith.constant 0 : index
    %c0_41 = arith.constant 0 : index
    %77 = vector.load %arg15[%c0_40, %c0_41] : memref<1x128xf32, #tpu.memory_space<vmem>>, vector<1x128xf32>
    %78 = vector.broadcast %77 : vector<1x128xf32> to vector<8x128xf32>
    %79 = arith.addf %76, %78 : vector<8x128xf32>
    %cst_42 = arith.constant 0.000000e+00 : f32
    %80 = vector.broadcast %cst_42 : f32 to vector<8x128xf32>
    %81 = arith.maximumf %79, %80 : vector<8x128xf32>
    %82 = arith.truncf %81 : vector<8x128xf32> to vector<8x128xbf16>
    %c0_43 = arith.constant 0 : index
    %c0_44 = arith.constant 0 : index
    %83 = vector.load %arg16[%c0_43, %c0_44] : memref<128x128xbf16, #tpu.memory_space<vmem>>, vector<128x128xbf16>
    %cst_45 = arith.constant dense<0.000000e+00> : vector<8x128xf32>
    %84 = tpu.matmul %82, %83, %cst_45 {dimension_numbers = #tpu.dot_dimension_numbers<[1], [0], [0], [1], [0, 0, 1, 1], [], []>} : vector<8x128xbf16>, vector<128x128xbf16>, vector<8x128xf32> -> vector<8x128xf32>
    %c0_46 = arith.constant 0 : index
    %c0_47 = arith.constant 0 : index
    %85 = vector.load %arg17[%c0_46, %c0_47] : memref<1x128xf32, #tpu.memory_space<vmem>>, vector<1x128xf32>
    %86 = vector.broadcast %85 : vector<1x128xf32> to vector<8x128xf32>
    %87 = arith.addf %84, %86 : vector<8x128xf32>
    %88 = tpu.iota {dimensions = array<i32: 1>} : vector<8x128xi32>
    %c10_i32 = arith.constant 10 : i32
    %89 = vector.broadcast %c10_i32 : i32 to vector<8x128xi32>
    %90 = arith.cmpi slt, %88, %89 : vector<8x128xi32>
    %cst_48 = arith.constant -1.000000e+30 : f32
    %91 = vector.broadcast %cst_48 : f32 to vector<8x128xf32>
    %92 = arith.select %90, %87, %91 : vector<8x128xi1>, vector<8x128xf32>
    %cst_49 = arith.constant dense<0xFF800000> : vector<8xf32>
    %93 = vector.multi_reduction <maximumf>, %92, %cst_49 [1] : vector<8x128xf32> to vector<8xf32>
    %94 = vector.shape_cast %93 : vector<8xf32> to vector<8x1xf32>
    %95 = vector.broadcast %94 : vector<8x1xf32> to vector<8x128xf32>
    %96 = arith.subf %92, %95 : vector<8x128xf32>
    %97 = math.exp %96 : vector<8x128xf32>
    %cst_50 = arith.constant dense<0.000000e+00> : vector<8xf32>
    %98 = vector.multi_reduction <add>, %97, %cst_50 [1] : vector<8x128xf32> to vector<8xf32>
    %99 = vector.shape_cast %98 : vector<8xf32> to vector<8x1xf32>
    %100 = math.log %99 : vector<8x1xf32>
    %101 = vector.broadcast %100 : vector<8x1xf32> to vector<8x128xf32>
    %102 = arith.subf %96, %101 : vector<8x128xf32>
    %c0_51 = arith.constant 0 : index
    %c0_52 = arith.constant 0 : index
    %103 = vector.load %arg18[%c0_51, %c0_52] : memref<8x128xf32, #tpu.memory_space<vmem>>, vector<8x128xf32>
    tpu.vector_store %arg18[%c0_51, %c0_52], %102 {strides = array<i32>} : memref<8x128xf32, #tpu.memory_space<vmem>>, vector<8x128xf32>,
    return
  }
  func.func @transform_0(%arg0: i32) -> (i32, i32, i32) {
    %c0_i32 = arith.constant 0 : i32
    %c0_i32_0 = arith.constant 0 : i32
    %c0_i32_1 = arith.constant 0 : i32
    return %arg0, %c0_i32, %c0_i32_0 : i32, i32, i32
  }
  func.func @transform_1(%arg0: i32) -> (i32, i32) {
    %c0_i32 = arith.constant 0 : i32
    %c0_i32_0 = arith.constant 0 : i32
    return %arg0, %c0_i32 : i32, i32
  }
  func.func @transform_2(%arg0: i32) -> (i32, i32) {
    %c0_i32 = arith.constant 0 : i32
    %c0_i32_0 = arith.constant 0 : i32
    %c0_i32_1 = arith.constant 0 : i32
    return %c0_i32, %c0_i32_0 : i32, i32
  }
  func.func @transform_3(%arg0: i32) -> (i32, i32) {
    %c0_i32 = arith.constant 0 : i32
    %c0_i32_0 = arith.constant 0 : i32
    %c0_i32_1 = arith.constant 0 : i32
    return %c0_i32, %c0_i32_0 : i32, i32
  }
  func.func @transform_4(%arg0: i32) -> (i32, i32) {
    %c0_i32 = arith.constant 0 : i32
    %c0_i32_0 = arith.constant 0 : i32
    %c0_i32_1 = arith.constant 0 : i32
    return %c0_i32, %c0_i32_0 : i32, i32
  }
  func.func @transform_5(%arg0: i32) -> (i32, i32) {
    %c0_i32 = arith.constant 0 : i32
    %c0_i32_0 = arith.constant 0 : i32
    %c0_i32_1 = arith.constant 0 : i32
    return %c0_i32, %c0_i32_0 : i32, i32
  }
  func.func @transform_6(%arg0: i32) -> (i32, i32) {
    %c0_i32 = arith.constant 0 : i32
    %c0_i32_0 = arith.constant 0 : i32
    %c0_i32_1 = arith.constant 0 : i32
    return %c0_i32, %c0_i32_0 : i32, i32
  }
  func.func @transform_7(%arg0: i32) -> (i32, i32) {
    %c0_i32 = arith.constant 0 : i32
    %c0_i32_0 = arith.constant 0 : i32
    %c0_i32_1 = arith.constant 0 : i32
    return %c0_i32, %c0_i32_0 : i32, i32
  }
  func.func @transform_8(%arg0: i32) -> (i32, i32) {
    %c0_i32 = arith.constant 0 : i32
    %c0_i32_0 = arith.constant 0 : i32
    %c0_i32_1 = arith.constant 0 : i32
    return %c0_i32, %c0_i32_0 : i32, i32
  }
  func.func @transform_9(%arg0: i32) -> (i32, i32) {
    %c0_i32 = arith.constant 0 : i32
    %c0_i32_0 = arith.constant 0 : i32
    %c0_i32_1 = arith.constant 0 : i32
    return %c0_i32, %c0_i32_0 : i32, i32
  }
  func.func @transform_10(%arg0: i32) -> (i32, i32) {
    %c0_i32 = arith.constant 0 : i32
    %c0_i32_0 = arith.constant 0 : i32
    %c0_i32_1 = arith.constant 0 : i32
    return %c0_i32, %c0_i32_0 : i32, i32
  }
  func.func @transform_11(%arg0: i32) -> (i32, i32) {
    %c0_i32 = arith.constant 0 : i32
    %c0_i32_0 = arith.constant 0 : i32
    %c0_i32_1 = arith.constant 0 : i32
    return %c0_i32, %c0_i32_0 : i32, i32
  }
  func.func @transform_12(%arg0: i32) -> (i32, i32) {
    %c0_i32 = arith.constant 0 : i32
    %c0_i32_0 = arith.constant 0 : i32
    %c0_i32_1 = arith.constant 0 : i32
    return %c0_i32, %c0_i32_0 : i32, i32
  }
  func.func @transform_13(%arg0: i32) -> (i32, i32) {
    %c0_i32 = arith.constant 0 : i32
    %c0_i32_0 = arith.constant 0 : i32
    %c0_i32_1 = arith.constant 0 : i32
    return %c0_i32, %c0_i32_0 : i32, i32
  }
  func.func @transform_14(%arg0: i32) -> (i32, i32) {
    %c0_i32 = arith.constant 0 : i32
    %c0_i32_0 = arith.constant 0 : i32
    %c0_i32_1 = arith.constant 0 : i32
    return %c0_i32, %c0_i32_0 : i32, i32
  }
  func.func @transform_15(%arg0: i32) -> (i32, i32) {
    %c0_i32 = arith.constant 0 : i32
    %c0_i32_0 = arith.constant 0 : i32
    %c0_i32_1 = arith.constant 0 : i32
    return %c0_i32, %c0_i32_0 : i32, i32
  }
  func.func @transform_16(%arg0: i32) -> (i32, i32) {
    %c0_i32 = arith.constant 0 : i32
    %c0_i32_0 = arith.constant 0 : i32
    %c0_i32_1 = arith.constant 0 : i32
    return %c0_i32, %c0_i32_0 : i32, i32
  }
  func.func @transform_17(%arg0: i32) -> (i32, i32) {
    %c0_i32 = arith.constant 0 : i32
    %c0_i32_0 = arith.constant 0 : i32
    return %arg0, %c0_i32 : i32, i32
  }
}

</mosaic_0001>

<bundles_post_ra>
// kernel: rn_forward.1
= control target key start
LH: loop header
LB: loop body
LE: loop exit
PB: predicated region body
PF: predicated region fallthrough
CT: control target
= control target key end

     0   :  { %v22054_v51 = vmov 0   ;;  %vm11108_vm0 = vcmask 1041409   ;;  %vm11110_vm1 = vcmask 1042434   ;;  %vm11112_vm2 = vcmask 1043459   ;;  %s22033_s2 = inlined_call_operand.vmem [shape: bf16[128,128], index: 2, kind: input, shape index: {}]   ;;  %s22034_s0 = inlined_call_operand.vmem [shape: bf16[8,64,128], index: 0, kind: input, shape index: {}]   ;;  %s22035_s4 = inlined_call_operand.vmem [shape: bf16[128,1152], index: 4, kind: input, shape index: {}]   ;;  %s22036_s3 = inlined_call_operand.vmem [shape: f32[1,128], index: 3, kind: input, shape index: {}]   ;;  %s22037_s6 = inlined_call_operand.vmem [shape: bf16[128,4608], index: 6, kind: input, shape index: {}]   ;;  %s22038_s5 = inlined_call_operand.vmem [shape: f32[1,128], index: 5, kind: input, shape index: {}]   ;;  %s22039_s8 = inlined_call_operand.vmem [shape: bf16[128,256], index: 8, kind: input, shape index: {}]   ;;  %s22040_s9 = inlined_call_operand.vmem [shape: bf16[128,128], index: 9, kind: input, shape index: {}]   ;;  %s22041_s7 = inlined_call_operand.vmem [shape: f32[16,128], index: 7, kind: input, shape index: {}]   ;;  %s22042_s1 = inlined_call_operand.vmem [shape: f32[8,128], index: 1, kind: input, shape index: {}]   ;;  %s22043_s10 = inlined_call_operand.vmem [shape: f32[1,128], index: 10, kind: input, shape index: {}]   ;;  %s22044_s11 = inlined_call_operand.vmem [shape: bf16[128,128], index: 11, kind: input, shape index: {}]   ;;  %s22045_s13 = inlined_call_operand.vmem [shape: bf16[128,128], index: 13, kind: input, shape index: {}]   ;;  %s22046_s15 = inlined_call_operand.vmem [shape: bf16[128,128], index: 15, kind: input, shape index: {}]   ;;  %s22047_s12 = inlined_call_operand.vmem [shape: f32[1,128], index: 12, kind: input, shape index: {}]   ;;  %s22048_s14 = inlined_call_operand.vmem [shape: f32[1,128], index: 14, kind: input, shape index: {}]   ;;  %s22049_s16 = inlined_call_operand.vmem [shape: f32[1,128], index: 16, kind: input, shape index: {}]   ;;  %s22050_s17 = inlined_call_operand.vmem [shape: f32[8,128], index: 17, kind: output, shape index: {}]  }
   0x1   :  { %22626 = sst [smem:[#allocation282_spill]] %s22033_s2  ;;  %v13922_v11 = vld [vmem:[%s22035_s4] ss:$36 sps:$4 sm:$0xff]   ;;  %v13927_v13 = vld [vmem:[%s22035_s4 + $0x48] ss:$36 sps:$4 sm:$0xff]   ;;  %1479 = vmatprep.mubr.bf16.mxu1 %v22054_v51  ;;  %vm11114_vm3 = vcmask 1044484  }
   0x2   :  { %22627 = sst [smem:[#allocation283_spill]] %s22034_s0  ;;  %s22628_s26 = sld [smem:[#allocation282_spill]]  ;;  %v13924_v12 = vld [vmem:[%s22035_s4 + $0x4] ss:$36 sps:$4 sm:$0xff]   ;;  %v13929_v14 = vld [vmem:[%s22035_s4 + $0x4c] ss:$36 sps:$4 sm:$0xff]  }
   0x3   :  { %s22629_s20 = sld [smem:[#allocation283_spill]]  ;;  %13870 = vmatprep.subr.bf16.mxu1 %v13924_v12  ;;  %v13934_v17 = vld [vmem:[%s22035_s4 + $0x94] ss:$36 sps:$4 sm:$0xff]   ;;  %v13939_v19 = vld [vmem:[%s22035_s4 + $0xdc] ss:$36 sps:$4 sm:$0xff]   ;;  %vm11116_vm4 = vcmask 1045509  }
   0x4   :  { %13878 = vmatpush1.bf16.msra.mxu1 %v13922_v11  ;;  %v13932_v18 = vld [vmem:[%s22035_s4 + $0x90] ss:$36 sps:$4 sm:$0xff]   ;;  %v13937_v20 = vld [vmem:[%s22035_s4 + $0xd8] ss:$36 sps:$4 sm:$0xff]   ;;  %v13944_v22 = vld [vmem:[%s22035_s4 + $0x124] ss:$36 sps:$4 sm:$0xff]  }
   0x5   :  { %13871 = vmatprep.subr.bf16.mxu1 %v13929_v14  ;;  %v13942_v24 = vld [vmem:[%s22035_s4 + $0x120] ss:$36 sps:$4 sm:$0xff]   ;;  %v13947_v25 = vld [vmem:[%s22035_s4 + $0x16c] ss:$36 sps:$4 sm:$0xff]   ;;  %v13950_v27 = vld [vmem:[%s22035_s4 + $0x1b4] ss:$36 sps:$4 sm:$0xff]  }
   0x6   :  { %v13945_v26 = vld [vmem:[%s22035_s4 + $0x168] ss:$36 sps:$4 sm:$0xff]   ;;  %v13948_v30 = vld [vmem:[%s22035_s4 + $0x1b0] ss:$36 sps:$4 sm:$0xff]   ;;  %v13953_v31 = vld [vmem:[%s22035_s4 + $0x1fc] ss:$36 sps:$4 sm:$0xff]  }
   0x7   :  { %v13951_v32 = vld [vmem:[%s22035_s4 + $0x1f8] ss:$36 sps:$4 sm:$0xff]   ;;  %v13956_v49 = vld [vmem:[%s22035_s4 + $0xc] ss:$36 sps:$4 sm:$0xff]   ;;  %v14799_v58 = vld [vmem:[%s22036_s3] ss:$0 sm:$0xff] }
   0x8   :  { %v13890_v0 = vld [vmem:[%s22628_s26] sm:$0xff]   ;;  %v13891_v1 = vld [vmem:[%s22628_s26 + $0x8] sm:$0xff]   ;;  %v13892_v2 = vld [vmem:[%s22628_s26 + $0x10] sm:$0xff]   ;;  %13879 = vmatpush1.bf16.msra.mxu1 %v13927_v13  ;;  %vm14532_vm5 = vmmov 0   ;;  %vm11118_vm6 = vcmask 1046534   ;;  %vm11120_vm7 = vcmask 1047559  }
   0x9   :  { %13378 = vmatprep.subr.bf16.mxu0 %v13890_v0  ;;  %v13893_v3 = vld [vmem:[%s22628_s26 + $0x18] sm:$0xff]   ;;  %v13898_v4 = vld [vmem:[%s22629_s20] sm:$0xff]   ;;  %v13895_v6 = vld [vmem:[%s22628_s26 + $0x28] sm:$0xff]   ;;  %13872 = vmatprep.subr.bf16.mxu1 %v13934_v17 }
   0xa   :  { %13379 = vmatpush3.bf16.msra.mxu0 %v13890_v0  ;;  %13394 = vmatprep.mubr.bf16.mxu0 %v13898_v4  ;;  %v13894_v5 = vld [vmem:[%s22628_s26 + $0x20] sm:$0xff]   ;;  %v13896_v7 = vld [vmem:[%s22628_s26 + $0x30] sm:$0xff]   ;;  %v13897_v8 = vld [vmem:[%s22628_s26 + $0x38] sm:$0xff]  }
   0xb   :  { %13380 = vmatprep.subr.bf16.mxu0 %v13891_v1  ;;  %v13899_v9 = vld [vmem:[%s22629_s20 + $0x8] sm:$0xff]   ;;  %v13900_v10 = vld [vmem:[%s22629_s20 + $0x10] sm:$0xff]   ;;  %v13901_v15 = vld [vmem:[%s22629_s20 + $0x18] sm:$0xff]  }
   0xc   :  { %v13902_v16 = vld [vmem:[%s22629_s20 + $0x20] sm:$0xff]   ;;  %13880 = vmatpush1.bf16.msra.mxu1 %v13932_v18  ;;  %v13903_v21 = vld [vmem:[%s22629_s20 + $0x28] sm:$0xff]   ;;  %v13904_v23 = vld [vmem:[%s22629_s20 + $0x30] sm:$0xff]  }
   0xd   :  { %13873 = vmatprep.subr.bf16.mxu1 %v13939_v19  ;;  %v13905_v28 = vld [vmem:[%s22629_s20 + $0x38] sm:$0xff]   ;;  %v13906_v29 = vld [vmem:[%s22629_s20 + $0x40] sm:$0xff]   ;;  %v13907_v33 = vld [vmem:[%s22629_s20 + $0x48] sm:$0xff]  }
   0xe   :  { %13381 = vmatpush3.bf16.msra.mxu0 %v13891_v1  ;;  %v13908_v34 = vld [vmem:[%s22629_s20 + $0x50] sm:$0xff]   ;;  %v13909_v35 = vld [vmem:[%s22629_s20 + $0x58] sm:$0xff]   ;;  %v13910_v36 = vld [vmem:[%s22629_s20 + $0x60] sm:$0xff]  }
   0xf   :  { %13382 = vmatprep.subr.bf16.mxu0 %v13892_v2  ;;  %v13911_v37 = vld [vmem:[%s22629_s20 + $0x68] sm:$0xff]   ;;  %v13912_v38 = vld [vmem:[%s22629_s20 + $0x70] sm:$0xff]   ;;  %v13913_v39 = vld [vmem:[%s22629_s20 + $0x78] sm:$0xff]  }
  0x10   :  { %13881 = vmatpush1.bf16.msra.mxu1 %v13937_v20  ;;  %v13914_v40 = vld [vmem:[%s22629_s20 + $0x80] sm:$0xff]   ;;  %v13915_v41 = vld [vmem:[%s22629_s20 + $0x88] sm:$0xff]   ;;  %v13916_v42 = vld [vmem:[%s22629_s20 + $0x90] sm:$0xff]  }
  0x11   :  { %13874 = vmatprep.subr.bf16.mxu1 %v13944_v22  ;;  %v13917_v43 = vld [vmem:[%s22629_s20 + $0x98] sm:$0xff]   ;;  %v13918_v44 = vld [vmem:[%s22629_s20 + $0xa0] sm:$0xff]   ;;  %v13919_v45 = vld [vmem:[%s22629_s20 + $0xa8] sm:$0xff]  }
  0x12   :  { %13383 = vmatpush3.bf16.msra.mxu0 %v13892_v2  ;;  %v13920_v46 = vld [vmem:[%s22629_s20 + $0xb0] sm:$0xff]   ;;  %v13921_v47 = vld [vmem:[%s22629_s20 + $0xb8] sm:$0xff]   ;;  %v13925_v48 = vld [vmem:[%s22629_s20 + $0xc0] sm:$0xff]  }
  0x13   :  { %13384 = vmatprep.subr.bf16.mxu0 %v13893_v3  ;;  %v13926_v50 = vld [vmem:[%s22629_s20 + $0xc8] sm:$0xff]   ;;  %v13930_v52 = vld [vmem:[%s22629_s20 + $0xd0] sm:$0xff]   ;;  %v13931_v53 = vld [vmem:[%s22629_s20 + $0xd8] sm:$0xff]  }
  0x14   :  { %13882 = vmatpush1.bf16.msra.mxu1 %v13942_v24  ;;  %v13935_v54 = vld [vmem:[%s22629_s20 + $0xe0] sm:$0xff]   ;;  %v13936_v55 = vld [vmem:[%s22629_s20 + $0xe8] sm:$0xff]   ;;  %v13940_v56 = vld [vmem:[%s22629_s20 + $0xf0] sm:$0xff]  }
  0x15   :  { %13875 = vmatprep.subr.bf16.mxu1 %v13947_v25  ;;  %v13941_v57 = vld [vmem:[%s22629_s20 + $0xf8] sm:$0xff]  }
  0x16   :  { %13385 = vmatpush3.bf16.msra.mxu0 %v13893_v3 }
  0x17   :  { %13386 = vmatprep.subr.bf16.mxu0 %v13894_v5 }
  0x18   :  { %13883 = vmatpush1.bf16.msra.mxu1 %v13945_v26 }
  0x19   :  { %13876 = vmatprep.subr.bf16.mxu1 %v13950_v27 }
  0x1a   :  { %13387 = vmatpush3.bf16.msra.mxu0 %v13894_v5 }
  0x1b   :  { %13388 = vmatprep.subr.bf16.mxu0 %v13895_v6 }
  0x1c   :  { %13884 = vmatpush1.bf16.msra.mxu1 %v13948_v30 }
  0x1d   :  { %13877 = vmatprep.subr.bf16.mxu1 %v13953_v31 }
  0x1e   :  { %13389 = vmatpush3.bf16.msra.mxu0 %v13895_v6 }
  0x1f   :  { %13390 = vmatprep.subr.bf16.mxu0 %v13896_v7 }
  0x20   :  { %13885 = vmatpush1.bf16.msra.mxu1 %v13951_v32 }
  0x22   :  { %13391 = vmatpush3.bf16.msra.mxu0 %v13896_v7 }
  0x23   :  { %13392 = vmatprep.subr.bf16.mxu0 %v13897_v8 }
  0x26   :  { %13393 = vmatpush3.bf16.msra.mxu0 %v13897_v8  ;;  %v13954_v8 = vld [vmem:[%s22035_s4 + $0x8] ss:$36 sps:$4 sm:$0xff]  }
  0x27   :  { %1217 = vmatprep.subr.bf16.mxu0 %v13924_v12  ;;  %v13974_v12 = vld [vmem:[%s22035_s4 + $0x14] ss:$36 sps:$4 sm:$0xff]  }
  0x28   :  { %1923 = vmatprep.subr.bf16.mxu1 %v13974_v12 }
  0x29   :  { %13395 = vmatmul.mubr.bf16.vlgmr.msra.gmra.mrb[0].mxu0 %v13899_v9 }
  0x2a   :  { %13398 = vmatprep.mubr.bf16.mxu0 %v13900_v10  ;;  %1218 = vmatpush1.bf16.msra.mxu0 %v13922_v11  ;;  %v13959_v11 = vld [vmem:[%s22035_s4 + $0x54] ss:$36 sps:$4 sm:$0xff]  }
  0x2b   :  { %1219 = vmatprep.subr.bf16.mxu0 %v13929_v14 }
  0x2e   :  { %1220 = vmatpush1.bf16.msra.mxu0 %v13927_v13 }
  0x2f   :  { %1221 = vmatprep.subr.bf16.mxu0 %v13934_v17 }
  0x31   :  { %13399 = vmatmul.mubr.bf16.gmra.mrb[4].mxu0 %v13901_v15 }
  0x32   :  { %13402 = vmatprep.mubr.bf16.mxu0 %v13902_v16  ;;  %1222 = vmatpush1.bf16.msra.mxu0 %v13932_v18 }
  0x33   :  { %1223 = vmatprep.subr.bf16.mxu0 %v13939_v19 }
  0x36   :  { %1224 = vmatpush1.bf16.msra.mxu0 %v13937_v20  ;;  %v13957_v20 = vld [vmem:[%s22035_s4 + $0x50] ss:$36 sps:$4 sm:$0xff]  }
  0x37   :  { %1225 = vmatprep.subr.bf16.mxu0 %v13944_v22 }
  0x39   :  { %13403 = vmatmul.mubr.bf16.gmra.mrb[8].mxu0 %v13903_v21 }
  0x3a   :  { %13406 = vmatprep.mubr.bf16.mxu0 %v13904_v23  ;;  %1226 = vmatpush1.bf16.msra.mxu0 %v13942_v24  ;;  %v13962_v23 = vld [vmem:[%s22035_s4 + $0x9c] ss:$36 sps:$4 sm:$0xff]  }
  0x3b   :  { %1227 = vmatprep.subr.bf16.mxu0 %v13947_v25 }
  0x3e   :  { %1228 = vmatpush1.bf16.msra.mxu0 %v13945_v26 }
  0x3f   :  { %1229 = vmatprep.subr.bf16.mxu0 %v13950_v27  ;;  %v13960_v27 = vld [vmem:[%s22035_s4 + $0x98] ss:$36 sps:$4 sm:$0xff]  }
  0x41   :  { %13407 = vmatmul.mubr.bf16.gmra.mrb[12].mxu0 %v13905_v28 }
  0x42   :  { %13410 = vmatprep.mubr.bf16.mxu0 %v13906_v29  ;;  %1230 = vmatpush1.bf16.msra.mxu0 %v13948_v30  ;;  %v13965_v30 = vld [vmem:[%s22035_s4 + $0xe4] ss:$36 sps:$4 sm:$0xff]  }
  0x43   :  { %1231 = vmatprep.subr.bf16.mxu0 %v13953_v31 }
  0x46   :  { %1232 = vmatpush1.bf16.msra.mxu0 %v13951_v32 }
  0x47   :  { %1570 = vmatprep.subr.bf16.mxu0 %v13956_v49 }
  0x49   :  { %13411 = vmatmul.mubr.bf16.gmra.mrb[16].mxu0 %v13907_v33 }
  0x4a   :  { %13414 = vmatprep.mubr.bf16.mxu0 %v13908_v34 }
  0x51   :  { %13415 = vmatmul.mubr.bf16.gmra.mrb[20].mxu0 %v13909_v35 }
  0x52   :  { %13418 = vmatprep.mubr.bf16.mxu0 %v13910_v36 }
  0x59   :  { %13419 = vmatmul.mubr.bf16.gmra.mrb[24].mxu0 %v13911_v37 }
  0x5a   :  { %13422 = vmatprep.mubr.bf16.mxu0 %v13912_v38  ;;  %v13963_v38 = vld [vmem:[%s22035_s4 + $0xe0] ss:$36 sps:$4 sm:$0xff]  }
  0x61   :  { %13423 = vmatmul.mubr.bf16.gmra.mrb[28].mxu0 %v13913_v39 }
  0x62   :  { %13426 = vmatprep.mubr.bf16.mxu0 %v13914_v40 }
  0x69   :  { %13427 = vmatmul.mubr.bf16.gmra.mrb[32].mxu0 %v13915_v41  ;;  %v13968_v41 = vld [vmem:[%s22035_s4 + $0x12c] ss:$36 sps:$4 sm:$0xff]  }
  0x6a   :  { %13430 = vmatprep.mubr.bf16.mxu0 %v13916_v42 }
  0x71   :  { %13431 = vmatmul.mubr.bf16.gmra.mrb[36].mxu0 %v13917_v43 }
  0x72   :  { %13434 = vmatprep.mubr.bf16.mxu0 %v13918_v44 }
  0x79   :  { %13435 = vmatmul.mubr.bf16.gmra.mrb[40].mxu0 %v13919_v45  ;;  %v13966_v45 = vld [vmem:[%s22035_s4 + $0x128] ss:$36 sps:$4 sm:$0xff]  }
  0x7a   :  { %13438 = vmatprep.mubr.bf16.mxu0 %v13920_v46 }
  0x81   :  { %13439 = vmatmul.mubr.bf16.gmra.mrb[44].mxu0 %v13921_v47 }
  0x82   :  { %13442 = vmatprep.mubr.bf16.mxu0 %v13925_v48  ;;  %v13971_v48 = vld [vmem:[%s22035_s4 + $0x174] ss:$36 sps:$4 sm:$0xff]  }
  0x89   :  { %13443 = vmatmul.mubr.bf16.gmra.mrb[48].mxu0 %v13926_v50 }
  0x8a   :  { %13446 = vmatprep.mubr.bf16.mxu0 %v13930_v52 }
  0x91   :  { %13447 = vmatmul.mubr.bf16.gmra.mrb[52].mxu0 %v13931_v53 }
  0x92   :  { %13450 = vmatprep.mubr.bf16.mxu0 %v13935_v54 }
  0x99   :  { %13451 = vmatmul.mubr.bf16.gmra.mrb[56].mxu0 %v13936_v55 }
  0x9a   :  { %13454 = vmatprep.mubr.bf16.mxu0 %v13940_v56 }
  0xa1   :  { %13455 = vmatmul.mubr.bf16.gmra.mrb[60].mxu0 %v13941_v57  ;;  %v13969_v57 = vld [vmem:[%s22035_s4 + $0x170] ss:$36 sps:$4 sm:$0xff]  }
  0xa2   :  { %1249 = vmatprep.mubr.bf16.mxu0 %v22054_v51 }
  0xfc   :  { %v13396_v59 = vpop.f32.mrb[0].mxu0 }
  0xfd   :  { %v427_v60 = vadd.f32 %v13396_v59, %v14799_v58  ;;  %v418_v61 = vpop.f32.mrb[1].mxu0 }
  0xfe   :  { %v419_v62 = vadd.f32 %v14799_v58, %v418_v61  ;;  %v13397_v63 = vpop.f32.mrb[2].mxu0  ;;  %v13983_v61 = vld [vmem:[%s22035_s4 + $0x1bc] ss:$36 sps:$4 sm:$0xff]  }
  0xff   :  { %v430_v0 = vadd.f32 %v13397_v63, %v14799_v58  ;;  %v421_v1 = vpop.f32.mrb[3].mxu0  ;;  %v675_v3 = vmax.f32 %v427_v60, 0.0 }
 0x100   :  { %v422_v2 = vadd.f32 %v14799_v58, %v421_v1  ;;  %v673_v5 = vmax.f32 %v419_v62, 0.0  ;;  %v13981_v1 = vld [vmem:[%s22035_s4 + $0x1b8] ss:$36 sps:$4 sm:$0xff]  }
 0x101   :  { %v676_v4 = vmax.f32 %v430_v0, 0.0 }
 0x102   :  { %v674_v6 = vmax.f32 %v422_v2, 0.0 }
 0x103   :  { %v14805_v7 = vpack.c.bf16 %v676_v4, %v675_v3 }
 0x104   :  { %v14810_v9 = vpack.c.bf16 %v674_v6, %v673_v5  ;;  %v13400_v10 = vpop.f32.mrb[4].mxu0 }
 0x105   :  { %v443_v13 = vadd.f32 %v13400_v10, %v14799_v58  ;;  %v434_v14 = vpop.f32.mrb[5].mxu0 }
 0x106   :  { %1250 = vmatmul.mubr.bf16.vlgmr.msra.gmra.mrb[64].mxu0 %v14810_v9  ;;  %v435_v15 = vadd.f32 %v14799_v58, %v434_v14  ;;  %v13401_v16 = vpop.f32.mrb[6].mxu0 }
 0x107   :  { %1571 = vmatpush1.bf16.msra.mxu0 %v13954_v8  ;;  %v679_v17 = vmax.f32 %v443_v13, 0.0  ;;  %v446_v18 = vadd.f32 %v13401_v16, %v14799_v58  ;;  %v437_v19 = vpop.f32.mrb[7].mxu0  ;;  %1259 = vmatprep.mubr.bf16.mxu0 %v22054_v51 }
 0x108   :  { %v677_v21 = vmax.f32 %v435_v15, 0.0  ;;  %v438_v22 = vadd.f32 %v14799_v58, %v437_v19  ;;  %1572 = vmatprep.subr.bf16.mxu0 %v13959_v11 }
 0x109   :  { %v680_v24 = vmax.f32 %v446_v18, 0.0 }
 0x10a   :  { %v678_v25 = vmax.f32 %v438_v22, 0.0 }
 0x10b   :  { %v14830_v26 = vpack.c.bf16 %v680_v24, %v679_v17  ;;  %1573 = vmatpush1.bf16.msra.mxu0 %v13957_v20  ;;  %v13999_v24 = vld [vmem:[%s22035_s4 + $0x200] ss:$36 sps:$4 sm:$0xff]  }
 0x10c   :  { %v14835_v28 = vpack.c.bf16 %v678_v25, %v677_v21  ;;  %v13404_v29 = vpop.f32.mrb[8].mxu0  ;;  %1574 = vmatprep.subr.bf16.mxu0 %v13962_v23  ;;  %v14001_v25 = vld [vmem:[%s22035_s4 + $0x204] ss:$36 sps:$4 sm:$0xff]  }
 0x10d   :  { %v459_v31 = vadd.f32 %v13404_v29, %v14799_v58  ;;  %v450_v32 = vpop.f32.mrb[9].mxu0 }
 0x10e   :  { %1260 = vmatmul.mubr.bf16.gmra.mrb[68].mxu0 %v14805_v7  ;;  %v451_v33 = vadd.f32 %v14799_v58, %v450_v32  ;;  %v13405_v34 = vpop.f32.mrb[10].mxu0 }
 0x10f   :  { %1269 = vmatprep.mubr.bf16.mxu0 %v22054_v51  ;;  %v683_v35 = vmax.f32 %v459_v31, 0.0  ;;  %v462_v36 = vadd.f32 %v13405_v34, %v14799_v58  ;;  %v453_v37 = vpop.f32.mrb[11].mxu0  ;;  %1575 = vmatpush1.bf16.msra.mxu0 %v13960_v27 }
 0x110   :  { %v681_v39 = vmax.f32 %v451_v33, 0.0  ;;  %v454_v40 = vadd.f32 %v14799_v58, %v453_v37  ;;  %1576 = vmatprep.subr.bf16.mxu0 %v13965_v30 }
 0x111   :  { %v684_v42 = vmax.f32 %v462_v36, 0.0 }
 0x112   :  { %v682_v43 = vmax.f32 %v454_v40, 0.0 }
 0x113   :  { %v14852_v44 = vpack.c.bf16 %v684_v42, %v683_v35  ;;  %1577 = vmatpush1.bf16.msra.mxu0 %v13963_v38 }
 0x114   :  { %v14857_v46 = vpack.c.bf16 %v682_v43, %v681_v39  ;;  %v13408_v47 = vpop.f32.mrb[12].mxu0  ;;  %1578 = vmatprep.subr.bf16.mxu0 %v13968_v41 }
 0x115   :  { %v475_v49 = vadd.f32 %v13408_v47, %v14799_v58  ;;  %v466_v50 = vpop.f32.mrb[13].mxu0 }
 0x116   :  { %1270 = vmatmul.mubr.bf16.gmra.mrb[72].mxu0 %v14835_v28  ;;  %v467_v52 = vadd.f32 %v14799_v58, %v466_v50  ;;  %v13409_v53 = vpop.f32.mrb[14].mxu0 }
 0x117   :  { %1279 = vmatprep.mubr.bf16.mxu0 %v22054_v51  ;;  %v687_v54 = vmax.f32 %v475_v49, 0.0  ;;  %v478_v55 = vadd.f32 %v13409_v53, %v14799_v58  ;;  %v469_v56 = vpop.f32.mrb[15].mxu0  ;;  %1579 = vmatpush1.bf16.msra.mxu0 %v13966_v45 }
 0x118   :  { %v685_v59 = vmax.f32 %v467_v52, 0.0  ;;  %v470_v60 = vadd.f32 %v14799_v58, %v469_v56  ;;  %1580 = vmatprep.subr.bf16.mxu0 %v13971_v48 }
 0x119   :  { %v688_v62 = vmax.f32 %v478_v55, 0.0 }
 0x11a   :  { %v686_v63 = vmax.f32 %v470_v60, 0.0 }
 0x11b   :  { %v14874_v0 = vpack.c.bf16 %v688_v62, %v687_v54  ;;  %1581 = vmatpush1.bf16.msra.mxu0 %v13969_v57 }
 0x11c   :  { %v14879_v2 = vpack.c.bf16 %v686_v63, %v685_v59  ;;  %v13412_v3 = vpop.f32.mrb[16].mxu0  ;;  %1582 = vmatprep.subr.bf16.mxu0 %v13983_v61  ;;  %v14004_v63 = vld [vmem:[%s22035_s4 + $0x1c] ss:$36 sps:$4 sm:$0xff]  }
 0x11d   :  { %v491_v4 = vadd.f32 %v13412_v3, %v14799_v58  ;;  %v482_v5 = vpop.f32.mrb[17].mxu0 }
 0x11e   :  { %1280 = vmatmul.mubr.bf16.gmra.mrb[76].mxu0 %v14830_v26  ;;  %v483_v6 = vadd.f32 %v14799_v58, %v482_v5  ;;  %v13413_v8 = vpop.f32.mrb[18].mxu0 }
 0x11f   :  { %1289 = vmatprep.mubr.bf16.mxu0 %v22054_v51  ;;  %v691_v10 = vmax.f32 %v491_v4, 0.0  ;;  %v494_v11 = vadd.f32 %v13413_v8, %v14799_v58  ;;  %v485_v12 = vpop.f32.mrb[19].mxu0  ;;  %1583 = vmatpush1.bf16.msra.mxu0 %v13981_v1 }
 0x120   :  { %v689_v13 = vmax.f32 %v483_v6, 0.0  ;;  %v486_v14 = vadd.f32 %v14799_v58, %v485_v12  ;;  %1584 = vmatprep.subr.bf16.mxu0 %v14001_v25 }
 0x121   :  { %v692_v15 = vmax.f32 %v494_v11, 0.0 }
 0x122   :  { %v690_v16 = vmax.f32 %v486_v14, 0.0 }
 0x123   :  { %v14887_v17 = vpack.c.bf16 %v692_v15, %v691_v10  ;;  %1585 = vmatpush1.bf16.msra.mxu0 %v13999_v24 }
 0x124   :  { %v14889_v18 = vpack.c.bf16 %v690_v16, %v689_v13  ;;  %v13416_v19 = vpop.f32.mrb[20].mxu0  ;;  %2276 = vmatprep.subr.bf16.mxu0 %v14004_v63 }
 0x125   :  { %22630 = vst [vmem:[#allocation2_spill] sm:$0xff] %v14887_v17  ;;  %v507_v20 = vadd.f32 %v13416_v19, %v14799_v58  ;;  %v498_v21 = vpop.f32.mrb[21].mxu0 }
 0x126   :  { %1290 = vmatmul.mubr.bf16.gmra.mrb[80].mxu0 %v14857_v46  ;;  %v499_v22 = vadd.f32 %v14799_v58, %v498_v21  ;;  %v13417_v23 = vpop.f32.mrb[22].mxu0 }
 0x127   :  { %1299 = vmatprep.mubr.bf16.mxu0 %v22054_v51  ;;  %v695_v27 = vmax.f32 %v507_v20, 0.0  ;;  %v510_v29 = vadd.f32 %v13417_v23, %v14799_v58  ;;  %v501_v30 = vpop.f32.mrb[23].mxu0 }
 0x128   :  { %v693_v31 = vmax.f32 %v499_v22, 0.0  ;;  %v502_v32 = vadd.f32 %v14799_v58, %v501_v30 }
 0x129   :  { %v696_v33 = vmax.f32 %v510_v29, 0.0 }
 0x12a   :  { %v694_v34 = vmax.f32 %v502_v32, 0.0 }
 0x12b   :  { %v14903_v35 = vpack.c.bf16 %v696_v33, %v695_v27 }
 0x12c   :  { %v14905_v36 = vpack.c.bf16 %v694_v34, %v693_v31  ;;  %v13420_v37 = vpop.f32.mrb[24].mxu0 }
 0x12d   :  { %22631 = vst [vmem:[#allocation3_spill] sm:$0xff] %v14903_v35  ;;  %v523_v38 = vadd.f32 %v13420_v37, %v14799_v58  ;;  %v514_v39 = vpop.f32.mrb[25].mxu0 }
 0x12e   :  { %22632 = vst [vmem:[#allocation4_spill] sm:$0xff] %v14905_v36  ;;  %1300 = vmatmul.mubr.bf16.gmra.mrb[84].mxu0 %v14852_v44  ;;  %v515_v40 = vadd.f32 %v14799_v58, %v514_v39  ;;  %v13421_v41 = vpop.f32.mrb[26].mxu0 }
 0x12f   :  { %1309 = vmatprep.mubr.bf16.mxu0 %v22054_v51  ;;  %v699_v42 = vmax.f32 %v523_v38, 0.0  ;;  %v526_v43 = vadd.f32 %v13421_v41, %v14799_v58  ;;  %v517_v45 = vpop.f32.mrb[27].mxu0 }
 0x130   :  { %v697_v47 = vmax.f32 %v515_v40, 0.0  ;;  %v518_v48 = vadd.f32 %v14799_v58, %v517_v45 }
 0x131   :  { %v700_v49 = vmax.f32 %v526_v43, 0.0 }
 0x132   :  { %v698_v50 = vmax.f32 %v518_v48, 0.0 }
 0x133   :  { %v14913_v52 = vpack.c.bf16 %v700_v49, %v699_v42 }
 0x134   :  { %v14915_v53 = vpack.c.bf16 %v698_v50, %v697_v47  ;;  %v13424_v54 = vpop.f32.mrb[28].mxu0 }
 0x135   :  { %22633 = vst [vmem:[#allocation5_spill] sm:$0xff] %v14913_v52  ;;  %v539_v55 = vadd.f32 %v13424_v54, %v14799_v58  ;;  %v530_v56 = vpop.f32.mrb[29].mxu0 }
 0x136   :  { %22634 = vst [vmem:[#allocation6_spill] sm:$0xff] %v14915_v53  ;;  %1310 = vmatmul.mubr.bf16.gmra.mrb[88].mxu0 %v14879_v2  ;;  %v531_v57 = vadd.f32 %v14799_v58, %v530_v56  ;;  %v13425_v59 = vpop.f32.mrb[30].mxu0 }
 0x137   :  { %1319 = vmatprep.mubr.bf16.mxu0 %v22054_v51  ;;  %v703_v60 = vmax.f32 %v539_v55, 0.0  ;;  %v542_v61 = vadd.f32 %v13425_v59, %v14799_v58  ;;  %v533_v62 = vpop.f32.mrb[31].mxu0 }
 0x138   :  { %v701_v1 = vmax.f32 %v531_v57, 0.0  ;;  %v534_v3 = vadd.f32 %v14799_v58, %v533_v62 }
 0x139   :  { %v704_v4 = vmax.f32 %v542_v61, 0.0 }
 0x13a   :  { %v702_v5 = vmax.f32 %v534_v3, 0.0 }
 0x13b   :  { %v14926_v6 = vpack.c.bf16 %v704_v4, %v703_v60 }
 0x13c   :  { %v14928_v8 = vpack.c.bf16 %v702_v5, %v701_v1  ;;  %v13428_v10 = vpop.f32.mrb[32].mxu0 }
 0x13d   :  { %22635 = vst [vmem:[#allocation7_spill] sm:$0xff] %v14926_v6  ;;  %v555_v11 = vadd.f32 %v13428_v10, %v14799_v58  ;;  %v546_v12 = vpop.f32.mrb[33].mxu0 }
 0x13e   :  { %22636 = vst [vmem:[#allocation8_spill] sm:$0xff] %v14928_v8  ;;  %1320 = vmatmul.mubr.bf16.gmra.mrb[92].mxu0 %v14874_v0  ;;  %v547_v13 = vadd.f32 %v14799_v58, %v546_v12  ;;  %v13429_v14 = vpop.f32.mrb[34].mxu0 }
 0x13f   :  { %1329 = vmatprep.mubr.bf16.mxu0 %v22054_v51  ;;  %v707_v15 = vmax.f32 %v555_v11, 0.0  ;;  %v558_v16 = vadd.f32 %v13429_v14, %v14799_v58  ;;  %v549_v19 = vpop.f32.mrb[35].mxu0 }
 0x140   :  { %v705_v20 = vmax.f32 %v547_v13, 0.0  ;;  %v550_v21 = vadd.f32 %v14799_v58, %v549_v19 }
 0x141   :  { %v708_v22 = vmax.f32 %v558_v16, 0.0 }
 0x142   :  { %v706_v23 = vmax.f32 %v550_v21, 0.0  ;;  %v13972_v21 = vld [vmem:[%s22035_s4 + $0x10] ss:$36 sps:$4 sm:$0xff]  }
 0x143   :  { %v14936_v24 = vpack.c.bf16 %v708_v22, %v707_v15 }
 0x144   :  { %v14938_v25 = vpack.c.bf16 %v706_v23, %v705_v20  ;;  %v13432_v27 = vpop.f32.mrb[36].mxu0 }
 0x145   :  { %22637 = vst [vmem:[#allocation9_spill] sm:$0xff] %v14936_v24  ;;  %v571_v29 = vadd.f32 %v13432_v27, %v14799_v58  ;;  %v562_v30 = vpop.f32.mrb[37].mxu0  ;;  %v13977_v27 = vld [vmem:[%s22035_s4 + $0x5c] ss:$36 sps:$4 sm:$0xff]  }
 0x146   :  { %22638 = vst [vmem:[#allocation10_spill] sm:$0xff] %v14938_v25  ;;  %1330 = vmatmul.mubr.bf16.gmra.mrb[96].mxu0 %v14889_v18  ;;  %v563_v31 = vadd.f32 %v14799_v58, %v562_v30  ;;  %v13433_v32 = vpop.f32.mrb[38].mxu0 }
 0x147   :  { %v711_v33 = vmax.f32 %v571_v29, 0.0  ;;  %1339 = vmatprep.mubr.bf16.mxu0 %v22054_v51  ;;  %v574_v34 = vadd.f32 %v13433_v32, %v14799_v58  ;;  %v565_v37 = vpop.f32.mrb[39].mxu0 }
 0x148   :  { %v709_v38 = vmax.f32 %v563_v31, 0.0  ;;  %v566_v39 = vadd.f32 %v14799_v58, %v565_v37 }
 0x149   :  { %v712_v40 = vmax.f32 %v574_v34, 0.0 }
 0x14a   :  { %v710_v41 = vmax.f32 %v566_v39, 0.0 }
 0x14b   :  { %v14946_v42 = vpack.c.bf16 %v712_v40, %v711_v33 }
 0x14c   :  { %v14948_v43 = vpack.c.bf16 %v710_v41, %v709_v38  ;;  %v13436_v45 = vpop.f32.mrb[40].mxu0  ;;  %v13975_v38 = vld [vmem:[%s22035_s4 + $0x58] ss:$36 sps:$4 sm:$0xff]   ;;  %v13980_v41 = vld [vmem:[%s22035_s4 + $0xa4] ss:$36 sps:$4 sm:$0xff]  }
 0x14d   :  { %22639 = vst [vmem:[#allocation11_spill] sm:$0xff] %v14946_v42  ;;  %v587_v47 = vadd.f32 %v13436_v45, %v14799_v58  ;;  %v578_v48 = vpop.f32.mrb[41].mxu0 }
 0x14e   :  { %22640 = vst [vmem:[#allocation12_spill] sm:$0xff] %v14948_v43  ;;  %1340 = vmatmul.mubr.bf16.gmra.mrb[100].mxu0 %v14887_v17  ;;  %v579_v49 = vadd.f32 %v14799_v58, %v578_v48  ;;  %v13437_v50 = vpop.f32.mrb[42].mxu0 }
 0x14f   :  { %v715_v54 = vmax.f32 %v587_v47, 0.0  ;;  %v590_v55 = vadd.f32 %v13437_v50, %v14799_v58  ;;  %v581_v56 = vpop.f32.mrb[43].mxu0  ;;  %1349 = vmatprep.mubr.bf16.mxu0 %v22054_v51 }
 0x150   :  { %v713_v57 = vmax.f32 %v579_v49, 0.0  ;;  %v582_v59 = vadd.f32 %v14799_v58, %v581_v56 }
 0x151   :  { %v716_v60 = vmax.f32 %v590_v55, 0.0 }
 0x152   :  { %v714_v61 = vmax.f32 %v582_v59, 0.0 }
 0x153   :  { %v14956_v62 = vpack.c.bf16 %v716_v60, %v715_v54  ;;  %v13978_v54 = vld [vmem:[%s22035_s4 + $0xa0] ss:$36 sps:$4 sm:$0xff]  }
 0x154   :  { %v14958_v63 = vpack.c.bf16 %v714_v61, %v713_v57  ;;  %v13440_v1 = vpop.f32.mrb[44].mxu0  ;;  %v13986_v57 = vld [vmem:[%s22035_s4 + $0xec] ss:$36 sps:$4 sm:$0xff]  }
 0x155   :  { %22641 = vst [vmem:[#allocation13_spill] sm:$0xff] %v14956_v62  ;;  %v603_v3 = vadd.f32 %v13440_v1, %v14799_v58  ;;  %v594_v4 = vpop.f32.mrb[45].mxu0 }
 0x156   :  { %22642 = vst [vmem:[#allocation14_spill] sm:$0xff] %v14958_v63  ;;  %v595_v5 = vadd.f32 %v14799_v58, %v594_v4  ;;  %1350 = vmatmul.mubr.bf16.gmra.mrb[104].mxu0 %v14905_v36  ;;  %v13441_v10 = vpop.f32.mrb[46].mxu0 }
 0x157   :  { %v719_v11 = vmax.f32 %v603_v3, 0.0  ;;  %v606_v12 = vadd.f32 %v13441_v10, %v14799_v58  ;;  %v597_v13 = vpop.f32.mrb[47].mxu0  ;;  %1359 = vmatprep.mubr.bf16.mxu0 %v22054_v51  ;;  %v13984_v10 = vld [vmem:[%s22035_s4 + $0xe8] ss:$36 sps:$4 sm:$0xff]  }
 0x158   :  { %v717_v14 = vmax.f32 %v595_v5, 0.0  ;;  %v598_v15 = vadd.f32 %v14799_v58, %v597_v13 }
 0x159   :  { %v720_v16 = vmax.f32 %v606_v12, 0.0  ;;  %v13989_v12 = vld [vmem:[%s22035_s4 + $0x134] ss:$36 sps:$4 sm:$0xff]  }
 0x15a   :  { %v718_v19 = vmax.f32 %v598_v15, 0.0 }
 0x15b   :  { %v14966_v20 = vpack.c.bf16 %v720_v16, %v719_v11 }
 0x15c   :  { %v14971_v22 = vpack.c.bf16 %v718_v19, %v717_v14  ;;  %v13444_v23 = vpop.f32.mrb[48].mxu0  ;;  %v13987_v19 = vld [vmem:[%s22035_s4 + $0x130] ss:$36 sps:$4 sm:$0xff]  }
 0x15d   :  { %22643 = vst [vmem:[#allocation15_spill] sm:$0xff] %v14966_v20  ;;  %v619_v29 = vadd.f32 %v13444_v23, %v14799_v58  ;;  %v610_v30 = vpop.f32.mrb[49].mxu0  ;;  %1480 = vmatmul.mubr.bf16.vlgmr.msra.gmra.mrb[0].mxu1 %v14966_v20 }
 0x15e   :  { %22644 = vst [vmem:[#allocation16_spill] sm:$0xff] %v14971_v22  ;;  %v611_v31 = vadd.f32 %v14799_v58, %v610_v30  ;;  %v13445_v32 = vpop.f32.mrb[50].mxu0  ;;  %1360 = vmatmul.mubr.bf16.gmra.mrb[108].mxu0 %v14903_v35  ;;  %1489 = vmatprep.mubr.bf16.mxu1 %v22054_v51 }
 0x15f   :  { %v723_v33 = vmax.f32 %v619_v29, 0.0  ;;  %v622_v34 = vadd.f32 %v13445_v32, %v14799_v58  ;;  %v613_v37 = vpop.f32.mrb[51].mxu0  ;;  %1369 = vmatprep.mubr.bf16.mxu0 %v22054_v51  ;;  %1924 = vmatpush1.bf16.msra.mxu1 %v13972_v21 }
 0x160   :  { %v721_v39 = vmax.f32 %v611_v31, 0.0  ;;  %v614_v40 = vadd.f32 %v14799_v58, %v613_v37  ;;  %1925 = vmatprep.subr.bf16.mxu1 %v13977_v27  ;;  %v13992_v27 = vld [vmem:[%s22035_s4 + $0x17c] ss:$36 sps:$4 sm:$0xff]  }
 0x161   :  { %v724_v45 = vmax.f32 %v622_v34, 0.0 }
 0x162   :  { %v722_v47 = vmax.f32 %v614_v40, 0.0  ;;  %v13995_v40 = vld [vmem:[%s22035_s4 + $0x1c4] ss:$36 sps:$4 sm:$0xff]  }
 0x163   :  { %v14990_v48 = vpack.c.bf16 %v724_v45, %v723_v33  ;;  %1926 = vmatpush1.bf16.msra.mxu1 %v13975_v38  ;;  %v13990_v38 = vld [vmem:[%s22035_s4 + $0x178] ss:$36 sps:$4 sm:$0xff]  }
 0x164   :  { %v14992_v49 = vpack.c.bf16 %v722_v47, %v721_v39  ;;  %v13448_v50 = vpop.f32.mrb[52].mxu0  ;;  %1927 = vmatprep.subr.bf16.mxu1 %v13980_v41 }
 0x165   :  { %22645 = vst [vmem:[#allocation17_spill] sm:$0xff] %v14990_v48  ;;  %v635_v55 = vadd.f32 %v13448_v50, %v14799_v58  ;;  %v626_v56 = vpop.f32.mrb[53].mxu0 }
 0x166   :  { %22646 = vst [vmem:[#allocation18_spill] sm:$0xff] %v14992_v49  ;;  %1370 = vmatmul.mubr.bf16.gmra.mrb[112].mxu0 %v14915_v53  ;;  %1490 = vmatmul.mubr.bf16.gmra.mrb[4].mxu1 %v14992_v49  ;;  %v627_v59 = vadd.f32 %v14799_v58, %v626_v56  ;;  %v13449_v60 = vpop.f32.mrb[54].mxu0 }
 0x167   :  { %v727_v61 = vmax.f32 %v635_v55, 0.0  ;;  %1379 = vmatprep.mubr.bf16.mxu0 %v22054_v51  ;;  %1499 = vmatprep.mubr.bf16.mxu1 %v22054_v51  ;;  %v638_v1 = vadd.f32 %v13449_v60, %v14799_v58  ;;  %v629_v3 = vpop.f32.mrb[55].mxu0 }
 0x168   :  { %v725_v4 = vmax.f32 %v627_v59, 0.0  ;;  %v630_v5 = vadd.f32 %v14799_v58, %v629_v3  ;;  %1928 = vmatpush1.bf16.msra.mxu1 %v13978_v54  ;;  %v13993_v54 = vld [vmem:[%s22035_s4 + $0x1c0] ss:$36 sps:$4 sm:$0xff]  }
 0x169   :  { %v728_v11 = vmax.f32 %v638_v1, 0.0  ;;  %1929 = vmatprep.subr.bf16.mxu1 %v13986_v57  ;;  %v13998_v57 = vld [vmem:[%s22035_s4 + $0x20c] ss:$36 sps:$4 sm:$0xff]  }
 0x16a   :  { %v726_v13 = vmax.f32 %v630_v5, 0.0 }
 0x16b   :  { %v15014_v14 = vpack.c.bf16 %v728_v11, %v727_v61 }
 0x16c   :  { %v15016_v15 = vpack.c.bf16 %v726_v13, %v725_v4  ;;  %v13452_v16 = vpop.f32.mrb[56].mxu0  ;;  %1930 = vmatpush1.bf16.msra.mxu1 %v13984_v10  ;;  %v13996_v10 = vld [vmem:[%s22035_s4 + $0x208] ss:$36 sps:$4 sm:$0xff]  }
 0x16d   :  { %v651_v21 = vadd.f32 %v13452_v16, %v14799_v58  ;;  %v642_v23 = vpop.f32.mrb[57].mxu0  ;;  %1931 = vmatprep.subr.bf16.mxu1 %v13989_v12 }
 0x16e   :  { %22647 = vst [vmem:[#allocation19_spill] sm:$0xff] %v15016_v15  ;;  %1380 = vmatmul.mubr.bf16.gmra.mrb[116].mxu0 %v14913_v52  ;;  %1500 = vmatmul.mubr.bf16.gmra.mrb[8].mxu1 %v14990_v48  ;;  %v643_v29 = vadd.f32 %v14799_v58, %v642_v23  ;;  %v13453_v30 = vpop.f32.mrb[58].mxu0  ;;  %v14005_v23 = vld [vmem:[%s22035_s4 + $0x60] ss:$36 sps:$4 sm:$0xff]  }
 0x16f   :  { %1389 = vmatprep.mubr.bf16.mxu0 %v22054_v51  ;;  %1509 = vmatprep.mubr.bf16.mxu1 %v22054_v51  ;;  %v731_v31 = vmax.f32 %v651_v21, 0.0  ;;  %v654_v32 = vadd.f32 %v13453_v30, %v14799_v58  ;;  %v645_v33 = vpop.f32.mrb[59].mxu0  ;;  %v14026_v21 = vld [vmem:[%s22035_s4 + $0x20] ss:$36 sps:$4 sm:$0xff]   ;;  %v14013_v30 = vld [vmem:[%s22035_s4 + $0xf4] ss:$36 sps:$4 sm:$0xff]  }
 0x170   :  { %v729_v34 = vmax.f32 %v643_v29, 0.0  ;;  %v646_v37 = vadd.f32 %v14799_v58, %v645_v33  ;;  %1932 = vmatpush1.bf16.msra.mxu1 %v13987_v19  ;;  %v14007_v19 = vld [vmem:[%s22035_s4 + $0x64] ss:$36 sps:$4 sm:$0xff]   ;;  %v14014_v33 = vld [vmem:[%s22035_s4 + $0x138] ss:$36 sps:$4 sm:$0xff]  }
 0x171   :  { %v732_v39 = vmax.f32 %v654_v32, 0.0  ;;  %1933 = vmatprep.subr.bf16.mxu1 %v13992_v27  ;;  %v14010_v27 = vld [vmem:[%s22035_s4 + $0xac] ss:$36 sps:$4 sm:$0xff]   ;;  %v14016_v32 = vld [vmem:[%s22035_s4 + $0x13c] ss:$36 sps:$4 sm:$0xff]  }
 0x172   :  { %v730_v41 = vmax.f32 %v646_v37, 0.0  ;;  %v14008_v29 = vld [vmem:[%s22035_s4 + $0xa8] ss:$36 sps:$4 sm:$0xff]   ;;  %v14017_v37 = vld [vmem:[%s22035_s4 + $0x180] ss:$36 sps:$4 sm:$0xff]  }
 0x173   :  { %v15038_v45 = vpack.c.bf16 %v732_v39, %v731_v31  ;;  %v14011_v31 = vld [vmem:[%s22035_s4 + $0xf0] ss:$36 sps:$4 sm:$0xff]   ;;  %v14020_v39 = vld [vmem:[%s22035_s4 + $0x1c8] ss:$36 sps:$4 sm:$0xff]  }
 0x174   :  { %v15040_v47 = vpack.c.bf16 %v730_v41, %v729_v34  ;;  %v13456_v50 = vpop.f32.mrb[60].mxu0  ;;  %1934 = vmatpush1.bf16.msra.mxu1 %v13990_v38  ;;  %v14019_v34 = vld [vmem:[%s22035_s4 + $0x184] ss:$36 sps:$4 sm:$0xff]   ;;  %v14022_v38 = vld [vmem:[%s22035_s4 + $0x1cc] ss:$36 sps:$4 sm:$0xff]  }
 0x175   :  { %v667_v55 = vadd.f32 %v13456_v50, %v14799_v58  ;;  %v658_v56 = vpop.f32.mrb[61].mxu0  ;;  %1935 = vmatprep.subr.bf16.mxu1 %v13995_v40  ;;  %v14025_v40 = vld [vmem:[%s22035_s4 + $0x214] ss:$36 sps:$4 sm:$0xff]  }
 0x176   :  { %1390 = vmatmul.mubr.bf16.gmra.mrb[120].mxu0 %v14928_v8  ;;  %1510 = vmatmul.mubr.bf16.gmra.mrb[12].mxu1 %v15016_v15  ;;  %v659_v59 = vadd.f32 %v14799_v58, %v658_v56  ;;  %v13457_v60 = vpop.f32.mrb[62].mxu0  ;;  %v14023_v41 = vld [vmem:[%s22035_s4 + $0x210] ss:$36 sps:$4 sm:$0xff]  }
 0x177   :  { %1399 = vmatprep.mubr.bf16.mxu0 %v22054_v51  ;;  %1519 = vmatprep.mubr.bf16.mxu1 %v22054_v51  ;;  %v735_v61 = vmax.f32 %v667_v55, 0.0  ;;  %v670_v1 = vadd.f32 %v13457_v60, %v14799_v58  ;;  %v661_v3 = vpop.f32.mrb[63].mxu0  ;;  %v14027_v60 = vld [vmem:[%s22035_s4 + $0x68] ss:$36 sps:$4 sm:$0xff]  }
 0x178   :  { %v733_v4 = vmax.f32 %v659_v59, 0.0  ;;  %v662_v5 = vadd.f32 %v14799_v58, %v661_v3  ;;  %1936 = vmatpush1.bf16.msra.mxu1 %v13993_v54  ;;  %v14002_v58 = vld [vmem:[%s22035_s4 + $0x18] ss:$36 sps:$4 sm:$0xff]  }
 0x179   :  { %v736_v11 = vmax.f32 %v670_v1, 0.0  ;;  %1937 = vmatprep.subr.bf16.mxu1 %v13998_v57 }
 0x17a   :  { %v734_v12 = vmax.f32 %v662_v5, 0.0 }
 0x17b   :  { %v15059_v13 = vpack.c.bf16 %v736_v11, %v735_v61 }
 0x17c   :  { %v15061_v16 = vpack.c.bf16 %v734_v12, %v733_v4  ;;  %1938 = vmatpush1.bf16.msra.mxu1 %v13996_v10  ;;  %v14031_v4 = vld [vmem:[%s22035_s4 + $0x188] ss:$36 sps:$4 sm:$0xff]  }
 0x17d   :  { %13458 = vmatprep.subr.bf16.mxu1 %v14026_v21 }
 0x17e   :  { %1400 = vmatmul.mubr.bf16.gmra.mrb[124].mxu0 %v14926_v6  ;;  %1520 = vmatmul.mubr.bf16.gmra.mrb[16].mxu1 %v15014_v14 }
 0x17f   :  { %1409 = vmatprep.mubr.bf16.mxu0 %v22054_v51  ;;  %1529 = vmatprep.mubr.bf16.mxu1 %v22054_v51 }
 0x186   :  { %1410 = vmatmul.mubr.bf16.gmra.mrb[128].mxu0 %v14938_v25  ;;  %1530 = vmatmul.mubr.bf16.gmra.mrb[20].mxu1 %v15040_v47 }
 0x187   :  { %1419 = vmatprep.mubr.bf16.mxu0 %v22054_v51  ;;  %1539 = vmatprep.mubr.bf16.mxu1 %v22054_v51 }
 0x18e   :  { %1420 = vmatmul.mubr.bf16.gmra.mrb[132].mxu0 %v14936_v24  ;;  %1540 = vmatmul.mubr.bf16.gmra.mrb[24].mxu1 %v15038_v45 }
 0x18f   :  { %1429 = vmatprep.mubr.bf16.mxu0 %v22054_v51  ;;  %1549 = vmatprep.mubr.bf16.mxu1 %v22054_v51 }
 0x196   :  { %1430 = vmatmul.mubr.bf16.gmra.mrb[136].mxu0 %v14948_v43  ;;  %1550 = vmatmul.mubr.bf16.gmra.mrb[28].mxu1 %v15061_v16 }
 0x197   :  { %1439 = vmatprep.mubr.bf16.mxu0 %v22054_v51  ;;  %1559 = vmatprep.mubr.bf16.mxu1 %v22054_v51 }
 0x19e   :  { %1440 = vmatmul.mubr.bf16.gmra.mrb[140].mxu0 %v14946_v42  ;;  %1560 = vmatmul.mubr.bf16.gmra.mrb[32].mxu1 %v15059_v13 }
 0x19f   :  { %1449 = vmatprep.mubr.bf16.mxu0 %v22054_v51  ;;  %1955 = vmatprep.mubr.bf16.mxu1 %v22054_v51 }
 0x1a6   :  { %1450 = vmatmul.mubr.bf16.gmra.mrb[144].mxu0 %v14958_v63  ;;  %1956 = vmatmul.mubr.bf16.vlgmr.msra.gmra.mrb[36].mxu1 %v14810_v9 }
 0x1a7   :  { %1459 = vmatprep.mubr.bf16.mxu0 %v22054_v51  ;;  %1965 = vmatprep.mubr.bf16.mxu1 %v22054_v51 }
 0x1a8   :  { %13459 = vmatpush3.bf16.msra.mxu1 %v14026_v21 }
 0x1a9   :  { %13460 = vmatprep.subr.bf16.mxu1 %v14027_v60 }
 0x1ac   :  { %13461 = vmatpush3.bf16.msra.mxu1 %v14027_v60  ;;  %v14028_v60 = vld [vmem:[%s22035_s4 + $0xb0] ss:$36 sps:$4 sm:$0xff]  }
 0x1ad   :  { %13462 = vmatprep.subr.bf16.mxu1 %v14028_v60 }
 0x1ae   :  { %1460 = vmatmul.mubr.bf16.gmra.mrb[148].mxu0 %v14956_v62  ;;  %1966 = vmatmul.mubr.bf16.gmra.mrb[40].mxu1 %v14805_v7 }
 0x1af   :  { %1469 = vmatprep.mubr.bf16.mxu0 %v22054_v51  ;;  %1975 = vmatprep.mubr.bf16.mxu1 %v22054_v51 }
 0x1b0   :  { %13463 = vmatpush3.bf16.msra.mxu1 %v14028_v60  ;;  %v14030_v60 = vld [vmem:[%s22035_s4 + $0x140] ss:$36 sps:$4 sm:$0xff]  }
 0x1b6   :  { %1470 = vmatmul.mubr.bf16.gmra.mrb[152].mxu0 %v14971_v22  ;;  %1976 = vmatmul.mubr.bf16.gmra.mrb[44].mxu1 %v14835_v28 }
 0x1b7   :  { %1602 = vmatprep.mubr.bf16.mxu0 %v22054_v51  ;;  %1985 = vmatprep.mubr.bf16.mxu1 %v22054_v51 }
 0x1be   :  { %1603 = vmatmul.mubr.bf16.vlgmr.msra.gmra.mrb[156].mxu0 %v14810_v9  ;;  %1986 = vmatmul.mubr.bf16.gmra.mrb[48].mxu1 %v14830_v26 }
 0x1bf   :  { %2277 = vmatpush1.bf16.msra.mxu0 %v14002_v58  ;;  %1612 = vmatprep.mubr.bf16.mxu0 %v22054_v51 }
 0x1c0   :  { %1995 = vmatprep.mubr.bf16.mxu1 %v22054_v51  ;;  %2278 = vmatprep.subr.bf16.mxu0 %v14007_v19 }
 0x1c3   :  { %2279 = vmatpush1.bf16.msra.mxu0 %v14005_v23 }
 0x1c4   :  { %2280 = vmatprep.subr.bf16.mxu0 %v14010_v27 }
 0x1c6   :  { %1613 = vmatmul.mubr.bf16.gmra.mrb[160].mxu0 %v14805_v7  ;;  %1996 = vmatmul.mubr.bf16.gmra.mrb[52].mxu1 %v14857_v46 }
 0x1c7   :  { %1622 = vmatprep.mubr.bf16.mxu0 %v22054_v51  ;;  %2005 = vmatprep.mubr.bf16.mxu1 %v22054_v51 }
 0x1c8   :  { %2281 = vmatpush1.bf16.msra.mxu0 %v14008_v29 }
 0x1c9   :  { %2282 = vmatprep.subr.bf16.mxu0 %v14013_v30 }
 0x1cc   :  { %2283 = vmatpush1.bf16.msra.mxu0 %v14011_v31 }
 0x1cd   :  { %2284 = vmatprep.subr.bf16.mxu0 %v14016_v32 }
 0x1ce   :  { %1623 = vmatmul.mubr.bf16.gmra.mrb[164].mxu0 %v14835_v28  ;;  %2006 = vmatmul.mubr.bf16.gmra.mrb[56].mxu1 %v14852_v44 }
 0x1cf   :  { %1632 = vmatprep.mubr.bf16.mxu0 %v22054_v51  ;;  %2015 = vmatprep.mubr.bf16.mxu1 %v22054_v51 }
 0x1d0   :  { %2285 = vmatpush1.bf16.msra.mxu0 %v14014_v33 }
 0x1d1   :  { %2286 = vmatprep.subr.bf16.mxu0 %v14019_v34 }
 0x1d4   :  { %2287 = vmatpush1.bf16.msra.mxu0 %v14017_v37 }
 0x1d5   :  { %2288 = vmatprep.subr.bf16.mxu0 %v14022_v38 }
 0x1d6   :  { %1633 = vmatmul.mubr.bf16.gmra.mrb[168].mxu0 %v14830_v26  ;;  %2016 = vmatmul.mubr.bf16.gmra.mrb[60].mxu1 %v14879_v2 }
 0x1d7   :  { %1642 = vmatprep.mubr.bf16.mxu0 %v22054_v51  ;;  %2025 = vmatprep.mubr.bf16.mxu1 %v22054_v51 }
 0x1d8   :  { %2289 = vmatpush1.bf16.msra.mxu0 %v14020_v39 }
 0x1d9   :  { %v15159_v50 = vpop.f32.mrb[64].mxu0  ;;  %2290 = vmatprep.subr.bf16.mxu0 %v14025_v40 }
 0x1da   :  { %v15161_v54 = vpop.f32.mrb[65].mxu0 }
 0x1db   :  { %22648 = vst [vmem:[#allocation20_spill] sm:$0xff] %v15161_v54  ;;  %v15163_v55 = vpop.f32.mrb[66].mxu0 }
 0x1dc   :  { %v15167_v57 = vpop.f32.mrb[67].mxu0  ;;  %2291 = vmatpush1.bf16.msra.mxu0 %v14023_v41  ;;  %v14029_v41 = vld [vmem:[%s22035_s4 + $0xf8] ss:$36 sps:$4 sm:$0xff]  }
 0x1dd   :  { %22649 = vst [vmem:[#allocation21_spill] sm:$0xff] %v15167_v57  ;;  %13464 = vmatprep.subr.bf16.mxu1 %v14029_v41 }
 0x1de   :  { %1643 = vmatmul.mubr.bf16.gmra.mrb[172].mxu0 %v14857_v46  ;;  %2026 = vmatmul.mubr.bf16.gmra.mrb[64].mxu1 %v14874_v0 }
 0x1df   :  { %1652 = vmatprep.mubr.bf16.mxu0 %v22054_v51  ;;  %2035 = vmatprep.mubr.bf16.mxu1 %v22054_v51 }
 0x1e0   :  { %13465 = vmatpush3.bf16.msra.mxu1 %v14029_v41 }
 0x1e1   :  { %v15178_v61 = vpop.f32.mrb[68].mxu0  ;;  %13466 = vmatprep.subr.bf16.mxu1 %v14030_v60 }
 0x1e2   :  { %v15180_v1 = vpop.f32.mrb[69].mxu0 }
 0x1e3   :  { %22650 = vst [vmem:[#allocation22_spill] sm:$0xff] %v15180_v1  ;;  %v15182_v3 = vpop.f32.mrb[70].mxu0 }
 0x1e4   :  { %v15186_v5 = vpop.f32.mrb[71].mxu0  ;;  %13467 = vmatpush3.bf16.msra.mxu1 %v14030_v60 }
 0x1e5   :  { %22651 = vst [vmem:[#allocation23_spill] sm:$0xff] %v15186_v5  ;;  %13468 = vmatprep.subr.bf16.mxu1 %v14031_v4 }
 0x1e6   :  { %1653 = vmatmul.mubr.bf16.gmra.mrb[176].mxu0 %v14852_v44  ;;  %2036 = vmatmul.mubr.bf16.gmra.mrb[68].mxu1 %v14889_v18 }
 0x1e7   :  { %1662 = vmatprep.mubr.bf16.mxu0 %v22054_v51  ;;  %2045 = vmatprep.mubr.bf16.mxu1 %v22054_v51 }
 0x1e8   :  { %13469 = vmatpush3.bf16.msra.mxu1 %v14031_v4 }
 0x1e9   :  { %v15194_v11 = vpop.f32.mrb[72].mxu0 }
 0x1ea   :  { %22652 = vst [vmem:[#allocation24_spill] sm:$0xff] %v15194_v11  ;;  %v15196_v12 = vpop.f32.mrb[73].mxu0 }
 0x1eb   :  { %22653 = vst [vmem:[#allocation25_spill] sm:$0xff] %v15196_v12  ;;  %v15198_v58 = vpop.f32.mrb[74].mxu0 }
 0x1ec   :  { %22654 = vst [vmem:[#allocation26_spill] sm:$0xff] %v15198_v58  ;;  %v15202_v21 = vpop.f32.mrb[75].mxu0 }
 0x1ed   :  { %22655 = vst [vmem:[#allocation27_spill] sm:$0xff] %v15202_v21 }
 0x1ee   :  { %1663 = vmatmul.mubr.bf16.gmra.mrb[180].mxu0 %v14879_v2  ;;  %2046 = vmatmul.mubr.bf16.gmra.mrb[72].mxu1 %v14887_v17 }
 0x1ef   :  { %1672 = vmatprep.mubr.bf16.mxu0 %v22054_v51  ;;  %2055 = vmatprep.mubr.bf16.mxu1 %v22054_v51 }
 0x1f1   :  { %v15210_v27 = vpop.f32.mrb[76].mxu0 }
 0x1f2   :  { %22656 = vst [vmem:[#allocation28_spill] sm:$0xff] %v15210_v27  ;;  %v15212_v29 = vpop.f32.mrb[77].mxu0 }
 0x1f3   :  { %22657 = vst [vmem:[#allocation29_spill] sm:$0xff] %v15212_v29  ;;  %v15214_v30 = vpop.f32.mrb[78].mxu0 }
 0x1f4   :  { %22658 = vst [vmem:[#allocation30_spill] sm:$0xff] %v15214_v30  ;;  %v15218_v32 = vpop.f32.mrb[79].mxu0 }
 0x1f5   :  { %22659 = vst [vmem:[#allocation31_spill] sm:$0xff] %v15218_v32 }
 0x1f6   :  { %1673 = vmatmul.mubr.bf16.gmra.mrb[184].mxu0 %v14874_v0  ;;  %2056 = vmatmul.mubr.bf16.gmra.mrb[76].mxu1 %v14905_v36 }
 0x1f7   :  { %1682 = vmatprep.mubr.bf16.mxu0 %v22054_v51  ;;  %2065 = vmatprep.mubr.bf16.mxu1 %v22054_v51 }
 0x1f9   :  { %v15226_v34 = vpop.f32.mrb[80].mxu0 }
 0x1fa   :  { %22660 = vst [vmem:[#allocation32_spill] sm:$0xff] %v15226_v34  ;;  %v15228_v37 = vpop.f32.mrb[81].mxu0 }
 0x1fb   :  { %22661 = vst [vmem:[#allocation33_spill] sm:$0xff] %v15228_v37  ;;  %v15230_v38 = vpop.f32.mrb[82].mxu0 }
 0x1fc   :  { %22662 = vst [vmem:[#allocation34_spill] sm:$0xff] %v15230_v38  ;;  %v15234_v40 = vpop.f32.mrb[83].mxu0 }
 0x1fd   :  { %22663 = vst [vmem:[#allocation35_spill] sm:$0xff] %v15234_v40 }
 0x1fe   :  { %1683 = vmatmul.mubr.bf16.gmra.mrb[188].mxu0 %v14889_v18  ;;  %2066 = vmatmul.mubr.bf16.gmra.mrb[80].mxu1 %v14903_v35 }
 0x1ff   :  { %1692 = vmatprep.mubr.bf16.mxu0 %v22054_v51  ;;  %2075 = vmatprep.mubr.bf16.mxu1 %v22054_v51 }
 0x201   :  { %v15245_v33 = vpop.f32.mrb[84].mxu0 }
 0x202   :  { %22664 = vst [vmem:[#allocation36_spill] sm:$0xff] %v15245_v33  ;;  %v15247_v23 = vpop.f32.mrb[85].mxu0 }
 0x203   :  { %22665 = vst [vmem:[#allocation37_spill] sm:$0xff] %v15247_v23  ;;  %v15249_v10 = vpop.f32.mrb[86].mxu0 }
 0x204   :  { %22666 = vst [vmem:[#allocation38_spill] sm:$0xff] %v15249_v10  ;;  %v15256_v39 = vpop.f32.mrb[87].mxu0 }
 0x205   :  { %22667 = vst [vmem:[#allocation39_spill] sm:$0xff] %v15256_v39  ;;  %v22672_v39 = vmov 0  }
 0x206   :  { %1693 = vmatmul.mubr.bf16.gmra.mrb[192].mxu0 %v14887_v17  ;;  %2076 = vmatmul.mubr.bf16.gmra.mrb[84].mxu1 %v14915_v53 }
 0x207   :  { %1702 = vmatprep.mubr.bf16.mxu0 %v22054_v51  ;;  %2085 = vmatprep.mubr.bf16.mxu1 %v22054_v51  ;;  %v14032_v51 = vld [vmem:[%s22035_s4 + $0x1d0] ss:$36 sps:$4 sm:$0xff]  }
 0x208   :  { %13470 = vmatprep.subr.bf16.mxu1 %v14032_v51 }
 0x209   :  { %v15267_v59 = vpop.f32.mrb[88].mxu0  ;;  %13471 = vmatpush3.bf16.msra.mxu1 %v14032_v51 }
 0x20a   :  { %22668 = vst [vmem:[#allocation40_spill] sm:$0xff] %v15267_v59  ;;  %v15269_v19 = vpop.f32.mrb[89].mxu0 }
 0x20b   :  { %22669 = vst [vmem:[#allocation41_spill] sm:$0xff] %v15269_v19  ;;  %v15271_v31 = vpop.f32.mrb[90].mxu0  ;;  %v14033_v19 = vld [vmem:[%s22035_s4 + $0x218] ss:$36 sps:$4 sm:$0xff]  }
 0x20c   :  { %22670 = vst [vmem:[#allocation42_spill] sm:$0xff] %v15271_v31  ;;  %v15278_v23 = vpop.f32.mrb[91].mxu0  ;;  %13472 = vmatprep.subr.bf16.mxu1 %v14033_v19 }
 0x20d   :  { %22671 = vst [vmem:[#allocation43_spill] sm:$0xff] %v15278_v23  ;;  %13473 = vmatpush3.bf16.msra.mxu1 %v14033_v19 }
 0x20e   :  { %1703 = vmatmul.mubr.bf16.gmra.mrb[196].mxu0 %v14905_v36  ;;  %2086 = vmatmul.mubr.bf16.gmra.mrb[88].mxu1 %v14913_v52 }
 0x20f   :  { %1712 = vmatprep.mubr.bf16.mxu0 %v22672_v39  ;;  %2095 = vmatprep.mubr.bf16.mxu1 %v22672_v39 }
 0x211   :  { %v15289_v56 = vpop.f32.mrb[92].mxu0 }
 0x212   :  { %22673 = vst [vmem:[#allocation44_spill] sm:$0xff] %v15289_v56  ;;  %v15291_v60 = vpop.f32.mrb[93].mxu0 }
 0x213   :  { %22674 = vst [vmem:[#allocation45_spill] sm:$0xff] %v15291_v60  ;;  %v15293_v41 = vpop.f32.mrb[94].mxu0 }
 0x214   :  { %22675 = vst [vmem:[#allocation46_spill] sm:$0xff] %v15293_v41  ;;  %v15300_v37 = vpop.f32.mrb[95].mxu0 }
 0x215   :  { %22676 = vst [vmem:[#allocation47_spill] sm:$0xff] %v15300_v37 }
 0x216   :  { %1713 = vmatmul.mubr.bf16.gmra.mrb[200].mxu0 %v14903_v35  ;;  %2096 = vmatmul.mubr.bf16.gmra.mrb[92].mxu1 %v14928_v8 }
 0x217   :  { %1722 = vmatprep.mubr.bf16.mxu0 %v22672_v39  ;;  %2105 = vmatprep.mubr.bf16.mxu1 %v22672_v39 }
 0x219   :  { %v1331_v40 = vpop.f32.mrb[96].mxu0 }
 0x21a   :  { %v15308_v29 = vpop.f32.mrb[97].mxu0 }
 0x21b   :  { %22677 = vst [vmem:[#allocation48_spill] sm:$0xff] %v15308_v29  ;;  %v1335_v23 = vpop.f32.mrb[98].mxu0 }
 0x21c   :  { %v2990_v32 = vpack.c.bf16 %v1335_v23, %v1331_v40  ;;  %v15310_v12 = vpop.f32.mrb[99].mxu0 }
 0x21d   :  { %22678 = vst [vmem:[#allocation49_spill] sm:$0xff] %v15310_v12 }
 0x21e   :  { %1723 = vmatmul.mubr.bf16.gmra.mrb[204].mxu0 %v14915_v53  ;;  %2106 = vmatmul.mubr.bf16.gmra.mrb[96].mxu1 %v14926_v6 }
 0x21f   :  { %12063 = vmatprep.subr.bf16.mxu0 %v2990_v32  ;;  %1732 = vmatprep.mubr.bf16.mxu0 %v22672_v39 }
 0x220   :  { %2115 = vmatprep.mubr.bf16.mxu1 %v22672_v39 }
 0x221   :  { %v15318_v19 = vpop.f32.mrb[100].mxu0 }
 0x222   :  { %v15320_v4 = vpop.f32.mrb[101].mxu0 }
 0x223   :  { %22679 = vst [vmem:[#allocation50_spill] sm:$0xff] %v15320_v4  ;;  %v15322_v60 = vpop.f32.mrb[102].mxu0 }
 0x224   :  { %v15326_v40 = vpop.f32.mrb[103].mxu0 }
 0x225   :  { %22680 = vst [vmem:[#allocation51_spill] sm:$0xff] %v15326_v40 }
 0x226   :  { %1733 = vmatmul.mubr.bf16.gmra.mrb[208].mxu0 %v14913_v52  ;;  %2116 = vmatmul.mubr.bf16.gmra.mrb[100].mxu1 %v14938_v25 }
 0x227   :  { %1742 = vmatprep.mubr.bf16.mxu0 %v22672_v39  ;;  %2125 = vmatprep.mubr.bf16.mxu1 %v22672_v39 }
 0x229   :  { %v15334_v32 = vpop.f32.mrb[104].mxu0 }
 0x22a   :  { %22681 = vst [vmem:[#allocation52_spill] sm:$0xff] %v15334_v32  ;;  %v15336_v37 = vpop.f32.mrb[105].mxu0 }
 0x22b   :  { %22682 = vst [vmem:[#allocation53_spill] sm:$0xff] %v15336_v37  ;;  %v15338_v21 = vpop.f32.mrb[106].mxu0 }
 0x22c   :  { %v15342_v1 = vpop.f32.mrb[107].mxu0 }
 0x22d   :  { %22683 = vst [vmem:[#allocation54_spill] sm:$0xff] %v15342_v1 }
 0x22e   :  { %1743 = vmatmul.mubr.bf16.gmra.mrb[212].mxu0 %v14928_v8  ;;  %2126 = vmatmul.mubr.bf16.gmra.mrb[104].mxu1 %v14936_v24 }
 0x22f   :  { %1752 = vmatprep.mubr.bf16.mxu0 %v22672_v39  ;;  %2135 = vmatprep.mubr.bf16.mxu1 %v22672_v39 }
 0x230   :  { %v15350_v5 = vpop.f32.mrb[0].mxu1 }
 0x231   :  { %v15352_v4 = vpop.f32.mrb[108].mxu0  ;;  %v15354_v40 = vpop.f32.mrb[1].mxu1 }
 0x232   :  { %22684 = vst [vmem:[#allocation55_spill] sm:$0xff] %v15352_v4  ;;  %22685 = vst [vmem:[#allocation56_spill] sm:$0xff] %v15354_v40  ;;  %v15356_v23 = vpop.f32.mrb[109].mxu0  ;;  %v15358_v54 = vpop.f32.mrb[2].mxu1 }
 0x233   :  { %22686 = vst [vmem:[#allocation57_spill] sm:$0xff] %v15356_v23  ;;  %v15360_v57 = vpop.f32.mrb[110].mxu0  ;;  %v15364_v37 = vpop.f32.mrb[3].mxu1 }
 0x234   :  { %22687 = vst [vmem:[#allocation58_spill] sm:$0xff] %v15360_v57  ;;  %22688 = vst [vmem:[#allocation59_spill] sm:$0xff] %v15364_v37  ;;  %v15368_v29 = vpop.f32.mrb[111].mxu0 }
 0x235   :  { %22689 = vst [vmem:[#allocation60_spill] sm:$0xff] %v15368_v29 }
 0x236   :  { %1753 = vmatmul.mubr.bf16.gmra.mrb[216].mxu0 %v14926_v6  ;;  %2136 = vmatmul.mubr.bf16.gmra.mrb[108].mxu1 %v14948_v43 }
 0x237   :  { %1762 = vmatprep.mubr.bf16.mxu0 %v22672_v39  ;;  %2145 = vmatprep.mubr.bf16.mxu1 %v22672_v39 }
 0x239   :  { %v15378_v51 = vpop.f32.mrb[112].mxu0  ;;  %v1491_v41 = vpop.f32.mrb[4].mxu1 }
 0x23a   :  { %22690 = vst [vmem:[#allocation61_spill] sm:$0xff] %v15378_v51  ;;  %v15380_v1 = vpop.f32.mrb[113].mxu0  ;;  %v15382_v8 = vpop.f32.mrb[5].mxu1 }
 0x23b   :  { %22691 = vst [vmem:[#allocation62_spill] sm:$0xff] %v15380_v1  ;;  %22692 = vst [vmem:[#allocation63_spill] sm:$0xff] %v15382_v8  ;;  %v15384_v59 = vpop.f32.mrb[114].mxu0  ;;  %v1495_v12 = vpop.f32.mrb[6].mxu1 }
 0x23c   :  { %22693 = vst [vmem:[#allocation64_spill] sm:$0xff] %v15384_v59  ;;  %v15388_v23 = vpop.f32.mrb[115].mxu0  ;;  %v3134_v29 = vpack.c.bf16 %v1495_v12, %v1491_v41  ;;  %v15390_v40 = vpop.f32.mrb[7].mxu1 }
 0x23d   :  { %22694 = vst [vmem:[#allocation65_spill] sm:$0xff] %v15388_v23  ;;  %22695 = vst [vmem:[#allocation66_spill] sm:$0xff] %v15390_v40 }
 0x23e   :  { %1763 = vmatmul.mubr.bf16.gmra.mrb[220].mxu0 %v14938_v25  ;;  %2146 = vmatmul.mubr.bf16.gmra.mrb[112].mxu1 %v14946_v42 }
 0x23f   :  { %1772 = vmatprep.mubr.bf16.mxu0 %v22672_v39  ;;  %2155 = vmatprep.mubr.bf16.mxu1 %v22672_v39 }
 0x240   :  { %12127 = vmatprep.subr.bf16.mxu1 %v3134_v29 }
 0x241   :  { %v15400_v56 = vpop.f32.mrb[116].mxu0  ;;  %v15402_v12 = vpop.f32.mrb[8].mxu1 }
 0x242   :  { %22696 = vst [vmem:[#allocation67_spill] sm:$0xff] %v15400_v56  ;;  %v15404_v41 = vpop.f32.mrb[117].mxu0  ;;  %v15406_v31 = vpop.f32.mrb[9].mxu1 }
 0x243   :  { %22697 = vst [vmem:[#allocation68_spill] sm:$0xff] %v15404_v41  ;;  %22698 = vst [vmem:[#allocation69_spill] sm:$0xff] %v15406_v31  ;;  %v15408_v37 = vpop.f32.mrb[118].mxu0  ;;  %v15410_v6 = vpop.f32.mrb[10].mxu1 }
 0x244   :  { %22699 = vst [vmem:[#allocation70_spill] sm:$0xff] %v15408_v37  ;;  %v15414_v23 = vpop.f32.mrb[119].mxu0  ;;  %v15418_v25 = vpop.f32.mrb[11].mxu1 }
 0x245   :  { %22700 = vst [vmem:[#allocation71_spill] sm:$0xff] %v15414_v23  ;;  %22701 = vst [vmem:[#allocation72_spill] sm:$0xff] %v15418_v25 }
 0x246   :  { %1773 = vmatmul.mubr.bf16.gmra.mrb[224].mxu0 %v14936_v24  ;;  %2156 = vmatmul.mubr.bf16.gmra.mrb[116].mxu1 %v14958_v63 }
 0x247   :  { %1782 = vmatprep.mubr.bf16.mxu0 %v22672_v39  ;;  %2165 = vmatprep.mubr.bf16.mxu1 %v22672_v39 }
 0x249   :  { %v15428_v1 = vpop.f32.mrb[120].mxu0  ;;  %v15430_v10 = vpop.f32.mrb[12].mxu1 }
 0x24a   :  { %22702 = vst [vmem:[#allocation73_spill] sm:$0xff] %v15428_v1  ;;  %v15432_v29 = vpop.f32.mrb[121].mxu0  ;;  %v15434_v56 = vpop.f32.mrb[13].mxu1 }
 0x24b   :  { %22703 = vst [vmem:[#allocation74_spill] sm:$0xff] %v15432_v29  ;;  %22704 = vst [vmem:[#allocation75_spill] sm:$0xff] %v15434_v56  ;;  %v15436_v52 = vpop.f32.mrb[122].mxu0  ;;  %v15438_v41 = vpop.f32.mrb[14].mxu1 }
 0x24c   :  { %22705 = vst [vmem:[#allocation76_spill] sm:$0xff] %v15436_v52  ;;  %v15442_v23 = vpop.f32.mrb[123].mxu0  ;;  %v15446_v25 = vpop.f32.mrb[15].mxu1 }
 0x24d   :  { %22706 = vst [vmem:[#allocation77_spill] sm:$0xff] %v15442_v23  ;;  %22707 = vst [vmem:[#allocation78_spill] sm:$0xff] %v15446_v25 }
 0x24e   :  { %1783 = vmatmul.mubr.bf16.gmra.mrb[228].mxu0 %v14948_v43  ;;  %2166 = vmatmul.mubr.bf16.gmra.mrb[120].mxu1 %v14956_v62 }
 0x24f   :  { %1792 = vmatprep.mubr.bf16.mxu0 %v22672_v39  ;;  %2175 = vmatprep.mubr.bf16.mxu1 %v22672_v39 }
 0x251   :  { %v15456_v33 = vpop.f32.mrb[124].mxu0  ;;  %v15458_v1 = vpop.f32.mrb[16].mxu1 }
 0x252   :  { %22708 = vst [vmem:[#allocation79_spill] sm:$0xff] %v15456_v33  ;;  %v15460_v31 = vpop.f32.mrb[125].mxu0  ;;  %v15462_v52 = vpop.f32.mrb[17].mxu1 }
 0x253   :  { %22709 = vst [vmem:[#allocation80_spill] sm:$0xff] %v15460_v31  ;;  %22710 = vst [vmem:[#allocation81_spill] sm:$0xff] %v15462_v52  ;;  %v15464_v24 = vpop.f32.mrb[126].mxu0  ;;  %v15466_v29 = vpop.f32.mrb[18].mxu1 }
 0x254   :  { %22711 = vst [vmem:[#allocation82_spill] sm:$0xff] %v15464_v24  ;;  %v15470_v23 = vpop.f32.mrb[127].mxu0  ;;  %v15474_v25 = vpop.f32.mrb[19].mxu1 }
 0x255   :  { %22712 = vst [vmem:[#allocation83_spill] sm:$0xff] %v15470_v23  ;;  %22713 = vst [vmem:[#allocation84_spill] sm:$0xff] %v15474_v25 }
 0x256   :  { %1793 = vmatmul.mubr.bf16.gmra.mrb[232].mxu0 %v14946_v42  ;;  %2176 = vmatmul.mubr.bf16.gmra.mrb[124].mxu1 %v14971_v22 }
 0x257   :  { %1802 = vmatprep.mubr.bf16.mxu0 %v22672_v39  ;;  %2185 = vmatprep.mubr.bf16.mxu1 %v22672_v39 }
 0x259   :  { %v15484_v37 = vpop.f32.mrb[128].mxu0  ;;  %v15486_v33 = vpop.f32.mrb[20].mxu1 }
 0x25a   :  { %v15488_v56 = vpop.f32.mrb[129].mxu0  ;;  %v15490_v24 = vpop.f32.mrb[21].mxu1 }
 0x25b   :  { %22714 = vst [vmem:[#allocation85_spill] sm:$0xff] %v15488_v56  ;;  %22715 = vst [vmem:[#allocation86_spill] sm:$0xff] %v15490_v24  ;;  %v15492_v43 = vpop.f32.mrb[130].mxu0  ;;  %v15494_v31 = vpop.f32.mrb[22].mxu1 }
 0x25c   :  { %v15498_v23 = vpop.f32.mrb[131].mxu0  ;;  %v15502_v25 = vpop.f32.mrb[23].mxu1 }
 0x25d   :  { %22716 = vst [vmem:[#allocation87_spill] sm:$0xff] %v15498_v23  ;;  %22717 = vst [vmem:[#allocation88_spill] sm:$0xff] %v15502_v25 }
 0x25e   :  { %1803 = vmatmul.mubr.bf16.gmra.mrb[236].mxu0 %v14958_v63  ;;  %2186 = vmatmul.mubr.bf16.gmra.mrb[128].mxu1 %v14966_v20 }
 0x25f   :  { %1812 = vmatprep.mubr.bf16.mxu0 %v22672_v39  ;;  %2195 = vmatprep.mubr.bf16.mxu1 %v22672_v39 }
 0x261   :  { %v15512_v53 = vpop.f32.mrb[132].mxu0  ;;  %v15514_v38 = vpop.f32.mrb[24].mxu1 }
 0x262   :  { %v15516_v52 = vpop.f32.mrb[133].mxu0  ;;  %v15518_v35 = vpop.f32.mrb[25].mxu1 }
 0x263   :  { %22718 = vst [vmem:[#allocation89_spill] sm:$0xff] %v15516_v52  ;;  %22719 = vst [vmem:[#allocation90_spill] sm:$0xff] %v15518_v35  ;;  %v15520_v42 = vpop.f32.mrb[134].mxu0  ;;  %v15522_v56 = vpop.f32.mrb[26].mxu1 }
 0x264   :  { %v15526_v24 = vpop.f32.mrb[135].mxu0  ;;  %v15530_v23 = vpop.f32.mrb[27].mxu1 }
 0x265   :  { %22720 = vst [vmem:[#allocation91_spill] sm:$0xff] %v15526_v24  ;;  %22721 = vst [vmem:[#allocation92_spill] sm:$0xff] %v15530_v23 }
 0x266   :  { %1813 = vmatmul.mubr.bf16.gmra.mrb[240].mxu0 %v14956_v62  ;;  %2196 = vmatmul.mubr.bf16.gmra.mrb[132].mxu1 %v14992_v49 }
 0x267   :  { %1822 = vmatprep.mubr.bf16.mxu0 %v22672_v39  ;;  %2205 = vmatprep.mubr.bf16.mxu1 %v22672_v39 }
 0x269   :  { %v15540_v34 = vpop.f32.mrb[136].mxu0  ;;  %v15542_v59 = vpop.f32.mrb[28].mxu1 }
 0x26a   :  { %v15544_v25 = vpop.f32.mrb[137].mxu0  ;;  %v15546_v27 = vpop.f32.mrb[29].mxu1 }
 0x26b   :  { %22722 = vst [vmem:[#allocation93_spill] sm:$0xff] %v15544_v25  ;;  %22723 = vst [vmem:[#allocation94_spill] sm:$0xff] %v15546_v27  ;;  %v15548_v63 = vpop.f32.mrb[138].mxu0  ;;  %v15550_v52 = vpop.f32.mrb[30].mxu1 }
 0x26c   :  { %v15554_v35 = vpop.f32.mrb[139].mxu0  ;;  %v15558_v24 = vpop.f32.mrb[31].mxu1 }
 0x26d   :  { %22724 = vst [vmem:[#allocation95_spill] sm:$0xff] %v15554_v35  ;;  %22725 = vst [vmem:[#allocation96_spill] sm:$0xff] %v15558_v24 }
 0x26e   :  { %1823 = vmatmul.mubr.bf16.gmra.mrb[244].mxu0 %v14971_v22  ;;  %2206 = vmatmul.mubr.bf16.gmra.mrb[136].mxu1 %v14990_v48 }
 0x26f   :  { %1832 = vmatprep.mubr.bf16.mxu0 %v22672_v39  ;;  %2215 = vmatprep.mubr.bf16.mxu1 %v22672_v39 }
 0x271   :  { %v15568_v51 = vpop.f32.mrb[140].mxu0  ;;  %v15570_v4 = vpop.f32.mrb[32].mxu1 }
 0x272   :  { %v15572_v23 = vpop.f32.mrb[141].mxu0  ;;  %v15574_v57 = vpop.f32.mrb[33].mxu1 }
 0x273   :  { %22726 = vst [vmem:[#allocation97_spill] sm:$0xff] %v15572_v23  ;;  %22727 = vst [vmem:[#allocation98_spill] sm:$0xff] %v15574_v57  ;;  %v15576_v62 = vpop.f32.mrb[142].mxu0  ;;  %v15578_v25 = vpop.f32.mrb[34].mxu1 }
 0x274   :  { %v15582_v27 = vpop.f32.mrb[143].mxu0  ;;  %v15586_v35 = vpop.f32.mrb[35].mxu1 }
 0x275   :  { %22728 = vst [vmem:[#allocation99_spill] sm:$0xff] %v15582_v27  ;;  %22729 = vst [vmem:[#allocation100_spill] sm:$0xff] %v15586_v35 }
 0x276   :  { %1833 = vmatmul.mubr.bf16.gmra.mrb[248].mxu0 %v14966_v20  ;;  %2216 = vmatmul.mubr.bf16.gmra.mrb[140].mxu1 %v15016_v15 }
 0x277   :  { %1842 = vmatprep.mubr.bf16.mxu0 %v22672_v39  ;;  %2225 = vmatprep.mubr.bf16.mxu1 %v22672_v39 }
 0x279   :  { %v15596_v30 = vpop.f32.mrb[144].mxu0  ;;  %v15598_v11 = vpop.f32.mrb[36].mxu1 }
 0x27a   :  { %22730 = vst [vmem:[#allocation101_spill] sm:$0xff] %v15598_v11  ;;  %v15600_v24 = vpop.f32.mrb[145].mxu0  ;;  %v15602_v58 = vpop.f32.mrb[37].mxu1 }
 0x27b   :  { %22731 = vst [vmem:[#allocation102_spill] sm:$0xff] %v15600_v24  ;;  %22732 = vst [vmem:[#allocation103_spill] sm:$0xff] %v15602_v58  ;;  %v15604_v22 = vpop.f32.mrb[146].mxu0  ;;  %v15606_v23 = vpop.f32.mrb[38].mxu1 }
 0x27c   :  { %22733 = vst [vmem:[#allocation104_spill] sm:$0xff] %v15606_v23  ;;  %v15612_v35 = vpop.f32.mrb[147].mxu0  ;;  %v15614_v27 = vpop.f32.mrb[39].mxu1 }
 0x27d   :  { %22734 = vst [vmem:[#allocation105_spill] sm:$0xff] %v15612_v35  ;;  %22735 = vst [vmem:[#allocation106_spill] sm:$0xff] %v15614_v27 }
 0x27e   :  { %1843 = vmatmul.mubr.bf16.gmra.mrb[252].mxu0 %v14992_v49  ;;  %2226 = vmatmul.mubr.bf16.gmra.mrb[144].mxu1 %v15014_v14 }
 0x27f   :  { %1852 = vmatprep.mubr.bf16.mxu0 %v22672_v39  ;;  %2235 = vmatprep.mubr.bf16.mxu1 %v22672_v39 }
 0x281   :  { %v15624_v36 = vpop.f32.mrb[148].mxu0  ;;  %v15626_v57 = vpop.f32.mrb[40].mxu1 }
 0x282   :  { %22736 = vst [vmem:[#allocation107_spill] sm:$0xff] %v15626_v57  ;;  %v15628_v11 = vpop.f32.mrb[149].mxu0  ;;  %v15630_v23 = vpop.f32.mrb[41].mxu1 }
 0x283   :  { %22737 = vst [vmem:[#allocation108_spill] sm:$0xff] %v15628_v11  ;;  %22738 = vst [vmem:[#allocation109_spill] sm:$0xff] %v15630_v23  ;;  %v15632_v20 = vpop.f32.mrb[150].mxu0  ;;  %v15634_v24 = vpop.f32.mrb[42].mxu1 }
 0x284   :  { %22739 = vst [vmem:[#allocation110_spill] sm:$0xff] %v15634_v24  ;;  %v15640_v27 = vpop.f32.mrb[151].mxu0  ;;  %v15642_v35 = vpop.f32.mrb[43].mxu1 }
 0x285   :  { %22740 = vst [vmem:[#allocation111_spill] sm:$0xff] %v15640_v27  ;;  %22741 = vst [vmem:[#allocation112_spill] sm:$0xff] %v15642_v35 }
 0x286   :  { %1853 = vmatmul.mubr.bf16.gmra.mrb[0].mxu0 %v14990_v48  ;;  %2236 = vmatmul.mubr.bf16.gmra.mrb[148].mxu1 %v15040_v47 }
 0x287   :  { %1862 = vmatprep.mubr.bf16.mxu0 %v22672_v39  ;;  %2245 = vmatprep.mubr.bf16.mxu1 %v22672_v39 }
 0x289   :  { %v15652_v17 = vpop.f32.mrb[152].mxu0  ;;  %v15654_v58 = vpop.f32.mrb[44].mxu1 }
 0x28a   :  { %22742 = vst [vmem:[#allocation113_spill] sm:$0xff] %v15654_v58  ;;  %v15656_v57 = vpop.f32.mrb[153].mxu0  ;;  %v15658_v24 = vpop.f32.mrb[45].mxu1 }
 0x28b   :  { %22743 = vst [vmem:[#allocation114_spill] sm:$0xff] %v15656_v57  ;;  %22744 = vst [vmem:[#allocation115_spill] sm:$0xff] %v15658_v24  ;;  %v15660_v49 = vpop.f32.mrb[154].mxu0  ;;  %v15662_v11 = vpop.f32.mrb[46].mxu1 }
 0x28c   :  { %22745 = vst [vmem:[#allocation116_spill] sm:$0xff] %v15662_v11  ;;  %v15668_v35 = vpop.f32.mrb[155].mxu0  ;;  %v15670_v27 = vpop.f32.mrb[47].mxu1 }
 0x28d   :  { %22746 = vst [vmem:[#allocation117_spill] sm:$0xff] %v15668_v35  ;;  %22747 = vst [vmem:[#allocation118_spill] sm:$0xff] %v15670_v27 }
 0x28e   :  { %1863 = vmatmul.mubr.bf16.gmra.mrb[4].mxu0 %v15016_v15  ;;  %2246 = vmatmul.mubr.bf16.gmra.mrb[152].mxu1 %v15038_v45 }
 0x28f   :  { %1872 = vmatprep.mubr.bf16.mxu0 %v22672_v39  ;;  %2255 = vmatprep.mubr.bf16.mxu1 %v22672_v39 }
 0x291   :  { %v15680_v8 = vpop.f32.mrb[156].mxu0  ;;  %v15682_v23 = vpop.f32.mrb[48].mxu1 }
 0x292   :  { %22748 = vst [vmem:[#allocation119_spill] sm:$0xff] %v15680_v8  ;;  %22749 = vst [vmem:[#allocation120_spill] sm:$0xff] %v15682_v23  ;;  %v15684_v58 = vpop.f32.mrb[157].mxu0  ;;  %v15686_v11 = vpop.f32.mrb[49].mxu1 }
 0x293   :  { %22750 = vst [vmem:[#allocation121_spill] sm:$0xff] %v15684_v58  ;;  %22751 = vst [vmem:[#allocation122_spill] sm:$0xff] %v15686_v11  ;;  %v15688_v48 = vpop.f32.mrb[158].mxu0  ;;  %v15690_v57 = vpop.f32.mrb[50].mxu1 }
 0x294   :  { %22752 = vst [vmem:[#allocation123_spill] sm:$0xff] %v15688_v48  ;;  %22753 = vst [vmem:[#allocation124_spill] sm:$0xff] %v15690_v57  ;;  %v15696_v27 = vpop.f32.mrb[159].mxu0  ;;  %v15698_v35 = vpop.f32.mrb[51].mxu1  ;;  %v22772_v48 = vpack.c.bf16 %v15492_v43, %v15484_v37  ;;  %v22778_v43 = vpack.c.bf16 %v15520_v42, %v15512_v53 }
 0x295   :  { %22754 = vst [vmem:[#allocation125_spill] sm:$0xff] %v15696_v27  ;;  %22755 = vst [vmem:[#allocation126_spill] sm:$0xff] %v15698_v35 }
 0x296   :  { %1873 = vmatmul.mubr.bf16.gmra.mrb[8].mxu0 %v15014_v14  ;;  %2256 = vmatmul.mubr.bf16.gmra.mrb[156].mxu1 %v15061_v16 }
 0x297   :  { %1882 = vmatprep.mubr.bf16.mxu0 %v22672_v39  ;;  %2265 = vmatprep.mubr.bf16.mxu1 %v22672_v39 }
 0x299   :  { %v15708_v40 = vpop.f32.mrb[160].mxu0  ;;  %v15710_v24 = vpop.f32.mrb[52].mxu1 }
 0x29a   :  { %22756 = vst [vmem:[#allocation127_spill] sm:$0xff] %v15708_v40  ;;  %22757 = vst [vmem:[#allocation128_spill] sm:$0xff] %v15710_v24  ;;  %v15712_v23 = vpop.f32.mrb[161].mxu0  ;;  %v15714_v57 = vpop.f32.mrb[53].mxu1 }
 0x29b   :  { %22758 = vst [vmem:[#allocation129_spill] sm:$0xff] %v15712_v23  ;;  %22759 = vst [vmem:[#allocation130_spill] sm:$0xff] %v15714_v57  ;;  %v15716_v15 = vpop.f32.mrb[162].mxu0  ;;  %v15718_v58 = vpop.f32.mrb[54].mxu1  ;;  %v22773_v57 = vpack.c.bf16 %v15410_v6, %v15402_v12  ;;  %v22781_v12 = vpack.c.bf16 %v15438_v41, %v15430_v10  ;;  %v22785_v10 = vpack.c.bf16 %v15466_v29, %v15458_v1 }
 0x29c   :  { %22760 = vst [vmem:[#allocation131_spill] sm:$0xff] %v15716_v15  ;;  %22761 = vst [vmem:[#allocation132_spill] sm:$0xff] %v15718_v58  ;;  %v15724_v35 = vpop.f32.mrb[163].mxu0  ;;  %v15726_v27 = vpop.f32.mrb[55].mxu1 }
 0x29d   :  { %22762 = vst [vmem:[#allocation133_spill] sm:$0xff] %v15724_v35  ;;  %22763 = vst [vmem:[#allocation134_spill] sm:$0xff] %v15726_v27 }
 0x29e   :  { %1883 = vmatmul.mubr.bf16.gmra.mrb[12].mxu0 %v15040_v47  ;;  %2266 = vmatmul.mubr.bf16.gmra.mrb[160].mxu1 %v15059_v13 }
 0x29f   :  { %13474 = vmatprep.mubr.bf16.mxu1 %v14810_v9  ;;  %1892 = vmatprep.mubr.bf16.mxu0 %v22672_v39 }
 0x2a1   :  { %v15736_v32 = vpop.f32.mrb[164].mxu0  ;;  %v15738_v11 = vpop.f32.mrb[56].mxu1 }
 0x2a2   :  { %22764 = vst [vmem:[#allocation135_spill] sm:$0xff] %v15736_v32  ;;  %22765 = vst [vmem:[#allocation136_spill] sm:$0xff] %v15738_v11  ;;  %v15740_v24 = vpop.f32.mrb[165].mxu0  ;;  %v15742_v58 = vpop.f32.mrb[57].mxu1 }
 0x2a3   :  { %22766 = vst [vmem:[#allocation137_spill] sm:$0xff] %v15740_v24  ;;  %22767 = vst [vmem:[#allocation138_spill] sm:$0xff] %v15742_v58  ;;  %v15744_v8 = vpop.f32.mrb[166].mxu0  ;;  %v15746_v23 = vpop.f32.mrb[58].mxu1  ;;  %v22934_v24 = vld [vmem:[#allocation18_spill] sm:$0xff] }
 0x2a4   :  { %22768 = vst [vmem:[#allocation139_spill] sm:$0xff] %v15744_v8  ;;  %22769 = vst [vmem:[#allocation140_spill] sm:$0xff] %v15746_v23  ;;  %v15752_v27 = vpop.f32.mrb[167].mxu0  ;;  %v15754_v35 = vpop.f32.mrb[59].mxu1 }
 0x2a5   :  { %22770 = vst [vmem:[#allocation141_spill] sm:$0xff] %v15752_v27  ;;  %22771 = vst [vmem:[#allocation142_spill] sm:$0xff] %v15754_v35 }
 0x2a6   :  { %1893 = vmatmul.mubr.bf16.gmra.mrb[16].mxu0 %v15038_v45  ;;  %13475 = vmatmul.mubr.bf16.vlgmr.msra.gmra.mrb[164].mxu1 %v14805_v7 }
 0x2a7   :  { %12128 = vmatpush3.bf16.msra.mxu1 %v22772_v48  ;;  %13478 = vmatprep.mubr.bf16.mxu1 %v14835_v28 }
 0x2a8   :  { %12129 = vmatprep.subr.bf16.mxu1 %v22773_v57  ;;  %1902 = vmatprep.mubr.bf16.mxu0 %v22672_v39 }
 0x2a9   :  { %v15770_v40 = vpop.f32.mrb[168].mxu0  ;;  %v15772_v11 = vpop.f32.mrb[60].mxu1 }
 0x2aa   :  { %22774 = vst [vmem:[#allocation143_spill] sm:$0xff] %v15770_v40  ;;  %22775 = vst [vmem:[#allocation144_spill] sm:$0xff] %v15772_v11  ;;  %v15774_v15 = vpop.f32.mrb[169].mxu0  ;;  %v15776_v58 = vpop.f32.mrb[61].mxu1  ;;  %v22966_v40 = vld [vmem:[#allocation85_spill] sm:$0xff] }
 0x2ab   :  { %22776 = vst [vmem:[#allocation145_spill] sm:$0xff] %v15774_v15  ;;  %22777 = vst [vmem:[#allocation146_spill] sm:$0xff] %v15776_v58  ;;  %12130 = vmatpush3.bf16.msra.mxu1 %v22778_v43  ;;  %v15781_v48 = vpop.f32.mrb[170].mxu0  ;;  %v15783_v37 = vpop.f32.mrb[62].mxu1  ;;  %v22784_v43 = vpack.c.bf16 %v15548_v63, %v15540_v34  ;;  %v22790_v63 = vpack.c.bf16 %v15576_v62, %v15568_v51  ;;  %v22923_v15 = vld [vmem:[#allocation13_spill] sm:$0xff] }
 0x2ac   :  { %22779 = vst [vmem:[#allocation147_spill] sm:$0xff] %v15781_v48  ;;  %22780 = vst [vmem:[#allocation148_spill] sm:$0xff] %v15783_v37  ;;  %12131 = vmatprep.subr.bf16.mxu1 %v22781_v12  ;;  %v15792_v35 = vpop.f32.mrb[171].mxu0  ;;  %v15794_v23 = vpop.f32.mrb[63].mxu1  ;;  %v22968_v48 = vld [vmem:[#allocation72_spill] sm:$0xff] }
 0x2ad   :  { %22782 = vst [vmem:[#allocation149_spill] sm:$0xff] %v15792_v35  ;;  %22783 = vst [vmem:[#allocation150_spill] sm:$0xff] %v15794_v23  ;;  %v22924_v35 = vld [vmem:[#allocation16_spill] sm:$0xff] }
 0x2ae   :  { %1903 = vmatmul.mubr.bf16.gmra.mrb[20].mxu0 %v15061_v16  ;;  %13479 = vmatmul.mubr.bf16.gmra.mrb[168].mxu1 %v14830_v26 }
 0x2af   :  { %12132 = vmatpush3.bf16.msra.mxu1 %v22784_v43  ;;  %13482 = vmatprep.mubr.bf16.mxu1 %v14857_v46 }
 0x2b0   :  { %12133 = vmatprep.subr.bf16.mxu1 %v22785_v10  ;;  %1912 = vmatprep.mubr.bf16.mxu0 %v22672_v39  ;;  %v22793_v10 = vpack.c.bf16 %v15494_v31, %v15486_v33  ;;  %v22797_v31 = vpack.c.bf16 %v15522_v56, %v15514_v38  ;;  %v22845_v56 = vld [vmem:[#allocation61_spill] sm:$0xff] }
 0x2b1   :  { %v15810_v41 = vpop.f32.mrb[172].mxu0  ;;  %v15812_v12 = vpop.f32.mrb[64].mxu1 }
 0x2b2   :  { %22786 = vst [vmem:[#allocation151_spill] sm:$0xff] %v15810_v41  ;;  %22787 = vst [vmem:[#allocation152_spill] sm:$0xff] %v15812_v12  ;;  %v15814_v42 = vpop.f32.mrb[173].mxu0  ;;  %v15816_v57 = vpop.f32.mrb[65].mxu1 }
 0x2b3   :  { %22788 = vst [vmem:[#allocation153_spill] sm:$0xff] %v15814_v42  ;;  %22789 = vst [vmem:[#allocation154_spill] sm:$0xff] %v15816_v57  ;;  %12134 = vmatpush3.bf16.msra.mxu1 %v22790_v63  ;;  %v15821_v34 = vpop.f32.mrb[174].mxu0  ;;  %v15823_v43 = vpop.f32.mrb[66].mxu1  ;;  %v22796_v63 = vpack.c.bf16 %v15604_v22, %v15596_v30  ;;  %v22802_v22 = vpack.c.bf16 %v15632_v20, %v15624_v36  ;;  %v22839_v36 = vld [vmem:[#allocation30_spill] sm:$0xff] }
 0x2b4   :  { %22791 = vst [vmem:[#allocation155_spill] sm:$0xff] %v15821_v34  ;;  %22792 = vst [vmem:[#allocation156_spill] sm:$0xff] %v15823_v43  ;;  %12135 = vmatprep.subr.bf16.mxu1 %v22793_v10  ;;  %v15832_v53 = vpop.f32.mrb[175].mxu0  ;;  %v15834_v6 = vpop.f32.mrb[67].mxu1  ;;  %v14037_v34 = vld [vmem:[%s22037_s6 + $0x12c] ss:$144 sps:$4 sm:$0xff]  }
 0x2b5   :  { %22794 = vst [vmem:[#allocation157_spill] sm:$0xff] %v15832_v53  ;;  %22795 = vst [vmem:[#allocation158_spill] sm:$0xff] %v15834_v6 }
 0x2b6   :  { %1913 = vmatmul.mubr.bf16.gmra.mrb[24].mxu0 %v15059_v13  ;;  %13483 = vmatmul.mubr.bf16.gmra.mrb[172].mxu1 %v14852_v44 }
 0x2b7   :  { %12136 = vmatpush3.bf16.msra.mxu1 %v22796_v63  ;;  %13486 = vmatprep.mubr.bf16.mxu1 %v14879_v2 }
 0x2b8   :  { %12137 = vmatprep.subr.bf16.mxu1 %v22797_v31  ;;  %2308 = vmatprep.mubr.bf16.mxu0 %v22672_v39  ;;  %v22805_v31 = vpack.c.bf16 %v15550_v52, %v15542_v59  ;;  %v22809_v52 = vpack.c.bf16 %v15660_v49, %v15652_v17  ;;  %v22810_v59 = vpack.c.bf16 %v15322_v60, %v15318_v19 }
 0x2b9   :  { %v15850_v33 = vpop.f32.mrb[176].mxu0  ;;  %v15852_v10 = vpop.f32.mrb[68].mxu1  ;;  %v22816_v49 = vpack.c.bf16 %v15182_v3, %v15178_v61  ;;  %v22822_v61 = vld [vmem:[#allocation66_spill] sm:$0xff]  ;;  %v22823_v3 = vld [vmem:[#allocation63_spill] sm:$0xff] }
 0x2ba   :  { %22798 = vst [vmem:[#allocation159_spill] sm:$0xff] %v15850_v33  ;;  %22799 = vst [vmem:[#allocation160_spill] sm:$0xff] %v15852_v10  ;;  %v15854_v51 = vpop.f32.mrb[177].mxu0  ;;  %v15856_v29 = vpop.f32.mrb[69].mxu1  ;;  %v22903_v10 = vld [vmem:[#allocation9_spill] sm:$0xff] }
 0x2bb   :  { %22800 = vst [vmem:[#allocation161_spill] sm:$0xff] %v15854_v51  ;;  %22801 = vst [vmem:[#allocation162_spill] sm:$0xff] %v15856_v29  ;;  %12138 = vmatpush3.bf16.msra.mxu1 %v22802_v22  ;;  %v15861_v30 = vpop.f32.mrb[178].mxu0  ;;  %v15863_v63 = vpop.f32.mrb[70].mxu1  ;;  %v22808_v22 = vpack.c.bf16 %v15163_v55, %v15159_v50  ;;  %v22817_v55 = vpack.c.bf16 %v15358_v54, %v15350_v5  ;;  %v22867_v29 = vld [vmem:[#allocation73_spill] sm:$0xff]  ;;  %v22914_v51 = vld [vmem:[#allocation14_spill] sm:$0xff] }
 0x2bc   :  { %22803 = vst [vmem:[#allocation163_spill] sm:$0xff] %v15861_v30  ;;  %22804 = vst [vmem:[#allocation164_spill] sm:$0xff] %v15863_v63  ;;  %12139 = vmatprep.subr.bf16.mxu1 %v22805_v31  ;;  %v15872_v62 = vpop.f32.mrb[179].mxu0  ;;  %v15874_v1 = vpop.f32.mrb[71].mxu1  ;;  %v22811_v31 = vpack.c.bf16 %v15578_v25, %v15570_v4  ;;  %v22840_v4 = vld [vmem:[#allocation28_spill] sm:$0xff] }
 0x2bd   :  { %22806 = vst [vmem:[#allocation165_spill] sm:$0xff] %v15872_v62  ;;  %22807 = vst [vmem:[#allocation166_spill] sm:$0xff] %v15874_v1  ;;  %v22904_v63 = vld [vmem:[#allocation12_spill] sm:$0xff]  ;;  %v14034_v33 = vld [vmem:[%s22037_s6 + $0x8] ss:$144 sps:$4 sm:$0xff]  }
 0x2be   :  { %2309 = vmatmul.mubr.bf16.vlgmr.msra.gmra.mrb[28].mxu0 %v14810_v9  ;;  %13487 = vmatmul.mubr.bf16.gmra.mrb[176].mxu1 %v14874_v0 }
 0x2bf   :  { %12064 = vmatpush3.bf16.msra.mxu0 %v22808_v22  ;;  %12140 = vmatpush3.bf16.msra.mxu1 %v22809_v52  ;;  %v22820_v22 = vld [vmem:[#allocation52_spill] sm:$0xff] }
 0x2c0   :  { %13490 = vmatprep.mubr.bf16.mxu1 %v14889_v18  ;;  %12065 = vmatprep.subr.bf16.mxu0 %v22810_v59  ;;  %v22821_v52 = vpack.c.bf16 %v15338_v21, %v22820_v22  ;;  %v22824_v59 = vpack.c.bf16 %v22822_v61, %v22823_v3  ;;  %v22828_v21 = vld [vmem:[#allocation26_spill] sm:$0xff]  ;;  %v22829_v22 = vld [vmem:[#allocation24_spill] sm:$0xff] }
 0x2c1   :  { %12141 = vmatprep.subr.bf16.mxu1 %v22811_v31  ;;  %v15895_v9 = vpop.f32.mrb[180].mxu0  ;;  %v15897_v20 = vpop.f32.mrb[72].mxu1  ;;  %2318 = vmatprep.mubr.bf16.mxu0 %v22672_v39  ;;  %v22831_v61 = vld [vmem:[#allocation4_spill] sm:$0xff]  ;;  %v22832_v3 = vld [vmem:[#allocation58_spill] sm:$0xff] }
 0x2c2   :  { %22812 = vst [vmem:[#allocation167_spill] sm:$0xff] %v15895_v9  ;;  %22813 = vst [vmem:[#allocation168_spill] sm:$0xff] %v15897_v20  ;;  %v15900_v50 = vpop.f32.mrb[181].mxu0  ;;  %v15902_v17 = vpop.f32.mrb[73].mxu1 }
 0x2c3   :  { %22814 = vst [vmem:[#allocation169_spill] sm:$0xff] %v15900_v50  ;;  %22815 = vst [vmem:[#allocation170_spill] sm:$0xff] %v15902_v17  ;;  %12066 = vmatpush3.bf16.msra.mxu0 %v22816_v49  ;;  %12142 = vmatpush3.bf16.msra.mxu1 %v22817_v55  ;;  %v15910_v25 = vpop.f32.mrb[182].mxu0  ;;  %v15912_v60 = vpop.f32.mrb[74].mxu1  ;;  %v22827_v55 = vld [vmem:[#allocation2_spill] sm:$0xff] }
 0x2c4   :  { %22818 = vst [vmem:[#allocation171_spill] sm:$0xff] %v15910_v25  ;;  %22819 = vst [vmem:[#allocation172_spill] sm:$0xff] %v15912_v60  ;;  %12067 = vmatprep.subr.bf16.mxu0 %v22821_v52  ;;  %12255 = vmatprep.subr.bf16.mxu1 %v22824_v59  ;;  %v15924_v54 = vpop.f32.mrb[183].mxu0  ;;  %v15926_v5 = vpop.f32.mrb[75].mxu1  ;;  %v22830_v52 = vpack.c.bf16 %v22828_v21, %v22829_v22  ;;  %v22833_v59 = vld [vmem:[#allocation55_spill] sm:$0xff]  ;;  %v22841_v21 = vpack.c.bf16 %v22839_v36, %v22840_v4 }
 0x2c5   :  { %22825 = vst [vmem:[#allocation52_spill] sm:$0xff] %v15924_v54  ;;  %22826 = vst [vmem:[#allocation66_spill] sm:$0xff] %v15926_v5  ;;  %v22834_v19 = vpack.c.bf16 %v22832_v3, %v22833_v59  ;;  %v22844_v59 = vld [vmem:[#allocation64_spill] sm:$0xff]  ;;  %v22913_v54 = vld [vmem:[#allocation11_spill] sm:$0xff] }
 0x2c6   :  { %2319 = vmatmul.mubr.bf16.gmra.mrb[32].mxu0 %v14805_v7  ;;  %13491 = vmatmul.mubr.bf16.gmra.mrb[180].mxu1 %v22827_v55  ;;  %v22846_v57 = vpack.c.bf16 %v22844_v59, %v22845_v56  ;;  %v22851_v3 = vld [vmem:[#allocation32_spill] sm:$0xff]  ;;  %v22853_v56 = vld [vmem:[#allocation6_spill] sm:$0xff]  ;;  %v22855_v59 = vld [vmem:[#allocation67_spill] sm:$0xff] }
 0x2c7   :  { %12068 = vmatpush3.bf16.msra.mxu0 %v22830_v52  ;;  %13494 = vmatprep.mubr.bf16.mxu1 %v22831_v61 }
 0x2c8   :  { %12069 = vmatprep.subr.bf16.mxu0 %v22834_v19  ;;  %2328 = vmatprep.mubr.bf16.mxu0 %v22672_v39  ;;  %v22850_v19 = vld [vmem:[#allocation34_spill] sm:$0xff] }
 0x2c9   :  { %v15942_v38 = vpop.f32.mrb[184].mxu0  ;;  %v15944_v31 = vpop.f32.mrb[76].mxu1  ;;  %v22852_v23 = vpack.c.bf16 %v22850_v19, %v22851_v3 }
 0x2ca   :  { %22835 = vst [vmem:[#allocation63_spill] sm:$0xff] %v15942_v38  ;;  %22836 = vst [vmem:[#allocation2_spill] sm:$0xff] %v15944_v31  ;;  %v15946_v49 = vpop.f32.mrb[185].mxu0  ;;  %v15948_v7 = vpop.f32.mrb[77].mxu1 }
 0x2cb   :  { %22837 = vst [vmem:[#allocation26_spill] sm:$0xff] %v15946_v49  ;;  %22838 = vst [vmem:[#allocation24_spill] sm:$0xff] %v15948_v7  ;;  %12070 = vmatpush3.bf16.msra.mxu0 %v22841_v21  ;;  %v15953_v22 = vpop.f32.mrb[186].mxu0  ;;  %v15955_v52 = vpop.f32.mrb[78].mxu1  ;;  %v22849_v21 = vld [vmem:[#allocation3_spill] sm:$0xff]  ;;  %v22861_v7 = vld [vmem:[#allocation38_spill] sm:$0xff] }
 0x2cc   :  { %22842 = vst [vmem:[#allocation4_spill] sm:$0xff] %v15953_v22  ;;  %22843 = vst [vmem:[#allocation58_spill] sm:$0xff] %v15955_v52  ;;  %12071 = vmatprep.subr.bf16.mxu0 %v22846_v57  ;;  %v15964_v6 = vpop.f32.mrb[187].mxu0  ;;  %v15966_v58 = vpop.f32.mrb[79].mxu1  ;;  %v22854_v57 = vld [vmem:[#allocation70_spill] sm:$0xff] }
 0x2cd   :  { %22847 = vst [vmem:[#allocation55_spill] sm:$0xff] %v15964_v6  ;;  %22848 = vst [vmem:[#allocation30_spill] sm:$0xff] %v15966_v58  ;;  %v22856_v17 = vpack.c.bf16 %v22854_v57, %v22855_v59  ;;  %v22862_v58 = vld [vmem:[#allocation36_spill] sm:$0xff] }
 0x2ce   :  { %2329 = vmatmul.mubr.bf16.gmra.mrb[36].mxu0 %v14835_v28  ;;  %13495 = vmatmul.mubr.bf16.gmra.mrb[184].mxu1 %v22849_v21  ;;  %v22863_v19 = vpack.c.bf16 %v22861_v7, %v22862_v58  ;;  %v22866_v59 = vld [vmem:[#allocation76_spill] sm:$0xff] }
 0x2cf   :  { %12072 = vmatpush3.bf16.msra.mxu0 %v22852_v23  ;;  %13498 = vmatprep.mubr.bf16.mxu1 %v22853_v56  ;;  %v22868_v1 = vpack.c.bf16 %v22866_v59, %v22867_v29  ;;  %v22873_v57 = vld [vmem:[#allocation40_spill] sm:$0xff]  ;;  %v22877_v59 = vld [vmem:[#allocation79_spill] sm:$0xff] }
 0x2d0   :  { %12073 = vmatprep.subr.bf16.mxu0 %v22856_v17  ;;  %2338 = vmatprep.mubr.bf16.mxu0 %v22672_v39  ;;  %v22872_v17 = vld [vmem:[#allocation42_spill] sm:$0xff]  ;;  %v22875_v29 = vld [vmem:[#allocation8_spill] sm:$0xff] }
 0x2d1   :  { %v15982_v36 = vpop.f32.mrb[188].mxu0  ;;  %v15984_v5 = vpop.f32.mrb[80].mxu1  ;;  %v22874_v11 = vpack.c.bf16 %v22872_v17, %v22873_v57 }
 0x2d2   :  { %22857 = vst [vmem:[#allocation28_spill] sm:$0xff] %v15982_v36  ;;  %22858 = vst [vmem:[#allocation64_spill] sm:$0xff] %v15984_v5  ;;  %v15986_v4 = vpop.f32.mrb[189].mxu0  ;;  %v15988_v28 = vpop.f32.mrb[81].mxu1 }
 0x2d3   :  { %22859 = vst [vmem:[#allocation61_spill] sm:$0xff] %v15986_v4  ;;  %22860 = vst [vmem:[#allocation3_spill] sm:$0xff] %v15988_v28  ;;  %12074 = vmatpush3.bf16.msra.mxu0 %v22863_v19  ;;  %v15993_v23 = vpop.f32.mrb[190].mxu0  ;;  %v15995_v3 = vpop.f32.mrb[82].mxu1  ;;  %v22871_v19 = vld [vmem:[#allocation5_spill] sm:$0xff]  ;;  %v22883_v28 = vld [vmem:[#allocation46_spill] sm:$0xff] }
 0x2d4   :  { %22864 = vst [vmem:[#allocation34_spill] sm:$0xff] %v15993_v23  ;;  %22865 = vst [vmem:[#allocation32_spill] sm:$0xff] %v15995_v3  ;;  %12075 = vmatprep.subr.bf16.mxu0 %v22868_v1  ;;  %v16004_v12 = vpop.f32.mrb[191].mxu0  ;;  %v16006_v43 = vpop.f32.mrb[83].mxu1  ;;  %v22876_v1 = vld [vmem:[#allocation82_spill] sm:$0xff]  ;;  %v22889_v3 = vld [vmem:[#allocation48_spill] sm:$0xff] }
 0x2d5   :  { %22869 = vst [vmem:[#allocation6_spill] sm:$0xff] %v16004_v12  ;;  %22870 = vst [vmem:[#allocation70_spill] sm:$0xff] %v16006_v43  ;;  %v22878_v37 = vpack.c.bf16 %v22876_v1, %v22877_v59  ;;  %v22884_v43 = vld [vmem:[#allocation44_spill] sm:$0xff]  ;;  %v22888_v59 = vld [vmem:[#allocation49_spill] sm:$0xff] }
 0x2d6   :  { %2339 = vmatmul.mubr.bf16.gmra.mrb[40].mxu0 %v14830_v26  ;;  %13499 = vmatmul.mubr.bf16.gmra.mrb[188].mxu1 %v22871_v19  ;;  %v22885_v17 = vpack.c.bf16 %v22883_v28, %v22884_v43  ;;  %v22890_v31 = vpack.c.bf16 %v22888_v59, %v22889_v3 }
 0x2d7   :  { %12076 = vmatpush3.bf16.msra.mxu0 %v22874_v11  ;;  %13502 = vmatprep.mubr.bf16.mxu1 %v22875_v29 }
 0x2d8   :  { %12077 = vmatprep.subr.bf16.mxu0 %v22878_v37  ;;  %2348 = vmatprep.mubr.bf16.mxu0 %v22672_v39  ;;  %v22894_v37 = vld [vmem:[#allocation10_spill] sm:$0xff] }
 0x2d9   :  { %v16022_v58 = vpop.f32.mrb[192].mxu0  ;;  %v16024_v5 = vpop.f32.mrb[84].mxu1 }
 0x2da   :  { %22879 = vst [vmem:[#allocation67_spill] sm:$0xff] %v16022_v58  ;;  %22880 = vst [vmem:[#allocation38_spill] sm:$0xff] %v16024_v5  ;;  %v16026_v7 = vpop.f32.mrb[193].mxu0  ;;  %v16028_v26 = vpop.f32.mrb[85].mxu1 }
 0x2db   :  { %22881 = vst [vmem:[#allocation36_spill] sm:$0xff] %v16026_v7  ;;  %22882 = vst [vmem:[#allocation76_spill] sm:$0xff] %v16028_v26  ;;  %12078 = vmatpush3.bf16.msra.mxu0 %v22885_v17  ;;  %v16033_v11 = vpop.f32.mrb[194].mxu0  ;;  %v16035_v57 = vpop.f32.mrb[86].mxu1  ;;  %v22893_v17 = vld [vmem:[#allocation7_spill] sm:$0xff] }
 0x2dc   :  { %22886 = vst [vmem:[#allocation73_spill] sm:$0xff] %v16033_v11  ;;  %22887 = vst [vmem:[#allocation5_spill] sm:$0xff] %v16035_v57  ;;  %12191 = vmatprep.subr.bf16.mxu0 %v22890_v31  ;;  %v16044_v52 = vpop.f32.mrb[195].mxu0  ;;  %v16046_v20 = vpop.f32.mrb[87].mxu1 }
 0x2dd   :  { %22891 = vst [vmem:[#allocation42_spill] sm:$0xff] %v16044_v52  ;;  %22892 = vst [vmem:[#allocation40_spill] sm:$0xff] %v16046_v20 }
 0x2de   :  { %2349 = vmatmul.mubr.bf16.gmra.mrb[44].mxu0 %v14857_v46  ;;  %13503 = vmatmul.mubr.bf16.gmra.mrb[192].mxu1 %v22893_v17 }
 0x2df   :  { %13506 = vmatprep.mubr.bf16.mxu1 %v22894_v37  ;;  %2358 = vmatprep.mubr.bf16.mxu0 %v22672_v39 }
 0x2e1   :  { %v16056_v3 = vpop.f32.mrb[196].mxu0  ;;  %v16058_v31 = vpop.f32.mrb[88].mxu1 }
 0x2e2   :  { %22895 = vst [vmem:[#allocation8_spill] sm:$0xff] %v16056_v3  ;;  %22896 = vst [vmem:[#allocation82_spill] sm:$0xff] %v16058_v31  ;;  %v16060_v59 = vpop.f32.mrb[197].mxu0  ;;  %v16062_v1 = vpop.f32.mrb[89].mxu1 }
 0x2e3   :  { %22897 = vst [vmem:[#allocation79_spill] sm:$0xff] %v16060_v59  ;;  %22898 = vst [vmem:[#allocation46_spill] sm:$0xff] %v16062_v1  ;;  %v16064_v43 = vpop.f32.mrb[198].mxu0  ;;  %v16066_v5 = vpop.f32.mrb[90].mxu1 }
 0x2e4   :  { %22899 = vst [vmem:[#allocation44_spill] sm:$0xff] %v16064_v43  ;;  %22900 = vst [vmem:[#allocation49_spill] sm:$0xff] %v16066_v5  ;;  %v16072_v26 = vpop.f32.mrb[199].mxu0  ;;  %v16074_v20 = vpop.f32.mrb[91].mxu1 }
 0x2e5   :  { %22901 = vst [vmem:[#allocation48_spill] sm:$0xff] %v16072_v26  ;;  %22902 = vst [vmem:[#allocation7_spill] sm:$0xff] %v16074_v20 }
 0x2e6   :  { %2359 = vmatmul.mubr.bf16.gmra.mrb[48].mxu0 %v14852_v44  ;;  %13507 = vmatmul.mubr.bf16.gmra.mrb[196].mxu1 %v22903_v10 }
 0x2e7   :  { %13510 = vmatprep.mubr.bf16.mxu1 %v22904_v63  ;;  %2368 = vmatprep.mubr.bf16.mxu0 %v22672_v39 }
 0x2e9   :  { %v16084_v46 = vpop.f32.mrb[200].mxu0  ;;  %v16086_v28 = vpop.f32.mrb[92].mxu1 }
 0x2ea   :  { %22905 = vst [vmem:[#allocation10_spill] sm:$0xff] %v16084_v46  ;;  %22906 = vst [vmem:[#allocation9_spill] sm:$0xff] %v16086_v28  ;;  %v16088_v31 = vpop.f32.mrb[201].mxu0  ;;  %v16090_v5 = vpop.f32.mrb[93].mxu1  ;;  %v22969_v46 = vld [vmem:[#allocation69_spill] sm:$0xff] }
 0x2eb   :  { %22907 = vst [vmem:[#allocation12_spill] sm:$0xff] %v16088_v31  ;;  %22908 = vst [vmem:[#allocation173_spill] sm:$0xff] %v16090_v5  ;;  %v16092_v57 = vpop.f32.mrb[202].mxu0  ;;  %v16094_v49 = vpop.f32.mrb[94].mxu1 }
 0x2ec   :  { %22909 = vst [vmem:[#allocation174_spill] sm:$0xff] %v16092_v57  ;;  %22910 = vst [vmem:[#allocation175_spill] sm:$0xff] %v16094_v49  ;;  %v16100_v1 = vpop.f32.mrb[203].mxu0  ;;  %v16102_v20 = vpop.f32.mrb[95].mxu1  ;;  %v22970_v57 = vpack.c.bf16 %v22968_v48, %v22969_v46  ;;  %v22977_v46 = vld [vmem:[#allocation78_spill] sm:$0xff] }
 0x2ed   :  { %22911 = vst [vmem:[#allocation176_spill] sm:$0xff] %v16100_v1  ;;  %22912 = vst [vmem:[#allocation177_spill] sm:$0xff] %v16102_v20  ;;  %v22933_v1 = vld [vmem:[#allocation15_spill] sm:$0xff] }
 0x2ee   :  { %2369 = vmatmul.mubr.bf16.gmra.mrb[52].mxu0 %v14879_v2  ;;  %13511 = vmatmul.mubr.bf16.gmra.mrb[200].mxu1 %v22913_v54 }
 0x2ef   :  { %13514 = vmatprep.mubr.bf16.mxu1 %v22914_v51  ;;  %2378 = vmatprep.mubr.bf16.mxu0 %v22672_v39 }
 0x2f1   :  { %v16112_v44 = vpop.f32.mrb[204].mxu0  ;;  %v16114_v60 = vpop.f32.mrb[96].mxu1 }
 0x2f2   :  { %22915 = vst [vmem:[#allocation11_spill] sm:$0xff] %v16112_v44  ;;  %22916 = vst [vmem:[#allocation14_spill] sm:$0xff] %v16114_v60  ;;  %v16116_v28 = vpop.f32.mrb[205].mxu0  ;;  %v16118_v49 = vpop.f32.mrb[97].mxu1 }
 0x2f3   :  { %22917 = vst [vmem:[#allocation178_spill] sm:$0xff] %v16116_v28  ;;  %22918 = vst [vmem:[#allocation179_spill] sm:$0xff] %v16118_v49  ;;  %v16120_v6 = vpop.f32.mrb[206].mxu0  ;;  %v16122_v62 = vpop.f32.mrb[98].mxu1 }
 0x2f4   :  { %22919 = vst [vmem:[#allocation180_spill] sm:$0xff] %v16120_v6  ;;  %22920 = vst [vmem:[#allocation181_spill] sm:$0xff] %v16122_v62  ;;  %v16128_v5 = vpop.f32.mrb[207].mxu0  ;;  %v16130_v20 = vpop.f32.mrb[99].mxu1 }
 0x2f5   :  { %22921 = vst [vmem:[#allocation182_spill] sm:$0xff] %v16128_v5  ;;  %22922 = vst [vmem:[#allocation183_spill] sm:$0xff] %v16130_v20 }
 0x2f6   :  { %2379 = vmatmul.mubr.bf16.gmra.mrb[56].mxu0 %v14874_v0  ;;  %13515 = vmatmul.mubr.bf16.gmra.mrb[204].mxu1 %v22923_v15 }
 0x2f7   :  { %13518 = vmatprep.mubr.bf16.mxu1 %v22924_v35  ;;  %2388 = vmatprep.mubr.bf16.mxu0 %v22672_v39 }
 0x2f9   :  { %v16140_v2 = vpop.f32.mrb[208].mxu0  ;;  %v16142_v50 = vpop.f32.mrb[100].mxu1 }
 0x2fa   :  { %22925 = vst [vmem:[#allocation13_spill] sm:$0xff] %v16140_v2  ;;  %22926 = vst [vmem:[#allocation16_spill] sm:$0xff] %v16142_v50  ;;  %v16144_v60 = vpop.f32.mrb[209].mxu0  ;;  %v16146_v62 = vpop.f32.mrb[101].mxu1 }
 0x2fb   :  { %22927 = vst [vmem:[#allocation184_spill] sm:$0xff] %v16144_v60  ;;  %22928 = vst [vmem:[#allocation185_spill] sm:$0xff] %v16146_v62  ;;  %v16148_v42 = vpop.f32.mrb[210].mxu0  ;;  %v16150_v28 = vpop.f32.mrb[102].mxu1  ;;  %v22943_v62 = vld [vmem:[#allocation17_spill] sm:$0xff] }
 0x2fc   :  { %22929 = vst [vmem:[#allocation186_spill] sm:$0xff] %v16148_v42  ;;  %22930 = vst [vmem:[#allocation187_spill] sm:$0xff] %v16150_v28  ;;  %v16156_v49 = vpop.f32.mrb[211].mxu0  ;;  %v16158_v20 = vpop.f32.mrb[103].mxu1 }
 0x2fd   :  { %22931 = vst [vmem:[#allocation188_spill] sm:$0xff] %v16156_v49  ;;  %22932 = vst [vmem:[#allocation189_spill] sm:$0xff] %v16158_v20  ;;  %v22944_v20 = vld [vmem:[#allocation19_spill] sm:$0xff] }
 0x2fe   :  { %2389 = vmatmul.mubr.bf16.gmra.mrb[60].mxu0 %v14889_v18  ;;  %13519 = vmatmul.mubr.bf16.gmra.mrb[208].mxu1 %v22933_v1 }
 0x2ff   :  { %13522 = vmatprep.mubr.bf16.mxu1 %v22934_v24  ;;  %2398 = vmatprep.mubr.bf16.mxu0 %v22672_v39 }
 0x301   :  { %v16168_v0 = vpop.f32.mrb[212].mxu0  ;;  %v16170_v53 = vpop.f32.mrb[104].mxu1 }
 0x302   :  { %22935 = vst [vmem:[#allocation15_spill] sm:$0xff] %v16168_v0  ;;  %22936 = vst [vmem:[#allocation18_spill] sm:$0xff] %v16170_v53  ;;  %v16172_v27 = vpop.f32.mrb[213].mxu0  ;;  %v16174_v59 = vpop.f32.mrb[105].mxu1 }
 0x303   :  { %22937 = vst [vmem:[#allocation190_spill] sm:$0xff] %v16172_v27  ;;  %22938 = vst [vmem:[#allocation191_spill] sm:$0xff] %v16174_v59  ;;  %v16176_v5 = vpop.f32.mrb[214].mxu0  ;;  %v16178_v60 = vpop.f32.mrb[106].mxu1 }
 0x304   :  { %22939 = vst [vmem:[#allocation192_spill] sm:$0xff] %v16176_v5  ;;  %22940 = vst [vmem:[#allocation193_spill] sm:$0xff] %v16178_v60  ;;  %v16184_v49 = vpop.f32.mrb[215].mxu0  ;;  %v16186_v26 = vpop.f32.mrb[107].mxu1  ;;  %v14054_v60 = vld [vmem:[%s22037_s6 + $0x6c8] ss:$144 sps:$4 sm:$0xff]  }
 0x305   :  { %22941 = vst [vmem:[#allocation194_spill] sm:$0xff] %v16184_v49  ;;  %22942 = vst [vmem:[#allocation195_spill] sm:$0xff] %v16186_v26 }
 0x306   :  { %2399 = vmatmul.mubr.bf16.gmra.mrb[64].mxu0 %v22827_v55  ;;  %13523 = vmatmul.mubr.bf16.gmra.mrb[212].mxu1 %v22943_v62 }
 0x307   :  { %13526 = vmatprep.mubr.bf16.mxu1 %v22944_v20  ;;  %2408 = vmatprep.mubr.bf16.mxu0 %v22672_v39 }
 0x309   :  { %v16196_v18 = vpop.f32.mrb[216].mxu0  ;;  %v16198_v31 = vpop.f32.mrb[108].mxu1 }
 0x30a   :  { %22945 = vst [vmem:[#allocation17_spill] sm:$0xff] %v16196_v18  ;;  %22946 = vst [vmem:[#allocation19_spill] sm:$0xff] %v16198_v31  ;;  %v16200_v4 = vpop.f32.mrb[217].mxu0  ;;  %v16202_v12 = vpop.f32.mrb[109].mxu1 }
 0x30b   :  { %22947 = vst [vmem:[#allocation196_spill] sm:$0xff] %v16200_v4  ;;  %22948 = vst [vmem:[#allocation197_spill] sm:$0xff] %v16202_v12  ;;  %v16204_v7 = vpop.f32.mrb[218].mxu0  ;;  %v16206_v27 = vpop.f32.mrb[110].mxu1 }
 0x30c   :  { %22949 = vst [vmem:[#allocation198_spill] sm:$0xff] %v16204_v7  ;;  %22950 = vst [vmem:[#allocation199_spill] sm:$0xff] %v16206_v27  ;;  %v16212_v49 = vpop.f32.mrb[219].mxu0  ;;  %v16214_v59 = vpop.f32.mrb[111].mxu1 }
 0x30d   :  { %22951 = vst [vmem:[#allocation200_spill] sm:$0xff] %v16212_v49  ;;  %22952 = vst [vmem:[#allocation201_spill] sm:$0xff] %v16214_v59 }
 0x30e   :  { %2409 = vmatmul.mubr.bf16.gmra.mrb[68].mxu0 %v22831_v61  ;;  %13527 = vmatmul.mubr.bf16.gmra.mrb[216].mxu1 %v15014_v14 }
 0x30f   :  { %13530 = vmatprep.mubr.bf16.mxu1 %v15040_v47  ;;  %2418 = vmatprep.mubr.bf16.mxu0 %v22672_v39 }
 0x311   :  { %v16224_v55 = vpop.f32.mrb[220].mxu0  ;;  %v16226_v52 = vpop.f32.mrb[112].mxu1 }
 0x312   :  { %22953 = vst [vmem:[#allocation202_spill] sm:$0xff] %v16226_v52  ;;  %v16228_v22 = vpop.f32.mrb[221].mxu0  ;;  %v16230_v18 = vpop.f32.mrb[113].mxu1 }
 0x313   :  { %22954 = vst [vmem:[#allocation203_spill] sm:$0xff] %v16230_v18  ;;  %v16232_v26 = vpop.f32.mrb[222].mxu0  ;;  %v16234_v4 = vpop.f32.mrb[114].mxu1 }
 0x314   :  { %22955 = vst [vmem:[#allocation204_spill] sm:$0xff] %v16234_v4  ;;  %v16240_v49 = vpop.f32.mrb[223].mxu0  ;;  %v16242_v12 = vpop.f32.mrb[115].mxu1 }
 0x315   :  { %22956 = vst [vmem:[#allocation205_spill] sm:$0xff] %v16242_v12 }
 0x316   :  { %2419 = vmatmul.mubr.bf16.gmra.mrb[72].mxu0 %v22849_v21  ;;  %13531 = vmatmul.mubr.bf16.gmra.mrb[220].mxu1 %v15038_v45  ;;  %v14036_v21 = vld [vmem:[%s22037_s6 + $0xc] ss:$144 sps:$4 sm:$0xff]  }
 0x317   :  { %13534 = vmatprep.mubr.bf16.mxu1 %v15061_v16  ;;  %2428 = vmatprep.mubr.bf16.mxu0 %v22672_v39 }
 0x319   :  { %v16252_v61 = vpop.f32.mrb[224].mxu0  ;;  %v16254_v38 = vpop.f32.mrb[116].mxu1 }
 0x31a   :  { %22957 = vst [vmem:[#allocation206_spill] sm:$0xff] %v16254_v38  ;;  %v16256_v9 = vpop.f32.mrb[225].mxu0  ;;  %v16258_v25 = vpop.f32.mrb[117].mxu1 }
 0x31b   :  { %22958 = vst [vmem:[#allocation207_spill] sm:$0xff] %v16258_v25  ;;  %v16260_v59 = vpop.f32.mrb[226].mxu0  ;;  %v16262_v0 = vpop.f32.mrb[118].mxu1  ;;  %v22965_v25 = vld [vmem:[#allocation87_spill] sm:$0xff] }
 0x31c   :  { %22959 = vst [vmem:[#allocation208_spill] sm:$0xff] %v16262_v0  ;;  %v16271_v12 = vpop.f32.mrb[227].mxu0  ;;  %v16273_v5 = vpop.f32.mrb[119].mxu1 }
 0x31d   :  { %22960 = vst [vmem:[#allocation209_spill] sm:$0xff] %v16273_v5 }
 0x31e   :  { %2429 = vmatmul.mubr.bf16.gmra.mrb[76].mxu0 %v22853_v56  ;;  %13535 = vmatmul.mubr.bf16.gmra.mrb[224].mxu1 %v15059_v13 }
 0x31f   :  { %2438 = vmatprep.mubr.bf16.mxu0 %v22672_v39  ;;  %5070 = vmatprep.mubr.bf16.mxu1 %v14036_v21  ;;  %v22967_v21 = vpack.c.bf16 %v22965_v25, %v22966_v40  ;;  %v14039_v40 = vld [vmem:[%s22037_s6 + $0x128] ss:$144 sps:$4 sm:$0xff]  }
 0x320   :  { %v22974_v25 = vld [vmem:[#allocation89_spill] sm:$0xff] }
 0x321   :  { %v16282_v7 = vpop.f32.mrb[228].mxu0  ;;  %v16284_v18 = vpop.f32.mrb[120].mxu1 }
 0x322   :  { %22961 = vst [vmem:[#allocation210_spill] sm:$0xff] %v16284_v18  ;;  %v16286_v2 = vpop.f32.mrb[229].mxu0  ;;  %v16288_v42 = vpop.f32.mrb[121].mxu1 }
 0x323   :  { %22962 = vst [vmem:[#allocation211_spill] sm:$0xff] %v16288_v42  ;;  %v16293_v30 = vpop.f32.mrb[230].mxu0  ;;  %v16295_v56 = vpop.f32.mrb[122].mxu1  ;;  %v22978_v42 = vld [vmem:[#allocation75_spill] sm:$0xff] }
 0x324   :  { %22963 = vst [vmem:[#allocation212_spill] sm:$0xff] %v16295_v56  ;;  %v16301_v5 = vpop.f32.mrb[231].mxu0  ;;  %v16303_v41 = vpop.f32.mrb[123].mxu1 }
 0x325   :  { %22964 = vst [vmem:[#allocation213_spill] sm:$0xff] %v16303_v41  ;;  %v22979_v41 = vpack.c.bf16 %v22977_v46, %v22978_v42  ;;  %v22982_v42 = vld [vmem:[#allocation93_spill] sm:$0xff]  ;;  %v22984_v46 = vld [vmem:[#allocation84_spill] sm:$0xff] }
 0x326   :  { %2439 = vmatmul.mubr.bf16.gmra.mrb[80].mxu0 %v22871_v19  ;;  %5071 = vmatmul.mubr.bf16.vlgmr.msra.gmra.mrb[228].mxu1 %v14034_v33  ;;  %v22973_v33 = vld [vmem:[#allocation91_spill] sm:$0xff] }
 0x327   :  { %12256 = vmatpush3.bf16.msra.mxu1 %v22967_v21  ;;  %2448 = vmatprep.mubr.bf16.mxu0 %v22672_v39  ;;  %v22975_v19 = vpack.c.bf16 %v22973_v33, %v22974_v25  ;;  %v14040_v33 = vld [vmem:[%s22037_s6 + $0x24c] ss:$144 sps:$4 sm:$0xff]  }
 0x328   :  { %12257 = vmatprep.subr.bf16.mxu1 %v22970_v57  ;;  %5078 = vmatprep.mubr.bf16.mxu1 %v14037_v34  ;;  %v22981_v57 = vld [vmem:[#allocation95_spill] sm:$0xff]  ;;  %v22985_v34 = vld [vmem:[#allocation81_spill] sm:$0xff] }
 0x329   :  { %v16320_v32 = vpop.f32.mrb[232].mxu0  ;;  %v16322_v44 = vpop.f32.mrb[124].mxu1  ;;  %v22986_v58 = vpack.c.bf16 %v22984_v46, %v22985_v34  ;;  %v22993_v46 = vld [vmem:[#allocation88_spill] sm:$0xff]  ;;  %v23001_v34 = vld [vmem:[#allocation90_spill] sm:$0xff] }
 0x32a   :  { %22971 = vst [vmem:[#allocation87_spill] sm:$0xff] %v16322_v44  ;;  %v16324_v8 = vpop.f32.mrb[233].mxu0  ;;  %v16326_v6 = vpop.f32.mrb[125].mxu1 }
 0x32b   :  { %22972 = vst [vmem:[#allocation85_spill] sm:$0xff] %v16326_v6  ;;  %12258 = vmatpush3.bf16.msra.mxu1 %v22975_v19  ;;  %v16334_v21 = vpop.f32.mrb[234].mxu0  ;;  %v16336_v48 = vpop.f32.mrb[126].mxu1  ;;  %v22994_v6 = vld [vmem:[#allocation86_spill] sm:$0xff] }
 0x32c   :  { %22976 = vst [vmem:[#allocation72_spill] sm:$0xff] %v16336_v48  ;;  %12259 = vmatprep.subr.bf16.mxu1 %v22979_v41  ;;  %v16345_v3 = vpop.f32.mrb[235].mxu0  ;;  %v16347_v43 = vpop.f32.mrb[127].mxu1  ;;  %v22983_v41 = vpack.c.bf16 %v22981_v57, %v22982_v42  ;;  %v22990_v57 = vld [vmem:[#allocation97_spill] sm:$0xff] }
 0x32d   :  { %22980 = vst [vmem:[#allocation69_spill] sm:$0xff] %v16347_v43  ;;  %v22995_v43 = vpack.c.bf16 %v22993_v46, %v22994_v6  ;;  %v22998_v6 = vld [vmem:[#allocation102_spill] sm:$0xff]  ;;  %v23000_v46 = vld [vmem:[#allocation92_spill] sm:$0xff] }
 0x32e   :  { %2449 = vmatmul.mubr.bf16.gmra.mrb[84].mxu0 %v22875_v29  ;;  %5079 = vmatmul.mubr.bf16.gmra.mrb[232].mxu1 %v14039_v40  ;;  %v14042_v29 = vld [vmem:[%s22037_s6 + $0x248] ss:$144 sps:$4 sm:$0xff]  }
 0x32f   :  { %12260 = vmatpush3.bf16.msra.mxu1 %v22983_v41  ;;  %2458 = vmatprep.mubr.bf16.mxu0 %v22672_v39  ;;  %v22989_v40 = vld [vmem:[#allocation99_spill] sm:$0xff] }
 0x330   :  { %12261 = vmatprep.subr.bf16.mxu1 %v22986_v58  ;;  %5086 = vmatprep.mubr.bf16.mxu1 %v14040_v33  ;;  %v22991_v42 = vpack.c.bf16 %v22989_v40, %v22990_v57  ;;  %v14043_v40 = vld [vmem:[%s22037_s6 + $0x36c] ss:$144 sps:$4 sm:$0xff]  }
 0x331   :  { %v16364_v11 = vpop.f32.mrb[236].mxu0  ;;  %v16366_v25 = vpop.f32.mrb[128].mxu1  ;;  %v22997_v33 = vld [vmem:[#allocation105_spill] sm:$0xff] }
 0x332   :  { %22987 = vst [vmem:[#allocation91_spill] sm:$0xff] %v16366_v25  ;;  %v16368_v44 = vpop.f32.mrb[237].mxu0  ;;  %v16370_v19 = vpop.f32.mrb[129].mxu1  ;;  %v23002_v25 = vpack.c.bf16 %v23000_v46, %v23001_v34  ;;  %v23008_v46 = vld [vmem:[#allocation96_spill] sm:$0xff]  ;;  %v23016_v34 = vld [vmem:[#allocation98_spill] sm:$0xff] }
 0x333   :  { %22988 = vst [vmem:[#allocation89_spill] sm:$0xff] %v16370_v19  ;;  %12262 = vmatpush3.bf16.msra.mxu1 %v22991_v42  ;;  %v16378_v41 = vpop.f32.mrb[238].mxu0  ;;  %v16380_v58 = vpop.f32.mrb[130].mxu1  ;;  %v23009_v19 = vld [vmem:[#allocation94_spill] sm:$0xff] }
 0x334   :  { %22992 = vst [vmem:[#allocation78_spill] sm:$0xff] %v16380_v58  ;;  %12263 = vmatprep.subr.bf16.mxu1 %v22995_v43  ;;  %v16389_v48 = vpop.f32.mrb[239].mxu0  ;;  %v16391_v18 = vpop.f32.mrb[131].mxu1  ;;  %v22999_v43 = vpack.c.bf16 %v22997_v33, %v22998_v6  ;;  %v23006_v33 = vld [vmem:[#allocation108_spill] sm:$0xff] }
 0x335   :  { %22996 = vst [vmem:[#allocation75_spill] sm:$0xff] %v16391_v18  ;;  %v23010_v18 = vpack.c.bf16 %v23008_v46, %v23009_v19  ;;  %v23013_v19 = vld [vmem:[#allocation114_spill] sm:$0xff]  ;;  %v23015_v46 = vld [vmem:[#allocation100_spill] sm:$0xff] }
 0x336   :  { %2459 = vmatmul.mubr.bf16.gmra.mrb[88].mxu0 %v22893_v17  ;;  %5087 = vmatmul.mubr.bf16.gmra.mrb[236].mxu1 %v14042_v29  ;;  %v14045_v17 = vld [vmem:[%s22037_s6 + $0x368] ss:$144 sps:$4 sm:$0xff]   ;;  %v23017_v52 = vpack.c.bf16 %v23015_v46, %v23016_v34  ;;  %v14049_v34 = vld [vmem:[%s22037_s6 + $0x5ac] ss:$144 sps:$4 sm:$0xff]  }
 0x337   :  { %12264 = vmatpush3.bf16.msra.mxu1 %v22999_v43  ;;  %2468 = vmatprep.mubr.bf16.mxu0 %v22672_v39  ;;  %v23005_v29 = vld [vmem:[#allocation111_spill] sm:$0xff] }
 0x338   :  { %12265 = vmatprep.subr.bf16.mxu1 %v23002_v25  ;;  %5094 = vmatprep.mubr.bf16.mxu1 %v14043_v40  ;;  %v23007_v6 = vpack.c.bf16 %v23005_v29, %v23006_v33  ;;  %v14046_v29 = vld [vmem:[%s22037_s6 + $0x48c] ss:$144 sps:$4 sm:$0xff]  }
 0x339   :  { %v16408_v58 = vpop.f32.mrb[240].mxu0  ;;  %v16410_v57 = vpop.f32.mrb[132].mxu1  ;;  %v23012_v40 = vld [vmem:[#allocation117_spill] sm:$0xff] }
 0x33a   :  { %23003 = vst [vmem:[#allocation95_spill] sm:$0xff] %v16410_v57  ;;  %v16412_v56 = vpop.f32.mrb[241].mxu0  ;;  %v16414_v42 = vpop.f32.mrb[133].mxu1 }
 0x33b   :  { %23004 = vst [vmem:[#allocation93_spill] sm:$0xff] %v16414_v42  ;;  %12266 = vmatpush3.bf16.msra.mxu1 %v23007_v6  ;;  %v16422_v43 = vpop.f32.mrb[242].mxu0  ;;  %v16424_v25 = vpop.f32.mrb[134].mxu1 }
 0x33c   :  { %12267 = vmatprep.subr.bf16.mxu1 %v23010_v18  ;;  %v16433_v38 = vpop.f32.mrb[243].mxu0  ;;  %v16435_v0 = vpop.f32.mrb[135].mxu1  ;;  %v23014_v18 = vpack.c.bf16 %v23012_v40, %v23013_v19  ;;  %v23021_v40 = vld [vmem:[#allocation56_spill] sm:$0xff] }
 0x33d   :  { %23011 = vst [vmem:[#allocation84_spill] sm:$0xff] %v16435_v0 }
 0x33e   :  { %2469 = vmatmul.mubr.bf16.gmra.mrb[92].mxu0 %v22894_v37  ;;  %5095 = vmatmul.mubr.bf16.gmra.mrb[240].mxu1 %v14045_v17  ;;  %v14048_v37 = vld [vmem:[%s22037_s6 + $0x488] ss:$144 sps:$4 sm:$0xff]  }
 0x33f   :  { %12268 = vmatpush3.bf16.msra.mxu1 %v23014_v18  ;;  %2478 = vmatprep.mubr.bf16.mxu0 %v22672_v39  ;;  %v23020_v17 = vld [vmem:[#allocation59_spill] sm:$0xff] }
 0x340   :  { %12269 = vmatprep.subr.bf16.mxu1 %v23017_v52  ;;  %5102 = vmatprep.mubr.bf16.mxu1 %v14046_v29  ;;  %v23022_v19 = vpack.c.bf16 %v23020_v17, %v23021_v40  ;;  %v14051_v17 = vld [vmem:[%s22037_s6 + $0x5a8] ss:$144 sps:$4 sm:$0xff]  }
 0x341   :  { %v16452_v4 = vpop.f32.mrb[244].mxu0  ;;  %v16454_v33 = vpop.f32.mrb[136].mxu1 }
 0x342   :  { %23018 = vst [vmem:[#allocation81_spill] sm:$0xff] %v16454_v33  ;;  %v16456_v31 = vpop.f32.mrb[245].mxu0  ;;  %v16458_v6 = vpop.f32.mrb[137].mxu1 }
 0x343   :  { %23019 = vst [vmem:[#allocation99_spill] sm:$0xff] %v16458_v6  ;;  %12270 = vmatpush3.bf16.msra.mxu1 %v23022_v19  ;;  %v16466_v18 = vpop.f32.mrb[246].mxu0  ;;  %v16468_v52 = vpop.f32.mrb[138].mxu1 }
 0x344   :  { %23023 = vst [vmem:[#allocation97_spill] sm:$0xff] %v16468_v52  ;;  %v16477_v42 = vpop.f32.mrb[247].mxu0  ;;  %v16479_v0 = vpop.f32.mrb[139].mxu1 }
 0x345   :  { %23024 = vst [vmem:[#allocation88_spill] sm:$0xff] %v16479_v0 }
 0x346   :  { %2479 = vmatmul.mubr.bf16.gmra.mrb[96].mxu0 %v22903_v10  ;;  %5103 = vmatmul.mubr.bf16.gmra.mrb[244].mxu1 %v14048_v37  ;;  %v14052_v10 = vld [vmem:[%s22037_s6 + $0x6cc] ss:$144 sps:$4 sm:$0xff]  }
 0x347   :  { %2488 = vmatprep.mubr.bf16.mxu0 %v22672_v39  ;;  %5110 = vmatprep.mubr.bf16.mxu1 %v14049_v34 }
 0x349   :  { %v16487_v19 = vpop.f32.mrb[248].mxu0  ;;  %v16489_v29 = vpop.f32.mrb[140].mxu1 }
 0x34a   :  { %23025 = vst [vmem:[#allocation86_spill] sm:$0xff] %v16489_v29  ;;  %v16491_v46 = vpop.f32.mrb[249].mxu0  ;;  %v16493_v27 = vpop.f32.mrb[141].mxu1 }
 0x34b   :  { %23026 = vst [vmem:[#allocation105_spill] sm:$0xff] %v16493_v27  ;;  %v16498_v53 = vpop.f32.mrb[250].mxu0  ;;  %v16500_v40 = vpop.f32.mrb[142].mxu1  ;;  %v14057_v27 = vld [vmem:[%s22037_s6 + $0x7ec] ss:$144 sps:$4 sm:$0xff]  }
 0x34c   :  { %23027 = vst [vmem:[#allocation102_spill] sm:$0xff] %v16500_v40  ;;  %v16509_v6 = vpop.f32.mrb[251].mxu0  ;;  %v16511_v0 = vpop.f32.mrb[143].mxu1 }
 0x34d   :  { %23028 = vst [vmem:[#allocation92_spill] sm:$0xff] %v16511_v0  ;;  %v14055_v0 = vld [vmem:[%s22037_s6 + $0x7e8] ss:$144 sps:$4 sm:$0xff]  }
 0x34e   :  { %2489 = vmatmul.mubr.bf16.gmra.mrb[100].mxu0 %v22904_v63  ;;  %5111 = vmatmul.mubr.bf16.gmra.mrb[248].mxu1 %v14051_v17 }
 0x34f   :  { %2498 = vmatprep.mubr.bf16.mxu0 %v22672_v39  ;;  %5118 = vmatprep.mubr.bf16.mxu1 %v14052_v10 }
 0x351   :  { %v1844_v37 = vpop.f32.mrb[252].mxu0  ;;  %v16519_v52 = vpop.f32.mrb[144].mxu1 }
 0x352   :  { %23029 = vst [vmem:[#allocation90_spill] sm:$0xff] %v16519_v52  ;;  %v16521_v34 = vpop.f32.mrb[253].mxu0  ;;  %v16523_v29 = vpop.f32.mrb[145].mxu1 }
 0x353   :  { %23030 = vst [vmem:[#allocation111_spill] sm:$0xff] %v16523_v29  ;;  %v1848_v40 = vpop.f32.mrb[254].mxu0  ;;  %v16528_v50 = vpop.f32.mrb[146].mxu1 }
 0x354   :  { %23031 = vst [vmem:[#allocation108_spill] sm:$0xff] %v16528_v50  ;;  %v3136_v33 = vpack.c.bf16 %v1848_v40, %v1844_v37  ;;  %v16532_v17 = vpop.f32.mrb[255].mxu0  ;;  %v16534_v10 = vpop.f32.mrb[147].mxu1 }
 0x355   :  { %23032 = vst [vmem:[#allocation96_spill] sm:$0xff] %v16534_v10  ;;  %v14058_v10 = vld [vmem:[%s22037_s6 + $0x18] ss:$144 sps:$4 sm:$0xff]  }
 0x356   :  { %2499 = vmatmul.mubr.bf16.gmra.mrb[104].mxu0 %v22913_v54  ;;  %5119 = vmatmul.mubr.bf16.gmra.mrb[252].mxu1 %v14054_v60  ;;  %v14060_v60 = vld [vmem:[%s22037_s6 + $0x1c] ss:$144 sps:$4 sm:$0xff]  }
 0x357   :  { %12383 = vmatprep.subr.bf16.mxu1 %v3136_v33  ;;  %2508 = vmatprep.mubr.bf16.mxu0 %v22672_v39 }
 0x358   :  { %5126 = vmatprep.mubr.bf16.mxu1 %v14057_v27 }
 0x359   :  { %v1854_v40 = vpop.f32.mrb[0].mxu0  ;;  %v16545_v37 = vpop.f32.mrb[148].mxu1 }
 0x35a   :  { %23033 = vst [vmem:[#allocation94_spill] sm:$0xff] %v16545_v37  ;;  %v16547_v63 = vpop.f32.mrb[1].mxu0  ;;  %v16549_v52 = vpop.f32.mrb[149].mxu1 }
 0x35b   :  { %23034 = vst [vmem:[#allocation117_spill] sm:$0xff] %v16549_v52  ;;  %v1858_v50 = vpop.f32.mrb[2].mxu0  ;;  %v16554_v28 = vpop.f32.mrb[150].mxu1  ;;  %v14063_v52 = vld [vmem:[%s22037_s6 + $0x13c] ss:$144 sps:$4 sm:$0xff]  }
 0x35c   :  { %23035 = vst [vmem:[#allocation114_spill] sm:$0xff] %v16554_v28  ;;  %v3145_v54 = vpack.c.bf16 %v1858_v50, %v1854_v40  ;;  %v16561_v33 = vpop.f32.mrb[3].mxu0  ;;  %v16563_v29 = vpop.f32.mrb[151].mxu1 }
 0x35d   :  { %23036 = vst [vmem:[#allocation100_spill] sm:$0xff] %v16563_v29 }
 0x35e   :  { %2509 = vmatmul.mubr.bf16.gmra.mrb[108].mxu0 %v22914_v51  ;;  %5127 = vmatmul.mubr.bf16.gmra.mrb[0].mxu1 %v14055_v0 }
 0x35f   :  { %2518 = vmatprep.mubr.bf16.mxu0 %v22672_v39  ;;  %5264 = vmatprep.mubr.bf16.mxu1 %v14060_v60 }
 0x361   :  { %v1864_v50 = vpop.f32.mrb[4].mxu0  ;;  %v16571_v40 = vpop.f32.mrb[152].mxu1 }
 0x362   :  { %23037 = vst [vmem:[#allocation98_spill] sm:$0xff] %v16571_v40  ;;  %v16573_v27 = vpop.f32.mrb[5].mxu0  ;;  %v16575_v37 = vpop.f32.mrb[153].mxu1 }
 0x363   :  { %23038 = vst [vmem:[#allocation59_spill] sm:$0xff] %v16575_v37  ;;  %v1868_v28 = vpop.f32.mrb[6].mxu0  ;;  %v16580_v23 = vpop.f32.mrb[154].mxu1  ;;  %v14066_v37 = vld [vmem:[%s22037_s6 + $0x25c] ss:$144 sps:$4 sm:$0xff]  }
 0x364   :  { %v3154_v36 = vpack.c.bf16 %v1868_v28, %v1864_v50  ;;  %v16584_v0 = vpop.f32.mrb[7].mxu0  ;;  %v16586_v60 = vpop.f32.mrb[155].mxu1  ;;  %v23039_v28 = vpack.c.bf16 %v16232_v26, %v16224_v55 }
 0x366   :  { %2519 = vmatmul.mubr.bf16.gmra.mrb[112].mxu0 %v22923_v15  ;;  %5265 = vmatmul.mubr.bf16.vlgmr.msra.gmra.mrb[4].mxu1 %v14058_v10  ;;  %v14061_v15 = vld [vmem:[%s22037_s6 + $0x138] ss:$144 sps:$4 sm:$0xff]   ;;  %v23041_v10 = vpack.c.bf16 %v16260_v59, %v16252_v61  ;;  %v14069_v59 = vld [vmem:[%s22037_s6 + $0x37c] ss:$144 sps:$4 sm:$0xff]  }
 0x367   :  { %12384 = vmatpush3.bf16.msra.mxu1 %v23039_v28  ;;  %2528 = vmatprep.mubr.bf16.mxu0 %v22672_v39 }
 0x368   :  { %12385 = vmatprep.subr.bf16.mxu1 %v3145_v54  ;;  %5272 = vmatprep.mubr.bf16.mxu1 %v14063_v52 }
 0x369   :  { %v1874_v50 = vpop.f32.mrb[8].mxu0  ;;  %v16600_v51 = vpop.f32.mrb[156].mxu1 }
 0x36a   :  { %v16602_v40 = vpop.f32.mrb[9].mxu0  ;;  %v16604_v29 = vpop.f32.mrb[157].mxu1 }
 0x36b   :  { %23040 = vst [vmem:[#allocation56_spill] sm:$0xff] %v16604_v29  ;;  %12386 = vmatpush3.bf16.msra.mxu1 %v23041_v10  ;;  %v1878_v26 = vpop.f32.mrb[10].mxu0  ;;  %v16612_v55 = vpop.f32.mrb[158].mxu1 }
 0x36c   :  { %v3163_v54 = vpack.c.bf16 %v1878_v26, %v1874_v50  ;;  %12387 = vmatprep.subr.bf16.mxu1 %v3154_v36  ;;  %v16616_v28 = vpop.f32.mrb[11].mxu0  ;;  %v16618_v57 = vpop.f32.mrb[159].mxu1  ;;  %v23042_v36 = vpack.c.bf16 %v16293_v30, %v16282_v7 }
 0x36e   :  { %2529 = vmatmul.mubr.bf16.gmra.mrb[116].mxu0 %v22924_v35  ;;  %5273 = vmatmul.mubr.bf16.gmra.mrb[8].mxu1 %v14061_v15  ;;  %v14064_v35 = vld [vmem:[%s22037_s6 + $0x258] ss:$144 sps:$4 sm:$0xff]   ;;  %v23044_v15 = vpack.c.bf16 %v16334_v21, %v16320_v32  ;;  %v23045_v21 = vpack.c.bf16 %v16378_v41, %v16364_v11 }
 0x36f   :  { %12388 = vmatpush3.bf16.msra.mxu1 %v23042_v36  ;;  %2538 = vmatprep.mubr.bf16.mxu0 %v22672_v39 }
 0x370   :  { %12389 = vmatprep.subr.bf16.mxu1 %v3163_v54  ;;  %5280 = vmatprep.mubr.bf16.mxu1 %v14066_v37 }
 0x371   :  { %v1884_v50 = vpop.f32.mrb[12].mxu0  ;;  %v16632_v10 = vpop.f32.mrb[160].mxu1 }
 0x372   :  { %v16634_v26 = vpop.f32.mrb[13].mxu0  ;;  %v16636_v52 = vpop.f32.mrb[161].mxu1 }
 0x373   :  { %23043 = vst [vmem:[#allocation214_spill] sm:$0xff] %v16636_v52  ;;  %12390 = vmatpush3.bf16.msra.mxu1 %v23044_v15  ;;  %v1888_v30 = vpop.f32.mrb[14].mxu0  ;;  %v16644_v7 = vpop.f32.mrb[162].mxu1 }
 0x374   :  { %v3172_v54 = vpack.c.bf16 %v1888_v30, %v1884_v50  ;;  %v16648_v36 = vpop.f32.mrb[15].mxu0  ;;  %v16650_v61 = vpop.f32.mrb[163].mxu1 }
 0x376   :  { %2539 = vmatmul.mubr.bf16.gmra.mrb[120].mxu0 %v22933_v1  ;;  %5281 = vmatmul.mubr.bf16.gmra.mrb[12].mxu1 %v14064_v35  ;;  %v14067_v1 = vld [vmem:[%s22037_s6 + $0x378] ss:$144 sps:$4 sm:$0xff]  }
 0x377   :  { %12391 = vmatprep.subr.bf16.mxu1 %v3172_v54  ;;  %2548 = vmatprep.mubr.bf16.mxu0 %v22672_v39 }
 0x378   :  { %12392 = vmatpush3.bf16.msra.mxu1 %v23045_v21  ;;  %5288 = vmatprep.mubr.bf16.mxu1 %v14069_v59  ;;  %v14072_v21 = vld [vmem:[%s22037_s6 + $0x49c] ss:$144 sps:$4 sm:$0xff]  }
 0x379   :  { %v1894_v50 = vpop.f32.mrb[16].mxu0  ;;  %v16664_v15 = vpop.f32.mrb[164].mxu1 }
 0x37a   :  { %23046 = vst [vmem:[#allocation215_spill] sm:$0xff] %v16664_v15  ;;  %v16666_v30 = vpop.f32.mrb[17].mxu0  ;;  %v16668_v37 = vpop.f32.mrb[165].mxu1 }
 0x37b   :  { %23047 = vst [vmem:[#allocation216_spill] sm:$0xff] %v16668_v37  ;;  %v1898_v35 = vpop.f32.mrb[18].mxu0  ;;  %v16673_v54 = vpop.f32.mrb[166].mxu1 }
 0x37c   :  { %23048 = vst [vmem:[#allocation217_spill] sm:$0xff] %v16673_v54  ;;  %v3181_v32 = vpack.c.bf16 %v1898_v35, %v1894_v50  ;;  %v16677_v41 = vpop.f32.mrb[19].mxu0  ;;  %v16679_v59 = vpop.f32.mrb[167].mxu1  ;;  %v23050_v50 = vpack.c.bf16 %v16422_v43, %v16408_v58 }
 0x37d   :  { %23049 = vst [vmem:[#allocation218_spill] sm:$0xff] %v16679_v59 }
 0x37e   :  { %2549 = vmatmul.mubr.bf16.gmra.mrb[124].mxu0 %v22934_v24  ;;  %5289 = vmatmul.mubr.bf16.gmra.mrb[16].mxu1 %v14067_v1  ;;  %v14070_v24 = vld [vmem:[%s22037_s6 + $0x498] ss:$144 sps:$4 sm:$0xff]  }
 0x37f   :  { %12393 = vmatprep.subr.bf16.mxu1 %v3181_v32  ;;  %2558 = vmatprep.mubr.bf16.mxu0 %v22672_v39 }
 0x380   :  { %12394 = vmatpush3.bf16.msra.mxu1 %v23050_v50  ;;  %5296 = vmatprep.mubr.bf16.mxu1 %v14072_v21  ;;  %v14075_v50 = vld [vmem:[%s22037_s6 + $0x5bc] ss:$144 sps:$4 sm:$0xff]  }
 0x381   :  { %v1904_v35 = vpop.f32.mrb[20].mxu0  ;;  %v16693_v11 = vpop.f32.mrb[168].mxu1 }
 0x382   :  { %23051 = vst [vmem:[#allocation219_spill] sm:$0xff] %v16693_v11  ;;  %v16695_v15 = vpop.f32.mrb[21].mxu0  ;;  %v16697_v29 = vpop.f32.mrb[169].mxu1 }
 0x383   :  { %23052 = vst [vmem:[#allocation220_spill] sm:$0xff] %v16697_v29  ;;  %v1908_v1 = vpop.f32.mrb[22].mxu0  ;;  %v16702_v32 = vpop.f32.mrb[170].mxu1 }
 0x384   :  { %23053 = vst [vmem:[#allocation221_spill] sm:$0xff] %v16702_v32  ;;  %v3190_v52 = vpack.c.bf16 %v1908_v1, %v1904_v35  ;;  %v16706_v43 = vpop.f32.mrb[23].mxu0  ;;  %v16708_v21 = vpop.f32.mrb[171].mxu1  ;;  %v23055_v35 = vpack.c.bf16 %v16466_v18, %v16452_v4 }
 0x385   :  { %23054 = vst [vmem:[#allocation222_spill] sm:$0xff] %v16708_v21 }
 0x386   :  { %2559 = vmatmul.mubr.bf16.gmra.mrb[128].mxu0 %v22943_v62  ;;  %5297 = vmatmul.mubr.bf16.gmra.mrb[20].mxu1 %v14070_v24  ;;  %v14073_v62 = vld [vmem:[%s22037_s6 + $0x5b8] ss:$144 sps:$4 sm:$0xff]  }
 0x387   :  { %12395 = vmatprep.subr.bf16.mxu1 %v3190_v52  ;;  %2568 = vmatprep.mubr.bf16.mxu0 %v22672_v39 }
 0x388   :  { %12396 = vmatpush3.bf16.msra.mxu1 %v23055_v35  ;;  %5304 = vmatprep.mubr.bf16.mxu1 %v14075_v50  ;;  %v14078_v35 = vld [vmem:[%s22037_s6 + $0x6dc] ss:$144 sps:$4 sm:$0xff]  }
 0x389   :  { %v1914_v1 = vpop.f32.mrb[24].mxu0  ;;  %v16722_v58 = vpop.f32.mrb[172].mxu1 }
 0x38a   :  { %23056 = vst [vmem:[#allocation223_spill] sm:$0xff] %v16722_v58  ;;  %v16724_v11 = vpop.f32.mrb[25].mxu0  ;;  %v16726_v54 = vpop.f32.mrb[173].mxu1 }
 0x38b   :  { %23057 = vst [vmem:[#allocation224_spill] sm:$0xff] %v16726_v54  ;;  %v1918_v24 = vpop.f32.mrb[26].mxu0  ;;  %v16731_v52 = vpop.f32.mrb[174].mxu1  ;;  %v14082_v54 = vld [vmem:[%s22037_s6 + $0x28] ss:$144 sps:$4 sm:$0xff]  }
 0x38c   :  { %23058 = vst [vmem:[#allocation225_spill] sm:$0xff] %v16731_v52  ;;  %v3199_v37 = vpack.c.bf16 %v1918_v24, %v1914_v1  ;;  %v16735_v18 = vpop.f32.mrb[27].mxu0  ;;  %v16737_v50 = vpop.f32.mrb[175].mxu1  ;;  %v23060_v1 = vpack.c.bf16 %v16498_v53, %v16487_v19  ;;  %v23061_v24 = vpack.c.bf16 %v16532_v17, %v16521_v34  ;;  %v14081_v19 = vld [vmem:[%s22037_s6 + $0x7fc] ss:$144 sps:$4 sm:$0xff]  }
 0x38d   :  { %23059 = vst [vmem:[#allocation226_spill] sm:$0xff] %v16737_v50 }
 0x38e   :  { %2569 = vmatmul.mubr.bf16.gmra.mrb[132].mxu0 %v22944_v20  ;;  %5305 = vmatmul.mubr.bf16.gmra.mrb[24].mxu1 %v14073_v62 }
 0x38f   :  { %12397 = vmatprep.subr.bf16.mxu1 %v3199_v37  ;;  %2578 = vmatprep.mubr.bf16.mxu0 %v22672_v39  ;;  %v14076_v37 = vld [vmem:[%s22037_s6 + $0x6d8] ss:$144 sps:$4 sm:$0xff]  }
 0x390   :  { %12398 = vmatpush3.bf16.msra.mxu1 %v23060_v1  ;;  %5312 = vmatprep.mubr.bf16.mxu1 %v14078_v35 }
 0x391   :  { %12511 = vmatprep.subr.bf16.mxu1 %v23061_v24  ;;  %v16754_v4 = vpop.f32.mrb[28].mxu0  ;;  %v16756_v32 = vpop.f32.mrb[176].mxu1  ;;  %v14079_v24 = vld [vmem:[%s22037_s6 + $0x7f8] ss:$144 sps:$4 sm:$0xff]  }
 0x392   :  { %23062 = vst [vmem:[#allocation227_spill] sm:$0xff] %v16754_v4  ;;  %23063 = vst [vmem:[#allocation228_spill] sm:$0xff] %v16756_v32  ;;  %v16758_v29 = vpop.f32.mrb[29].mxu0  ;;  %v16760_v20 = vpop.f32.mrb[177].mxu1 }
 0x393   :  { %23064 = vst [vmem:[#allocation229_spill] sm:$0xff] %v16758_v29  ;;  %23065 = vst [vmem:[#allocation230_spill] sm:$0xff] %v16760_v20  ;;  %v16765_v62 = vpop.f32.mrb[30].mxu0  ;;  %v16767_v53 = vpop.f32.mrb[178].mxu1  ;;  %v23218_v29 = vld [vmem:[#allocation97_spill] sm:$0xff] }
 0x394   :  { %23066 = vst [vmem:[#allocation231_spill] sm:$0xff] %v16765_v62  ;;  %23067 = vst [vmem:[#allocation232_spill] sm:$0xff] %v16767_v53  ;;  %v16776_v35 = vpop.f32.mrb[31].mxu0  ;;  %v16778_v1 = vpop.f32.mrb[179].mxu1 }
 0x395   :  { %23068 = vst [vmem:[#allocation233_spill] sm:$0xff] %v16776_v35  ;;  %23069 = vst [vmem:[#allocation234_spill] sm:$0xff] %v16778_v1  ;;  %v14132_v35 = vld [vmem:[%s22037_s6 + $0x15c] ss:$144 sps:$4 sm:$0xff]  }
 0x396   :  { %2579 = vmatmul.mubr.bf16.gmra.mrb[136].mxu0 %v15014_v14  ;;  %5313 = vmatmul.mubr.bf16.gmra.mrb[28].mxu1 %v14076_v37  ;;  %v14084_v14 = vld [vmem:[%s22037_s6 + $0x2c] ss:$144 sps:$4 sm:$0xff]  }
 0x397   :  { %2588 = vmatprep.mubr.bf16.mxu0 %v22672_v39  ;;  %5320 = vmatprep.mubr.bf16.mxu1 %v14081_v19 }
 0x399   :  { %v16786_v34 = vpop.f32.mrb[32].mxu0  ;;  %v16788_v52 = vpop.f32.mrb[180].mxu1 }
 0x39a   :  { %23070 = vst [vmem:[#allocation235_spill] sm:$0xff] %v16786_v34  ;;  %23071 = vst [vmem:[#allocation236_spill] sm:$0xff] %v16788_v52  ;;  %v16790_v17 = vpop.f32.mrb[33].mxu0  ;;  %v16792_v32 = vpop.f32.mrb[181].mxu1 }
 0x39b   :  { %23072 = vst [vmem:[#allocation237_spill] sm:$0xff] %v16790_v17  ;;  %23073 = vst [vmem:[#allocation238_spill] sm:$0xff] %v16792_v32  ;;  %v16797_v53 = vpop.f32.mrb[34].mxu0  ;;  %v16799_v58 = vpop.f32.mrb[182].mxu1  ;;  %v14087_v32 = vld [vmem:[%s22037_s6 + $0x14c] ss:$144 sps:$4 sm:$0xff]  }
 0x39c   :  { %23074 = vst [vmem:[#allocation239_spill] sm:$0xff] %v16797_v53  ;;  %23075 = vst [vmem:[#allocation240_spill] sm:$0xff] %v16799_v58  ;;  %v16808_v20 = vpop.f32.mrb[35].mxu0  ;;  %v16810_v1 = vpop.f32.mrb[183].mxu1 }
 0x39d   :  { %23076 = vst [vmem:[#allocation241_spill] sm:$0xff] %v16808_v20  ;;  %23077 = vst [vmem:[#allocation242_spill] sm:$0xff] %v16810_v1  ;;  %v14124_v20 = vld [vmem:[%s22037_s6 + $0x38] ss:$144 sps:$4 sm:$0xff]  }
 0x39e   :  { %2589 = vmatmul.mubr.bf16.gmra.mrb[140].mxu0 %v15040_v47  ;;  %5321 = vmatmul.mubr.bf16.gmra.mrb[32].mxu1 %v14079_v24  ;;  %v23086_v24 = vpack.c.bf16 %v16240_v49, %v16228_v22  ;;  %v23087_v47 = vpack.c.bf16 %v16561_v33, %v16547_v63  ;;  %v23092_v49 = vpack.c.bf16 %v16271_v12, %v16256_v9  ;;  %v14090_v12 = vld [vmem:[%s22037_s6 + $0x26c] ss:$144 sps:$4 sm:$0xff]  }
 0x39f   :  { %2598 = vmatprep.mubr.bf16.mxu0 %v22672_v39  ;;  %5458 = vmatprep.mubr.bf16.mxu1 %v14084_v14  ;;  %v23126_v33 = vld [vmem:[#allocation51_spill] sm:$0xff] }
 0x3a1   :  { %v16818_v37 = vpop.f32.mrb[36].mxu0  ;;  %v16820_v21 = vpop.f32.mrb[184].mxu1 }
 0x3a2   :  { %23078 = vst [vmem:[#allocation243_spill] sm:$0xff] %v16818_v37  ;;  %23079 = vst [vmem:[#allocation244_spill] sm:$0xff] %v16820_v21  ;;  %v16822_v19 = vpop.f32.mrb[37].mxu0  ;;  %v16824_v52 = vpop.f32.mrb[185].mxu1 }
 0x3a3   :  { %23080 = vst [vmem:[#allocation245_spill] sm:$0xff] %v16822_v19  ;;  %23081 = vst [vmem:[#allocation246_spill] sm:$0xff] %v16824_v52  ;;  %v16829_v58 = vpop.f32.mrb[38].mxu0  ;;  %v16831_v50 = vpop.f32.mrb[186].mxu1 }
 0x3a4   :  { %23082 = vst [vmem:[#allocation247_spill] sm:$0xff] %v16829_v58  ;;  %23083 = vst [vmem:[#allocation248_spill] sm:$0xff] %v16831_v50  ;;  %v16837_v14 = vpop.f32.mrb[39].mxu0  ;;  %v16839_v59 = vpop.f32.mrb[187].mxu1  ;;  %v14139_v58 = vld [vmem:[%s22037_s6 + $0x10] ss:$144 sps:$4 sm:$0xff]  }
 0x3a5   :  { %23084 = vst [vmem:[#allocation249_spill] sm:$0xff] %v16837_v14  ;;  %23085 = vst [vmem:[#allocation250_spill] sm:$0xff] %v16839_v59 }
 0x3a6   :  { %2599 = vmatmul.mubr.bf16.gmra.mrb[144].mxu0 %v15038_v45  ;;  %5459 = vmatmul.mubr.bf16.vlgmr.msra.gmra.mrb[36].mxu1 %v14082_v54  ;;  %v14085_v45 = vld [vmem:[%s22037_s6 + $0x148] ss:$144 sps:$4 sm:$0xff]  }
 0x3a7   :  { %12512 = vmatpush3.bf16.msra.mxu1 %v23086_v24  ;;  %2608 = vmatprep.mubr.bf16.mxu0 %v22672_v39 }
 0x3a8   :  { %12513 = vmatprep.subr.bf16.mxu1 %v23087_v47  ;;  %5466 = vmatprep.mubr.bf16.mxu1 %v14087_v32  ;;  %v23095_v32 = vpack.c.bf16 %v16584_v0, %v16573_v27  ;;  %v23098_v27 = vpack.c.bf16 %v16301_v5, %v16286_v2  ;;  %v23099_v0 = vpack.c.bf16 %v16616_v28, %v16602_v40  ;;  %v14093_v28 = vld [vmem:[%s22037_s6 + $0x4] ss:$144 sps:$4 sm:$0xff]  }
 0x3a9   :  { %v16856_v21 = vpop.f32.mrb[40].mxu0  ;;  %v16858_v1 = vpop.f32.mrb[188].mxu1  ;;  %v23104_v5 = vpack.c.bf16 %v16345_v3, %v16324_v8 }
 0x3aa   :  { %23088 = vst [vmem:[#allocation251_spill] sm:$0xff] %v16856_v21  ;;  %23089 = vst [vmem:[#allocation252_spill] sm:$0xff] %v16858_v1  ;;  %v16860_v50 = vpop.f32.mrb[41].mxu0  ;;  %v16862_v17 = vpop.f32.mrb[189].mxu1  ;;  %v23163_v1 = vld [vmem:[#allocation62_spill] sm:$0xff]  ;;  %v23236_v21 = vld [vmem:[#allocation19_spill] sm:$0xff] }
 0x3ab   :  { %23090 = vst [vmem:[#allocation253_spill] sm:$0xff] %v16860_v50  ;;  %23091 = vst [vmem:[#allocation254_spill] sm:$0xff] %v16862_v17  ;;  %12514 = vmatpush3.bf16.msra.mxu1 %v23092_v49  ;;  %v16870_v22 = vpop.f32.mrb[42].mxu0  ;;  %v16872_v63 = vpop.f32.mrb[190].mxu1 }
 0x3ac   :  { %23093 = vst [vmem:[#allocation255_spill] sm:$0xff] %v16870_v22  ;;  %23094 = vst [vmem:[#allocation256_spill] sm:$0xff] %v16872_v63  ;;  %12515 = vmatprep.subr.bf16.mxu1 %v23095_v32  ;;  %v16881_v47 = vpop.f32.mrb[43].mxu0  ;;  %v16883_v24 = vpop.f32.mrb[191].mxu1 }
 0x3ad   :  { %23096 = vst [vmem:[#allocation257_spill] sm:$0xff] %v16881_v47  ;;  %23097 = vst [vmem:[#allocation258_spill] sm:$0xff] %v16883_v24  ;;  %v23168_v24 = vld [vmem:[#allocation33_spill] sm:$0xff] }
 0x3ae   :  { %2609 = vmatmul.mubr.bf16.gmra.mrb[148].mxu0 %v15061_v16  ;;  %5467 = vmatmul.mubr.bf16.gmra.mrb[40].mxu1 %v14085_v45  ;;  %v14088_v16 = vld [vmem:[%s22037_s6 + $0x268] ss:$144 sps:$4 sm:$0xff]  }
 0x3af   :  { %12516 = vmatpush3.bf16.msra.mxu1 %v23098_v27  ;;  %2618 = vmatprep.mubr.bf16.mxu0 %v22672_v39  ;;  %v23107_v27 = vpack.c.bf16 %v16648_v36, %v16634_v26  ;;  %v23110_v26 = vpack.c.bf16 %v16389_v48, %v16368_v44  ;;  %v23111_v36 = vpack.c.bf16 %v16677_v41, %v16666_v30  ;;  %v14094_v44 = vld [vmem:[%s22037_s6 + $0x388] ss:$144 sps:$4 sm:$0xff]  }
 0x3b0   :  { %12517 = vmatprep.subr.bf16.mxu1 %v23099_v0  ;;  %5474 = vmatprep.mubr.bf16.mxu1 %v14090_v12  ;;  %v14096_v0 = vld [vmem:[%s22037_s6 + $0x38c] ss:$144 sps:$4 sm:$0xff]   ;;  %v23116_v48 = vpack.c.bf16 %v16433_v38, %v16412_v56  ;;  %v23125_v38 = vpack.c.bf16 %v16477_v42, %v16456_v31  ;;  %v23129_v39 = vpack.c.bf16 %v16735_v18, %v16724_v11  ;;  %v14097_v31 = vld [vmem:[%s22037_s6 + $0x120] ss:$144 sps:$4 sm:$0xff]   ;;  %v14100_v42 = vld [vmem:[%s22037_s6 + $0x4a8] ss:$144 sps:$4 sm:$0xff]  }
 0x3b1   :  { %v16900_v32 = vpop.f32.mrb[44].mxu0  ;;  %v16902_v54 = vpop.f32.mrb[192].mxu1  ;;  %v23134_v11 = vld [vmem:[#allocation23_spill] sm:$0xff] }
 0x3b2   :  { %23100 = vst [vmem:[#allocation259_spill] sm:$0xff] %v16900_v32  ;;  %23101 = vst [vmem:[#allocation260_spill] sm:$0xff] %v16902_v54  ;;  %v16904_v9 = vpop.f32.mrb[45].mxu0  ;;  %v16906_v49 = vpop.f32.mrb[193].mxu1 }
 0x3b3   :  { %23102 = vst [vmem:[#allocation261_spill] sm:$0xff] %v16904_v9  ;;  %23103 = vst [vmem:[#allocation262_spill] sm:$0xff] %v16906_v49  ;;  %12518 = vmatpush3.bf16.msra.mxu1 %v23104_v5  ;;  %v16914_v2 = vpop.f32.mrb[46].mxu0  ;;  %v16916_v40 = vpop.f32.mrb[194].mxu1 }
 0x3b4   :  { %23105 = vst [vmem:[#allocation263_spill] sm:$0xff] %v16914_v2  ;;  %23106 = vst [vmem:[#allocation264_spill] sm:$0xff] %v16916_v40  ;;  %12519 = vmatprep.subr.bf16.mxu1 %v23107_v27  ;;  %v16928_v8 = vpop.f32.mrb[47].mxu0  ;;  %v16930_v3 = vpop.f32.mrb[195].mxu1 }
 0x3b5   :  { %23108 = vst [vmem:[#allocation265_spill] sm:$0xff] %v16928_v8  ;;  %23109 = vst [vmem:[#allocation266_spill] sm:$0xff] %v16930_v3 }
 0x3b6   :  { %2619 = vmatmul.mubr.bf16.gmra.mrb[152].mxu0 %v15059_v13  ;;  %5475 = vmatmul.mubr.bf16.gmra.mrb[44].mxu1 %v14088_v16  ;;  %v14091_v13 = vld [vmem:[%s22037_s6] ss:$144 sps:$4 sm:$0xff]   ;;  %v14102_v16 = vld [vmem:[%s22037_s6 + $0x4ac] ss:$144 sps:$4 sm:$0xff]  }
 0x3b7   :  { %12520 = vmatpush3.bf16.msra.mxu1 %v23110_v26  ;;  %4973 = vmatprep.mubr.bf16.mxu0 %v14093_v28  ;;  %v23127_v28 = vld [vmem:[#allocation50_spill] sm:$0xff] }
 0x3b8   :  { %12521 = vmatprep.subr.bf16.mxu1 %v23111_v36  ;;  %5482 = vmatprep.mubr.bf16.mxu1 %v14096_v0  ;;  %v23119_v0 = vpack.c.bf16 %v16706_v43, %v16695_v15  ;;  %v23122_v15 = vld [vmem:[#allocation21_spill] sm:$0xff]  ;;  %v23123_v43 = vld [vmem:[#allocation20_spill] sm:$0xff]  ;;  %v23128_v56 = vpack.c.bf16 %v23126_v33, %v23127_v28  ;;  %v23137_v33 = vpack.c.bf16 %v16509_v6, %v16491_v46  ;;  %v23143_v6 = vld [vmem:[#allocation95_spill] sm:$0xff] }
 0x3b9   :  { %v16946_v27 = vpop.f32.mrb[48].mxu0  ;;  %v16948_v12 = vpop.f32.mrb[196].mxu1  ;;  %v23144_v46 = vpack.c.bf16 %v16424_v25, %v23143_v6  ;;  %v23151_v6 = vld [vmem:[#allocation57_spill] sm:$0xff] }
 0x3ba   :  { %23112 = vst [vmem:[#allocation267_spill] sm:$0xff] %v16946_v27  ;;  %23113 = vst [vmem:[#allocation268_spill] sm:$0xff] %v16948_v12  ;;  %v16950_v5 = vpop.f32.mrb[49].mxu0  ;;  %v16952_v45 = vpop.f32.mrb[197].mxu1 }
 0x3bb   :  { %23114 = vst [vmem:[#allocation269_spill] sm:$0xff] %v16950_v5  ;;  %23115 = vst [vmem:[#allocation270_spill] sm:$0xff] %v16952_v45  ;;  %12522 = vmatpush3.bf16.msra.mxu1 %v23116_v48  ;;  %v16963_v30 = vpop.f32.mrb[50].mxu0  ;;  %v16965_v41 = vpop.f32.mrb[198].mxu1  ;;  %v14099_v48 = vld [vmem:[%s22037_s6 + $0x124] ss:$144 sps:$4 sm:$0xff]  }
 0x3bc   :  { %23117 = vst [vmem:[#allocation271_spill] sm:$0xff] %v16963_v30  ;;  %23118 = vst [vmem:[#allocation272_spill] sm:$0xff] %v16965_v41  ;;  %12523 = vmatprep.subr.bf16.mxu1 %v23119_v0  ;;  %v16974_v26 = vpop.f32.mrb[51].mxu0  ;;  %v16976_v36 = vpop.f32.mrb[199].mxu1  ;;  %v23124_v0 = vpack.c.bf16 %v23122_v15, %v23123_v43  ;;  %v23140_v43 = vld [vmem:[#allocation54_spill] sm:$0xff] }
 0x3bd   :  { %23120 = vst [vmem:[#allocation273_spill] sm:$0xff] %v16974_v26  ;;  %23121 = vst [vmem:[#allocation274_spill] sm:$0xff] %v16976_v36  ;;  %v23188_v26 = vld [vmem:[#allocation41_spill] sm:$0xff] }
 0x3be   :  { %4974 = vmatmul.mubr.bf16.vlgmr.msra.gmra.mrb[156].mxu0 %v14091_v13  ;;  %5483 = vmatmul.mubr.bf16.gmra.mrb[48].mxu1 %v14094_v44  ;;  %v23406_v36 = vld [vmem:[#allocation153_spill] sm:$0xff] }
 0x3bf   :  { %12192 = vmatpush3.bf16.msra.mxu0 %v23124_v0  ;;  %12524 = vmatpush3.bf16.msra.mxu1 %v23125_v38  ;;  %v14105_v38 = vld [vmem:[%s22037_s6 + $0x244] ss:$144 sps:$4 sm:$0xff]   ;;  %v23141_v0 = vld [vmem:[#allocation53_spill] sm:$0xff] }
 0x3c0   :  { %12193 = vmatprep.subr.bf16.mxu0 %v23128_v56  ;;  %12525 = vmatprep.subr.bf16.mxu1 %v23129_v39  ;;  %v23135_v39 = vld [vmem:[#allocation22_spill] sm:$0xff] }
 0x3c1   :  { %v17000_v54 = vpop.f32.mrb[52].mxu0  ;;  %v17002_v13 = vpop.f32.mrb[200].mxu1  ;;  %4981 = vmatprep.mubr.bf16.mxu0 %v14099_v48  ;;  %5490 = vmatprep.mubr.bf16.mxu1 %v14102_v16  ;;  %v23136_v18 = vpack.c.bf16 %v23134_v11, %v23135_v39  ;;  %v23142_v11 = vpack.c.bf16 %v23140_v43, %v23141_v0  ;;  %v23147_v43 = vld [vmem:[#allocation27_spill] sm:$0xff]  ;;  %v23148_v0 = vld [vmem:[#allocation25_spill] sm:$0xff] }
 0x3c2   :  { %23130 = vst [vmem:[#allocation21_spill] sm:$0xff] %v17000_v54  ;;  %23131 = vst [vmem:[#allocation20_spill] sm:$0xff] %v17002_v13  ;;  %v17004_v44 = vpop.f32.mrb[53].mxu0  ;;  %v17006_v15 = vpop.f32.mrb[201].mxu1  ;;  %v23149_v25 = vpack.c.bf16 %v23147_v43, %v23148_v0  ;;  %v23158_v43 = vld [vmem:[#allocation29_spill] sm:$0xff] }
 0x3c3   :  { %23132 = vst [vmem:[#allocation51_spill] sm:$0xff] %v17004_v44  ;;  %23133 = vst [vmem:[#allocation50_spill] sm:$0xff] %v17006_v15  ;;  %12194 = vmatpush3.bf16.msra.mxu0 %v23136_v18  ;;  %12526 = vmatpush3.bf16.msra.mxu1 %v23137_v33  ;;  %v17020_v16 = vpop.f32.mrb[54].mxu0  ;;  %v17022_v28 = vpop.f32.mrb[202].mxu1  ;;  %v14108_v33 = vld [vmem:[%s22037_s6 + $0x5cc] ss:$144 sps:$4 sm:$0xff]  }
 0x3c4   :  { %23138 = vst [vmem:[#allocation23_spill] sm:$0xff] %v17020_v16  ;;  %23139 = vst [vmem:[#allocation22_spill] sm:$0xff] %v17022_v28  ;;  %12195 = vmatprep.subr.bf16.mxu0 %v23142_v11  ;;  %12639 = vmatprep.subr.bf16.mxu1 %v23144_v46  ;;  %v17037_v39 = vpop.f32.mrb[55].mxu0  ;;  %v17039_v18 = vpop.f32.mrb[203].mxu1  ;;  %v23150_v11 = vld [vmem:[#allocation60_spill] sm:$0xff]  ;;  %v23162_v48 = vld [vmem:[#allocation65_spill] sm:$0xff] }
 0x3c5   :  { %23145 = vst [vmem:[#allocation54_spill] sm:$0xff] %v17037_v39  ;;  %23146 = vst [vmem:[#allocation53_spill] sm:$0xff] %v17039_v18  ;;  %v23152_v46 = vpack.c.bf16 %v23150_v11, %v23151_v6  ;;  %v14111_v11 = vld [vmem:[%s22037_s6 + $0x364] ss:$144 sps:$4 sm:$0xff]   ;;  %v23164_v63 = vpack.c.bf16 %v23162_v48, %v23163_v1  ;;  %v23182_v6 = vld [vmem:[#allocation77_spill] sm:$0xff] }
 0x3c6   :  { %4982 = vmatmul.mubr.bf16.gmra.mrb[160].mxu0 %v14097_v31  ;;  %5491 = vmatmul.mubr.bf16.gmra.mrb[52].mxu1 %v14100_v42  ;;  %v14103_v31 = vld [vmem:[%s22037_s6 + $0x240] ss:$144 sps:$4 sm:$0xff]   ;;  %v14106_v42 = vld [vmem:[%s22037_s6 + $0x5c8] ss:$144 sps:$4 sm:$0xff]  }
 0x3c7   :  { %12196 = vmatpush3.bf16.msra.mxu0 %v23149_v25  ;;  %4989 = vmatprep.mubr.bf16.mxu0 %v14105_v38  ;;  %v23157_v38 = vld [vmem:[#allocation31_spill] sm:$0xff]  ;;  %v23171_v48 = vld [vmem:[#allocation68_spill] sm:$0xff]  ;;  %v23219_v54 = vld [vmem:[#allocation81_spill] sm:$0xff] }
 0x3c8   :  { %12197 = vmatprep.subr.bf16.mxu0 %v23152_v46  ;;  %5498 = vmatprep.mubr.bf16.mxu1 %v14108_v33  ;;  %v23159_v0 = vpack.c.bf16 %v23157_v38, %v23158_v43  ;;  %v23167_v46 = vld [vmem:[#allocation35_spill] sm:$0xff]  ;;  %v23220_v16 = vpack.c.bf16 %v23218_v29, %v23219_v54  ;;  %v23226_v29 = vld [vmem:[#allocation18_spill] sm:$0xff]  ;;  %v23375_v15 = vld [vmem:[#allocation36_spill] sm:$0xff] }
 0x3c9   :  { %v17054_v40 = vpop.f32.mrb[56].mxu0  ;;  %v17056_v49 = vpop.f32.mrb[204].mxu1  ;;  %v23169_v1 = vpack.c.bf16 %v23167_v46, %v23168_v24  ;;  %v14112_v24 = vld [vmem:[%s22037_s6 + $0x6e8] ss:$144 sps:$4 sm:$0xff]  }
 0x3ca   :  { %23153 = vst [vmem:[#allocation95_spill] sm:$0xff] %v17054_v40  ;;  %23154 = vst [vmem:[#allocation27_spill] sm:$0xff] %v17056_v49  ;;  %v17058_v56 = vpop.f32.mrb[57].mxu0  ;;  %v17060_v3 = vpop.f32.mrb[205].mxu1  ;;  %v23216_v40 = vld [vmem:[#allocation16_spill] sm:$0xff]  ;;  %v23347_v49 = vld [vmem:[#allocation197_spill] sm:$0xff] }
 0x3cb   :  { %23155 = vst [vmem:[#allocation25_spill] sm:$0xff] %v17058_v56  ;;  %23156 = vst [vmem:[#allocation60_spill] sm:$0xff] %v17060_v3  ;;  %12198 = vmatpush3.bf16.msra.mxu0 %v23159_v0  ;;  %v17071_v33 = vpop.f32.mrb[58].mxu0  ;;  %v17073_v25 = vpop.f32.mrb[206].mxu1  ;;  %v14114_v0 = vld [vmem:[%s22037_s6 + $0x6ec] ss:$144 sps:$4 sm:$0xff]  }
 0x3cc   :  { %23160 = vst [vmem:[#allocation57_spill] sm:$0xff] %v17071_v33  ;;  %23161 = vst [vmem:[#allocation31_spill] sm:$0xff] %v17073_v25  ;;  %12199 = vmatprep.subr.bf16.mxu0 %v23164_v63  ;;  %v17085_v38 = vpop.f32.mrb[59].mxu0  ;;  %v17087_v43 = vpop.f32.mrb[207].mxu1  ;;  %v23170_v63 = vld [vmem:[#allocation71_spill] sm:$0xff] }
 0x3cd   :  { %23165 = vst [vmem:[#allocation29_spill] sm:$0xff] %v17085_v38  ;;  %23166 = vst [vmem:[#allocation65_spill] sm:$0xff] %v17087_v43  ;;  %v23172_v52 = vpack.c.bf16 %v23170_v63, %v23171_v48  ;;  %v23183_v38 = vld [vmem:[#allocation74_spill] sm:$0xff]  ;;  %v23187_v48 = vld [vmem:[#allocation43_spill] sm:$0xff] }
 0x3ce   :  { %4990 = vmatmul.mubr.bf16.gmra.mrb[164].mxu0 %v14103_v31  ;;  %5499 = vmatmul.mubr.bf16.gmra.mrb[56].mxu1 %v14106_v42  ;;  %v14109_v31 = vld [vmem:[%s22037_s6 + $0x360] ss:$144 sps:$4 sm:$0xff]   ;;  %v23177_v42 = vld [vmem:[#allocation39_spill] sm:$0xff]  ;;  %v23184_v39 = vpack.c.bf16 %v23182_v6, %v23183_v38  ;;  %v23189_v6 = vpack.c.bf16 %v23187_v48, %v23188_v26 }
 0x3cf   :  { %12200 = vmatpush3.bf16.msra.mxu0 %v23169_v1  ;;  %4997 = vmatprep.mubr.bf16.mxu0 %v14111_v11  ;;  %v23178_v11 = vld [vmem:[#allocation37_spill] sm:$0xff]  ;;  %v14117_v1 = vld [vmem:[%s22037_s6 + $0x484] ss:$144 sps:$4 sm:$0xff]  }
 0x3d0   :  { %12201 = vmatprep.subr.bf16.mxu0 %v23172_v52  ;;  %5506 = vmatprep.mubr.bf16.mxu1 %v14114_v0  ;;  %v23179_v52 = vpack.c.bf16 %v23177_v42, %v23178_v11  ;;  %v23191_v38 = vld [vmem:[#allocation80_spill] sm:$0xff]  ;;  %v14118_v26 = vld [vmem:[%s22037_s6 + $0x808] ss:$144 sps:$4 sm:$0xff]  }
 0x3d1   :  { %v17102_v59 = vpop.f32.mrb[60].mxu0  ;;  %v17104_v44 = vpop.f32.mrb[208].mxu1 }
 0x3d2   :  { %23173 = vst [vmem:[#allocation62_spill] sm:$0xff] %v17102_v59  ;;  %23174 = vst [vmem:[#allocation35_spill] sm:$0xff] %v17104_v44  ;;  %v17106_v17 = vpop.f32.mrb[61].mxu0  ;;  %v17108_v56 = vpop.f32.mrb[209].mxu1 }
 0x3d3   :  { %23175 = vst [vmem:[#allocation33_spill] sm:$0xff] %v17106_v17  ;;  %23176 = vst [vmem:[#allocation71_spill] sm:$0xff] %v17108_v56  ;;  %12202 = vmatpush3.bf16.msra.mxu0 %v23179_v52  ;;  %v17119_v46 = vpop.f32.mrb[62].mxu0  ;;  %v17121_v0 = vpop.f32.mrb[210].mxu1  ;;  %v14120_v52 = vld [vmem:[%s22037_s6 + $0x80c] ss:$144 sps:$4 sm:$0xff]  }
 0x3d4   :  { %23180 = vst [vmem:[#allocation68_spill] sm:$0xff] %v17119_v46  ;;  %23181 = vst [vmem:[#allocation39_spill] sm:$0xff] %v17121_v0  ;;  %12203 = vmatprep.subr.bf16.mxu0 %v23184_v39  ;;  %v17133_v42 = vpop.f32.mrb[63].mxu0  ;;  %v17135_v11 = vpop.f32.mrb[211].mxu1  ;;  %v23190_v39 = vld [vmem:[#allocation83_spill] sm:$0xff] }
 0x3d5   :  { %23185 = vst [vmem:[#allocation37_spill] sm:$0xff] %v17133_v42  ;;  %23186 = vst [vmem:[#allocation77_spill] sm:$0xff] %v17135_v11  ;;  %v23192_v9 = vpack.c.bf16 %v23190_v39, %v23191_v38  ;;  %v14126_v39 = vld [vmem:[%s22037_s6 + $0x3c] ss:$144 sps:$4 sm:$0xff]   ;;  %v23230_v42 = vld [vmem:[#allocation102_spill] sm:$0xff] }
 0x3d6   :  { %4998 = vmatmul.mubr.bf16.gmra.mrb[168].mxu0 %v14109_v31  ;;  %5507 = vmatmul.mubr.bf16.gmra.mrb[60].mxu1 %v14112_v24  ;;  %v14115_v31 = vld [vmem:[%s22037_s6 + $0x480] ss:$144 sps:$4 sm:$0xff]   ;;  %v23197_v24 = vld [vmem:[#allocation47_spill] sm:$0xff] }
 0x3d7   :  { %12204 = vmatpush3.bf16.msra.mxu0 %v23189_v6  ;;  %5005 = vmatprep.mubr.bf16.mxu0 %v14117_v1  ;;  %v23198_v1 = vld [vmem:[#allocation45_spill] sm:$0xff]  ;;  %v14123_v6 = vld [vmem:[%s22037_s6 + $0x5a4] ss:$144 sps:$4 sm:$0xff]   ;;  %v23338_v56 = vld [vmem:[#allocation99_spill] sm:$0xff] }
 0x3d8   :  { %12205 = vmatprep.subr.bf16.mxu0 %v23192_v9  ;;  %5514 = vmatprep.mubr.bf16.mxu1 %v14120_v52  ;;  %v23199_v9 = vpack.c.bf16 %v23197_v24, %v23198_v1  ;;  %v23202_v24 = vld [vmem:[#allocation34_spill] sm:$0xff]  ;;  %v23203_v1 = vld [vmem:[#allocation28_spill] sm:$0xff] }
 0x3d9   :  { %v17150_v8 = vpop.f32.mrb[64].mxu0  ;;  %v17152_v50 = vpop.f32.mrb[212].mxu1 }
 0x3da   :  { %23193 = vst [vmem:[#allocation74_spill] sm:$0xff] %v17150_v8  ;;  %23194 = vst [vmem:[#allocation43_spill] sm:$0xff] %v17152_v50  ;;  %v17154_v5 = vpop.f32.mrb[65].mxu0  ;;  %v17156_v47 = vpop.f32.mrb[213].mxu1  ;;  %v23335_v8 = vld [vmem:[#allocation185_spill] sm:$0xff] }
 0x3db   :  { %23195 = vst [vmem:[#allocation41_spill] sm:$0xff] %v17154_v5  ;;  %23196 = vst [vmem:[#allocation83_spill] sm:$0xff] %v17156_v47  ;;  %12206 = vmatpush3.bf16.msra.mxu0 %v23199_v9  ;;  %v17167_v48 = vpop.f32.mrb[66].mxu0  ;;  %v17169_v52 = vpop.f32.mrb[214].mxu1  ;;  %v23204_v9 = vpack.c.bf16 %v23202_v24, %v23203_v1 }
 0x3dc   :  { %23200 = vst [vmem:[#allocation80_spill] sm:$0xff] %v17167_v48  ;;  %23201 = vst [vmem:[#allocation47_spill] sm:$0xff] %v17169_v52  ;;  %v17184_v19 = vpop.f32.mrb[67].mxu0  ;;  %v17186_v14 = vpop.f32.mrb[215].mxu1 }
 0x3dd   :  { %12319 = vmatprep.subr.bf16.mxu0 %v23204_v9  ;;  %23205 = vst [vmem:[#allocation45_spill] sm:$0xff] %v17184_v19  ;;  %23206 = vst [vmem:[#allocation34_spill] sm:$0xff] %v17186_v14  ;;  %v14121_v9 = vld [vmem:[%s22037_s6 + $0x5a0] ss:$144 sps:$4 sm:$0xff]  }
 0x3de   :  { %5006 = vmatmul.mubr.bf16.gmra.mrb[172].mxu0 %v14115_v31  ;;  %5515 = vmatmul.mubr.bf16.gmra.mrb[64].mxu1 %v14118_v26 }
 0x3df   :  { %5013 = vmatprep.mubr.bf16.mxu0 %v14123_v6  ;;  %5652 = vmatprep.mubr.bf16.mxu1 %v14126_v39  ;;  %v14129_v6 = vld [vmem:[%s22037_s6 + $0x6c4] ss:$144 sps:$4 sm:$0xff]   ;;  %v23215_v39 = vld [vmem:[#allocation187_spill] sm:$0xff] }
 0x3e0   :  { %v23217_v33 = vpack.c.bf16 %v23215_v39, %v23216_v40  ;;  %v14130_v40 = vld [vmem:[%s22037_s6 + $0x158] ss:$144 sps:$4 sm:$0xff]  }
 0x3e1   :  { %v17192_v38 = vpop.f32.mrb[68].mxu0  ;;  %v17194_v63 = vpop.f32.mrb[216].mxu1  ;;  %v23235_v39 = vld [vmem:[#allocation199_spill] sm:$0xff] }
 0x3e2   :  { %23207 = vst [vmem:[#allocation28_spill] sm:$0xff] %v17192_v38  ;;  %23208 = vst [vmem:[#allocation275_spill] sm:$0xff] %v17194_v63  ;;  %v17196_v24 = vpop.f32.mrb[69].mxu0  ;;  %v17198_v1 = vpop.f32.mrb[217].mxu1  ;;  %v23372_v63 = vld [vmem:[#allocation85_spill] sm:$0xff] }
 0x3e3   :  { %23209 = vst [vmem:[#allocation276_spill] sm:$0xff] %v17196_v24  ;;  %23210 = vst [vmem:[#allocation277_spill] sm:$0xff] %v17198_v1  ;;  %v17206_v31 = vpop.f32.mrb[70].mxu0  ;;  %v17208_v26 = vpop.f32.mrb[218].mxu1  ;;  %v23377_v1 = vld [vmem:[#allocation214_spill] sm:$0xff] }
 0x3e4   :  { %23211 = vst [vmem:[#allocation278_spill] sm:$0xff] %v17206_v31  ;;  %23212 = vst [vmem:[#allocation279_spill] sm:$0xff] %v17208_v26  ;;  %v17217_v5 = vpop.f32.mrb[71].mxu0  ;;  %v17219_v19 = vpop.f32.mrb[219].mxu1  ;;  %v23374_v26 = vld [vmem:[#allocation42_spill] sm:$0xff] }
 0x3e5   :  { %23213 = vst [vmem:[#allocation280_spill] sm:$0xff] %v17217_v5  ;;  %23214 = vst [vmem:[#allocation281_spill] sm:$0xff] %v17219_v19  ;;  %v23231_v5 = vld [vmem:[#allocation86_spill] sm:$0xff]  ;;  %v23376_v18 = vpack.c.bf16 %v23374_v26, %v23375_v15  ;;  %v23378_v19 = vpack.c.bf16 %v16650_v61, %v23377_v1  ;;  %v14196_v15 = vld [vmem:[%s22037_s6 + $0x4c8] ss:$144 sps:$4 sm:$0xff]  }
 0x3e6   :  { %5014 = vmatmul.mubr.bf16.gmra.mrb[176].mxu0 %v14121_v9  ;;  %5653 = vmatmul.mubr.bf16.vlgmr.msra.gmra.mrb[68].mxu1 %v14124_v20  ;;  %v14127_v20 = vld [vmem:[%s22037_s6 + $0x6c0] ss:$144 sps:$4 sm:$0xff]   ;;  %v14135_v9 = vld [vmem:[%s22037_s6 + $0x7e4] ss:$144 sps:$4 sm:$0xff]   ;;  %v23232_v32 = vpack.c.bf16 %v23230_v42, %v23231_v5  ;;  %v23237_v5 = vpack.c.bf16 %v23235_v39, %v23236_v21  ;;  %v14136_v21 = vld [vmem:[%s22037_s6 + $0x278] ss:$144 sps:$4 sm:$0xff]  }
 0x3e7   :  { %12640 = vmatpush3.bf16.msra.mxu1 %v23217_v33  ;;  %5021 = vmatprep.mubr.bf16.mxu0 %v14129_v6  ;;  %v23225_v33 = vld [vmem:[#allocation193_spill] sm:$0xff]  ;;  %v23239_v42 = vld [vmem:[#allocation90_spill] sm:$0xff]  ;;  %v23383_v26 = vld [vmem:[#allocation75_spill] sm:$0xff] }
 0x3e8   :  { %12641 = vmatprep.subr.bf16.mxu1 %v23220_v16  ;;  %5660 = vmatprep.mubr.bf16.mxu1 %v14132_v35  ;;  %v23227_v54 = vpack.c.bf16 %v23225_v33, %v23226_v29  ;;  %v23250_v6 = vld [vmem:[#allocation114_spill] sm:$0xff]  ;;  %v23380_v61 = vld [vmem:[#allocation133_spill] sm:$0xff] }
 0x3e9   :  { %v17234_v27 = vpop.f32.mrb[72].mxu0  ;;  %v17236_v30 = vpop.f32.mrb[220].mxu1 }
 0x3ea   :  { %23221 = vst [vmem:[#allocation187_spill] sm:$0xff] %v17234_v27  ;;  %23222 = vst [vmem:[#allocation16_spill] sm:$0xff] %v17236_v30  ;;  %v17238_v17 = vpop.f32.mrb[73].mxu0  ;;  %v17240_v24 = vpop.f32.mrb[221].mxu1 }
 0x3eb   :  { %23223 = vst [vmem:[#allocation97_spill] sm:$0xff] %v17238_v17  ;;  %23224 = vst [vmem:[#allocation81_spill] sm:$0xff] %v17240_v24  ;;  %12642 = vmatpush3.bf16.msra.mxu1 %v23227_v54  ;;  %v17251_v35 = vpop.f32.mrb[74].mxu0  ;;  %v17253_v16 = vpop.f32.mrb[222].mxu1  ;;  %v14138_v54 = vld [vmem:[%s22037_s6 + $0x27c] ss:$144 sps:$4 sm:$0xff]  }
 0x3ec   :  { %23228 = vst [vmem:[#allocation193_spill] sm:$0xff] %v17251_v35  ;;  %23229 = vst [vmem:[#allocation18_spill] sm:$0xff] %v17253_v16  ;;  %12643 = vmatprep.subr.bf16.mxu1 %v23232_v32  ;;  %v17265_v33 = vpop.f32.mrb[75].mxu0  ;;  %v17267_v29 = vpop.f32.mrb[223].mxu1  ;;  %v23238_v32 = vld [vmem:[#allocation108_spill] sm:$0xff]  ;;  %v23359_v24 = vld [vmem:[#allocation207_spill] sm:$0xff] }
 0x3ed   :  { %23233 = vst [vmem:[#allocation102_spill] sm:$0xff] %v17265_v33  ;;  %23234 = vst [vmem:[#allocation86_spill] sm:$0xff] %v17267_v29  ;;  %v23240_v22 = vpack.c.bf16 %v23238_v32, %v23239_v42  ;;  %v23251_v33 = vld [vmem:[#allocation94_spill] sm:$0xff]  ;;  %v23255_v42 = vld [vmem:[#allocation208_spill] sm:$0xff] }
 0x3ee   :  { %5022 = vmatmul.mubr.bf16.gmra.mrb[180].mxu0 %v14127_v20  ;;  %5661 = vmatmul.mubr.bf16.gmra.mrb[72].mxu1 %v14130_v40  ;;  %v14133_v20 = vld [vmem:[%s22037_s6 + $0x7e0] ss:$144 sps:$4 sm:$0xff]   ;;  %v23252_v37 = vpack.c.bf16 %v23250_v6, %v23251_v33  ;;  %v23274_v32 = vld [vmem:[#allocation73_spill] sm:$0xff] }
 0x3ef   :  { %12644 = vmatpush3.bf16.msra.mxu1 %v23237_v5  ;;  %5029 = vmatprep.mubr.bf16.mxu0 %v14135_v9  ;;  %v23245_v40 = vld [vmem:[#allocation204_spill] sm:$0xff]  ;;  %v23246_v9 = vld [vmem:[#allocation202_spill] sm:$0xff] }
 0x3f0   :  { %12645 = vmatprep.subr.bf16.mxu1 %v23240_v22  ;;  %5668 = vmatprep.mubr.bf16.mxu1 %v14138_v54  ;;  %v23247_v22 = vpack.c.bf16 %v23245_v40, %v23246_v9  ;;  %v14141_v5 = vld [vmem:[%s22037_s6 + $0x14] ss:$144 sps:$4 sm:$0xff]  }
 0x3f1   :  { %v17282_v27 = vpop.f32.mrb[76].mxu0  ;;  %v17284_v35 = vpop.f32.mrb[224].mxu1 }
 0x3f2   :  { %23241 = vst [vmem:[#allocation199_spill] sm:$0xff] %v17282_v27  ;;  %23242 = vst [vmem:[#allocation19_spill] sm:$0xff] %v17284_v35  ;;  %v17286_v2 = vpop.f32.mrb[77].mxu0  ;;  %v17288_v17 = vpop.f32.mrb[225].mxu1  ;;  %v23256_v27 = vld [vmem:[#allocation206_spill] sm:$0xff] }
 0x3f3   :  { %23243 = vst [vmem:[#allocation108_spill] sm:$0xff] %v17286_v2  ;;  %23244 = vst [vmem:[#allocation90_spill] sm:$0xff] %v17288_v17  ;;  %12646 = vmatpush3.bf16.msra.mxu1 %v23247_v22  ;;  %v17299_v39 = vpop.f32.mrb[78].mxu0  ;;  %v17301_v54 = vpop.f32.mrb[226].mxu1  ;;  %v14144_v22 = vld [vmem:[%s22037_s6 + $0x39c] ss:$144 sps:$4 sm:$0xff]   ;;  %v23257_v6 = vpack.c.bf16 %v23255_v42, %v23256_v27 }
 0x3f4   :  { %23248 = vst [vmem:[#allocation204_spill] sm:$0xff] %v17299_v39  ;;  %23249 = vst [vmem:[#allocation202_spill] sm:$0xff] %v17301_v54  ;;  %12647 = vmatprep.subr.bf16.mxu1 %v23252_v37  ;;  %v17313_v40 = vpop.f32.mrb[79].mxu0  ;;  %v17315_v9 = vpop.f32.mrb[227].mxu1  ;;  %v23258_v37 = vld [vmem:[#allocation98_spill] sm:$0xff]  ;;  %v23262_v27 = vld [vmem:[#allocation212_spill] sm:$0xff] }
 0x3f5   :  { %23253 = vst [vmem:[#allocation114_spill] sm:$0xff] %v17313_v40  ;;  %23254 = vst [vmem:[#allocation94_spill] sm:$0xff] %v17315_v9  ;;  %v23259_v33 = vpack.c.bf16 %v16580_v23, %v23258_v37  ;;  %v23275_v37 = vld [vmem:[#allocation67_spill] sm:$0xff]  ;;  %v23334_v54 = vld [vmem:[#allocation189_spill] sm:$0xff] }
 0x3f6   :  { %5030 = vmatmul.mubr.bf16.gmra.mrb[184].mxu0 %v14133_v20  ;;  %5669 = vmatmul.mubr.bf16.gmra.mrb[76].mxu1 %v14136_v21  ;;  %v14142_v20 = vld [vmem:[%s22037_s6 + $0x398] ss:$144 sps:$4 sm:$0xff]   ;;  %v23263_v21 = vld [vmem:[#allocation210_spill] sm:$0xff]  ;;  %v23336_v48 = vpack.c.bf16 %v23334_v54, %v23335_v8 }
 0x3f7   :  { %12648 = vmatpush3.bf16.msra.mxu1 %v23257_v6  ;;  %5167 = vmatprep.mubr.bf16.mxu0 %v14141_v5  ;;  %v23264_v5 = vpack.c.bf16 %v23262_v27, %v23263_v21  ;;  %v14150_v27 = vld [vmem:[%s22037_s6 + $0x4bc] ss:$144 sps:$4 sm:$0xff]   ;;  %v14178_v8 = vld [vmem:[%s22037_s6 + $0x168] ss:$144 sps:$4 sm:$0xff]  }
 0x3f8   :  { %12649 = vmatprep.subr.bf16.mxu1 %v23259_v33  ;;  %5676 = vmatprep.mubr.bf16.mxu1 %v14144_v22  ;;  %v23266_v22 = vpack.c.bf16 %v16612_v55, %v16600_v51  ;;  %v14147_v33 = vld [vmem:[%s22037_s6 + $0x134] ss:$144 sps:$4 sm:$0xff]   ;;  %v23268_v21 = vld [vmem:[#allocation123_spill] sm:$0xff] }
 0x3f9   :  { %v17330_v39 = vpop.f32.mrb[80].mxu0  ;;  %v23271_v51 = vld [vmem:[#allocation72_spill] sm:$0xff]  ;;  %v23272_v55 = vld [vmem:[#allocation87_spill] sm:$0xff] }
 0x3fa   :  { %23260 = vst [vmem:[#allocation208_spill] sm:$0xff] %v17330_v39  ;;  %v17332_v38 = vpop.f32.mrb[81].mxu0  ;;  %v23340_v54 = vld [vmem:[#allocation195_spill] sm:$0xff] }
 0x3fb   :  { %23261 = vst [vmem:[#allocation206_spill] sm:$0xff] %v17332_v38  ;;  %12650 = vmatpush3.bf16.msra.mxu1 %v23264_v5  ;;  %v17343_v42 = vpop.f32.mrb[82].mxu0  ;;  %v23269_v5 = vld [vmem:[#allocation119_spill] sm:$0xff]  ;;  %v23276_v38 = vpack.c.bf16 %v23274_v32, %v23275_v37 }
 0x3fc   :  { %23265 = vst [vmem:[#allocation98_spill] sm:$0xff] %v17343_v42  ;;  %12651 = vmatprep.subr.bf16.mxu1 %v23266_v22  ;;  %v17350_v6 = vpop.f32.mrb[83].mxu0  ;;  %v23270_v23 = vpack.c.bf16 %v23268_v21, %v23269_v5  ;;  %v23273_v22 = vpack.c.bf16 %v23271_v51, %v23272_v55  ;;  %v23280_v32 = vld [vmem:[#allocation131_spill] sm:$0xff]  ;;  %v23287_v5 = vld [vmem:[#allocation44_spill] sm:$0xff] }
 0x3fd   :  { %23267 = vst [vmem:[#allocation212_spill] sm:$0xff] %v17350_v6  ;;  %v23277_v6 = vpack.c.bf16 %v16644_v7, %v16632_v10  ;;  %v23283_v10 = vld [vmem:[#allocation78_spill] sm:$0xff]  ;;  %v23284_v7 = vld [vmem:[#allocation91_spill] sm:$0xff]  ;;  %v23288_v51 = vld [vmem:[#allocation8_spill] sm:$0xff] }
 0x3fe   :  { %5168 = vmatmul.mubr.bf16.vlgmr.msra.gmra.mrb[188].mxu0 %v14139_v58  ;;  %5677 = vmatmul.mubr.bf16.gmra.mrb[80].mxu1 %v14142_v20  ;;  %v14145_v20 = vld [vmem:[%s22037_s6 + $0x130] ss:$144 sps:$4 sm:$0xff]   ;;  %v23289_v55 = vpack.c.bf16 %v23287_v5, %v23288_v51  ;;  %v23295_v21 = vld [vmem:[#allocation135_spill] sm:$0xff] }
 0x3ff   :  { %12320 = vmatpush3.bf16.msra.mxu0 %v23270_v23  ;;  %12652 = vmatpush3.bf16.msra.mxu1 %v23273_v22  ;;  %v14148_v23 = vld [vmem:[%s22037_s6 + $0x4b8] ss:$144 sps:$4 sm:$0xff]   ;;  %v23290_v22 = vld [vmem:[#allocation84_spill] sm:$0xff]  ;;  %v23297_v5 = vld [vmem:[#allocation174_spill] sm:$0xff] }
 0x400   :  { %12321 = vmatprep.subr.bf16.mxu0 %v23276_v38  ;;  %12653 = vmatprep.subr.bf16.mxu1 %v23277_v6  ;;  %v23281_v38 = vld [vmem:[#allocation127_spill] sm:$0xff]  ;;  %v23285_v6 = vpack.c.bf16 %v23283_v10, %v23284_v7  ;;  %v23298_v51 = vld [vmem:[#allocation10_spill] sm:$0xff] }
 0x401   :  { %v17372_v2 = vpop.f32.mrb[84].mxu0  ;;  %5175 = vmatprep.mubr.bf16.mxu0 %v14147_v33  ;;  %5684 = vmatprep.mubr.bf16.mxu1 %v14150_v27  ;;  %v23282_v37 = vpack.c.bf16 %v23280_v32, %v23281_v38  ;;  %v14153_v27 = vld [vmem:[%s22037_s6 + $0x254] ss:$144 sps:$4 sm:$0xff]   ;;  %v23291_v32 = vld [vmem:[#allocation93_spill] sm:$0xff] }
 0x402   :  { %23278 = vst [vmem:[#allocation210_spill] sm:$0xff] %v17372_v2  ;;  %v17374_v58 = vpop.f32.mrb[85].mxu0  ;;  %v23292_v38 = vpack.c.bf16 %v23290_v22, %v23291_v32  ;;  %v14156_v10 = vld [vmem:[%s22037_s6 + $0x5dc] ss:$144 sps:$4 sm:$0xff]  }
 0x403   :  { %23279 = vst [vmem:[#allocation123_spill] sm:$0xff] %v17374_v58  ;;  %12322 = vmatpush3.bf16.msra.mxu0 %v23282_v37  ;;  %12654 = vmatpush3.bf16.msra.mxu1 %v23285_v6  ;;  %v17388_v33 = vpop.f32.mrb[86].mxu0  ;;  %v23294_v6 = vld [vmem:[#allocation139_spill] sm:$0xff] }
 0x404   :  { %23286 = vst [vmem:[#allocation119_spill] sm:$0xff] %v17388_v33  ;;  %12323 = vmatprep.subr.bf16.mxu0 %v23289_v55  ;;  %12767 = vmatprep.subr.bf16.mxu1 %v23292_v38  ;;  %v17401_v37 = vpop.f32.mrb[87].mxu0  ;;  %v23296_v40 = vpack.c.bf16 %v23294_v6, %v23295_v21  ;;  %v23299_v55 = vpack.c.bf16 %v23297_v5, %v23298_v51  ;;  %v14151_v38 = vld [vmem:[%s22037_s6 + $0x250] ss:$144 sps:$4 sm:$0xff]   ;;  %v23307_v51 = vld [vmem:[#allocation11_spill] sm:$0xff] }
 0x405   :  { %23293 = vst [vmem:[#allocation72_spill] sm:$0xff] %v17401_v37  ;;  %v23306_v5 = vld [vmem:[#allocation180_spill] sm:$0xff]  ;;  %v23311_v58 = vld [vmem:[#allocation151_spill] sm:$0xff]  ;;  %v23313_v6 = vld [vmem:[#allocation186_spill] sm:$0xff] }
 0x406   :  { %5176 = vmatmul.mubr.bf16.gmra.mrb[192].mxu0 %v14145_v20  ;;  %5685 = vmatmul.mubr.bf16.gmra.mrb[84].mxu1 %v14148_v23  ;;  %v14154_v20 = vld [vmem:[%s22037_s6 + $0x5d8] ss:$144 sps:$4 sm:$0xff]  }
 0x407   :  { %12324 = vmatpush3.bf16.msra.mxu0 %v23296_v40  ;;  %5183 = vmatprep.mubr.bf16.mxu0 %v14153_v27  ;;  %v23302_v23 = vld [vmem:[#allocation147_spill] sm:$0xff] }
 0x408   :  { %12325 = vmatprep.subr.bf16.mxu0 %v23299_v55  ;;  %5692 = vmatprep.mubr.bf16.mxu1 %v14156_v10  ;;  %v23303_v40 = vld [vmem:[#allocation143_spill] sm:$0xff]  ;;  %v14159_v10 = vld [vmem:[%s22037_s6 + $0x374] ss:$144 sps:$4 sm:$0xff]   ;;  %v23308_v55 = vpack.c.bf16 %v23306_v5, %v23307_v51  ;;  %v12143_v51 = vpop.f32.mrb[228].mxu1 }
 0x409   :  { %v17414_v22 = vpop.f32.mrb[88].mxu0  ;;  %v23304_v27 = vpack.c.bf16 %v23302_v23, %v23303_v40  ;;  %v14162_v23 = vld [vmem:[%s22037_s6 + $0x6fc] ss:$144 sps:$4 sm:$0xff]  }
 0x40a   :  { %23300 = vst [vmem:[#allocation87_spill] sm:$0xff] %v17414_v22  ;;  %v17416_v32 = vpop.f32.mrb[89].mxu0  ;;  %v23314_v22 = vld [vmem:[#allocation13_spill] sm:$0xff]  ;;  %v23320_v40 = vld [vmem:[#allocation15_spill] sm:$0xff] }
 0x40b   :  { %23301 = vst [vmem:[#allocation73_spill] sm:$0xff] %v17416_v32  ;;  %12326 = vmatpush3.bf16.msra.mxu0 %v23304_v27  ;;  %v17427_v21 = vpop.f32.mrb[90].mxu0  ;;  %v23310_v27 = vld [vmem:[#allocation155_spill] sm:$0xff]  ;;  %v23315_v5 = vpack.c.bf16 %v23313_v6, %v23314_v22 }
 0x40c   :  { %23305 = vst [vmem:[#allocation67_spill] sm:$0xff] %v17427_v21  ;;  %12327 = vmatprep.subr.bf16.mxu0 %v23308_v55  ;;  %v17437_v7 = vpop.f32.mrb[91].mxu0  ;;  %v23312_v37 = vpack.c.bf16 %v23310_v27, %v23311_v58  ;;  %v12144_v21 = vpop.f32.mrb[229].mxu1  ;;  %v14160_v58 = vld [vmem:[%s22037_s6 + $0x6f8] ss:$144 sps:$4 sm:$0xff]  }
 0x40d   :  { %23309 = vst [vmem:[#allocation131_spill] sm:$0xff] %v17437_v7  ;;  %v23317_v22 = vld [vmem:[#allocation159_spill] sm:$0xff] }
 0x40e   :  { %5184 = vmatmul.mubr.bf16.gmra.mrb[196].mxu0 %v14151_v38  ;;  %5693 = vmatmul.mubr.bf16.gmra.mrb[88].mxu1 %v14154_v20  ;;  %v14157_v38 = vld [vmem:[%s22037_s6 + $0x370] ss:$144 sps:$4 sm:$0xff]   ;;  %v23316_v20 = vld [vmem:[#allocation163_spill] sm:$0xff] }
 0x40f   :  { %12328 = vmatpush3.bf16.msra.mxu0 %v23312_v37  ;;  %5191 = vmatprep.mubr.bf16.mxu0 %v14159_v10  ;;  %v17460_v37 = vadd.f32 %v12144_v21, %v12143_v51  ;;  %v23318_v10 = vpack.c.bf16 %v23316_v20, %v23317_v22  ;;  %v14168_v21 = vld [vmem:[%s22037_s6 + $0x81c] ss:$144 sps:$4 sm:$0xff]   ;;  %v12146_v51 = vpop.f32.mrb[230].mxu1 }
 0x410   :  { %12329 = vmatprep.subr.bf16.mxu0 %v23315_v5  ;;  %5700 = vmatprep.mubr.bf16.mxu1 %v14162_v23  ;;  %v14165_v23 = vld [vmem:[%s22037_s6 + $0x494] ss:$144 sps:$4 sm:$0xff]   ;;  %v12147_v22 = vpop.f32.mrb[231].mxu1  ;;  %v23322_v27 = vld [vmem:[#allocation171_spill] sm:$0xff] }
 0x411   :  { %v17450_v55 = vpop.f32.mrb[92].mxu0  ;;  %v23319_v5 = vld [vmem:[#allocation192_spill] sm:$0xff]  ;;  %v23323_v33 = vld [vmem:[#allocation167_spill] sm:$0xff]  ;;  %v12149_v42 = vpop.f32.mrb[232].mxu1 }
 0x412   :  { %v17452_v2 = vpop.f32.mrb[93].mxu0  ;;  %v23321_v32 = vpack.c.bf16 %v23319_v5, %v23320_v40  ;;  %v23324_v39 = vpack.c.bf16 %v23322_v27, %v23323_v33  ;;  %v23326_v40 = vld [vmem:[#allocation17_spill] sm:$0xff]  ;;  %v12150_v44 = vpop.f32.mrb[233].mxu1 }
 0x413   :  { %12330 = vmatpush3.bf16.msra.mxu0 %v23318_v10  ;;  %v17465_v6 = vpop.f32.mrb[94].mxu0  ;;  %v17482_v10 = vadd.f32 %v12147_v22, %v12146_v51  ;;  %v17500_v33 = vadd.f32 %v12150_v44, %v12149_v42  ;;  %v14171_v51 = vld [vmem:[%s22037_s6 + $0x5b4] ss:$144 sps:$4 sm:$0xff]   ;;  %v14174_v22 = vld [vmem:[%s22037_s6 + $0x4c] ss:$144 sps:$4 sm:$0xff]  }
 0x414   :  { %12331 = vmatprep.subr.bf16.mxu0 %v23321_v32  ;;  %v17475_v7 = vpop.f32.mrb[95].mxu0  ;;  %v23325_v32 = vld [vmem:[#allocation198_spill] sm:$0xff]  ;;  %v23332_v44 = vld [vmem:[#allocation61_spill] sm:$0xff] }
 0x415   :  { %v23327_v5 = vpack.c.bf16 %v23325_v32, %v23326_v40  ;;  %v23331_v40 = vld [vmem:[#allocation6_spill] sm:$0xff] }
 0x416   :  { %5192 = vmatmul.mubr.bf16.gmra.mrb[200].mxu0 %v14157_v38  ;;  %5701 = vmatmul.mubr.bf16.gmra.mrb[92].mxu1 %v14160_v58  ;;  %v14163_v38 = vld [vmem:[%s22037_s6 + $0x490] ss:$144 sps:$4 sm:$0xff]   ;;  %v23333_v42 = vpack.c.bf16 %v23331_v40, %v23332_v44  ;;  %v14172_v44 = vld [vmem:[%s22037_s6 + $0x48] ss:$144 sps:$4 sm:$0xff]  }
 0x417   :  { %12332 = vmatpush3.bf16.msra.mxu0 %v23324_v39  ;;  %5199 = vmatprep.mubr.bf16.mxu0 %v14165_v23  ;;  %v14166_v39 = vld [vmem:[%s22037_s6 + $0x818] ss:$144 sps:$4 sm:$0xff]   ;;  %v23328_v58 = vld [vmem:[#allocation4_spill] sm:$0xff] }
 0x418   :  { %12333 = vmatprep.subr.bf16.mxu0 %v23327_v5  ;;  %5708 = vmatprep.mubr.bf16.mxu1 %v14168_v21  ;;  %v23329_v23 = vld [vmem:[#allocation63_spill] sm:$0xff]  ;;  %v14169_v40 = vld [vmem:[%s22037_s6 + $0x5b0] ss:$144 sps:$4 sm:$0xff]  }
 0x419   :  { %v17490_v31 = vpop.f32.mrb[96].mxu0  ;;  %v23330_v27 = vpack.c.bf16 %v23328_v58, %v23329_v23  ;;  %v12152_v58 = vpop.f32.mrb[234].mxu1 }
 0x41a   :  { %v17492_v20 = vpop.f32.mrb[97].mxu0 }
 0x41b   :  { %12334 = vmatpush3.bf16.msra.mxu0 %v23330_v27  ;;  %v17505_v21 = vpop.f32.mrb[98].mxu0  ;;  %v12153_v27 = vpop.f32.mrb[235].mxu1 }
 0x41c   :  { %12447 = vmatprep.subr.bf16.mxu0 %v23333_v42  ;;  %v17518_v5 = vpop.f32.mrb[99].mxu0  ;;  %v17522_v0 = vadd.f32 %v12153_v27, %v12152_v58  ;;  %v12155_v34 = vpop.f32.mrb[236].mxu1  ;;  %v14180_v58 = vld [vmem:[%s22037_s6 + $0x16c] ss:$144 sps:$4 sm:$0xff]  }
 0x41d   :  { %v12156_v32 = vpop.f32.mrb[237].mxu1 }
 0x41e   :  { %5200 = vmatmul.mubr.bf16.gmra.mrb[204].mxu0 %v14163_v38  ;;  %5709 = vmatmul.mubr.bf16.gmra.mrb[96].mxu1 %v14166_v39  ;;  %v17534_v38 = vadd.f32 %v12156_v32, %v12155_v34  ;;  %v12158_v27 = vpop.f32.mrb[238].mxu1 }
 0x41f   :  { %5207 = vmatprep.mubr.bf16.mxu0 %v14171_v51  ;;  %5846 = vmatprep.mubr.bf16.mxu1 %v14174_v22  ;;  %v14177_v51 = vld [vmem:[%s22037_s6 + $0x6d4] ss:$144 sps:$4 sm:$0xff]   ;;  %v12159_v32 = vpop.f32.mrb[239].mxu1 }
 0x420   :  { %v17550_v23 = vadd.f32 %v12159_v32, %v12158_v27  ;;  %v23337_v22 = vld [vmem:[#allocation88_spill] sm:$0xff]  ;;  %v12161_v4 = vpop.f32.mrb[240].mxu1  ;;  %v23344_v27 = vld [vmem:[#allocation105_spill] sm:$0xff] }
 0x421   :  { %v17524_v53 = vpop.f32.mrb[100].mxu0  ;;  %v23339_v11 = vpack.c.bf16 %v23337_v22, %v23338_v56  ;;  %v12162_v17 = vpop.f32.mrb[241].mxu1  ;;  %v23341_v56 = vld [vmem:[#allocation191_spill] sm:$0xff]  ;;  %v23346_v22 = vld [vmem:[#allocation201_spill] sm:$0xff] }
 0x422   :  { %v17526_v35 = vpop.f32.mrb[101].mxu0  ;;  %v23348_v25 = vpack.c.bf16 %v23346_v22, %v23347_v49  ;;  %v14184_v49 = vld [vmem:[%s22037_s6 + $0x288] ss:$144 sps:$4 sm:$0xff]  }
 0x423   :  { %v17536_v39 = vpop.f32.mrb[102].mxu0 }
 0x424   :  { %v17543_v42 = vpop.f32.mrb[103].mxu0 }
 0x426   :  { %5208 = vmatmul.mubr.bf16.gmra.mrb[208].mxu0 %v14169_v40  ;;  %5847 = vmatmul.mubr.bf16.vlgmr.msra.gmra.mrb[100].mxu1 %v14172_v44  ;;  %v14175_v40 = vld [vmem:[%s22037_s6 + $0x6d0] ss:$144 sps:$4 sm:$0xff]  }
 0x427   :  { %12768 = vmatpush3.bf16.msra.mxu1 %v23336_v48  ;;  %5215 = vmatprep.mubr.bf16.mxu0 %v14177_v51  ;;  %v17568_v48 = vadd.f32 %v12162_v17, %v12161_v4  ;;  %v14183_v51 = vld [vmem:[%s22037_s6 + $0x7f4] ss:$144 sps:$4 sm:$0xff]   ;;  %v14186_v4 = vld [vmem:[%s22037_s6 + $0x28c] ss:$144 sps:$4 sm:$0xff]   ;;  %v12164_v17 = vpop.f32.mrb[242].mxu1 }
 0x428   :  { %12769 = vmatprep.subr.bf16.mxu1 %v23339_v11  ;;  %5854 = vmatprep.mubr.bf16.mxu1 %v14180_v58  ;;  %v23342_v11 = vpack.c.bf16 %v23340_v54, %v23341_v56  ;;  %v23343_v58 = vld [vmem:[#allocation92_spill] sm:$0xff]  ;;  %v12165_v56 = vpop.f32.mrb[243].mxu1 }
 0x429   :  { %v17558_v62 = vpop.f32.mrb[104].mxu0  ;;  %v23345_v32 = vpack.c.bf16 %v23343_v58, %v23344_v27  ;;  %v23349_v58 = vld [vmem:[#allocation96_spill] sm:$0xff]  ;;  %v23350_v27 = vld [vmem:[#allocation111_spill] sm:$0xff]  ;;  %v12167_v30 = vpop.f32.mrb[244].mxu1 }
 0x42a   :  { %v17560_v34 = vpop.f32.mrb[105].mxu0  ;;  %v12168_v3 = vpop.f32.mrb[245].mxu1 }
 0x42b   :  { %12770 = vmatpush3.bf16.msra.mxu1 %v23342_v11  ;;  %v17573_v44 = vpop.f32.mrb[106].mxu0  ;;  %v17590_v11 = vadd.f32 %v12165_v56, %v12164_v17  ;;  %v14189_v17 = vld [vmem:[%s22037_s6 + $0x24] ss:$144 sps:$4 sm:$0xff]   ;;  %v23358_v56 = vld [vmem:[#allocation209_spill] sm:$0xff] }
 0x42c   :  { %12771 = vmatprep.subr.bf16.mxu1 %v23345_v32  ;;  %v17583_v9 = vpop.f32.mrb[107].mxu0  ;;  %v23351_v32 = vpack.c.bf16 %v23349_v58, %v23350_v27  ;;  %v23355_v58 = vld [vmem:[#allocation100_spill] sm:$0xff]  ;;  %v23356_v27 = vld [vmem:[#allocation117_spill] sm:$0xff]  ;;  %v23360_v29 = vpack.c.bf16 %v23358_v56, %v23359_v24 }
 0x42d   :  { %v14190_v24 = vld [vmem:[%s22037_s6 + $0x3a8] ss:$144 sps:$4 sm:$0xff]  }
 0x42e   :  { %5216 = vmatmul.mubr.bf16.gmra.mrb[212].mxu0 %v14175_v40  ;;  %5855 = vmatmul.mubr.bf16.gmra.mrb[104].mxu1 %v14178_v8  ;;  %v14181_v40 = vld [vmem:[%s22037_s6 + $0x7f0] ss:$144 sps:$4 sm:$0xff]   ;;  %v23352_v8 = vld [vmem:[#allocation205_spill] sm:$0xff] }
 0x42f   :  { %12772 = vmatpush3.bf16.msra.mxu1 %v23348_v25  ;;  %5223 = vmatprep.mubr.bf16.mxu0 %v14183_v51  ;;  %v17608_v25 = vadd.f32 %v12168_v3, %v12167_v30  ;;  %v23353_v51 = vld [vmem:[#allocation203_spill] sm:$0xff]  ;;  %v12170_v30 = vpop.f32.mrb[246].mxu1 }
 0x430   :  { %12773 = vmatprep.subr.bf16.mxu1 %v23351_v32  ;;  %5862 = vmatprep.mubr.bf16.mxu1 %v14186_v4  ;;  %v23354_v22 = vpack.c.bf16 %v23352_v8, %v23353_v51  ;;  %v23357_v32 = vpack.c.bf16 %v23355_v58, %v23356_v27  ;;  %v14192_v3 = vld [vmem:[%s22037_s6 + $0x3ac] ss:$144 sps:$4 sm:$0xff]   ;;  %v12171_v51 = vpop.f32.mrb[247].mxu1 }
 0x431   :  { %v17598_v16 = vpop.f32.mrb[108].mxu0  ;;  %v23361_v58 = vld [vmem:[#allocation59_spill] sm:$0xff] }
 0x432   :  { %v17600_v54 = vpop.f32.mrb[109].mxu0  ;;  %v23362_v27 = vpack.c.bf16 %v16586_v60, %v23361_v58  ;;  %v23364_v60 = vld [vmem:[#allocation211_spill] sm:$0xff] }
 0x433   :  { %12774 = vmatpush3.bf16.msra.mxu1 %v23354_v22  ;;  %v17613_v4 = vpop.f32.mrb[110].mxu0  ;;  %v17630_v22 = vadd.f32 %v12171_v51, %v12170_v30  ;;  %v23366_v30 = vld [vmem:[#allocation56_spill] sm:$0xff] }
 0x434   :  { %12775 = vmatprep.subr.bf16.mxu1 %v23357_v32  ;;  %v17623_v43 = vpop.f32.mrb[111].mxu0  ;;  %v12173_v32 = vpop.f32.mrb[248].mxu1  ;;  %v23367_v51 = vpack.c.bf16 %v16618_v57, %v23366_v30  ;;  %v23368_v57 = vld [vmem:[#allocation125_spill] sm:$0xff] }
 0x435   :  { %v12174_v28 = vpop.f32.mrb[249].mxu1  ;;  %v23369_v30 = vld [vmem:[#allocation121_spill] sm:$0xff] }
 0x436   :  { %5224 = vmatmul.mubr.bf16.gmra.mrb[216].mxu0 %v14181_v40  ;;  %5863 = vmatmul.mubr.bf16.gmra.mrb[108].mxu1 %v14184_v49  ;;  %v14187_v40 = vld [vmem:[%s22037_s6 + $0x20] ss:$144 sps:$4 sm:$0xff]   ;;  %v23363_v49 = vld [vmem:[#allocation213_spill] sm:$0xff] }
 0x437   :  { %12776 = vmatpush3.bf16.msra.mxu1 %v23360_v29  ;;  %5361 = vmatprep.mubr.bf16.mxu0 %v14189_v17  ;;  %v17648_v29 = vadd.f32 %v12174_v28, %v12173_v32  ;;  %v23365_v17 = vpack.c.bf16 %v23363_v49, %v23364_v60  ;;  %v14195_v32 = vld [vmem:[%s22037_s6 + $0x144] ss:$144 sps:$4 sm:$0xff]   ;;  %v14198_v49 = vld [vmem:[%s22037_s6 + $0x4cc] ss:$144 sps:$4 sm:$0xff]  }
 0x438   :  { %12777 = vmatprep.subr.bf16.mxu1 %v23362_v27  ;;  %5870 = vmatprep.mubr.bf16.mxu1 %v14192_v3  ;;  %v12176_v27 = vpop.f32.mrb[250].mxu1  ;;  %v23371_v3 = vld [vmem:[#allocation69_spill] sm:$0xff] }
 0x439   :  { %v17638_v13 = vpop.f32.mrb[112].mxu0  ;;  %v12177_v60 = vpop.f32.mrb[251].mxu1  ;;  %v23373_v28 = vpack.c.bf16 %v23371_v3, %v23372_v63  ;;  %v14193_v63 = vld [vmem:[%s22037_s6 + $0x140] ss:$144 sps:$4 sm:$0xff]   ;;  %v23384_v3 = vld [vmem:[#allocation89_spill] sm:$0xff] }
 0x43a   :  { %v17640_v8 = vpop.f32.mrb[113].mxu0 }
 0x43b   :  { %12778 = vmatpush3.bf16.msra.mxu1 %v23365_v17  ;;  %v17653_v56 = vpop.f32.mrb[114].mxu0  ;;  %v17670_v17 = vadd.f32 %v12177_v60, %v12176_v27 }
 0x43c   :  { %12779 = vmatprep.subr.bf16.mxu1 %v23367_v51  ;;  %v17660_v58 = vpop.f32.mrb[115].mxu0  ;;  %v23370_v51 = vpack.c.bf16 %v23368_v57, %v23369_v30  ;;  %v23386_v30 = vld [vmem:[#allocation48_spill] sm:$0xff]  ;;  %v23391_v57 = vld [vmem:[#allocation137_spill] sm:$0xff] }
 0x43e   :  { %5362 = vmatmul.mubr.bf16.vlgmr.msra.gmra.mrb[220].mxu0 %v14187_v40  ;;  %5871 = vmatmul.mubr.bf16.gmra.mrb[112].mxu1 %v14190_v24  ;;  %v12179_v40 = vpop.f32.mrb[252].mxu1 }
 0x43f   :  { %12448 = vmatpush3.bf16.msra.mxu0 %v23370_v51  ;;  %12780 = vmatpush3.bf16.msra.mxu1 %v23373_v28  ;;  %v12180_v27 = vpop.f32.mrb[253].mxu1  ;;  %v23385_v28 = vpack.c.bf16 %v23383_v26, %v23384_v3  ;;  %v23387_v51 = vld [vmem:[#allocation79_spill] sm:$0xff] }
 0x440   :  { %12449 = vmatprep.subr.bf16.mxu0 %v23376_v18  ;;  %12781 = vmatprep.subr.bf16.mxu1 %v23378_v19  ;;  %v17694_v18 = vadd.f32 %v12180_v27, %v12179_v40  ;;  %v23381_v19 = vld [vmem:[#allocation129_spill] sm:$0xff]  ;;  %v23388_v40 = vpack.c.bf16 %v23386_v30, %v23387_v51  ;;  %v23393_v30 = vld [vmem:[#allocation176_spill] sm:$0xff] }
 0x441   :  { %v17684_v24 = vpop.f32.mrb[116].mxu0  ;;  %5369 = vmatprep.mubr.bf16.mxu0 %v14195_v32  ;;  %5878 = vmatprep.mubr.bf16.mxu1 %v14198_v49  ;;  %v23382_v1 = vpack.c.bf16 %v23380_v61, %v23381_v19  ;;  %v14201_v49 = vld [vmem:[%s22037_s6 + $0x264] ss:$144 sps:$4 sm:$0xff]   ;;  %v14204_v61 = vld [vmem:[%s22037_s6 + $0x5ec] ss:$144 sps:$4 sm:$0xff]   ;;  %v12182_v19 = vpop.f32.mrb[254].mxu1 }
 0x442   :  { %v17686_v60 = vpop.f32.mrb[117].mxu0  ;;  %23379 = vst [vmem:[#allocation127_spill] sm:$0xff] %v17694_v18  ;;  %v12183_v26 = vpop.f32.mrb[255].mxu1  ;;  %v23394_v51 = vld [vmem:[#allocation12_spill] sm:$0xff] }
 0x443   :  { %12450 = vmatpush3.bf16.msra.mxu0 %v23382_v1  ;;  %12782 = vmatpush3.bf16.msra.mxu1 %v23385_v28  ;;  %v17702_v32 = vpop.f32.mrb[118].mxu0  ;;  %v17719_v3 = vadd.f32 %v12183_v26, %v12182_v19  ;;  %v23390_v28 = vld [vmem:[#allocation141_spill] sm:$0xff]  ;;  %v12185_v41 = vpop.f32.mrb[0].mxu1  ;;  %v14207_v26 = vld [vmem:[%s22037_s6 + $0x384] ss:$144 sps:$4 sm:$0xff]  }
 0x444   :  { %12451 = vmatprep.subr.bf16.mxu0 %v23388_v40  ;;  %v17712_v27 = vpop.f32.mrb[119].mxu0  ;;  %v23392_v12 = vpack.c.bf16 %v23390_v28, %v23391_v57  ;;  %v23395_v40 = vpack.c.bf16 %v23393_v30, %v23394_v51  ;;  %v12186_v52 = vpop.f32.mrb[1].mxu1  ;;  %v23399_v57 = vld [vmem:[#allocation145_spill] sm:$0xff]  ;;  %v23401_v30 = vld [vmem:[#allocation182_spill] sm:$0xff] }
 0x445   :  { %23389 = vst [vmem:[#allocation78_spill] sm:$0xff] %v17719_v3  ;;  %v23402_v51 = vld [vmem:[#allocation178_spill] sm:$0xff]  ;;  %v23405_v28 = vld [vmem:[#allocation157_spill] sm:$0xff] }
 0x446   :  { %5370 = vmatmul.mubr.bf16.gmra.mrb[224].mxu0 %v14193_v63  ;;  %5879 = vmatmul.mubr.bf16.gmra.mrb[116].mxu1 %v14196_v15  ;;  %v14199_v63 = vld [vmem:[%s22037_s6 + $0x260] ss:$144 sps:$4 sm:$0xff]   ;;  %v17737_v15 = vadd.f32 %v12186_v52, %v12185_v41  ;;  %v14210_v41 = vld [vmem:[%s22037_s6 + $0x70c] ss:$144 sps:$4 sm:$0xff]   ;;  %v12188_v52 = vpop.f32.mrb[2].mxu1  ;;  %v23407_v59 = vpack.c.bf16 %v23405_v28, %v23406_v36 }
 0x447   :  { %12452 = vmatpush3.bf16.msra.mxu0 %v23392_v12  ;;  %5377 = vmatprep.mubr.bf16.mxu0 %v14201_v49  ;;  %v14202_v12 = vld [vmem:[%s22037_s6 + $0x5e8] ss:$144 sps:$4 sm:$0xff]  }
 0x448   :  { %12453 = vmatprep.subr.bf16.mxu0 %v23395_v40  ;;  %5886 = vmatprep.mubr.bf16.mxu1 %v14204_v61  ;;  %23397 = vst [vmem:[#allocation44_spill] sm:$0xff] %v17737_v15  ;;  %v23398_v49 = vld [vmem:[#allocation149_spill] sm:$0xff]  ;;  %v23403_v40 = vpack.c.bf16 %v23401_v30, %v23402_v51  ;;  %v23408_v30 = vld [vmem:[#allocation188_spill] sm:$0xff] }
 0x449   :  { %v17727_v50 = vpop.f32.mrb[120].mxu0  ;;  %v23400_v19 = vpack.c.bf16 %v23398_v49, %v23399_v57  ;;  %v12189_v57 = vpop.f32.mrb[3].mxu1  ;;  %v23409_v51 = vld [vmem:[#allocation184_spill] sm:$0xff]  ;;  %v14208_v36 = vld [vmem:[%s22037_s6 + $0x708] ss:$144 sps:$4 sm:$0xff]  }
 0x44a   :  { %v17729_v1 = vpop.f32.mrb[121].mxu0  ;;  %v12271_v46 = vpop.f32.mrb[4].mxu1  ;;  %v14213_v49 = vld [vmem:[%s22037_s6 + $0x4a4] ss:$144 sps:$4 sm:$0xff]  }
 0x44b   :  { %23396 = vst [vmem:[#allocation91_spill] sm:$0xff] %v17729_v1  ;;  %12454 = vmatpush3.bf16.msra.mxu0 %v23400_v19  ;;  %v17742_v61 = vpop.f32.mrb[122].mxu0  ;;  %v17759_v19 = vadd.f32 %v12189_v57, %v12188_v52  ;;  %v12272_v3 = vpop.f32.mrb[5].mxu1  ;;  %v23415_v57 = vld [vmem:[#allocation194_spill] sm:$0xff] }
 0x44c   :  { %12455 = vmatprep.subr.bf16.mxu0 %v23403_v40  ;;  %v17752_v45 = vpop.f32.mrb[123].mxu0  ;;  %v23410_v40 = vpack.c.bf16 %v23408_v30, %v23409_v51  ;;  %v23416_v30 = vld [vmem:[#allocation190_spill] sm:$0xff] }
 0x44d   :  { %23404 = vst [vmem:[#allocation8_spill] sm:$0xff] %v17759_v19  ;;  %v23417_v51 = vpack.c.bf16 %v23415_v57, %v23416_v30  ;;  %v12274_v19 = vpop.f32.mrb[6].mxu1  ;;  %v23422_v57 = vld [vmem:[#allocation200_spill] sm:$0xff] }
 0x44e   :  { %5378 = vmatmul.mubr.bf16.gmra.mrb[228].mxu0 %v14199_v63  ;;  %5887 = vmatmul.mubr.bf16.gmra.mrb[120].mxu1 %v14202_v12  ;;  %v14205_v63 = vld [vmem:[%s22037_s6 + $0x380] ss:$144 sps:$4 sm:$0xff]   ;;  %v23412_v12 = vld [vmem:[#allocation165_spill] sm:$0xff] }
 0x44f   :  { %12456 = vmatpush3.bf16.msra.mxu0 %v23407_v59  ;;  %5385 = vmatprep.mubr.bf16.mxu0 %v14207_v26  ;;  %v17775_v59 = vadd.f32 %v12272_v3, %v12271_v46  ;;  %v23413_v26 = vld [vmem:[#allocation161_spill] sm:$0xff]  ;;  %v23423_v30 = vld [vmem:[#allocation196_spill] sm:$0xff] }
 0x450   :  { %12457 = vmatprep.subr.bf16.mxu0 %v23410_v40  ;;  %5894 = vmatprep.mubr.bf16.mxu1 %v14210_v41  ;;  %v23414_v28 = vpack.c.bf16 %v23412_v12, %v23413_v26  ;;  %v14216_v3 = vld [vmem:[%s22037_s6 + $0x82c] ss:$144 sps:$4 sm:$0xff]   ;;  %v12275_v12 = vpop.f32.mrb[7].mxu1  ;;  %v23419_v26 = vld [vmem:[#allocation52_spill] sm:$0xff] }
 0x451   :  { %v2550_v15 = vpop.f32.mrb[124].mxu0  ;;  %23411 = vst [vmem:[#allocation84_spill] sm:$0xff] %v17775_v59  ;;  %v12277_v46 = vpop.f32.mrb[8].mxu1 }
 0x452   :  { %v17767_v18 = vpop.f32.mrb[125].mxu0  ;;  %v12278_v47 = vpop.f32.mrb[9].mxu1 }
 0x453   :  { %12458 = vmatpush3.bf16.msra.mxu0 %v23414_v28  ;;  %v2554_v41 = vpop.f32.mrb[126].mxu0  ;;  %v23420_v28 = vld [vmem:[#allocation169_spill] sm:$0xff] }
 0x454   :  { %v3140_v52 = vpack.c.bf16 %v2554_v41, %v2550_v15  ;;  %12459 = vmatprep.subr.bf16.mxu0 %v23417_v51  ;;  %v17783_v40 = vpop.f32.mrb[127].mxu0  ;;  %v17793_v15 = vadd.f32 %v12275_v12, %v12274_v19  ;;  %v23421_v41 = vpack.c.bf16 %v23419_v26, %v23420_v28  ;;  %v23424_v51 = vpack.c.bf16 %v23422_v57, %v23423_v30  ;;  %v14211_v19 = vld [vmem:[%s22037_s6 + $0x4a0] ss:$144 sps:$4 sm:$0xff]   ;;  %v14222_v28 = vld [vmem:[%s22037_s6 + $0x5c] ss:$144 sps:$4 sm:$0xff]  }
 0x455   :  { %v23427_v12 = vld [vmem:[#allocation26_spill] sm:$0xff]  ;;  %v23429_v57 = vld [vmem:[#allocation164_spill] sm:$0xff] }
 0x456   :  { %5386 = vmatmul.mubr.bf16.gmra.mrb[232].mxu0 %v14205_v63  ;;  %5895 = vmatmul.mubr.bf16.gmra.mrb[124].mxu1 %v14208_v36  ;;  %23418 = vst [vmem:[#allocation93_spill] sm:$0xff] %v17793_v15  ;;  %v14214_v63 = vld [vmem:[%s22037_s6 + $0x828] ss:$144 sps:$4 sm:$0xff]   ;;  %v17809_v36 = vadd.f32 %v12278_v47, %v12277_v46  ;;  %v23430_v30 = vld [vmem:[#allocation160_spill] sm:$0xff]  ;;  %v12280_v46 = vpop.f32.mrb[10].mxu1 }
 0x457   :  { %12460 = vmatpush3.bf16.msra.mxu0 %v23421_v41  ;;  %12895 = vmatprep.subr.bf16.mxu1 %v3140_v52  ;;  %v23426_v52 = vld [vmem:[#allocation55_spill] sm:$0xff] }
 0x458   :  { %12461 = vmatprep.subr.bf16.mxu0 %v23424_v51  ;;  %5393 = vmatprep.mubr.bf16.mxu0 %v14213_v49  ;;  %23425 = vst [vmem:[#allocation139_spill] sm:$0xff] %v17809_v36  ;;  %v23428_v26 = vpack.c.bf16 %v23426_v52, %v23427_v12  ;;  %v23431_v51 = vpack.c.bf16 %v23429_v57, %v23430_v30  ;;  %v12281_v12 = vpop.f32.mrb[11].mxu1  ;;  %v14217_v57 = vld [vmem:[%s22037_s6 + $0x5c0] ss:$144 sps:$4 sm:$0xff]   ;;  %v14220_v30 = vld [vmem:[%s22037_s6 + $0x58] ss:$144 sps:$4 sm:$0xff]  }
 0x459   :  { %v2560_v59 = vpop.f32.mrb[128].mxu0  ;;  %5902 = vmatprep.mubr.bf16.mxu1 %v14216_v3  ;;  %v14219_v3 = vld [vmem:[%s22037_s6 + $0x5c4] ss:$144 sps:$4 sm:$0xff]   ;;  %v12283_v36 = vpop.f32.mrb[12].mxu1  ;;  %v14223_v52 = vld [vmem:[%s22037_s6 + $0x6e0] ss:$144 sps:$4 sm:$0xff]  }
 0x45a   :  { %v17801_v14 = vpop.f32.mrb[129].mxu0 }
 0x45b   :  { %12462 = vmatpush3.bf16.msra.mxu0 %v23428_v26  ;;  %v2564_v49 = vpop.f32.mrb[130].mxu0  ;;  %v17827_v26 = vadd.f32 %v12281_v12, %v12280_v46  ;;  %v14228_v46 = vld [vmem:[%s22037_s6 + $0x17c] ss:$144 sps:$4 sm:$0xff]  }
 0x45c   :  { %v3149_v41 = vpack.c.bf16 %v2564_v49, %v2560_v59  ;;  %12575 = vmatprep.subr.bf16.mxu0 %v23431_v51  ;;  %v17823_v47 = vpop.f32.mrb[131].mxu0  ;;  %v12284_v59 = vpop.f32.mrb[13].mxu1 }
 0x45d   :  { %23432 = vst [vmem:[#allocation135_spill] sm:$0xff] %v17827_v26  ;;  %v17837_v51 = vadd.f32 %v12284_v59, %v12283_v36  ;;  %v12286_v12 = vpop.f32.mrb[14].mxu1  ;;  %v23434_v59 = vpack.c.bf16 %v17465_v6, %v17450_v55  ;;  %v23435_v55 = vpack.c.bf16 %v17505_v21, %v17490_v31  ;;  %v23437_v21 = vpack.c.bf16 %v17536_v39, %v17524_v53 }
 0x45e   :  { %5394 = vmatmul.mubr.bf16.gmra.mrb[236].mxu0 %v14211_v19  ;;  %5903 = vmatmul.mubr.bf16.gmra.mrb[128].mxu1 %v14214_v63  ;;  %v14225_v63 = vld [vmem:[%s22037_s6 + $0x6e4] ss:$144 sps:$4 sm:$0xff]   ;;  %v12287_v26 = vpop.f32.mrb[15].mxu1  ;;  %v23439_v53 = vpack.c.bf16 %v17573_v44, %v17558_v62  ;;  %v23441_v44 = vpack.c.bf16 %v17613_v4, %v17598_v16 }
 0x45f   :  { %5401 = vmatprep.mubr.bf16.mxu0 %v14219_v3  ;;  %6040 = vmatprep.mubr.bf16.mxu1 %v14222_v28  ;;  %23433 = vst [vmem:[#allocation174_spill] sm:$0xff] %v17837_v51  ;;  %v17849_v36 = vadd.f32 %v12287_v26, %v12286_v12  ;;  %v14226_v26 = vld [vmem:[%s22037_s6 + $0x178] ss:$144 sps:$4 sm:$0xff]  }
 0x461   :  { %v2570_v15 = vpop.f32.mrb[132].mxu0 }
 0x462   :  { %v17829_v49 = vpop.f32.mrb[133].mxu0 }
 0x463   :  { %v2574_v19 = vpop.f32.mrb[134].mxu0 }
 0x464   :  { %v3158_v3 = vpack.c.bf16 %v2574_v19, %v2570_v15  ;;  %v17842_v28 = vpop.f32.mrb[135].mxu0  ;;  %v12289_v15 = vpop.f32.mrb[16].mxu1 }
 0x465   :  { %v12290_v51 = vpop.f32.mrb[17].mxu1 }
 0x466   :  { %5402 = vmatmul.mubr.bf16.gmra.mrb[240].mxu0 %v14217_v57  ;;  %6041 = vmatmul.mubr.bf16.vlgmr.msra.gmra.mrb[132].mxu1 %v14220_v30  ;;  %v17862_v57 = vadd.f32 %v12290_v51, %v12289_v15  ;;  %v12292_v12 = vpop.f32.mrb[18].mxu1  ;;  %v23447_v51 = vld [vmem:[#allocation172_spill] sm:$0xff] }
 0x467   :  { %12896 = vmatpush3.bf16.msra.mxu1 %v23434_v59  ;;  %5409 = vmatprep.mubr.bf16.mxu0 %v14225_v63  ;;  %v12293_v59 = vpop.f32.mrb[19].mxu1 }
 0x468   :  { %12897 = vmatprep.subr.bf16.mxu1 %v3149_v41  ;;  %6048 = vmatprep.mubr.bf16.mxu1 %v14228_v46  ;;  %v14231_v41 = vld [vmem:[%s22037_s6 + $0x804] ss:$144 sps:$4 sm:$0xff]   ;;  %v14234_v46 = vld [vmem:[%s22037_s6 + $0x29c] ss:$144 sps:$4 sm:$0xff]   ;;  %v17877_v31 = vadd.f32 %v12293_v59, %v12292_v12 }
 0x469   :  { %v2580_v19 = vpop.f32.mrb[136].mxu0  ;;  %v14240_v12 = vld [vmem:[%s22037_s6 + $0x3bc] ss:$144 sps:$4 sm:$0xff]  }
 0x46a   :  { %v17854_v1 = vpop.f32.mrb[137].mxu0  ;;  %23436 = vst [vmem:[#allocation10_spill] sm:$0xff] %v17877_v31 }
 0x46b   :  { %12898 = vmatpush3.bf16.msra.mxu1 %v23435_v55  ;;  %v2584_v6 = vpop.f32.mrb[138].mxu0 }
 0x46c   :  { %v3167_v30 = vpack.c.bf16 %v2584_v6, %v2580_v19  ;;  %12899 = vmatprep.subr.bf16.mxu1 %v3158_v3  ;;  %v17870_v63 = vpop.f32.mrb[139].mxu0  ;;  %v12295_v3 = vpop.f32.mrb[20].mxu1  ;;  %v14229_v6 = vld [vmem:[%s22037_s6 + $0x800] ss:$144 sps:$4 sm:$0xff]  }
 0x46d   :  { %v12296_v19 = vpop.f32.mrb[21].mxu1 }
 0x46e   :  { %5410 = vmatmul.mubr.bf16.gmra.mrb[244].mxu0 %v14223_v52  ;;  %6049 = vmatmul.mubr.bf16.gmra.mrb[136].mxu1 %v14226_v26  ;;  %v14232_v52 = vld [vmem:[%s22037_s6 + $0x298] ss:$144 sps:$4 sm:$0xff]   ;;  %v17890_v26 = vadd.f32 %v12296_v19, %v12295_v3  ;;  %v12298_v59 = vpop.f32.mrb[22].mxu1 }
 0x46f   :  { %12900 = vmatpush3.bf16.msra.mxu1 %v23437_v21  ;;  %5417 = vmatprep.mubr.bf16.mxu0 %v14231_v41  ;;  %v14237_v41 = vld [vmem:[%s22037_s6 + $0x34] ss:$144 sps:$4 sm:$0xff]   ;;  %v12299_v3 = vpop.f32.mrb[23].mxu1  ;;  %v14235_v21 = vld [vmem:[%s22037_s6 + $0x30] ss:$144 sps:$4 sm:$0xff]  }
 0x470   :  { %12901 = vmatprep.subr.bf16.mxu1 %v3167_v30  ;;  %6056 = vmatprep.mubr.bf16.mxu1 %v14234_v46  ;;  %23438 = vst [vmem:[#allocation147_spill] sm:$0xff] %v17890_v26  ;;  %v17905_v62 = vadd.f32 %v12299_v3, %v12298_v59  ;;  %v14243_v59 = vld [vmem:[%s22037_s6 + $0x154] ss:$144 sps:$4 sm:$0xff]   ;;  %v14246_v3 = vld [vmem:[%s22037_s6 + $0x4dc] ss:$144 sps:$4 sm:$0xff]  }
 0x471   :  { %v2590_v15 = vpop.f32.mrb[140].mxu0 }
 0x472   :  { %v17882_v55 = vpop.f32.mrb[141].mxu0  ;;  %23440 = vst [vmem:[#allocation143_spill] sm:$0xff] %v17905_v62  ;;  %v23450_v62 = vpack.c.bf16 %v17653_v56, %v17638_v13  ;;  %v23453_v13 = vld [vmem:[#allocation107_spill] sm:$0xff] }
 0x473   :  { %12902 = vmatpush3.bf16.msra.mxu1 %v23439_v53  ;;  %v2594_v39 = vpop.f32.mrb[142].mxu0 }
 0x474   :  { %v3176_v30 = vpack.c.bf16 %v2594_v39, %v2590_v15  ;;  %v17898_v46 = vpop.f32.mrb[143].mxu0  ;;  %v12301_v15 = vpop.f32.mrb[24].mxu1 }
 0x475   :  { %v12302_v53 = vpop.f32.mrb[25].mxu1 }
 0x476   :  { %5418 = vmatmul.mubr.bf16.gmra.mrb[248].mxu0 %v14229_v6  ;;  %6057 = vmatmul.mubr.bf16.gmra.mrb[140].mxu1 %v14232_v52  ;;  %v14238_v6 = vld [vmem:[%s22037_s6 + $0x3b8] ss:$144 sps:$4 sm:$0xff]   ;;  %v17918_v52 = vadd.f32 %v12302_v53, %v12301_v15  ;;  %v12304_v4 = vpop.f32.mrb[26].mxu1 }
 0x477   :  { %12903 = vmatprep.subr.bf16.mxu1 %v3176_v30  ;;  %5555 = vmatprep.mubr.bf16.mxu0 %v14237_v41  ;;  %v23445_v53 = vld [vmem:[#allocation101_spill] sm:$0xff] }
 0x478   :  { %12904 = vmatpush3.bf16.msra.mxu1 %v23441_v44  ;;  %6064 = vmatprep.mubr.bf16.mxu1 %v14240_v12  ;;  %23442 = vst [vmem:[#allocation180_spill] sm:$0xff] %v17918_v52  ;;  %v12305_v44 = vpop.f32.mrb[27].mxu1  ;;  %v23448_v12 = vld [vmem:[#allocation168_spill] sm:$0xff] }
 0x479   :  { %v2600_v19 = vpop.f32.mrb[144].mxu0  ;;  %v17930_v15 = vadd.f32 %v12305_v44, %v12304_v4  ;;  %v23449_v52 = vpack.c.bf16 %v23447_v51, %v23448_v12  ;;  %v12307_v26 = vpop.f32.mrb[28].mxu1  ;;  %v14241_v4 = vld [vmem:[%s22037_s6 + $0x150] ss:$144 sps:$4 sm:$0xff]   ;;  %v14244_v51 = vld [vmem:[%s22037_s6 + $0x4d8] ss:$144 sps:$4 sm:$0xff]  }
 0x47a   :  { %v17910_v39 = vpop.f32.mrb[145].mxu0 }
 0x47b   :  { %v2604_v41 = vpop.f32.mrb[146].mxu0  ;;  %23443 = vst [vmem:[#allocation11_spill] sm:$0xff] %v17930_v15 }
 0x47c   :  { %v3185_v30 = vpack.c.bf16 %v2604_v41, %v2600_v19  ;;  %v17920_v16 = vpop.f32.mrb[147].mxu0  ;;  %v23444_v19 = vld [vmem:[#allocation104_spill] sm:$0xff] }
 0x47d   :  { %v23446_v41 = vpack.c.bf16 %v23444_v19, %v23445_v53 }
 0x47e   :  { %5556 = vmatmul.mubr.bf16.vlgmr.msra.gmra.mrb[252].mxu0 %v14235_v21  ;;  %6065 = vmatmul.mubr.bf16.gmra.mrb[144].mxu1 %v14238_v6  ;;  %v12308_v21 = vpop.f32.mrb[29].mxu1 }
 0x47f   :  { %12576 = vmatpush3.bf16.msra.mxu0 %v23446_v41  ;;  %12905 = vmatprep.subr.bf16.mxu1 %v3185_v30  ;;  %v23452_v30 = vld [vmem:[#allocation110_spill] sm:$0xff]  ;;  %v12310_v53 = vpop.f32.mrb[30].mxu1  ;;  %v23465_v41 = vpack.c.bf16 %v17702_v32, %v17684_v24  ;;  %v23468_v24 = vld [vmem:[#allocation120_spill] sm:$0xff] }
 0x480   :  { %12577 = vmatprep.subr.bf16.mxu0 %v23449_v52  ;;  %12906 = vmatpush3.bf16.msra.mxu1 %v23450_v62  ;;  %v17949_v52 = vadd.f32 %v12308_v21, %v12307_v26  ;;  %v23454_v56 = vpack.c.bf16 %v23452_v30, %v23453_v13  ;;  %v14249_v26 = vld [vmem:[%s22037_s6 + $0x274] ss:$144 sps:$4 sm:$0xff]   ;;  %v14252_v21 = vld [vmem:[%s22037_s6 + $0x5fc] ss:$144 sps:$4 sm:$0xff]   ;;  %v12311_v30 = vpop.f32.mrb[31].mxu1 }
 0x481   :  { %v2610_v31 = vpop.f32.mrb[148].mxu0  ;;  %5563 = vmatprep.mubr.bf16.mxu0 %v14243_v59  ;;  %6072 = vmatprep.mubr.bf16.mxu1 %v14246_v3  ;;  %v23455_v59 = vld [vmem:[#allocation58_spill] sm:$0xff]  ;;  %v23459_v13 = vld [vmem:[#allocation116_spill] sm:$0xff] }
 0x482   :  { %v17941_v6 = vpop.f32.mrb[149].mxu0  ;;  %23451 = vst [vmem:[#allocation155_spill] sm:$0xff] %v17949_v52  ;;  %v23456_v3 = vld [vmem:[#allocation2_spill] sm:$0xff]  ;;  %v12313_v52 = vpop.f32.mrb[32].mxu1 }
 0x483   :  { %12578 = vmatpush3.bf16.msra.mxu0 %v23454_v56  ;;  %v2614_v62 = vpop.f32.mrb[150].mxu0  ;;  %v23457_v44 = vpack.c.bf16 %v23455_v59, %v23456_v3  ;;  %v23460_v56 = vld [vmem:[#allocation113_spill] sm:$0xff]  ;;  %v23462_v59 = vld [vmem:[#allocation32_spill] sm:$0xff] }
 0x484   :  { %v3194_v12 = vpack.c.bf16 %v2614_v62, %v2610_v31  ;;  %v17957_v19 = vpop.f32.mrb[151].mxu0  ;;  %v17967_v31 = vadd.f32 %v12311_v30, %v12310_v53  ;;  %v23461_v62 = vpack.c.bf16 %v23459_v13, %v23460_v56  ;;  %v23463_v3 = vld [vmem:[#allocation64_spill] sm:$0xff]  ;;  %v23471_v56 = vld [vmem:[#allocation38_spill] sm:$0xff] }
 0x485   :  { %12579 = vmatprep.subr.bf16.mxu0 %v23457_v44  ;;  %v23464_v44 = vpack.c.bf16 %v23462_v59, %v23463_v3  ;;  %v14247_v53 = vld [vmem:[%s22037_s6 + $0x270] ss:$144 sps:$4 sm:$0xff]  }
 0x486   :  { %5564 = vmatmul.mubr.bf16.gmra.mrb[0].mxu0 %v14241_v4  ;;  %6073 = vmatmul.mubr.bf16.gmra.mrb[148].mxu1 %v14244_v51  ;;  %23458 = vst [vmem:[#allocation151_spill] sm:$0xff] %v17967_v31  ;;  %v12314_v4 = vpop.f32.mrb[33].mxu1  ;;  %v23467_v13 = vld [vmem:[#allocation124_spill] sm:$0xff] }
 0x487   :  { %12580 = vmatpush3.bf16.msra.mxu0 %v23461_v62  ;;  %12907 = vmatprep.subr.bf16.mxu1 %v3194_v12  ;;  %v14250_v12 = vld [vmem:[%s22037_s6 + $0x5f8] ss:$144 sps:$4 sm:$0xff]   ;;  %v17986_v30 = vadd.f32 %v12314_v4, %v12313_v52  ;;  %v23469_v32 = vpack.c.bf16 %v23467_v13, %v23468_v24  ;;  %v12316_v3 = vpop.f32.mrb[34].mxu1  ;;  %v14255_v52 = vld [vmem:[%s22037_s6 + $0x394] ss:$144 sps:$4 sm:$0xff]  }
 0x488   :  { %12581 = vmatprep.subr.bf16.mxu0 %v23464_v44  ;;  %12908 = vmatpush3.bf16.msra.mxu1 %v23465_v41  ;;  %v12317_v4 = vpop.f32.mrb[35].mxu1  ;;  %v23474_v24 = vld [vmem:[#allocation132_spill] sm:$0xff]  ;;  %v23480_v44 = vpack.c.bf16 %v17742_v61, %v17727_v50  ;;  %v14256_v50 = vld [vmem:[%s22037_s6 + $0x718] ss:$144 sps:$4 sm:$0xff]  }
 0x489   :  { %v2620_v15 = vpop.f32.mrb[152].mxu0  ;;  %5571 = vmatprep.mubr.bf16.mxu0 %v14249_v26  ;;  %6080 = vmatprep.mubr.bf16.mxu1 %v14252_v21  ;;  %23466 = vst [vmem:[#allocation186_spill] sm:$0xff] %v17986_v30  ;;  %v23470_v21 = vld [vmem:[#allocation5_spill] sm:$0xff]  ;;  %v18004_v13 = vadd.f32 %v12317_v4, %v12316_v3  ;;  %v18021_v4 = vld [vmem:[%s22038_s5] ss:$0 sm:$0xff] }
 0x48a   :  { %v17978_v51 = vpop.f32.mrb[153].mxu0  ;;  %v23472_v62 = vpack.c.bf16 %v23470_v21, %v23471_v56  ;;  %v23477_v21 = vld [vmem:[#allocation49_spill] sm:$0xff]  ;;  %v23478_v56 = vld [vmem:[#allocation82_spill] sm:$0xff] }
 0x48b   :  { %12582 = vmatpush3.bf16.msra.mxu0 %v23469_v32  ;;  %v2624_v41 = vpop.f32.mrb[154].mxu0  ;;  %23473 = vst [vmem:[#allocation13_spill] sm:$0xff] %v18004_v13  ;;  %v23475_v32 = vld [vmem:[#allocation128_spill] sm:$0xff]  ;;  %v23493_v30 = vld [vmem:[#allocation14_spill] sm:$0xff] }
 0x48c   :  { %v3203_v26 = vpack.c.bf16 %v2624_v41, %v2620_v15  ;;  %12583 = vmatprep.subr.bf16.mxu0 %v23472_v62  ;;  %v17994_v59 = vpop.f32.mrb[155].mxu0  ;;  %v14258_v15 = vld [vmem:[%s22037_s6 + $0x71c] ss:$144 sps:$4 sm:$0xff]   ;;  %v23476_v41 = vpack.c.bf16 %v23474_v24, %v23475_v32  ;;  %v23479_v62 = vpack.c.bf16 %v23477_v21, %v23478_v56  ;;  %v14253_v32 = vld [vmem:[%s22037_s6 + $0x390] ss:$144 sps:$4 sm:$0xff]  }
 0x48d   :  { %v23486_v56 = vld [vmem:[#allocation175_spill] sm:$0xff] }
 0x48e   :  { %5572 = vmatmul.mubr.bf16.gmra.mrb[4].mxu0 %v14247_v53  ;;  %6081 = vmatmul.mubr.bf16.gmra.mrb[152].mxu1 %v14250_v12  ;;  %v12399_v53 = vpop.f32.mrb[36].mxu1  ;;  %v23481_v12 = vpack.c.bf16 %v17783_v40, %v17767_v18  ;;  %v23483_v40 = vld [vmem:[#allocation140_spill] sm:$0xff] }
 0x48f   :  { %12584 = vmatpush3.bf16.msra.mxu0 %v23476_v41  ;;  %12909 = vmatprep.subr.bf16.mxu1 %v3203_v26  ;;  %v12400_v26 = vpop.f32.mrb[37].mxu1 }
 0x490   :  { %12585 = vmatprep.subr.bf16.mxu0 %v23479_v62  ;;  %12910 = vmatpush3.bf16.msra.mxu1 %v23480_v44  ;;  %v18029_v18 = vadd.f32 %v12400_v26, %v12399_v53  ;;  %v23484_v44 = vld [vmem:[#allocation136_spill] sm:$0xff]  ;;  %v23487_v62 = vld [vmem:[#allocation9_spill] sm:$0xff]  ;;  %v12402_v53 = vpop.f32.mrb[38].mxu1 }
 0x491   :  { %13023 = vmatprep.subr.bf16.mxu1 %v23481_v12  ;;  %v12079_v3 = vpop.f32.mrb[156].mxu0  ;;  %5579 = vmatprep.mubr.bf16.mxu0 %v14255_v52  ;;  %v23485_v41 = vpack.c.bf16 %v23483_v40, %v23484_v44  ;;  %v14261_v52 = vld [vmem:[%s22037_s6 + $0x4b4] ss:$144 sps:$4 sm:$0xff]   ;;  %v23488_v12 = vpack.c.bf16 %v23486_v56, %v23487_v62 }
 0x492   :  { %v12080_v24 = vpop.f32.mrb[157].mxu0  ;;  %6088 = vmatprep.mubr.bf16.mxu1 %v14258_v15  ;;  %23482 = vst [vmem:[#allocation163_spill] sm:$0xff] %v18029_v18  ;;  %v14264_v15 = vld [vmem:[%s22037_s6 + $0x83c] ss:$144 sps:$4 sm:$0xff]   ;;  %v23490_v18 = vld [vmem:[#allocation144_spill] sm:$0xff] }
 0x493   :  { %v12081_v61 = vadd.f32 %v12080_v24, %v12079_v3  ;;  %12586 = vmatpush3.bf16.msra.mxu0 %v23485_v41  ;;  %v12082_v21 = vpop.f32.mrb[158].mxu0  ;;  %v12403_v24 = vpop.f32.mrb[39].mxu1  ;;  %v23489_v41 = vld [vmem:[#allocation148_spill] sm:$0xff] }
 0x494   :  { %12587 = vmatprep.subr.bf16.mxu0 %v23488_v12  ;;  %v12083_v13 = vpop.f32.mrb[159].mxu0  ;;  %v18044_v40 = vadd.f32 %v12403_v24, %v12402_v53  ;;  %v23491_v56 = vpack.c.bf16 %v23489_v41, %v23490_v18  ;;  %v23492_v12 = vld [vmem:[#allocation181_spill] sm:$0xff]  ;;  %v14259_v18 = vld [vmem:[%s22037_s6 + $0x4b0] ss:$144 sps:$4 sm:$0xff]  }
 0x495   :  { %v4976_v3 = vadd.f32 %v12081_v61, %v18021_v4  ;;  %v12084_v26 = vadd.f32 %v12083_v13, %v12082_v21  ;;  %v23494_v31 = vpack.c.bf16 %v23492_v12, %v23493_v30  ;;  %v12405_v13 = vpop.f32.mrb[40].mxu1  ;;  %v23498_v24 = vld [vmem:[#allocation166_spill] sm:$0xff] }
 0x496   :  { %5580 = vmatmul.mubr.bf16.gmra.mrb[8].mxu0 %v14253_v32  ;;  %6089 = vmatmul.mubr.bf16.gmra.mrb[156].mxu1 %v14256_v50  ;;  %v12406_v61 = vpop.f32.mrb[41].mxu1 }
 0x497   :  { %v4979_v44 = vadd.f32 %v12084_v26, %v18021_v4  ;;  %12588 = vmatpush3.bf16.msra.mxu0 %v23491_v56  ;;  %5587 = vmatprep.mubr.bf16.mxu0 %v14261_v52  ;;  %v18051_v62 = vadd.f32 %v17460_v37, %v4976_v3  ;;  %v14262_v37 = vld [vmem:[%s22037_s6 + $0x838] ss:$144 sps:$4 sm:$0xff]   ;;  %v18065_v52 = vadd.f32 %v12406_v61, %v12405_v13  ;;  %v14270_v26 = vld [vmem:[%s22037_s6 + $0x6c] ss:$144 sps:$4 sm:$0xff]   ;;  %v12408_v12 = vpop.f32.mrb[42].mxu1 }
 0x498   :  { %12589 = vmatprep.subr.bf16.mxu0 %v23494_v31  ;;  %6096 = vmatprep.mubr.bf16.mxu1 %v14264_v15  ;;  %v23495_v31 = vld [vmem:[#allocation156_spill] sm:$0xff]  ;;  %v12409_v61 = vpop.f32.mrb[43].mxu1 }
 0x499   :  { %v12085_v32 = vpop.f32.mrb[160].mxu0  ;;  %v18057_v50 = vadd.f32 %v17482_v10, %v4979_v44  ;;  %v23496_v15 = vld [vmem:[#allocation152_spill] sm:$0xff]  ;;  %v23499_v44 = vld [vmem:[#allocation162_spill] sm:$0xff] }
 0x49a   :  { %v12086_v21 = vpop.f32.mrb[161].mxu0  ;;  %v23497_v53 = vpack.c.bf16 %v23495_v31, %v23496_v15  ;;  %v14267_v10 = vld [vmem:[%s22037_s6 + $0x5d4] ss:$144 sps:$4 sm:$0xff]   ;;  %v23500_v41 = vpack.c.bf16 %v23498_v24, %v23499_v44 }
 0x49b   :  { %v12087_v30 = vadd.f32 %v12086_v21, %v12085_v32  ;;  %v12088_v3 = vpop.f32.mrb[162].mxu0  ;;  %v18080_v21 = vadd.f32 %v12409_v61, %v12408_v12 }
 0x49c   :  { %12590 = vmatpush3.bf16.msra.mxu0 %v23497_v53  ;;  %v12089_v56 = vpop.f32.mrb[163].mxu0  ;;  %v12411_v53 = vpop.f32.mrb[44].mxu1 }
 0x49d   :  { %12703 = vmatprep.subr.bf16.mxu0 %v23500_v41  ;;  %v4984_v13 = vadd.f32 %v12087_v30, %v18021_v4  ;;  %v12090_v32 = vadd.f32 %v12089_v56, %v12088_v3  ;;  %v12412_v41 = vpop.f32.mrb[45].mxu1  ;;  %v14276_v56 = vld [vmem:[%s22037_s6 + $0x18c] ss:$144 sps:$4 sm:$0xff]  }
 0x49e   :  { %5588 = vmatmul.mubr.bf16.gmra.mrb[12].mxu0 %v14259_v18  ;;  %6097 = vmatmul.mubr.bf16.gmra.mrb[160].mxu1 %v14262_v37  ;;  %v14265_v18 = vld [vmem:[%s22037_s6 + $0x5d0] ss:$144 sps:$4 sm:$0xff]   ;;  %v14268_v37 = vld [vmem:[%s22037_s6 + $0x68] ss:$144 sps:$4 sm:$0xff]   ;;  %v18095_v3 = vadd.f32 %v12412_v41, %v12411_v53  ;;  %v12414_v12 = vpop.f32.mrb[46].mxu1 }
 0x49f   :  { %v4987_v31 = vadd.f32 %v12090_v32, %v18021_v4  ;;  %5595 = vmatprep.mubr.bf16.mxu0 %v14267_v10  ;;  %6234 = vmatprep.mubr.bf16.mxu1 %v14270_v26  ;;  %v18084_v15 = vadd.f32 %v17500_v33, %v4984_v13  ;;  %v14273_v26 = vld [vmem:[%s22037_s6 + $0x6f4] ss:$144 sps:$4 sm:$0xff]   ;;  %v12415_v61 = vpop.f32.mrb[47].mxu1 }
 0x4a1   :  { %v12091_v24 = vpop.f32.mrb[164].mxu0  ;;  %v18087_v44 = vadd.f32 %v17522_v0, %v4987_v31  ;;  %v18104_v31 = vadd.f32 %v12415_v61, %v12414_v12 }
 0x4a2   :  { %v12092_v30 = vpop.f32.mrb[165].mxu0 }
 0x4a3   :  { %v12093_v10 = vadd.f32 %v12092_v30, %v12091_v24  ;;  %v12094_v33 = vpop.f32.mrb[166].mxu0  ;;  %v23501_v24 = vpack.c.bf16 %v17475_v7, %v17452_v2  ;;  %v12417_v30 = vpop.f32.mrb[48].mxu1  ;;  %v14271_v2 = vld [vmem:[%s22037_s6 + $0x6f0] ss:$144 sps:$4 sm:$0xff]   ;;  %v14274_v7 = vld [vmem:[%s22037_s6 + $0x188] ss:$144 sps:$4 sm:$0xff]  }
 0x4a4   :  { %v12095_v0 = vpop.f32.mrb[167].mxu0 }
 0x4a5   :  { %v4992_v13 = vadd.f32 %v12093_v10, %v18021_v4  ;;  %v12096_v32 = vadd.f32 %v12095_v0, %v12094_v33  ;;  %v23502_v10 = vpack.c.bf16 %v17823_v47, %v17801_v14  ;;  %v12418_v33 = vpop.f32.mrb[49].mxu1  ;;  %v23503_v14 = vpack.c.bf16 %v17518_v5, %v17492_v20 }
 0x4a6   :  { %5596 = vmatmul.mubr.bf16.gmra.mrb[16].mxu0 %v14265_v18  ;;  %6235 = vmatmul.mubr.bf16.vlgmr.msra.gmra.mrb[164].mxu1 %v14268_v37 }
 0x4a7   :  { %v4995_v53 = vadd.f32 %v12096_v32, %v18021_v4  ;;  %13024 = vmatpush3.bf16.msra.mxu1 %v23501_v24  ;;  %5603 = vmatprep.mubr.bf16.mxu0 %v14273_v26  ;;  %v18111_v41 = vadd.f32 %v17534_v38, %v4992_v13  ;;  %v18125_v38 = vadd.f32 %v12418_v33, %v12417_v30  ;;  %v14282_v13 = vld [vmem:[%s22037_s6 + $0x2ac] ss:$144 sps:$4 sm:$0xff]   ;;  %v12420_v32 = vpop.f32.mrb[50].mxu1 }
 0x4a8   :  { %13025 = vmatprep.subr.bf16.mxu1 %v23502_v10  ;;  %6242 = vmatprep.mubr.bf16.mxu1 %v14276_v56  ;;  %v23504_v56 = vpack.c.bf16 %v17842_v28, %v17829_v49  ;;  %v12421_v20 = vpop.f32.mrb[51].mxu1  ;;  %v23505_v49 = vpack.c.bf16 %v17543_v42, %v17526_v35  ;;  %v23506_v10 = vpack.c.bf16 %v17870_v63, %v17854_v1  ;;  %v14277_v35 = vld [vmem:[%s22037_s6 + $0x810] ss:$144 sps:$4 sm:$0xff]   ;;  %v14280_v42 = vld [vmem:[%s22037_s6 + $0x2a8] ss:$144 sps:$4 sm:$0xff]  }
 0x4a9   :  { %v12097_v18 = vpop.f32.mrb[168].mxu0  ;;  %v18117_v37 = vadd.f32 %v17550_v23, %v4995_v53  ;;  %v14279_v23 = vld [vmem:[%s22037_s6 + $0x814] ss:$144 sps:$4 sm:$0xff]   ;;  %v18140_v5 = vadd.f32 %v12421_v20, %v12420_v32  ;;  %v12423_v30 = vpop.f32.mrb[52].mxu1  ;;  %v23507_v1 = vpack.c.bf16 %v17583_v9, %v17560_v34 }
 0x4aa   :  { %v12098_v0 = vpop.f32.mrb[169].mxu0 }
 0x4ab   :  { %v12099_v26 = vadd.f32 %v12098_v0, %v12097_v18  ;;  %13026 = vmatpush3.bf16.msra.mxu1 %v23503_v14  ;;  %v12100_v47 = vpop.f32.mrb[170].mxu0  ;;  %v12424_v0 = vpop.f32.mrb[53].mxu1 }
 0x4ac   :  { %13027 = vmatprep.subr.bf16.mxu1 %v23504_v56  ;;  %v12101_v12 = vpop.f32.mrb[171].mxu0 }
 0x4ad   :  { %v5000_v61 = vadd.f32 %v12099_v26, %v18021_v4  ;;  %v12102_v53 = vadd.f32 %v12101_v12, %v12100_v47  ;;  %v23508_v26 = vpack.c.bf16 %v17898_v46, %v17882_v55  ;;  %v14288_v47 = vld [vmem:[%s22037_s6 + $0x3cc] ss:$144 sps:$4 sm:$0xff]   ;;  %v23509_v55 = vpack.c.bf16 %v17623_v43, %v17600_v54  ;;  %v14283_v43 = vld [vmem:[%s22037_s6 + $0x40] ss:$144 sps:$4 sm:$0xff]   ;;  %v14286_v54 = vld [vmem:[%s22037_s6 + $0x3c8] ss:$144 sps:$4 sm:$0xff]  }
 0x4ae   :  { %5604 = vmatmul.mubr.bf16.gmra.mrb[20].mxu0 %v14271_v2  ;;  %6243 = vmatmul.mubr.bf16.gmra.mrb[168].mxu1 %v14274_v7 }
 0x4af   :  { %v5003_v24 = vadd.f32 %v12102_v53, %v18021_v4  ;;  %13028 = vmatpush3.bf16.msra.mxu1 %v23505_v49  ;;  %5611 = vmatprep.mubr.bf16.mxu0 %v14279_v23  ;;  %v18147_v28 = vadd.f32 %v17568_v48, %v5000_v61  ;;  %v18161_v48 = vadd.f32 %v12424_v0, %v12423_v30  ;;  %v12426_v23 = vpop.f32.mrb[54].mxu1 }
 0x4b0   :  { %13029 = vmatprep.subr.bf16.mxu1 %v23506_v10  ;;  %6250 = vmatprep.mubr.bf16.mxu1 %v14282_v13  ;;  %v12427_v9 = vpop.f32.mrb[55].mxu1  ;;  %v23510_v61 = vpack.c.bf16 %v17920_v16, %v17910_v39  ;;  %v23511_v39 = vpack.c.bf16 %v17660_v58, %v17640_v8 }
 0x4b1   :  { %v12103_v18 = vpop.f32.mrb[172].mxu0  ;;  %v18153_v33 = vadd.f32 %v17590_v11, %v5003_v24  ;;  %v14285_v11 = vld [vmem:[%s22037_s6 + $0x44] ss:$144 sps:$4 sm:$0xff]   ;;  %v18176_v34 = vadd.f32 %v12427_v9, %v12426_v23  ;;  %v12429_v32 = vpop.f32.mrb[56].mxu1  ;;  %v23520_v23 = vpack.c.bf16 %v17994_v59, %v17978_v51 }
 0x4b2   :  { %v12104_v2 = vpop.f32.mrb[173].mxu0  ;;  %v12430_v24 = vpop.f32.mrb[57].mxu1  ;;  %v23521_v59 = vld [vmem:[#allocation112_spill] sm:$0xff] }
 0x4b3   :  { %v12105_v7 = vadd.f32 %v12104_v2, %v12103_v18  ;;  %13030 = vmatpush3.bf16.msra.mxu1 %v23507_v1  ;;  %v12106_v63 = vpop.f32.mrb[174].mxu0  ;;  %v12432_v18 = vpop.f32.mrb[58].mxu1 }
 0x4b4   :  { %13031 = vmatprep.subr.bf16.mxu1 %v23508_v26  ;;  %v12107_v14 = vpop.f32.mrb[175].mxu0  ;;  %v12433_v8 = vpop.f32.mrb[59].mxu1  ;;  %v23517_v26 = vld [vmem:[#allocation66_spill] sm:$0xff] }
 0x4b5   :  { %v5008_v56 = vadd.f32 %v12105_v7, %v18021_v4  ;;  %v12108_v12 = vadd.f32 %v12107_v14, %v12106_v63  ;;  %v18212_v58 = vadd.f32 %v12433_v8, %v12432_v18  ;;  %v23514_v7 = vld [vmem:[#allocation103_spill] sm:$0xff]  ;;  %v23516_v63 = vpack.c.bf16 %v17712_v27, %v17686_v60  ;;  %v23518_v14 = vld [vmem:[#allocation170_spill] sm:$0xff] }
 0x4b6   :  { %5612 = vmatmul.mubr.bf16.gmra.mrb[24].mxu0 %v14277_v35  ;;  %6251 = vmatmul.mubr.bf16.gmra.mrb[172].mxu1 %v14280_v42  ;;  %v14291_v35 = vld [vmem:[%s22037_s6 + $0x164] ss:$144 sps:$4 sm:$0xff]   ;;  %v14294_v42 = vld [vmem:[%s22037_s6 + $0x4ec] ss:$144 sps:$4 sm:$0xff]  }
 0x4b7   :  { %v5011_v13 = vadd.f32 %v12108_v12, %v18021_v4  ;;  %13032 = vmatpush3.bf16.msra.mxu1 %v23509_v55  ;;  %5749 = vmatprep.mubr.bf16.mxu0 %v14285_v11  ;;  %v18183_v46 = vadd.f32 %v17608_v25, %v5008_v56  ;;  %v18197_v25 = vadd.f32 %v12430_v24, %v12429_v32  ;;  %v12435_v56 = vpop.f32.mrb[60].mxu1  ;;  %v23522_v32 = vld [vmem:[#allocation109_spill] sm:$0xff] }
 0x4b8   :  { %13033 = vmatprep.subr.bf16.mxu1 %v23510_v61  ;;  %6258 = vmatprep.mubr.bf16.mxu1 %v14288_v47  ;;  %v23519_v47 = vpack.c.bf16 %v23517_v26, %v23518_v14  ;;  %v12436_v60 = vpop.f32.mrb[61].mxu1  ;;  %v23523_v61 = vpack.c.bf16 %v23521_v59, %v23522_v32  ;;  %v14300_v18 = vld [vmem:[%s22037_s6 + $0x60c] ss:$144 sps:$4 sm:$0xff]   ;;  %v23536_v26 = vld [vmem:[#allocation70_spill] sm:$0xff] }
 0x4b9   :  { %v12109_v53 = vpop.f32.mrb[176].mxu0  ;;  %v18189_v20 = vadd.f32 %v17630_v22, %v5011_v13  ;;  %v23512_v22 = vpack.c.bf16 %v17957_v19, %v17941_v6  ;;  %v23513_v19 = vld [vmem:[#allocation106_spill] sm:$0xff]  ;;  %v14292_v13 = vld [vmem:[%s22037_s6 + $0x4e8] ss:$144 sps:$4 sm:$0xff]   ;;  %v18239_v55 = vadd.f32 %v12436_v60, %v12435_v56 }
 0x4ba   :  { %v12110_v49 = vpop.f32.mrb[177].mxu0  ;;  %v23515_v1 = vpack.c.bf16 %v23513_v19, %v23514_v7  ;;  %v23533_v19 = vld [vmem:[#allocation115_spill] sm:$0xff] }
 0x4bb   :  { %v12111_v30 = vadd.f32 %v12110_v49, %v12109_v53  ;;  %13034 = vmatpush3.bf16.msra.mxu1 %v23511_v39  ;;  %v12112_v16 = vpop.f32.mrb[178].mxu0  ;;  %v14297_v49 = vld [vmem:[%s22037_s6 + $0x284] ss:$144 sps:$4 sm:$0xff]   ;;  %v23537_v14 = vld [vmem:[#allocation3_spill] sm:$0xff] }
 0x4bc   :  { %13035 = vmatprep.subr.bf16.mxu1 %v23512_v22  ;;  %v12113_v10 = vpop.f32.mrb[179].mxu0  ;;  %v23529_v39 = vld [vmem:[#allocation34_spill] sm:$0xff] }
 0x4bd   :  { %v5016_v0 = vadd.f32 %v12111_v30, %v18021_v4  ;;  %v12114_v2 = vadd.f32 %v12113_v10, %v12112_v16  ;;  %v23530_v16 = vld [vmem:[#allocation83_spill] sm:$0xff] }
 0x4be   :  { %5750 = vmatmul.mubr.bf16.vlgmr.msra.gmra.mrb[28].mxu0 %v14283_v43  ;;  %6259 = vmatmul.mubr.bf16.gmra.mrb[176].mxu1 %v14286_v54  ;;  %v23526_v43 = vld [vmem:[#allocation30_spill] sm:$0xff]  ;;  %v23527_v54 = vld [vmem:[#allocation24_spill] sm:$0xff]  ;;  %v23531_v22 = vpack.c.bf16 %v23529_v39, %v23530_v16  ;;  %v14306_v16 = vld [vmem:[%s22037_s6 + $0x72c] ss:$144 sps:$4 sm:$0xff]  }
 0x4bf   :  { %v5019_v6 = vadd.f32 %v12114_v2, %v18021_v4  ;;  %12704 = vmatpush3.bf16.msra.mxu0 %v23515_v1  ;;  %13036 = vmatpush3.bf16.msra.mxu1 %v23516_v63  ;;  %v18222_v11 = vadd.f32 %v17648_v29, %v5016_v0  ;;  %v14289_v29 = vld [vmem:[%s22037_s6 + $0x160] ss:$144 sps:$4 sm:$0xff]   ;;  %v23528_v30 = vpack.c.bf16 %v23526_v43, %v23527_v54  ;;  %v23535_v1 = vld [vmem:[#allocation127_spill] sm:$0xff] }
 0x4c0   :  { %12705 = vmatprep.subr.bf16.mxu0 %v23519_v47  ;;  %13037 = vmatprep.subr.bf16.mxu1 %v23520_v23  ;;  %v23538_v47 = vpack.c.bf16 %v23536_v26, %v23537_v14  ;;  %v23543_v43 = vld [vmem:[#allocation40_spill] sm:$0xff]  ;;  %v23551_v26 = vld [vmem:[#allocation46_spill] sm:$0xff] }
 0x4c1   :  { %v12115_v12 = vpop.f32.mrb[180].mxu0  ;;  %5757 = vmatprep.mubr.bf16.mxu0 %v14291_v35  ;;  %6266 = vmatprep.mubr.bf16.mxu1 %v14294_v42  ;;  %v18231_v9 = vadd.f32 %v17670_v17, %v5019_v6  ;;  %v23524_v17 = vld [vmem:[#allocation91_spill] sm:$0xff]  ;;  %v23532_v6 = vld [vmem:[#allocation118_spill] sm:$0xff]  ;;  %v23544_v54 = vld [vmem:[#allocation76_spill] sm:$0xff] }
 0x4c2   :  { %v12116_v27 = vpop.f32.mrb[181].mxu0  ;;  %v23525_v53 = vpack.c.bf16 %v17752_v45, %v23524_v17  ;;  %v12438_v45 = vpop.f32.mrb[62].mxu1  ;;  %v23534_v7 = vpack.c.bf16 %v23532_v6, %v23533_v19  ;;  %v23541_v17 = vld [vmem:[#allocation122_spill] sm:$0xff]  ;;  %v23549_v19 = vld [vmem:[#allocation44_spill] sm:$0xff] }
 0x4c3   :  { %v12117_v51 = vadd.f32 %v12116_v27, %v12115_v12  ;;  %12706 = vmatpush3.bf16.msra.mxu0 %v23523_v61  ;;  %v12118_v24 = vpop.f32.mrb[182].mxu0  ;;  %v12439_v35 = vpop.f32.mrb[63].mxu1  ;;  %v23539_v12 = vld [vmem:[#allocation78_spill] sm:$0xff] }
 0x4c4   :  { %13038 = vmatpush3.bf16.msra.mxu1 %v23525_v53  ;;  %12707 = vmatprep.subr.bf16.mxu0 %v23528_v30  ;;  %v12119_v10 = vpop.f32.mrb[183].mxu0  ;;  %v18260_v42 = vadd.f32 %v12439_v35, %v12438_v45  ;;  %v12441_v23 = vpop.f32.mrb[64].mxu1  ;;  %v23540_v61 = vld [vmem:[#allocation126_spill] sm:$0xff]  ;;  %v23545_v30 = vpack.c.bf16 %v23543_v43, %v23544_v54  ;;  %v23557_v43 = vld [vmem:[#allocation177_spill] sm:$0xff] }
 0x4c5   :  { %13151 = vmatprep.subr.bf16.mxu1 %v23531_v22  ;;  %v5024_v0 = vadd.f32 %v12117_v51, %v18021_v4  ;;  %v12120_v2 = vadd.f32 %v12119_v10, %v12118_v24  ;;  %v12442_v27 = vpop.f32.mrb[65].mxu1  ;;  %v14298_v51 = vld [vmem:[%s22037_s6 + $0x608] ss:$144 sps:$4 sm:$0xff]   ;;  %v23542_v53 = vpack.c.bf16 %v23540_v61, %v23541_v17  ;;  %v23546_v35 = vld [vmem:[#allocation134_spill] sm:$0xff] }
 0x4c6   :  { %5758 = vmatmul.mubr.bf16.gmra.mrb[32].mxu0 %v14289_v29  ;;  %6267 = vmatmul.mubr.bf16.gmra.mrb[180].mxu1 %v14292_v13  ;;  %v14295_v13 = vld [vmem:[%s22037_s6 + $0x280] ss:$144 sps:$4 sm:$0xff]   ;;  %v18281_v59 = vadd.f32 %v12442_v27, %v12441_v23  ;;  %v12444_v22 = vpop.f32.mrb[66].mxu1  ;;  %v23558_v54 = vld [vmem:[#allocation173_spill] sm:$0xff] }
 0x4c7   :  { %v5027_v8 = vadd.f32 %v12120_v2, %v18021_v4  ;;  %12708 = vmatpush3.bf16.msra.mxu0 %v23534_v7  ;;  %5765 = vmatprep.mubr.bf16.mxu0 %v14297_v49  ;;  %v18267_v63 = vadd.f32 %v23535_v1, %v5024_v0  ;;  %v14303_v49 = vld [vmem:[%s22037_s6 + $0x3a4] ss:$144 sps:$4 sm:$0xff]   ;;  %v12445_v45 = vpop.f32.mrb[67].mxu1  ;;  %v23550_v1 = vld [vmem:[#allocation7_spill] sm:$0xff] }
 0x4c8   :  { %12709 = vmatprep.subr.bf16.mxu0 %v23538_v47  ;;  %6274 = vmatprep.mubr.bf16.mxu1 %v14300_v18  ;;  %v18296_v0 = vadd.f32 %v12445_v45, %v12444_v22  ;;  %v23552_v14 = vpack.c.bf16 %v23550_v1, %v23551_v26  ;;  %v12527_v47 = vpop.f32.mrb[68].mxu1  ;;  %v23554_v61 = vld [vmem:[#allocation142_spill] sm:$0xff]  ;;  %v23563_v1 = vld [vmem:[#allocation84_spill] sm:$0xff] }
 0x4c9   :  { %v12121_v56 = vpop.f32.mrb[184].mxu0  ;;  %v18273_v60 = vadd.f32 %v23539_v12, %v5027_v8  ;;  %v23547_v8 = vld [vmem:[#allocation130_spill] sm:$0xff]  ;;  %v12528_v27 = vpop.f32.mrb[69].mxu1 }
 0x4ca   :  { %v12122_v29 = vpop.f32.mrb[185].mxu0  ;;  %v23548_v6 = vpack.c.bf16 %v23546_v35, %v23547_v8  ;;  %v23555_v17 = vld [vmem:[#allocation138_spill] sm:$0xff]  ;;  %v12530_v22 = vpop.f32.mrb[70].mxu1 }
 0x4cb   :  { %v12123_v32 = vadd.f32 %v12122_v29, %v12121_v56  ;;  %12710 = vmatpush3.bf16.msra.mxu0 %v23542_v53  ;;  %v12124_v24 = vpop.f32.mrb[186].mxu0  ;;  %v23553_v56 = vld [vmem:[#allocation8_spill] sm:$0xff]  ;;  %v23556_v53 = vpack.c.bf16 %v23554_v61, %v23555_v17  ;;  %v12531_v45 = vpop.f32.mrb[71].mxu1  ;;  %v23560_v8 = vld [vmem:[#allocation150_spill] sm:$0xff] }
 0x4cc   :  { %12711 = vmatprep.subr.bf16.mxu0 %v23545_v30  ;;  %v12125_v39 = vpop.f32.mrb[187].mxu0  ;;  %v14301_v29 = vld [vmem:[%s22037_s6 + $0x3a0] ss:$144 sps:$4 sm:$0xff]   ;;  %v23559_v30 = vpack.c.bf16 %v23557_v43, %v23558_v54  ;;  %v14315_v54 = vld [vmem:[%s22037_s6 + $0x5e4] ss:$144 sps:$4 sm:$0xff]  }
 0x4cd   :  { %v5032_v10 = vadd.f32 %v12123_v32, %v18021_v4  ;;  %v12126_v18 = vadd.f32 %v12125_v39, %v12124_v24 }
 0x4ce   :  { %5766 = vmatmul.mubr.bf16.gmra.mrb[36].mxu0 %v14295_v13  ;;  %6275 = vmatmul.mubr.bf16.gmra.mrb[184].mxu1 %v14298_v51  ;;  %v14304_v13 = vld [vmem:[%s22037_s6 + $0x728] ss:$144 sps:$4 sm:$0xff]   ;;  %v18317_v51 = vadd.f32 %v12528_v27, %v12527_v47 }
 0x4cf   :  { %v5035_v2 = vadd.f32 %v12126_v18, %v18021_v4  ;;  %12712 = vmatpush3.bf16.msra.mxu0 %v23548_v6  ;;  %5773 = vmatprep.mubr.bf16.mxu0 %v14303_v49  ;;  %v18303_v7 = vadd.f32 %v23549_v19, %v5032_v10  ;;  %v14309_v49 = vld [vmem:[%s22037_s6 + $0x4c4] ss:$144 sps:$4 sm:$0xff]   ;;  %v23565_v47 = vld [vmem:[#allocation179_spill] sm:$0xff]  ;;  %v23567_v27 = vld [vmem:[#allocation93_spill] sm:$0xff] }
 0x4d0   :  { %12713 = vmatprep.subr.bf16.mxu0 %v23552_v14  ;;  %6282 = vmatprep.mubr.bf16.mxu1 %v14306_v16  ;;  %v14312_v16 = vld [vmem:[%s22037_s6 + $0x84c] ss:$144 sps:$4 sm:$0xff]   ;;  %v23561_v6 = vld [vmem:[#allocation146_spill] sm:$0xff] }
 0x4d1   :  { %v12207_v23 = vpop.f32.mrb[188].mxu0  ;;  %v18309_v12 = vadd.f32 %v23553_v56, %v5035_v2  ;;  %v18332_v2 = vadd.f32 %v12531_v45, %v12530_v22  ;;  %v23562_v19 = vpack.c.bf16 %v23560_v8, %v23561_v6  ;;  %v23564_v14 = vld [vmem:[#allocation183_spill] sm:$0xff] }
 0x4d2   :  { %v12208_v4 = vpop.f32.mrb[189].mxu0 }
 0x4d3   :  { %v12209_v32 = vadd.f32 %v12208_v4, %v12207_v23  ;;  %12714 = vmatpush3.bf16.msra.mxu0 %v23556_v53  ;;  %v12210_v24 = vpop.f32.mrb[190].mxu0  ;;  %v23566_v23 = vpack.c.bf16 %v23564_v14, %v23565_v47  ;;  %v23568_v53 = vld [vmem:[#allocation158_spill] sm:$0xff] }
 0x4d4   :  { %12715 = vmatprep.subr.bf16.mxu0 %v23559_v30  ;;  %v12211_v39 = vpop.f32.mrb[191].mxu0  ;;  %v14318_v30 = vld [vmem:[%s22037_s6 + $0x7c] ss:$144 sps:$4 sm:$0xff]  }
 0x4d5   :  { %v5170_v10 = vadd.f32 %v12209_v32, %v18051_v62  ;;  %v12212_v18 = vadd.f32 %v12211_v39, %v12210_v24  ;;  %v12533_v62 = vpop.f32.mrb[72].mxu1  ;;  %v14310_v32 = vld [vmem:[%s22037_s6 + $0x848] ss:$144 sps:$4 sm:$0xff]   ;;  %v23569_v24 = vld [vmem:[#allocation154_spill] sm:$0xff]  ;;  %v23571_v39 = vld [vmem:[#allocation68_spill] sm:$0xff] }
 0x4d6   :  { %5774 = vmatmul.mubr.bf16.gmra.mrb[40].mxu0 %v14301_v29  ;;  %6283 = vmatmul.mubr.bf16.gmra.mrb[188].mxu1 %v14304_v13  ;;  %v12534_v29 = vpop.f32.mrb[73].mxu1  ;;  %v14307_v13 = vld [vmem:[%s22037_s6 + $0x4c0] ss:$144 sps:$4 sm:$0xff]  }
 0x4d7   :  { %v5173_v35 = vadd.f32 %v12212_v18, %v18057_v50  ;;  %12716 = vmatpush3.bf16.msra.mxu0 %v23562_v19  ;;  %5781 = vmatprep.mubr.bf16.mxu0 %v14309_v49  ;;  %v18339_v26 = vadd.f32 %v23563_v1, %v5170_v10  ;;  %v18353_v61 = vadd.f32 %v12534_v29, %v12533_v62  ;;  %v12536_v18 = vpop.f32.mrb[74].mxu1  ;;  %v23574_v1 = vld [vmem:[#allocation139_spill] sm:$0xff]  ;;  %v14313_v29 = vld [vmem:[%s22037_s6 + $0x5e0] ss:$144 sps:$4 sm:$0xff]  }
 0x4d8   :  { %12717 = vmatprep.subr.bf16.mxu0 %v23566_v23  ;;  %6290 = vmatprep.mubr.bf16.mxu1 %v14312_v16  ;;  %v23570_v49 = vpack.c.bf16 %v23568_v53, %v23569_v24  ;;  %v23572_v16 = vld [vmem:[#allocation62_spill] sm:$0xff]  ;;  %v12537_v8 = vpop.f32.mrb[75].mxu1  ;;  %v23575_v62 = vld [vmem:[#allocation135_spill] sm:$0xff] }
 0x4d9   :  { %v12213_v56 = vpop.f32.mrb[192].mxu0  ;;  %v18345_v4 = vadd.f32 %v23567_v27, %v5173_v35  ;;  %v23573_v22 = vpack.c.bf16 %v23571_v39, %v23572_v16  ;;  %v18368_v6 = vadd.f32 %v12537_v8, %v12536_v18  ;;  %v12539_v47 = vpop.f32.mrb[76].mxu1  ;;  %v23576_v16 = vld [vmem:[#allocation274_spill] sm:$0xff]  ;;  %v23580_v8 = vld [vmem:[#allocation47_spill] sm:$0xff] }
 0x4da   :  { %v12214_v50 = vpop.f32.mrb[193].mxu0  ;;  %v12540_v27 = vpop.f32.mrb[77].mxu1  ;;  %v23579_v18 = vld [vmem:[#allocation174_spill] sm:$0xff] }
 0x4db   :  { %v12215_v17 = vadd.f32 %v12214_v50, %v12213_v56  ;;  %12718 = vmatpush3.bf16.msra.mxu0 %v23570_v49  ;;  %v12216_v43 = vpop.f32.mrb[194].mxu0  ;;  %v18383_v50 = vadd.f32 %v12540_v27, %v12539_v47  ;;  %v12542_v24 = vpop.f32.mrb[78].mxu1 }
 0x4dc   :  { %12831 = vmatprep.subr.bf16.mxu0 %v23573_v22  ;;  %v12217_v10 = vpop.f32.mrb[195].mxu0  ;;  %v23577_v22 = vld [vmem:[#allocation270_spill] sm:$0xff] }
 0x4dd   :  { %v5178_v45 = vadd.f32 %v12215_v17, %v18084_v15  ;;  %v12218_v35 = vadd.f32 %v12217_v10, %v12216_v43  ;;  %v14321_v17 = vld [vmem:[%s22037_s6 + $0x704] ss:$144 sps:$4 sm:$0xff]   ;;  %v23578_v10 = vpack.c.bf16 %v23576_v16, %v23577_v22 }
 0x4de   :  { %5782 = vmatmul.mubr.bf16.gmra.mrb[44].mxu0 %v14307_v13  ;;  %6291 = vmatmul.mubr.bf16.gmra.mrb[192].mxu1 %v14310_v32 }
 0x4df   :  { %v5181_v19 = vadd.f32 %v12218_v35, %v18087_v44  ;;  %5789 = vmatprep.mubr.bf16.mxu0 %v14315_v54  ;;  %6428 = vmatprep.mubr.bf16.mxu1 %v14318_v30  ;;  %v18372_v14 = vadd.f32 %v23574_v1, %v5178_v45  ;;  %v14316_v44 = vld [vmem:[%s22037_s6 + $0x78] ss:$144 sps:$4 sm:$0xff]   ;;  %v12543_v54 = vpop.f32.mrb[79].mxu1 }
 0x4e0   :  { %v18389_v30 = vadd.f32 %v12543_v54, %v12542_v24  ;;  %v12545_v35 = vpop.f32.mrb[80].mxu1 }
 0x4e1   :  { %v12219_v23 = vpop.f32.mrb[196].mxu0  ;;  %v18375_v56 = vadd.f32 %v23575_v62, %v5181_v19  ;;  %v23581_v19 = vld [vmem:[#allocation43_spill] sm:$0xff] }
 0x4e2   :  { %v12220_v15 = vpop.f32.mrb[197].mxu0 }
 0x4e3   :  { %v12221_v13 = vadd.f32 %v12220_v15, %v12219_v23  ;;  %v12222_v32 = vpop.f32.mrb[198].mxu0  ;;  %v12546_v23 = vpop.f32.mrb[81].mxu1 }
 0x4e4   :  { %v12223_v53 = vpop.f32.mrb[199].mxu0  ;;  %v18407_v27 = vadd.f32 %v12546_v23, %v12545_v35  ;;  %v23590_v35 = vld [vmem:[#allocation50_spill] sm:$0xff]  ;;  %v23593_v23 = vld [vmem:[#allocation275_spill] sm:$0xff] }
 0x4e5   :  { %v5186_v49 = vadd.f32 %v12221_v13, %v18111_v41  ;;  %v12224_v43 = vadd.f32 %v12223_v53, %v12222_v32  ;;  %v23582_v41 = vpack.c.bf16 %v23580_v8, %v23581_v19  ;;  %v23587_v53 = vld [vmem:[#allocation277_spill] sm:$0xff] }
 0x4e6   :  { %5790 = vmatmul.mubr.bf16.gmra.mrb[48].mxu0 %v14313_v29  ;;  %6429 = vmatmul.mubr.bf16.vlgmr.msra.gmra.mrb[196].mxu1 %v14316_v44  ;;  %v23583_v29 = vld [vmem:[#allocation272_spill] sm:$0xff] }
 0x4e7   :  { %v5189_v39 = vadd.f32 %v12224_v43, %v18117_v37  ;;  %13152 = vmatpush3.bf16.msra.mxu1 %v23578_v10  ;;  %5797 = vmatprep.mubr.bf16.mxu0 %v14321_v17  ;;  %v18396_v45 = vadd.f32 %v23579_v18, %v5186_v49  ;;  %v14319_v37 = vld [vmem:[%s22037_s6 + $0x700] ss:$144 sps:$4 sm:$0xff]   ;;  %v14324_v17 = vld [vmem:[%s22037_s6 + $0x824] ss:$144 sps:$4 sm:$0xff]   ;;  %v12548_v43 = vpop.f32.mrb[82].mxu1  ;;  %v23589_v18 = vld [vmem:[#allocation53_spill] sm:$0xff] }
 0x4e8   :  { %13153 = vmatprep.subr.bf16.mxu1 %v23582_v41  ;;  %v23584_v44 = vld [vmem:[#allocation268_spill] sm:$0xff]  ;;  %v12549_v16 = vpop.f32.mrb[83].mxu1  ;;  %v23591_v8 = vpack.c.bf16 %v23589_v18, %v23590_v35 }
 0x4e9   :  { %v12225_v1 = vpop.f32.mrb[200].mxu0  ;;  %v18402_v47 = vadd.f32 %v17849_v36, %v5189_v39  ;;  %v23585_v13 = vpack.c.bf16 %v23583_v29, %v23584_v44  ;;  %v23586_v36 = vld [vmem:[#allocation281_spill] sm:$0xff]  ;;  %v18419_v22 = vadd.f32 %v12549_v16, %v12548_v43  ;;  %v12551_v41 = vpop.f32.mrb[84].mxu1 }
 0x4ea   :  { %v12226_v62 = vpop.f32.mrb[201].mxu0  ;;  %v23588_v24 = vpack.c.bf16 %v23586_v36, %v23587_v53  ;;  %v12552_v29 = vpop.f32.mrb[85].mxu1  ;;  %v23600_v43 = vld [vmem:[#allocation81_spill] sm:$0xff] }
 0x4eb   :  { %v12227_v15 = vadd.f32 %v12226_v62, %v12225_v1  ;;  %13154 = vmatpush3.bf16.msra.mxu1 %v23585_v13  ;;  %v12228_v32 = vpop.f32.mrb[202].mxu0  ;;  %v23592_v1 = vld [vmem:[#allocation279_spill] sm:$0xff]  ;;  %v18437_v13 = vadd.f32 %v12552_v29, %v12551_v41  ;;  %v12554_v16 = vpop.f32.mrb[86].mxu1 }
 0x4ec   :  { %13155 = vmatprep.subr.bf16.mxu1 %v23588_v24  ;;  %v12229_v49 = vpop.f32.mrb[203].mxu0  ;;  %v23594_v62 = vpack.c.bf16 %v23592_v1, %v23593_v23  ;;  %v14327_v24 = vld [vmem:[%s22037_s6 + $0x54] ss:$144 sps:$4 sm:$0xff]   ;;  %v12555_v35 = vpop.f32.mrb[87].mxu1  ;;  %v23602_v1 = vld [vmem:[#allocation65_spill] sm:$0xff] }
 0x4ed   :  { %v5194_v54 = vadd.f32 %v12227_v15, %v18147_v28  ;;  %v12230_v39 = vadd.f32 %v12229_v49, %v12228_v32  ;;  %v23595_v15 = vld [vmem:[#allocation10_spill] sm:$0xff]  ;;  %v23603_v23 = vld [vmem:[#allocation60_spill] sm:$0xff]  ;;  %v12557_v29 = vpop.f32.mrb[88].mxu1 }
 0x4ee   :  { %5798 = vmatmul.mubr.bf16.gmra.mrb[52].mxu0 %v14319_v37  ;;  %v23599_v49 = vld [vmem:[#allocation86_spill] sm:$0xff] }
 0x4ef   :  { %v5197_v10 = vadd.f32 %v12230_v39, %v18153_v33  ;;  %13156 = vmatpush3.bf16.msra.mxu1 %v23591_v8  ;;  %5805 = vmatprep.mubr.bf16.mxu0 %v14324_v17  ;;  %v18426_v19 = vadd.f32 %v17862_v57, %v5194_v54  ;;  %v14322_v33 = vld [vmem:[%s22037_s6 + $0x820] ss:$144 sps:$4 sm:$0xff]   ;;  %v23601_v54 = vpack.c.bf16 %v23599_v49, %v23600_v43  ;;  %v23610_v43 = vld [vmem:[#allocation31_spill] sm:$0xff] }
 0x4f0   :  { %13157 = vmatprep.subr.bf16.mxu1 %v23594_v62  ;;  %v23596_v57 = vld [vmem:[#allocation22_spill] sm:$0xff]  ;;  %v23597_v17 = vld [vmem:[#allocation20_spill] sm:$0xff]  ;;  %v18449_v8 = vadd.f32 %v12555_v35, %v12554_v16  ;;  %v23604_v62 = vpack.c.bf16 %v23602_v1, %v23603_v23 }
 0x4f1   :  { %v12231_v28 = vpop.f32.mrb[204].mxu0  ;;  %v18432_v37 = vadd.f32 %v23595_v15, %v5197_v10  ;;  %v23598_v36 = vpack.c.bf16 %v23596_v57, %v23597_v17  ;;  %v23607_v57 = vld [vmem:[#allocation16_spill] sm:$0xff] }
 0x4f2   :  { %v12232_v44 = vpop.f32.mrb[205].mxu0 }
 0x4f3   :  { %v12233_v32 = vadd.f32 %v12232_v44, %v12231_v28  ;;  %13158 = vmatpush3.bf16.msra.mxu1 %v23598_v36  ;;  %v12234_v53 = vpop.f32.mrb[206].mxu0  ;;  %v23605_v28 = vld [vmem:[#allocation147_spill] sm:$0xff]  ;;  %v23606_v44 = vld [vmem:[#allocation18_spill] sm:$0xff]  ;;  %v12558_v36 = vpop.f32.mrb[89].mxu1 }
 0x4f4   :  { %13159 = vmatprep.subr.bf16.mxu1 %v23601_v54  ;;  %v12235_v39 = vpop.f32.mrb[207].mxu0  ;;  %v23608_v17 = vpack.c.bf16 %v23606_v44, %v23607_v57  ;;  %v18467_v49 = vadd.f32 %v12558_v36, %v12557_v29  ;;  %v23611_v54 = vld [vmem:[#allocation27_spill] sm:$0xff]  ;;  %v12560_v1 = vpop.f32.mrb[90].mxu1  ;;  %v23619_v36 = vld [vmem:[#allocation77_spill] sm:$0xff] }
 0x4f5   :  { %v5202_v10 = vadd.f32 %v12233_v32, %v18183_v46  ;;  %v12236_v18 = vadd.f32 %v12235_v39, %v12234_v53  ;;  %v23609_v32 = vld [vmem:[#allocation143_spill] sm:$0xff]  ;;  %v23612_v39 = vpack.c.bf16 %v23610_v43, %v23611_v54  ;;  %v12561_v29 = vpop.f32.mrb[91].mxu1  ;;  %v23623_v54 = vld [vmem:[#allocation80_spill] sm:$0xff] }
 0x4f6   :  { %5806 = vmatmul.mubr.bf16.gmra.mrb[56].mxu0 %v14322_v33  ;;  %v18479_v44 = vadd.f32 %v12561_v29, %v12560_v1 }
 0x4f7   :  { %v5205_v41 = vadd.f32 %v12236_v18, %v18189_v20  ;;  %13160 = vmatpush3.bf16.msra.mxu1 %v23604_v62  ;;  %5943 = vmatprep.mubr.bf16.mxu0 %v14327_v24  ;;  %v18456_v15 = vadd.f32 %v23605_v28, %v5202_v10  ;;  %v14325_v20 = vld [vmem:[%s22037_s6 + $0x50] ss:$144 sps:$4 sm:$0xff]   ;;  %v14330_v28 = vld [vmem:[%s22037_s6 + $0x174] ss:$144 sps:$4 sm:$0xff]  }
 0x4f8   :  { %13161 = vmatprep.subr.bf16.mxu1 %v23608_v17  ;;  %v23613_v10 = vld [vmem:[#allocation94_spill] sm:$0xff]  ;;  %v23616_v17 = vld [vmem:[#allocation231_spill] sm:$0xff] }
 0x4f9   :  { %v12237_v46 = vpop.f32.mrb[208].mxu0  ;;  %v18462_v33 = vadd.f32 %v23609_v32, %v5205_v41  ;;  %v23614_v18 = vld [vmem:[#allocation90_spill] sm:$0xff] }
 0x4fa   :  { %v12238_v53 = vpop.f32.mrb[209].mxu0  ;;  %v23615_v35 = vpack.c.bf16 %v23613_v10, %v23614_v18  ;;  %v23627_v10 = vld [vmem:[#allocation19_spill] sm:$0xff] }
 0x4fb   :  { %v12239_v24 = vadd.f32 %v12238_v53, %v12237_v46  ;;  %13162 = vmatpush3.bf16.msra.mxu1 %v23612_v39  ;;  %v12240_v16 = vpop.f32.mrb[210].mxu0  ;;  %v23617_v46 = vld [vmem:[#allocation227_spill] sm:$0xff]  ;;  %v23624_v39 = vld [vmem:[#allocation74_spill] sm:$0xff] }
 0x4fc   :  { %13163 = vmatprep.subr.bf16.mxu1 %v23615_v35  ;;  %v12241_v41 = vpop.f32.mrb[211].mxu0  ;;  %v23618_v32 = vpack.c.bf16 %v23616_v17, %v23617_v46  ;;  %v23620_v53 = vld [vmem:[#allocation71_spill] sm:$0xff] }
 0x4fd   :  { %v5210_v23 = vadd.f32 %v12239_v24, %v18222_v11  ;;  %v12242_v62 = vadd.f32 %v12241_v41, %v12240_v16  ;;  %v23621_v43 = vpack.c.bf16 %v23619_v36, %v23620_v53  ;;  %v23622_v11 = vld [vmem:[#allocation180_spill] sm:$0xff]  ;;  %v23625_v16 = vpack.c.bf16 %v23623_v54, %v23624_v39  ;;  %v23629_v41 = vld [vmem:[#allocation11_spill] sm:$0xff]  ;;  %v23636_v39 = vld [vmem:[#allocation278_spill] sm:$0xff] }
 0x4fe   :  { %5944 = vmatmul.mubr.bf16.vlgmr.msra.gmra.mrb[60].mxu0 %v14325_v20  ;;  %v23626_v20 = vld [vmem:[#allocation202_spill] sm:$0xff]  ;;  %v23631_v36 = vld [vmem:[#allocation235_spill] sm:$0xff] }
 0x4ff   :  { %v5213_v57 = vadd.f32 %v12242_v62, %v18231_v9  ;;  %12832 = vmatpush3.bf16.msra.mxu0 %v23618_v32  ;;  %13164 = vmatpush3.bf16.msra.mxu1 %v23621_v43  ;;  %v18489_v24 = vadd.f32 %v23622_v11, %v5210_v23  ;;  %v23628_v18 = vpack.c.bf16 %v23626_v20, %v23627_v10  ;;  %v12563_v9 = vpop.f32.mrb[92].mxu1  ;;  %v14328_v23 = vld [vmem:[%s22037_s6 + $0x170] ss:$144 sps:$4 sm:$0xff]   ;;  %v23630_v32 = vld [vmem:[#allocation239_spill] sm:$0xff] }
 0x500   :  { %12833 = vmatprep.subr.bf16.mxu0 %v23625_v16  ;;  %5951 = vmatprep.mubr.bf16.mxu0 %v14330_v28  ;;  %v12564_v62 = vpop.f32.mrb[93].mxu1  ;;  %v23632_v53 = vpack.c.bf16 %v23630_v32, %v23631_v36  ;;  %v23633_v43 = vld [vmem:[#allocation39_spill] sm:$0xff]  ;;  %v23637_v16 = vld [vmem:[#allocation28_spill] sm:$0xff] }
 0x501   :  { %13165 = vmatprep.subr.bf16.mxu1 %v23628_v18  ;;  %v12243_v35 = vpop.f32.mrb[212].mxu0  ;;  %v18498_v1 = vadd.f32 %v23629_v41, %v5213_v57  ;;  %v18503_v17 = vadd.f32 %v12564_v62, %v12563_v9  ;;  %v23634_v11 = vld [vmem:[#allocation35_spill] sm:$0xff]  ;;  %v14333_v57 = vld [vmem:[%s22037_s6 + $0x294] ss:$144 sps:$4 sm:$0xff]   ;;  %v23638_v20 = vpack.c.bf16 %v23636_v39, %v23637_v16  ;;  %v12566_v18 = vpop.f32.mrb[94].mxu1 }
 0x502   :  { %v12244_v29 = vpop.f32.mrb[213].mxu0  ;;  %v23635_v54 = vpack.c.bf16 %v23633_v43, %v23634_v11  ;;  %v14378_v9 = vld [vmem:[%s22037_s6 + $0x19c] ss:$144 sps:$4 sm:$0xff]   ;;  %v12567_v62 = vpop.f32.mrb[95].mxu1 }
 0x503   :  { %v12245_v46 = vadd.f32 %v12244_v29, %v12243_v35  ;;  %12834 = vmatpush3.bf16.msra.mxu0 %v23632_v53  ;;  %v12246_v28 = vpop.f32.mrb[214].mxu0  ;;  %v14376_v29 = vld [vmem:[%s22037_s6 + $0x198] ss:$144 sps:$4 sm:$0xff]   ;;  %v18524_v32 = vadd.f32 %v12567_v62, %v12566_v18  ;;  %6436 = vmatprep.mubr.bf16.mxu1 %v14378_v9  ;;  %v12569_v16 = vpop.f32.mrb[96].mxu1  ;;  %v14331_v9 = vld [vmem:[%s22037_s6 + $0x290] ss:$144 sps:$4 sm:$0xff]  }
 0x504   :  { %13166 = vmatpush3.bf16.msra.mxu1 %v23635_v54  ;;  %12835 = vmatprep.subr.bf16.mxu0 %v23638_v20  ;;  %v12247_v10 = vpop.f32.mrb[215].mxu0  ;;  %v23639_v53 = vld [vmem:[#allocation247_spill] sm:$0xff]  ;;  %v12570_v18 = vpop.f32.mrb[97].mxu1 }
 0x505   :  { %v5218_v35 = vadd.f32 %v12245_v46, %v18267_v63  ;;  %v12248_v41 = vadd.f32 %v12247_v10, %v12246_v28  ;;  %v23640_v43 = vld [vmem:[#allocation243_spill] sm:$0xff]  ;;  %v23643_v63 = vld [vmem:[#allocation193_spill] sm:$0xff]  ;;  %6437 = vmatmul.mubr.bf16.gmra.mrb[200].mxu1 %v14376_v29  ;;  %v14336_v29 = vld [vmem:[%s22037_s6 + $0x3b4] ss:$144 sps:$4 sm:$0xff]  }
 0x506   :  { %5952 = vmatmul.mubr.bf16.gmra.mrb[64].mxu0 %v14328_v23  ;;  %v23641_v11 = vpack.c.bf16 %v23639_v53, %v23640_v43  ;;  %v23642_v54 = vld [vmem:[#allocation155_spill] sm:$0xff] }
 0x507   :  { %v5221_v36 = vadd.f32 %v12248_v41, %v18273_v60  ;;  %5959 = vmatprep.mubr.bf16.mxu0 %v14333_v57  ;;  %v18531_v39 = vadd.f32 %v23642_v54, %v5218_v35  ;;  %v23644_v46 = vld [vmem:[#allocation187_spill] sm:$0xff]  ;;  %v18542_v57 = vadd.f32 %v12570_v18, %v12569_v16 }
 0x508   :  { %12836 = vmatpush3.bf16.msra.mxu0 %v23641_v11  ;;  %v23645_v28 = vpack.c.bf16 %v23643_v63, %v23644_v46  ;;  %v23646_v20 = vld [vmem:[#allocation151_spill] sm:$0xff]  ;;  %v12572_v46 = vpop.f32.mrb[98].mxu1 }
 0x509   :  { %v12249_v23 = vpop.f32.mrb[216].mxu0  ;;  %v18537_v10 = vadd.f32 %v23646_v20, %v5221_v36  ;;  %v23647_v41 = vld [vmem:[#allocation255_spill] sm:$0xff]  ;;  %v23650_v36 = vld [vmem:[#allocation204_spill] sm:$0xff]  ;;  %v12573_v20 = vpop.f32.mrb[99].mxu1 }
 0x50a   :  { %12837 = vmatprep.subr.bf16.mxu0 %v23645_v28  ;;  %v12250_v60 = vpop.f32.mrb[217].mxu0  ;;  %v23648_v62 = vld [vmem:[#allocation251_spill] sm:$0xff] }
 0x50b   :  { %v12251_v35 = vadd.f32 %v12250_v60, %v12249_v23  ;;  %v23649_v53 = vpack.c.bf16 %v23647_v41, %v23648_v62  ;;  %v12252_v43 = vpop.f32.mrb[218].mxu0  ;;  %v23651_v11 = vld [vmem:[#allocation199_spill] sm:$0xff]  ;;  %v18560_v60 = vadd.f32 %v12573_v20, %v12572_v46  ;;  %v23661_v46 = vld [vmem:[#allocation13_spill] sm:$0xff] }
 0x50c   :  { %v23652_v54 = vpack.c.bf16 %v23650_v36, %v23651_v11  ;;  %v12253_v63 = vpop.f32.mrb[219].mxu0  ;;  %v14384_v28 = vld [vmem:[%s22037_s6 + $0x2bc] ss:$144 sps:$4 sm:$0xff]   ;;  %v14382_v18 = vld [vmem:[%s22037_s6 + $0x2b8] ss:$144 sps:$4 sm:$0xff]   ;;  %v23657_v11 = vld [vmem:[#allocation186_spill] sm:$0xff] }
 0x50d   :  { %12838 = vmatpush3.bf16.msra.mxu0 %v23649_v53  ;;  %v5226_v16 = vadd.f32 %v12251_v35, %v18303_v7  ;;  %v12254_v23 = vadd.f32 %v12253_v63, %v12252_v43  ;;  %23653 = vst [vmem:[#allocation159_spill] sm:$0xff] %v18560_v60  ;;  %6444 = vmatprep.mubr.bf16.mxu1 %v14384_v28  ;;  %v23654_v62 = vld [vmem:[#allocation263_spill] sm:$0xff]  ;;  %v23658_v7 = vld [vmem:[#allocation98_spill] sm:$0xff]  ;;  %v23659_v35 = vld [vmem:[#allocation208_spill] sm:$0xff]  ;;  %v12655_v63 = vpop.f32.mrb[100].mxu1 }
 0x50e   :  { %12839 = vmatprep.subr.bf16.mxu0 %v23652_v54  ;;  %5960 = vmatmul.mubr.bf16.gmra.mrb[68].mxu0 %v14331_v9  ;;  %v23655_v53 = vld [vmem:[#allocation259_spill] sm:$0xff]  ;;  %v23660_v43 = vpack.c.bf16 %v23658_v7, %v23659_v35  ;;  %v12656_v28 = vpop.f32.mrb[101].mxu1  ;;  %v23667_v7 = vld [vmem:[#allocation210_spill] sm:$0xff] }
 0x50f   :  { %v5229_v41 = vadd.f32 %v12254_v23, %v18309_v12  ;;  %v23656_v36 = vpack.c.bf16 %v23654_v62, %v23655_v53  ;;  %5967 = vmatprep.mubr.bf16.mxu0 %v14336_v29  ;;  %v18567_v54 = vadd.f32 %v23657_v11, %v5226_v16  ;;  %6445 = vmatmul.mubr.bf16.gmra.mrb[204].mxu1 %v14382_v18  ;;  %v14334_v23 = vld [vmem:[%s22037_s6 + $0x3b0] ss:$144 sps:$4 sm:$0xff]   ;;  %v23663_v62 = vld [vmem:[#allocation271_spill] sm:$0xff]  ;;  %v14339_v18 = vld [vmem:[%s22037_s6 + $0x4d4] ss:$144 sps:$4 sm:$0xff]  }
 0x510   :  { %v18578_v29 = vadd.f32 %v12656_v28, %v12655_v63  ;;  %v23664_v53 = vld [vmem:[#allocation267_spill] sm:$0xff] }
 0x511   :  { %12840 = vmatpush3.bf16.msra.mxu0 %v23656_v36  ;;  %v12335_v9 = vpop.f32.mrb[220].mxu0  ;;  %v18573_v20 = vadd.f32 %v23661_v46, %v5229_v41  ;;  %v23665_v36 = vpack.c.bf16 %v23663_v62, %v23664_v53  ;;  %v23666_v41 = vld [vmem:[#allocation119_spill] sm:$0xff]  ;;  %v12658_v46 = vpop.f32.mrb[102].mxu1 }
 0x512   :  { %12841 = vmatprep.subr.bf16.mxu0 %v23660_v43  ;;  %v12336_v12 = vpop.f32.mrb[221].mxu0  ;;  %23662 = vst [vmem:[#allocation192_spill] sm:$0xff] %v18578_v29  ;;  %v23668_v35 = vpack.c.bf16 %v23666_v41, %v23667_v7  ;;  %v14390_v63 = vld [vmem:[%s22037_s6 + $0x3dc] ss:$144 sps:$4 sm:$0xff]   ;;  %v14388_v62 = vld [vmem:[%s22037_s6 + $0x3d8] ss:$144 sps:$4 sm:$0xff]  }
 0x513   :  { %v12337_v16 = vadd.f32 %v12336_v12, %v12335_v9  ;;  %v12338_v11 = vpop.f32.mrb[222].mxu0  ;;  %v12659_v12 = vpop.f32.mrb[103].mxu1  ;;  %6452 = vmatprep.mubr.bf16.mxu1 %v14390_v63  ;;  %v23669_v41 = vld [vmem:[#allocation23_spill] sm:$0xff]  ;;  %v23670_v7 = vld [vmem:[#allocation21_spill] sm:$0xff] }
 0x514   :  { %v12339_v43 = vpop.f32.mrb[223].mxu0  ;;  %v18596_v53 = vadd.f32 %v12659_v12, %v12658_v46  ;;  %v23672_v29 = vld [vmem:[#allocation163_spill] sm:$0xff] }
 0x515   :  { %12842 = vmatpush3.bf16.msra.mxu0 %v23665_v36  ;;  %v5364_v9 = vadd.f32 %v12337_v16, %v18339_v26  ;;  %v12340_v28 = vadd.f32 %v12339_v43, %v12338_v11  ;;  %v23673_v26 = vld [vmem:[#allocation67_spill] sm:$0xff]  ;;  %v12661_v43 = vpop.f32.mrb[104].mxu1 }
 0x516   :  { %12843 = vmatprep.subr.bf16.mxu0 %v23668_v35  ;;  %5968 = vmatmul.mubr.bf16.gmra.mrb[72].mxu0 %v14334_v23  ;;  %v23671_v35 = vpack.c.bf16 %v23669_v41, %v23670_v7  ;;  %v23674_v16 = vld [vmem:[#allocation87_spill] sm:$0xff]  ;;  %v12662_v63 = vpop.f32.mrb[105].mxu1 }
 0x517   :  { %v5367_v36 = vadd.f32 %v12340_v28, %v18345_v4  ;;  %5975 = vmatprep.mubr.bf16.mxu0 %v14339_v18  ;;  %v18603_v60 = vadd.f32 %v23672_v29, %v5364_v9  ;;  %v23675_v11 = vpack.c.bf16 %v23673_v26, %v23674_v16  ;;  %6453 = vmatmul.mubr.bf16.gmra.mrb[208].mxu1 %v14388_v62  ;;  %v14337_v28 = vld [vmem:[%s22037_s6 + $0x4d0] ss:$144 sps:$4 sm:$0xff]   ;;  %v23676_v9 = vld [vmem:[#allocation57_spill] sm:$0xff]  ;;  %v23677_v12 = vld [vmem:[#allocation95_spill] sm:$0xff]  ;;  %v12664_v16 = vpop.f32.mrb[106].mxu1 }
 0x518   :  { %v18614_v18 = vadd.f32 %v12662_v63, %v12661_v43  ;;  %v23678_v41 = vpack.c.bf16 %v23676_v9, %v23677_v12  ;;  %v14342_v62 = vld [vmem:[%s22037_s6 + $0x5f4] ss:$144 sps:$4 sm:$0xff]   ;;  %v12665_v63 = vpop.f32.mrb[107].mxu1 }
 0x519   :  { %12844 = vmatpush3.bf16.msra.mxu0 %v23671_v35  ;;  %v12341_v23 = vpop.f32.mrb[224].mxu0  ;;  %v18609_v46 = vadd.f32 %v18044_v40, %v5367_v36  ;;  %v23679_v40 = vld [vmem:[#allocation37_spill] sm:$0xff]  ;;  %v18632_v9 = vadd.f32 %v12665_v63, %v12664_v16 }
 0x51a   :  { %12845 = vmatprep.subr.bf16.mxu0 %v23675_v11  ;;  %v12342_v4 = vpop.f32.mrb[225].mxu0  ;;  %v23680_v36 = vld [vmem:[#allocation33_spill] sm:$0xff] }
 0x51b   :  { %v12343_v29 = vadd.f32 %v12342_v4, %v12341_v23  ;;  %v12344_v7 = vpop.f32.mrb[226].mxu0  ;;  %v23681_v35 = vpack.c.bf16 %v23679_v40, %v23680_v36  ;;  %v14396_v11 = vld [vmem:[%s22037_s6 + $0x4fc] ss:$144 sps:$4 sm:$0xff]   ;;  %v14394_v4 = vld [vmem:[%s22037_s6 + $0x4f8] ss:$144 sps:$4 sm:$0xff]   ;;  %v12667_v40 = vpop.f32.mrb[108].mxu1 }
 0x51c   :  { %v12345_v26 = vpop.f32.mrb[227].mxu0  ;;  %6460 = vmatprep.mubr.bf16.mxu1 %v14396_v11  ;;  %v14400_v63 = vld [vmem:[%s22037_s6 + $0x618] ss:$144 sps:$4 sm:$0xff]  }
 0x51d   :  { %12846 = vmatpush3.bf16.msra.mxu0 %v23678_v41  ;;  %v5372_v43 = vadd.f32 %v12343_v29, %v18372_v14  ;;  %v12346_v23 = vadd.f32 %v12345_v26, %v12344_v7  ;;  %v12668_v29 = vpop.f32.mrb[109].mxu1 }
 0x51e   :  { %12959 = vmatprep.subr.bf16.mxu0 %v23681_v35  ;;  %5976 = vmatmul.mubr.bf16.gmra.mrb[76].mxu0 %v14337_v28  ;;  %v14340_v28 = vld [vmem:[%s22037_s6 + $0x5f0] ss:$144 sps:$4 sm:$0xff]   ;;  %v18644_v35 = vadd.f32 %v12668_v29, %v12667_v40  ;;  %v12670_v16 = vpop.f32.mrb[110].mxu1 }
 0x51f   :  { %v5375_v12 = vadd.f32 %v12346_v23, %v18375_v56  ;;  %5983 = vmatprep.mubr.bf16.mxu0 %v14342_v62  ;;  %v18636_v41 = vadd.f32 %v18065_v52, %v5372_v43  ;;  %6461 = vmatmul.mubr.bf16.gmra.mrb[212].mxu1 %v14394_v4  ;;  %v14345_v52 = vld [vmem:[%s22037_s6 + $0x714] ss:$144 sps:$4 sm:$0xff]   ;;  %v12671_v23 = vpop.f32.mrb[111].mxu1 }
 0x520   :  { %v18656_v4 = vadd.f32 %v12671_v23, %v12670_v16  ;;  %v14406_v23 = vld [vmem:[%s22037_s6 + $0x738] ss:$144 sps:$4 sm:$0xff]  }
 0x521   :  { %v12347_v36 = vpop.f32.mrb[228].mxu0  ;;  %v18639_v14 = vadd.f32 %v18080_v21, %v5375_v12  ;;  %v14402_v21 = vld [vmem:[%s22037_s6 + $0x61c] ss:$144 sps:$4 sm:$0xff]  }
 0x522   :  { %v12348_v7 = vpop.f32.mrb[229].mxu0  ;;  %6468 = vmatprep.mubr.bf16.mxu1 %v14402_v21 }
 0x523   :  { %v12349_v26 = vadd.f32 %v12348_v7, %v12347_v36  ;;  %v12350_v56 = vpop.f32.mrb[230].mxu0  ;;  %v12673_v36 = vpop.f32.mrb[112].mxu1 }
 0x524   :  { %v12351_v62 = vpop.f32.mrb[231].mxu0  ;;  %v12674_v7 = vpop.f32.mrb[113].mxu1 }
 0x525   :  { %v5380_v11 = vadd.f32 %v12349_v26, %v18396_v45  ;;  %v12352_v43 = vadd.f32 %v12351_v62, %v12350_v56  ;;  %v18668_v56 = vadd.f32 %v12674_v7, %v12673_v36  ;;  %v12676_v16 = vpop.f32.mrb[114].mxu1 }
 0x526   :  { %5984 = vmatmul.mubr.bf16.gmra.mrb[80].mxu0 %v14340_v28  ;;  %v14343_v28 = vld [vmem:[%s22037_s6 + $0x710] ss:$144 sps:$4 sm:$0xff]  }
 0x527   :  { %v5383_v12 = vadd.f32 %v12352_v43, %v18402_v47  ;;  %5991 = vmatprep.mubr.bf16.mxu0 %v14345_v52  ;;  %v18660_v40 = vadd.f32 %v18095_v3, %v5380_v11  ;;  %6469 = vmatmul.mubr.bf16.gmra.mrb[216].mxu1 %v14400_v63  ;;  %v14348_v3 = vld [vmem:[%s22037_s6 + $0x834] ss:$144 sps:$4 sm:$0xff]   ;;  %v12677_v43 = vpop.f32.mrb[115].mxu1 }
 0x528   :  { %v18680_v63 = vadd.f32 %v12677_v43, %v12676_v16  ;;  %v14412_v43 = vld [vmem:[%s22037_s6 + $0x858] ss:$144 sps:$4 sm:$0xff]  }
 0x529   :  { %v12353_v29 = vpop.f32.mrb[232].mxu0  ;;  %v18663_v45 = vadd.f32 %v18104_v31, %v5383_v12  ;;  %v14408_v31 = vld [vmem:[%s22037_s6 + $0x73c] ss:$144 sps:$4 sm:$0xff]  }
 0x52a   :  { %v12354_v26 = vpop.f32.mrb[233].mxu0  ;;  %6476 = vmatprep.mubr.bf16.mxu1 %v14408_v31 }
 0x52b   :  { %v12355_v62 = vadd.f32 %v12354_v26, %v12353_v29  ;;  %v12356_v47 = vpop.f32.mrb[234].mxu0  ;;  %v12679_v29 = vpop.f32.mrb[116].mxu1 }
 0x52c   :  { %v12357_v52 = vpop.f32.mrb[235].mxu0  ;;  %v12680_v26 = vpop.f32.mrb[117].mxu1 }
 0x52d   :  { %v5388_v21 = vadd.f32 %v12355_v62, %v18426_v19  ;;  %v12358_v11 = vadd.f32 %v12357_v52, %v12356_v47  ;;  %v18692_v47 = vadd.f32 %v12680_v26, %v12679_v29  ;;  %v12682_v16 = vpop.f32.mrb[118].mxu1 }
 0x52e   :  { %5992 = vmatmul.mubr.bf16.gmra.mrb[84].mxu0 %v14343_v28  ;;  %v14346_v28 = vld [vmem:[%s22037_s6 + $0x830] ss:$144 sps:$4 sm:$0xff]  }
 0x52f   :  { %v5391_v12 = vadd.f32 %v12358_v11, %v18432_v37  ;;  %5999 = vmatprep.mubr.bf16.mxu0 %v14348_v3  ;;  %v18684_v36 = vadd.f32 %v18125_v38, %v5388_v21  ;;  %6477 = vmatmul.mubr.bf16.gmra.mrb[220].mxu1 %v14406_v23  ;;  %v14351_v38 = vld [vmem:[%s22037_s6 + $0x64] ss:$144 sps:$4 sm:$0xff]   ;;  %v12683_v11 = vpop.f32.mrb[119].mxu1 }
 0x530   :  { %v18704_v23 = vadd.f32 %v12683_v11, %v12682_v16  ;;  %v14418_v11 = vld [vmem:[%s22037_s6 + $0x88] ss:$144 sps:$4 sm:$0xff]  }
 0x531   :  { %v12359_v7 = vpop.f32.mrb[236].mxu0  ;;  %v18687_v19 = vadd.f32 %v18140_v5, %v5391_v12  ;;  %v14414_v5 = vld [vmem:[%s22037_s6 + $0x85c] ss:$144 sps:$4 sm:$0xff]  }
 0x532   :  { %v12360_v62 = vpop.f32.mrb[237].mxu0  ;;  %6484 = vmatprep.mubr.bf16.mxu1 %v14414_v5 }
 0x533   :  { %v12361_v52 = vadd.f32 %v12360_v62, %v12359_v7  ;;  %v12362_v37 = vpop.f32.mrb[238].mxu0  ;;  %v12685_v7 = vpop.f32.mrb[120].mxu1 }
 0x534   :  { %v12363_v3 = vpop.f32.mrb[239].mxu0  ;;  %v12686_v62 = vpop.f32.mrb[121].mxu1 }
 0x535   :  { %v5396_v31 = vadd.f32 %v12361_v52, %v18456_v15  ;;  %v12364_v21 = vadd.f32 %v12363_v3, %v12362_v37  ;;  %v18716_v37 = vadd.f32 %v12686_v62, %v12685_v7  ;;  %v12688_v16 = vpop.f32.mrb[122].mxu1  ;;  %v23682_v7 = vld [vmem:[#allocation233_spill] sm:$0xff] }
 0x536   :  { %6000 = vmatmul.mubr.bf16.gmra.mrb[88].mxu0 %v14346_v28  ;;  %v14349_v28 = vld [vmem:[%s22037_s6 + $0x60] ss:$144 sps:$4 sm:$0xff]  }
 0x537   :  { %v5399_v12 = vadd.f32 %v12364_v21, %v18462_v33  ;;  %6137 = vmatprep.mubr.bf16.mxu0 %v14351_v38  ;;  %v18708_v29 = vadd.f32 %v18161_v48, %v5396_v31  ;;  %6485 = vmatmul.mubr.bf16.gmra.mrb[224].mxu1 %v14412_v43  ;;  %v14354_v48 = vld [vmem:[%s22037_s6 + $0x184] ss:$144 sps:$4 sm:$0xff]   ;;  %v12689_v21 = vpop.f32.mrb[123].mxu1 }
 0x538   :  { %v18728_v43 = vadd.f32 %v12689_v21, %v12688_v16  ;;  %v23690_v21 = vld [vmem:[#allocation237_spill] sm:$0xff] }
 0x539   :  { %v12365_v26 = vpop.f32.mrb[240].mxu0  ;;  %v18711_v15 = vadd.f32 %v18176_v34, %v5399_v12  ;;  %v14420_v34 = vld [vmem:[%s22037_s6 + $0x8c] ss:$144 sps:$4 sm:$0xff]  }
 0x53a   :  { %v12366_v52 = vpop.f32.mrb[241].mxu0  ;;  %6622 = vmatprep.mubr.bf16.mxu1 %v14420_v34 }
 0x53b   :  { %v12367_v3 = vadd.f32 %v12366_v52, %v12365_v26  ;;  %v12368_v33 = vpop.f32.mrb[242].mxu0  ;;  %v23683_v26 = vld [vmem:[#allocation229_spill] sm:$0xff] }
 0x53c   :  { %v12369_v38 = vpop.f32.mrb[243].mxu0  ;;  %v23684_v62 = vpack.c.bf16 %v23682_v7, %v23683_v26 }
 0x53d   :  { %v5404_v5 = vadd.f32 %v12367_v3, %v18489_v24  ;;  %v12370_v31 = vadd.f32 %v12369_v38, %v12368_v33  ;;  %v12691_v24 = vpop.f32.mrb[124].mxu1  ;;  %v23685_v3 = vld [vmem:[#allocation45_spill] sm:$0xff] }
 0x53e   :  { %6138 = vmatmul.mubr.bf16.vlgmr.msra.gmra.mrb[92].mxu0 %v14349_v28  ;;  %v23686_v33 = vld [vmem:[#allocation41_spill] sm:$0xff]  ;;  %v12692_v34 = vpop.f32.mrb[125].mxu1 }
 0x53f   :  { %v5407_v12 = vadd.f32 %v12370_v31, %v18498_v1  ;;  %12960 = vmatpush3.bf16.msra.mxu0 %v23684_v62  ;;  %6145 = vmatprep.mubr.bf16.mxu0 %v14354_v48  ;;  %v18735_v52 = vadd.f32 %v18197_v25, %v5404_v5  ;;  %v23687_v38 = vpack.c.bf16 %v23685_v3, %v23686_v33  ;;  %v14352_v31 = vld [vmem:[%s22037_s6 + $0x180] ss:$144 sps:$4 sm:$0xff]   ;;  %v23689_v5 = vld [vmem:[#allocation241_spill] sm:$0xff]  ;;  %v12694_v33 = vpop.f32.mrb[126].mxu1 }
 0x540   :  { %6623 = vmatmul.mubr.bf16.vlgmr.msra.gmra.mrb[228].mxu1 %v14418_v11  ;;  %v18746_v48 = vadd.f32 %v12692_v34, %v12691_v24  ;;  %v23691_v7 = vpack.c.bf16 %v23689_v5, %v23690_v21  ;;  %v14357_v11 = vld [vmem:[%s22037_s6 + $0x2a4] ss:$144 sps:$4 sm:$0xff]   ;;  %v12695_v34 = vpop.f32.mrb[127].mxu1  ;;  %v23695_v5 = vld [vmem:[#allocation249_spill] sm:$0xff] }
 0x541   :  { %12961 = vmatprep.subr.bf16.mxu0 %v23687_v38  ;;  %v12371_v28 = vpop.f32.mrb[244].mxu0  ;;  %v18741_v16 = vadd.f32 %v18212_v58, %v5407_v12  ;;  %v23692_v58 = vld [vmem:[#allocation280_spill] sm:$0xff]  ;;  %v23696_v21 = vld [vmem:[#allocation245_spill] sm:$0xff] }
 0x542   :  { %v12372_v1 = vpop.f32.mrb[245].mxu0  ;;  %23688 = vst [vmem:[#allocation15_spill] sm:$0xff] %v18746_v48  ;;  %v23693_v12 = vld [vmem:[#allocation276_spill] sm:$0xff] }
 0x543   :  { %v12373_v25 = vadd.f32 %v12372_v1, %v12371_v28  ;;  %12962 = vmatpush3.bf16.msra.mxu0 %v23691_v7  ;;  %v12374_v26 = vpop.f32.mrb[246].mxu0  ;;  %v23694_v62 = vpack.c.bf16 %v23692_v58, %v23693_v12  ;;  %v18758_v28 = vadd.f32 %v12695_v34, %v12694_v33  ;;  %v23697_v7 = vpack.c.bf16 %v23695_v5, %v23696_v21  ;;  %v14427_v58 = vld [vmem:[%s22037_s6 + $0x1a8] ss:$144 sps:$4 sm:$0xff]  }
 0x544   :  { %v12375_v3 = vpop.f32.mrb[247].mxu0  ;;  %v23702_v34 = vld [vmem:[#allocation253_spill] sm:$0xff] }
 0x545   :  { %12963 = vmatprep.subr.bf16.mxu0 %v23694_v62  ;;  %v5412_v38 = vadd.f32 %v12373_v25, %v18531_v39  ;;  %v12376_v24 = vadd.f32 %v12375_v3, %v12374_v26  ;;  %v14429_v39 = vld [vmem:[%s22037_s6 + $0x1ac] ss:$144 sps:$4 sm:$0xff]   ;;  %v23698_v25 = vld [vmem:[#allocation102_spill] sm:$0xff] }
 0x546   :  { %6146 = vmatmul.mubr.bf16.gmra.mrb[96].mxu0 %v14352_v31  ;;  %v12697_v31 = vpop.f32.mrb[128].mxu1  ;;  %v23699_v26 = vld [vmem:[#allocation97_spill] sm:$0xff]  ;;  %6630 = vmatprep.mubr.bf16.mxu1 %v14429_v39  ;;  %v14355_v3 = vld [vmem:[%s22037_s6 + $0x2a0] ss:$144 sps:$4 sm:$0xff]  }
 0x547   :  { %v5415_v1 = vadd.f32 %v12376_v24, %v18537_v10  ;;  %12964 = vmatpush3.bf16.msra.mxu0 %v23697_v7  ;;  %6153 = vmatprep.mubr.bf16.mxu0 %v14357_v11  ;;  %v18765_v48 = vadd.f32 %v18239_v55, %v5412_v38  ;;  %v23700_v10 = vpack.c.bf16 %v23698_v25, %v23699_v26  ;;  %v12698_v55 = vpop.f32.mrb[129].mxu1  ;;  %v23701_v24 = vld [vmem:[#allocation257_spill] sm:$0xff]  ;;  %v23705_v7 = vld [vmem:[#allocation108_spill] sm:$0xff] }
 0x548   :  { %6631 = vmatmul.mubr.bf16.gmra.mrb[232].mxu1 %v14427_v58  ;;  %v18782_v33 = vadd.f32 %v12698_v55, %v12697_v31  ;;  %v23703_v5 = vpack.c.bf16 %v23701_v24, %v23702_v34  ;;  %v12700_v26 = vpop.f32.mrb[130].mxu1  ;;  %v23708_v24 = vld [vmem:[#allocation261_spill] sm:$0xff] }
 0x549   :  { %12965 = vmatprep.subr.bf16.mxu0 %v23700_v10  ;;  %v12377_v12 = vpop.f32.mrb[248].mxu0  ;;  %v18777_v62 = vadd.f32 %v18260_v42, %v5415_v1  ;;  %v14360_v42 = vld [vmem:[%s22037_s6 + $0x3c4] ss:$144 sps:$4 sm:$0xff]   ;;  %v12701_v10 = vpop.f32.mrb[131].mxu1 }
 0x54a   :  { %v12378_v11 = vpop.f32.mrb[249].mxu0  ;;  %v23704_v1 = vld [vmem:[#allocation114_spill] sm:$0xff] }
 0x54b   :  { %v12379_v38 = vadd.f32 %v12378_v11, %v12377_v12  ;;  %12966 = vmatpush3.bf16.msra.mxu0 %v23703_v5  ;;  %v12380_v21 = vpop.f32.mrb[250].mxu0  ;;  %v23706_v39 = vpack.c.bf16 %v23704_v1, %v23705_v7  ;;  %v18794_v12 = vadd.f32 %v12701_v10, %v12700_v26  ;;  %v23707_v11 = vld [vmem:[#allocation265_spill] sm:$0xff] }
 0x54c   :  { %v12381_v25 = vpop.f32.mrb[251].mxu0  ;;  %v23709_v34 = vpack.c.bf16 %v23707_v11, %v23708_v24  ;;  %v14433_v1 = vld [vmem:[%s22037_s6 + $0x2c8] ss:$144 sps:$4 sm:$0xff]  }
 0x54d   :  { %12967 = vmatprep.subr.bf16.mxu0 %v23706_v39  ;;  %v5420_v58 = vadd.f32 %v12379_v38, %v18567_v54  ;;  %v12382_v31 = vadd.f32 %v12381_v25, %v12380_v21  ;;  %v14435_v54 = vld [vmem:[%s22037_s6 + $0x2cc] ss:$144 sps:$4 sm:$0xff]   ;;  %v23710_v38 = vld [vmem:[#allocation212_spill] sm:$0xff]  ;;  %v23711_v21 = vld [vmem:[#allocation206_spill] sm:$0xff] }
 0x54e   :  { %6154 = vmatmul.mubr.bf16.gmra.mrb[100].mxu0 %v14355_v3  ;;  %v12783_v3 = vpop.f32.mrb[132].mxu1  ;;  %6638 = vmatprep.mubr.bf16.mxu1 %v14435_v54  ;;  %v14358_v25 = vld [vmem:[%s22037_s6 + $0x3c0] ss:$144 sps:$4 sm:$0xff]   ;;  %v23714_v10 = vld [vmem:[#allocation269_spill] sm:$0xff] }
 0x54f   :  { %v5423_v55 = vadd.f32 %v12382_v31, %v18573_v20  ;;  %12968 = vmatpush3.bf16.msra.mxu0 %v23709_v34  ;;  %6161 = vmatprep.mubr.bf16.mxu0 %v14360_v42  ;;  %v18801_v5 = vadd.f32 %v18281_v59, %v5420_v58  ;;  %v23712_v20 = vpack.c.bf16 %v23710_v38, %v23711_v21  ;;  %v12784_v59 = vpop.f32.mrb[133].mxu1  ;;  %v23713_v31 = vld [vmem:[#allocation273_spill] sm:$0xff]  ;;  %v23717_v34 = vld [vmem:[#allocation123_spill] sm:$0xff] }
 0x550   :  { %6639 = vmatmul.mubr.bf16.gmra.mrb[236].mxu1 %v14433_v1  ;;  %v18818_v26 = vadd.f32 %v12784_v59, %v12783_v3  ;;  %v23715_v11 = vpack.c.bf16 %v23713_v31, %v23714_v10  ;;  %v12786_v21 = vpop.f32.mrb[134].mxu1  ;;  %v23720_v31 = vld [vmem:[#allocation51_spill] sm:$0xff] }
 0x551   :  { %12969 = vmatprep.subr.bf16.mxu0 %v23712_v20  ;;  %v12463_v7 = vpop.f32.mrb[252].mxu0  ;;  %v18813_v39 = vadd.f32 %v18296_v0, %v5423_v55  ;;  %v14363_v0 = vld [vmem:[%s22037_s6 + $0x4e4] ss:$144 sps:$4 sm:$0xff]   ;;  %v12787_v20 = vpop.f32.mrb[135].mxu1 }
 0x552   :  { %v12464_v42 = vpop.f32.mrb[253].mxu0  ;;  %v23716_v55 = vld [vmem:[#allocation72_spill] sm:$0xff] }
 0x553   :  { %v12465_v58 = vadd.f32 %v12464_v42, %v12463_v7  ;;  %12970 = vmatpush3.bf16.msra.mxu0 %v23715_v11  ;;  %v12466_v24 = vpop.f32.mrb[254].mxu0  ;;  %v23718_v54 = vpack.c.bf16 %v23716_v55, %v23717_v34  ;;  %v18830_v7 = vadd.f32 %v12787_v20, %v12786_v21  ;;  %v23719_v42 = vld [vmem:[#allocation54_spill] sm:$0xff]  ;;  %v14439_v55 = vld [vmem:[%s22037_s6 + $0x3e8] ss:$144 sps:$4 sm:$0xff]  }
 0x554   :  { %v12467_v38 = vpop.f32.mrb[255].mxu0  ;;  %v23721_v10 = vpack.c.bf16 %v23719_v42, %v23720_v31  ;;  %v23726_v20 = vld [vmem:[#allocation25_spill] sm:$0xff] }
 0x555   :  { %12971 = vmatprep.subr.bf16.mxu0 %v23718_v54  ;;  %v5558_v1 = vadd.f32 %v12465_v58, %v18603_v60  ;;  %v12468_v3 = vadd.f32 %v12467_v38, %v12466_v24  ;;  %v14441_v60 = vld [vmem:[%s22037_s6 + $0x3ec] ss:$144 sps:$4 sm:$0xff]   ;;  %v14361_v38 = vld [vmem:[%s22037_s6 + $0x4e0] ss:$144 sps:$4 sm:$0xff]  }
 0x556   :  { %6162 = vmatmul.mubr.bf16.gmra.mrb[104].mxu0 %v14358_v25  ;;  %v12789_v25 = vpop.f32.mrb[136].mxu1  ;;  %v23722_v58 = vld [vmem:[#allocation131_spill] sm:$0xff]  ;;  %v23723_v24 = vld [vmem:[#allocation73_spill] sm:$0xff]  ;;  %6646 = vmatprep.mubr.bf16.mxu1 %v14441_v60 }
 0x557   :  { %v5561_v59 = vadd.f32 %v12468_v3, %v18609_v46  ;;  %12972 = vmatpush3.bf16.msra.mxu0 %v23721_v10  ;;  %6169 = vmatprep.mubr.bf16.mxu0 %v14363_v0  ;;  %v18837_v11 = vadd.f32 %v18317_v51, %v5558_v1  ;;  %v23724_v46 = vpack.c.bf16 %v23722_v58, %v23723_v24  ;;  %v12790_v51 = vpop.f32.mrb[137].mxu1  ;;  %v23725_v3 = vld [vmem:[#allocation29_spill] sm:$0xff]  ;;  %v23729_v10 = vld [vmem:[#allocation238_spill] sm:$0xff] }
 0x558   :  { %6647 = vmatmul.mubr.bf16.gmra.mrb[240].mxu1 %v14439_v55  ;;  %v18854_v21 = vadd.f32 %v12790_v51, %v12789_v25  ;;  %v23727_v42 = vpack.c.bf16 %v23725_v3, %v23726_v20  ;;  %v12792_v24 = vpop.f32.mrb[138].mxu1  ;;  %v14445_v3 = vld [vmem:[%s22037_s6 + $0x508] ss:$144 sps:$4 sm:$0xff]   ;;  %v14447_v20 = vld [vmem:[%s22037_s6 + $0x50c] ss:$144 sps:$4 sm:$0xff]  }
 0x559   :  { %12973 = vmatprep.subr.bf16.mxu0 %v23724_v46  ;;  %v12469_v34 = vpop.f32.mrb[0].mxu0  ;;  %v18849_v54 = vadd.f32 %v18332_v2, %v5561_v59  ;;  %v14366_v2 = vld [vmem:[%s22037_s6 + $0x604] ss:$144 sps:$4 sm:$0xff]   ;;  %v12793_v46 = vpop.f32.mrb[139].mxu1  ;;  %6654 = vmatprep.mubr.bf16.mxu1 %v14447_v20  ;;  %v14453_v20 = vld [vmem:[%s22037_s6 + $0x62c] ss:$144 sps:$4 sm:$0xff]  }
 0x55a   :  { %v12470_v0 = vpop.f32.mrb[1].mxu0  ;;  %v23728_v59 = vld [vmem:[#allocation242_spill] sm:$0xff] }
 0x55b   :  { %v12471_v1 = vadd.f32 %v12470_v0, %v12469_v34  ;;  %12974 = vmatpush3.bf16.msra.mxu0 %v23727_v42  ;;  %v12472_v31 = vpop.f32.mrb[2].mxu0  ;;  %v23730_v60 = vpack.c.bf16 %v23728_v59, %v23729_v10  ;;  %v18866_v34 = vadd.f32 %v12793_v46, %v12792_v24  ;;  %v14369_v10 = vld [vmem:[%s22037_s6 + $0x724] ss:$144 sps:$4 sm:$0xff]  }
 0x55c   :  { %v12473_v58 = vpop.f32.mrb[3].mxu0 }
 0x55d   :  { %13087 = vmatprep.subr.bf16.mxu0 %v23730_v60  ;;  %v5566_v55 = vadd.f32 %v12471_v1, %v18636_v41  ;;  %v12474_v25 = vadd.f32 %v12473_v58, %v12472_v31  ;;  %v12795_v41 = vpop.f32.mrb[140].mxu1 }
 0x55e   :  { %6170 = vmatmul.mubr.bf16.gmra.mrb[108].mxu0 %v14361_v38  ;;  %v12796_v42 = vpop.f32.mrb[141].mxu1 }
 0x55f   :  { %v5569_v51 = vadd.f32 %v12474_v25, %v18639_v14  ;;  %6177 = vmatprep.mubr.bf16.mxu0 %v14366_v2  ;;  %v18870_v0 = vadd.f32 %v18353_v61, %v5566_v55  ;;  %v14364_v61 = vld [vmem:[%s22037_s6 + $0x600] ss:$144 sps:$4 sm:$0xff]   ;;  %v18884_v31 = vadd.f32 %v12796_v42, %v12795_v41  ;;  %v12798_v58 = vpop.f32.mrb[142].mxu1 }
 0x560   :  { %6655 = vmatmul.mubr.bf16.gmra.mrb[244].mxu1 %v14445_v3  ;;  %v12799_v55 = vpop.f32.mrb[143].mxu1  ;;  %v14451_v3 = vld [vmem:[%s22037_s6 + $0x628] ss:$144 sps:$4 sm:$0xff]  }
 0x561   :  { %v12475_v1 = vpop.f32.mrb[4].mxu0  ;;  %v18879_v38 = vadd.f32 %v18368_v6, %v5569_v51  ;;  %v18890_v25 = vadd.f32 %v12799_v55, %v12798_v58  ;;  %6662 = vmatprep.mubr.bf16.mxu1 %v14453_v20  ;;  %v14459_v20 = vld [vmem:[%s22037_s6 + $0x74c] ss:$144 sps:$4 sm:$0xff]  }
 0x562   :  { %v12476_v14 = vpop.f32.mrb[5].mxu0 }
 0x563   :  { %v12477_v2 = vadd.f32 %v12476_v14, %v12475_v1  ;;  %v12478_v59 = vpop.f32.mrb[6].mxu0 }
 0x564   :  { %v12479_v60 = vpop.f32.mrb[7].mxu0 }
 0x565   :  { %v5574_v6 = vadd.f32 %v12477_v2, %v18660_v40  ;;  %v12480_v24 = vadd.f32 %v12479_v60, %v12478_v59  ;;  %v12801_v40 = vpop.f32.mrb[144].mxu1  ;;  %v14372_v59 = vld [vmem:[%s22037_s6 + $0x844] ss:$144 sps:$4 sm:$0xff]  }
 0x566   :  { %6178 = vmatmul.mubr.bf16.gmra.mrb[112].mxu0 %v14364_v61  ;;  %v12802_v42 = vpop.f32.mrb[145].mxu1 }
 0x567   :  { %v5577_v46 = vadd.f32 %v12480_v24, %v18663_v45  ;;  %6185 = vmatprep.mubr.bf16.mxu0 %v14369_v10  ;;  %v18894_v51 = vadd.f32 %v18383_v50, %v5574_v6  ;;  %v14367_v50 = vld [vmem:[%s22037_s6 + $0x720] ss:$144 sps:$4 sm:$0xff]   ;;  %v18908_v14 = vadd.f32 %v12802_v42, %v12801_v40  ;;  %v12804_v60 = vpop.f32.mrb[146].mxu1 }
 0x568   :  { %6663 = vmatmul.mubr.bf16.gmra.mrb[248].mxu1 %v14451_v3  ;;  %v12805_v6 = vpop.f32.mrb[147].mxu1  ;;  %v14457_v3 = vld [vmem:[%s22037_s6 + $0x748] ss:$144 sps:$4 sm:$0xff]  }
 0x569   :  { %v12481_v41 = vpop.f32.mrb[8].mxu0  ;;  %v18903_v1 = vadd.f32 %v18389_v30, %v5577_v46  ;;  %v18914_v24 = vadd.f32 %v12805_v6, %v12804_v60  ;;  %6670 = vmatprep.mubr.bf16.mxu1 %v14459_v20  ;;  %v14465_v20 = vld [vmem:[%s22037_s6 + $0x86c] ss:$144 sps:$4 sm:$0xff]  }
 0x56a   :  { %v12482_v45 = vpop.f32.mrb[9].mxu0 }
 0x56b   :  { %v12483_v61 = vadd.f32 %v12482_v45, %v12481_v41  ;;  %v12484_v2 = vpop.f32.mrb[10].mxu0 }
 0x56c   :  { %v12485_v10 = vpop.f32.mrb[11].mxu0 }
 0x56d   :  { %v5582_v30 = vadd.f32 %v12483_v61, %v18684_v36  ;;  %v12486_v58 = vadd.f32 %v12485_v10, %v12484_v2  ;;  %v12807_v36 = vpop.f32.mrb[148].mxu1  ;;  %v14375_v2 = vld [vmem:[%s22037_s6 + $0x74] ss:$144 sps:$4 sm:$0xff]  }
 0x56e   :  { %6186 = vmatmul.mubr.bf16.gmra.mrb[116].mxu0 %v14367_v50  ;;  %v12808_v42 = vpop.f32.mrb[149].mxu1 }
 0x56f   :  { %v5585_v55 = vadd.f32 %v12486_v58, %v18687_v19  ;;  %6193 = vmatprep.mubr.bf16.mxu0 %v14372_v59  ;;  %v18918_v46 = vadd.f32 %v18407_v27, %v5582_v30  ;;  %v14370_v27 = vld [vmem:[%s22037_s6 + $0x840] ss:$144 sps:$4 sm:$0xff]   ;;  %v18932_v45 = vadd.f32 %v12808_v42, %v12807_v36  ;;  %v12810_v10 = vpop.f32.mrb[150].mxu1 }
 0x570   :  { %6671 = vmatmul.mubr.bf16.gmra.mrb[252].mxu1 %v14457_v3  ;;  %v12811_v30 = vpop.f32.mrb[151].mxu1  ;;  %v14463_v3 = vld [vmem:[%s22037_s6 + $0x868] ss:$144 sps:$4 sm:$0xff]  }
 0x571   :  { %v12487_v40 = vpop.f32.mrb[12].mxu0  ;;  %v18927_v41 = vadd.f32 %v18419_v22, %v5585_v55  ;;  %v18938_v58 = vadd.f32 %v12811_v30, %v12810_v10  ;;  %6678 = vmatprep.mubr.bf16.mxu1 %v14465_v20 }
 0x572   :  { %v12488_v19 = vpop.f32.mrb[13].mxu0 }
 0x573   :  { %v12489_v50 = vadd.f32 %v12488_v19, %v12487_v40  ;;  %v12490_v61 = vpop.f32.mrb[14].mxu0 }
 0x574   :  { %v12491_v59 = vpop.f32.mrb[15].mxu0 }
 0x575   :  { %v5590_v22 = vadd.f32 %v12489_v50, %v18708_v29  ;;  %v12492_v60 = vadd.f32 %v12491_v59, %v12490_v61  ;;  %v12813_v29 = vpop.f32.mrb[152].mxu1  ;;  %v14381_v61 = vld [vmem:[%s22037_s6 + $0x194] ss:$144 sps:$4 sm:$0xff]  }
 0x576   :  { %6194 = vmatmul.mubr.bf16.gmra.mrb[120].mxu0 %v14370_v27  ;;  %v12814_v42 = vpop.f32.mrb[153].mxu1 }
 0x577   :  { %v5593_v6 = vadd.f32 %v12492_v60, %v18711_v15  ;;  %6331 = vmatprep.mubr.bf16.mxu0 %v14375_v2  ;;  %v18942_v55 = vadd.f32 %v18437_v13, %v5590_v22  ;;  %v14373_v13 = vld [vmem:[%s22037_s6 + $0x70] ss:$144 sps:$4 sm:$0xff]   ;;  %v18956_v19 = vadd.f32 %v12814_v42, %v12813_v29  ;;  %v12816_v59 = vpop.f32.mrb[154].mxu1 }
 0x578   :  { %6679 = vmatmul.mubr.bf16.gmra.mrb[0].mxu1 %v14463_v3  ;;  %v12817_v22 = vpop.f32.mrb[155].mxu1  ;;  %v23733_v3 = vld [vmem:[#allocation216_spill] sm:$0xff] }
 0x579   :  { %v12493_v36 = vpop.f32.mrb[16].mxu0  ;;  %v18951_v40 = vadd.f32 %v18449_v8, %v5593_v6  ;;  %23731 = vst [vmem:[#allocation171_spill] sm:$0xff] %v18956_v19  ;;  %v18962_v60 = vadd.f32 %v12817_v22, %v12816_v59  ;;  %v23732_v6 = vld [vmem:[#allocation218_spill] sm:$0xff]  ;;  %v23735_v42 = vld [vmem:[#allocation240_spill] sm:$0xff]  ;;  %v23739_v59 = vld [vmem:[#allocation215_spill] sm:$0xff] }
 0x57a   :  { %v12494_v15 = vpop.f32.mrb[17].mxu0  ;;  %v23734_v20 = vpack.c.bf16 %v23732_v6, %v23733_v3  ;;  %v23742_v22 = vld [vmem:[#allocation246_spill] sm:$0xff] }
 0x57b   :  { %v12495_v27 = vadd.f32 %v12494_v15, %v12493_v36  ;;  %v12496_v50 = vpop.f32.mrb[18].mxu0  ;;  %v12819_v36 = vpop.f32.mrb[156].mxu1  ;;  %v23736_v15 = vld [vmem:[#allocation236_spill] sm:$0xff] }
 0x57c   :  { %v12497_v2 = vpop.f32.mrb[19].mxu0  ;;  %v23737_v19 = vpack.c.bf16 %v23735_v42, %v23736_v15 }
 0x57d   :  { %v5598_v8 = vadd.f32 %v12495_v27, %v18735_v52  ;;  %v12498_v10 = vadd.f32 %v12497_v2, %v12496_v50  ;;  %v12820_v27 = vpop.f32.mrb[157].mxu1 }
 0x57e   :  { %6332 = vmatmul.mubr.bf16.vlgmr.msra.gmra.mrb[124].mxu0 %v14373_v13  ;;  %v18980_v2 = vadd.f32 %v12820_v27, %v12819_v36  ;;  %v12822_v3 = vpop.f32.mrb[158].mxu1  ;;  %v23744_v27 = vld [vmem:[#allocation222_spill] sm:$0xff] }
 0x57f   :  { %v5601_v30 = vadd.f32 %v12498_v10, %v18741_v16  ;;  %13088 = vmatpush3.bf16.msra.mxu0 %v23734_v20  ;;  %6339 = vmatprep.mubr.bf16.mxu0 %v14381_v61  ;;  %v18969_v29 = vadd.f32 %v18467_v49, %v5598_v8  ;;  %v14379_v16 = vld [vmem:[%s22037_s6 + $0x190] ss:$144 sps:$4 sm:$0xff]   ;;  %v23738_v49 = vld [vmem:[#allocation217_spill] sm:$0xff]  ;;  %v12823_v42 = vpop.f32.mrb[159].mxu1 }
 0x580   :  { %13089 = vmatprep.subr.bf16.mxu0 %v23737_v19  ;;  %v23740_v8 = vpack.c.bf16 %v23738_v49, %v23739_v59  ;;  %v14387_v19 = vld [vmem:[%s22037_s6 + $0x2b4] ss:$144 sps:$4 sm:$0xff]   ;;  %v18992_v15 = vadd.f32 %v12823_v42, %v12822_v3  ;;  %v23751_v3 = vld [vmem:[#allocation219_spill] sm:$0xff] }
 0x581   :  { %v12499_v52 = vpop.f32.mrb[20].mxu0  ;;  %v18975_v13 = vadd.f32 %v18479_v44, %v5601_v30  ;;  %v23741_v44 = vld [vmem:[#allocation250_spill] sm:$0xff] }
 0x582   :  { %v12500_v50 = vpop.f32.mrb[21].mxu0  ;;  %v23743_v30 = vpack.c.bf16 %v23741_v44, %v23742_v22  ;;  %v23747_v44 = vld [vmem:[#allocation248_spill] sm:$0xff] }
 0x583   :  { %v12501_v61 = vadd.f32 %v12500_v50, %v12499_v52  ;;  %13090 = vmatpush3.bf16.msra.mxu0 %v23740_v8  ;;  %v12502_v10 = vpop.f32.mrb[22].mxu0  ;;  %v23745_v50 = vld [vmem:[#allocation220_spill] sm:$0xff]  ;;  %v12825_v8 = vpop.f32.mrb[160].mxu1 }
 0x584   :  { %13091 = vmatprep.subr.bf16.mxu0 %v23743_v30  ;;  %v12503_v6 = vpop.f32.mrb[23].mxu0  ;;  %v23746_v49 = vpack.c.bf16 %v23744_v27, %v23745_v50  ;;  %v23748_v22 = vld [vmem:[#allocation244_spill] sm:$0xff] }
 0x585   :  { %v5606_v20 = vadd.f32 %v12501_v61, %v18765_v48  ;;  %v12504_v36 = vadd.f32 %v12503_v6, %v12502_v10  ;;  %v23749_v30 = vpack.c.bf16 %v23747_v44, %v23748_v22  ;;  %v12826_v61 = vpop.f32.mrb[161].mxu1  ;;  %v14393_v42 = vld [vmem:[%s22037_s6 + $0x3d4] ss:$144 sps:$4 sm:$0xff]  }
 0x586   :  { %6340 = vmatmul.mubr.bf16.gmra.mrb[128].mxu0 %v14379_v16  ;;  %v19010_v6 = vadd.f32 %v12826_v61, %v12825_v8  ;;  %v23757_v61 = vld [vmem:[#allocation226_spill] sm:$0xff] }
 0x587   :  { %v5609_v52 = vadd.f32 %v12504_v36, %v18777_v62  ;;  %13092 = vmatpush3.bf16.msra.mxu0 %v23746_v49  ;;  %6347 = vmatprep.mubr.bf16.mxu0 %v14387_v19  ;;  %v18999_v59 = vadd.f32 %v18503_v17, %v5606_v20  ;;  %v14385_v62 = vld [vmem:[%s22037_s6 + $0x2b0] ss:$144 sps:$4 sm:$0xff]   ;;  %v23750_v17 = vld [vmem:[#allocation221_spill] sm:$0xff]  ;;  %v12828_v49 = vpop.f32.mrb[162].mxu1 }
 0x588   :  { %13093 = vmatprep.subr.bf16.mxu0 %v23749_v30  ;;  %v23752_v20 = vpack.c.bf16 %v23750_v17, %v23751_v3  ;;  %v12829_v22 = vpop.f32.mrb[163].mxu1 }
 0x589   :  { %v12505_v48 = vpop.f32.mrb[24].mxu0  ;;  %v19005_v16 = vadd.f32 %v18524_v32, %v5609_v52  ;;  %v23753_v32 = vld [vmem:[#allocation258_spill] sm:$0xff]  ;;  %v19022_v30 = vadd.f32 %v12829_v22, %v12828_v49 }
 0x58a   :  { %v12506_v10 = vpop.f32.mrb[25].mxu0  ;;  %v23754_v52 = vld [vmem:[#allocation254_spill] sm:$0xff] }
 0x58b   :  { %v12507_v19 = vadd.f32 %v12506_v10, %v12505_v48  ;;  %13094 = vmatpush3.bf16.msra.mxu0 %v23752_v20  ;;  %v12508_v36 = vpop.f32.mrb[26].mxu0  ;;  %v23755_v27 = vpack.c.bf16 %v23753_v32, %v23754_v52  ;;  %23756 = vst [vmem:[#allocation167_spill] sm:$0xff] %v19022_v30  ;;  %v23758_v10 = vld [vmem:[#allocation224_spill] sm:$0xff]  ;;  %v12911_v20 = vpop.f32.mrb[164].mxu1 }
 0x58c   :  { %v12509_v50 = vpop.f32.mrb[27].mxu0  ;;  %v23759_v17 = vpack.c.bf16 %v23757_v61, %v23758_v10  ;;  %v23760_v32 = vld [vmem:[#allocation256_spill] sm:$0xff]  ;;  %v23769_v10 = vld [vmem:[#allocation262_spill] sm:$0xff] }
 0x58d   :  { %13095 = vmatprep.subr.bf16.mxu0 %v23755_v27  ;;  %v5614_v44 = vadd.f32 %v12507_v19, %v18801_v5  ;;  %v12510_v8 = vadd.f32 %v12509_v50, %v12508_v36  ;;  %v23761_v52 = vld [vmem:[#allocation252_spill] sm:$0xff]  ;;  %v23763_v19 = vld [vmem:[#allocation159_spill] sm:$0xff]  ;;  %v12912_v36 = vpop.f32.mrb[165].mxu1 }
 0x58e   :  { %6348 = vmatmul.mubr.bf16.gmra.mrb[132].mxu0 %v14385_v62  ;;  %v23762_v27 = vpack.c.bf16 %v23760_v32, %v23761_v52  ;;  %v19040_v49 = vadd.f32 %v12912_v36, %v12911_v20  ;;  %v14399_v61 = vld [vmem:[%s22037_s6 + $0x4f4] ss:$144 sps:$4 sm:$0xff]   ;;  %v12914_v52 = vpop.f32.mrb[166].mxu1 }
 0x58f   :  { %v5617_v48 = vadd.f32 %v12510_v8, %v18813_v39  ;;  %13096 = vmatpush3.bf16.msra.mxu0 %v23759_v17  ;;  %6355 = vmatprep.mubr.bf16.mxu0 %v14393_v42  ;;  %v19029_v3 = vadd.f32 %v18542_v57, %v5614_v44  ;;  %v14391_v39 = vld [vmem:[%s22037_s6 + $0x3d0] ss:$144 sps:$4 sm:$0xff]   ;;  %v23765_v57 = vld [vmem:[#allocation225_spill] sm:$0xff]  ;;  %v23766_v44 = vld [vmem:[#allocation223_spill] sm:$0xff] }
 0x590   :  { %13097 = vmatprep.subr.bf16.mxu0 %v23762_v27  ;;  %23764 = vst [vmem:[#allocation198_spill] sm:$0xff] %v19040_v49  ;;  %v23767_v8 = vpack.c.bf16 %v23765_v57, %v23766_v44  ;;  %v23772_v57 = vld [vmem:[#allocation230_spill] sm:$0xff] }
 0x591   :  { %v12591_v5 = vpop.f32.mrb[28].mxu0  ;;  %v19035_v62 = vadd.f32 %v23763_v19, %v5617_v48  ;;  %v23768_v48 = vld [vmem:[#allocation266_spill] sm:$0xff]  ;;  %v12915_v19 = vpop.f32.mrb[167].mxu1 }
 0x592   :  { %v12592_v50 = vpop.f32.mrb[29].mxu0  ;;  %v23770_v17 = vpack.c.bf16 %v23768_v48, %v23769_v10  ;;  %v12917_v48 = vpop.f32.mrb[168].mxu1  ;;  %v23775_v10 = vld [vmem:[#allocation264_spill] sm:$0xff] }
 0x593   :  { %v12593_v42 = vadd.f32 %v12592_v50, %v12591_v5  ;;  %13098 = vmatpush3.bf16.msra.mxu0 %v23767_v8  ;;  %v12594_v22 = vpop.f32.mrb[30].mxu0  ;;  %v19052_v5 = vadd.f32 %v12915_v19, %v12914_v52  ;;  %v23771_v50 = vld [vmem:[#allocation234_spill] sm:$0xff]  ;;  %v23774_v8 = vld [vmem:[#allocation192_spill] sm:$0xff] }
 0x594   :  { %13099 = vmatprep.subr.bf16.mxu0 %v23770_v17  ;;  %v12595_v32 = vpop.f32.mrb[31].mxu0  ;;  %v23773_v44 = vpack.c.bf16 %v23771_v50, %v23772_v57  ;;  %v23776_v17 = vld [vmem:[#allocation260_spill] sm:$0xff] }
 0x595   :  { %v5752_v27 = vadd.f32 %v12593_v42, %v18837_v11  ;;  %v12596_v20 = vadd.f32 %v12595_v32, %v12594_v22  ;;  %v23777_v30 = vpack.c.bf16 %v23775_v10, %v23776_v17  ;;  %v12918_v42 = vpop.f32.mrb[169].mxu1  ;;  %v23778_v52 = vld [vmem:[#allocation232_spill] sm:$0xff] }
 0x596   :  { %6356 = vmatmul.mubr.bf16.gmra.mrb[136].mxu0 %v14391_v39  ;;  %v19070_v32 = vadd.f32 %v12918_v42, %v12917_v48 }
 0x597   :  { %v5755_v36 = vadd.f32 %v12596_v20, %v18849_v54  ;;  %13100 = vmatpush3.bf16.msra.mxu0 %v23773_v44  ;;  %6363 = vmatprep.mubr.bf16.mxu0 %v14399_v61  ;;  %v19059_v49 = vadd.f32 %v23774_v8, %v5752_v27  ;;  %v14397_v54 = vld [vmem:[%s22037_s6 + $0x4f0] ss:$144 sps:$4 sm:$0xff]  }
 0x598   :  { %13101 = vmatprep.subr.bf16.mxu0 %v23777_v30  ;;  %v23779_v27 = vld [vmem:[#allocation228_spill] sm:$0xff] }
 0x599   :  { %v12597_v11 = vpop.f32.mrb[32].mxu0  ;;  %v19065_v39 = vadd.f32 %v18596_v53, %v5755_v36  ;;  %v23780_v20 = vpack.c.bf16 %v23778_v52, %v23779_v27  ;;  %v14405_v30 = vld [vmem:[%s22037_s6 + $0x614] ss:$144 sps:$4 sm:$0xff]   ;;  %v12920_v36 = vpop.f32.mrb[170].mxu1 }
 0x59a   :  { %v12598_v22 = vpop.f32.mrb[33].mxu0  ;;  %v12921_v44 = vpop.f32.mrb[171].mxu1 }
 0x59b   :  { %v12599_v61 = vadd.f32 %v12598_v22, %v12597_v11  ;;  %13102 = vmatpush3.bf16.msra.mxu0 %v23780_v20  ;;  %v12600_v19 = vpop.f32.mrb[34].mxu0  ;;  %v19079_v8 = vadd.f32 %v12921_v44, %v12920_v36  ;;  %v12923_v17 = vpop.f32.mrb[172].mxu1 }
 0x59c   :  { %v12601_v53 = vpop.f32.mrb[35].mxu0  ;;  %v12924_v22 = vpop.f32.mrb[173].mxu1 }
 0x59d   :  { %v5760_v50 = vadd.f32 %v12599_v61, %v18870_v0  ;;  %v12602_v57 = vadd.f32 %v12601_v53, %v12600_v19  ;;  %v14403_v0 = vld [vmem:[%s22037_s6 + $0x610] ss:$144 sps:$4 sm:$0xff]   ;;  %v12926_v20 = vpop.f32.mrb[174].mxu1 }
 0x59e   :  { %6364 = vmatmul.mubr.bf16.gmra.mrb[140].mxu0 %v14397_v54  ;;  %v19091_v54 = vadd.f32 %v12924_v22, %v12923_v17 }
 0x59f   :  { %v5763_v48 = vadd.f32 %v12602_v57, %v18879_v38  ;;  %6371 = vmatprep.mubr.bf16.mxu0 %v14405_v30  ;;  %v19083_v10 = vadd.f32 %v18614_v18, %v5760_v50  ;;  %v14411_v18 = vld [vmem:[%s22037_s6 + $0x734] ss:$144 sps:$4 sm:$0xff]   ;;  %v12927_v30 = vpop.f32.mrb[175].mxu1 }
 0x5a0   :  { %v19097_v53 = vadd.f32 %v12927_v30, %v12926_v20  ;;  %v12929_v57 = vpop.f32.mrb[176].mxu1 }
 0x5a1   :  { %v12603_v11 = vpop.f32.mrb[36].mxu0  ;;  %v19086_v42 = vadd.f32 %v18632_v9, %v5763_v48  ;;  %v12930_v17 = vpop.f32.mrb[177].mxu1 }
 0x5a2   :  { %v12604_v52 = vpop.f32.mrb[37].mxu0  ;;  %v19109_v22 = vadd.f32 %v12930_v17, %v12929_v57 }
 0x5a3   :  { %v12605_v61 = vadd.f32 %v12604_v52, %v12603_v11  ;;  %v12606_v27 = vpop.f32.mrb[38].mxu0 }
 0x5a4   :  { %v12607_v38 = vpop.f32.mrb[39].mxu0 }
 0x5a5   :  { %v5768_v19 = vadd.f32 %v12605_v61, %v18894_v51  ;;  %v12608_v9 = vadd.f32 %v12607_v38, %v12606_v27  ;;  %v14409_v51 = vld [vmem:[%s22037_s6 + $0x730] ss:$144 sps:$4 sm:$0xff]   ;;  %v12932_v61 = vpop.f32.mrb[178].mxu1 }
 0x5a6   :  { %6372 = vmatmul.mubr.bf16.gmra.mrb[144].mxu0 %v14403_v0 }
 0x5a7   :  { %v5771_v36 = vadd.f32 %v12608_v9, %v18903_v1  ;;  %6379 = vmatprep.mubr.bf16.mxu0 %v14411_v18  ;;  %v19101_v50 = vadd.f32 %v18644_v35, %v5768_v19  ;;  %v14417_v35 = vld [vmem:[%s22037_s6 + $0x854] ss:$144 sps:$4 sm:$0xff]   ;;  %v12933_v18 = vpop.f32.mrb[179].mxu1 }
 0x5a8   :  { %v19115_v38 = vadd.f32 %v12933_v18, %v12932_v61  ;;  %v12935_v9 = vpop.f32.mrb[180].mxu1 }
 0x5a9   :  { %v12609_v44 = vpop.f32.mrb[40].mxu0  ;;  %v19104_v48 = vadd.f32 %v18656_v4, %v5771_v36  ;;  %v12936_v57 = vpop.f32.mrb[181].mxu1 }
 0x5aa   :  { %v12610_v11 = vpop.f32.mrb[41].mxu0  ;;  %v19127_v17 = vadd.f32 %v12936_v57, %v12935_v9 }
 0x5ab   :  { %v12611_v52 = vadd.f32 %v12610_v11, %v12609_v44  ;;  %v12612_v0 = vpop.f32.mrb[42].mxu0 }
 0x5ac   :  { %v12613_v1 = vpop.f32.mrb[43].mxu0 }
 0x5ad   :  { %v5776_v27 = vadd.f32 %v12611_v52, %v18918_v46  ;;  %v12614_v4 = vadd.f32 %v12613_v1, %v12612_v0  ;;  %v14415_v46 = vld [vmem:[%s22037_s6 + $0x850] ss:$144 sps:$4 sm:$0xff]   ;;  %v12938_v52 = vpop.f32.mrb[182].mxu1 }
 0x5ae   :  { %6380 = vmatmul.mubr.bf16.gmra.mrb[148].mxu0 %v14409_v51 }
 0x5af   :  { %v5779_v20 = vadd.f32 %v12614_v4, %v18927_v41  ;;  %6387 = vmatprep.mubr.bf16.mxu0 %v14417_v35  ;;  %v19119_v19 = vadd.f32 %v18668_v56, %v5776_v27  ;;  %v14423_v56 = vld [vmem:[%s22037_s6 + $0x84] ss:$144 sps:$4 sm:$0xff]   ;;  %v12939_v35 = vpop.f32.mrb[183].mxu1 }
 0x5b0   :  { %v19133_v1 = vadd.f32 %v12939_v35, %v12938_v52  ;;  %v12941_v4 = vpop.f32.mrb[184].mxu1 }
 0x5b1   :  { %v12615_v30 = vpop.f32.mrb[44].mxu0  ;;  %v19122_v36 = vadd.f32 %v18680_v63, %v5779_v20  ;;  %v12942_v9 = vpop.f32.mrb[185].mxu1 }
 0x5b2   :  { %v12616_v44 = vpop.f32.mrb[45].mxu0  ;;  %v19145_v57 = vadd.f32 %v12942_v9, %v12941_v4 }
 0x5b3   :  { %v12617_v11 = vadd.f32 %v12616_v44, %v12615_v30  ;;  %v12618_v51 = vpop.f32.mrb[46].mxu0 }
 0x5b4   :  { %v12619_v41 = vpop.f32.mrb[47].mxu0 }
 0x5b5   :  { %v5784_v0 = vadd.f32 %v12617_v11, %v18942_v55  ;;  %v12620_v63 = vadd.f32 %v12619_v41, %v12618_v51  ;;  %v14421_v55 = vld [vmem:[%s22037_s6 + $0x80] ss:$144 sps:$4 sm:$0xff]   ;;  %v12944_v11 = vpop.f32.mrb[186].mxu1 }
 0x5b6   :  { %6388 = vmatmul.mubr.bf16.gmra.mrb[152].mxu0 %v14415_v46 }
 0x5b7   :  { %v5787_v61 = vadd.f32 %v12620_v63, %v18951_v40  ;;  %6525 = vmatprep.mubr.bf16.mxu0 %v14423_v56  ;;  %v19137_v27 = vadd.f32 %v18692_v47, %v5784_v0  ;;  %v14426_v47 = vld [vmem:[%s22037_s6 + $0x1a4] ss:$144 sps:$4 sm:$0xff]   ;;  %v12945_v56 = vpop.f32.mrb[187].mxu1 }
 0x5b8   :  { %v19151_v41 = vadd.f32 %v12945_v56, %v12944_v11  ;;  %v12947_v63 = vpop.f32.mrb[188].mxu1 }
 0x5b9   :  { %v12621_v18 = vpop.f32.mrb[48].mxu0  ;;  %v19140_v20 = vadd.f32 %v18704_v23, %v5787_v61  ;;  %v12948_v4 = vpop.f32.mrb[189].mxu1 }
 0x5ba   :  { %v12622_v30 = vpop.f32.mrb[49].mxu0  ;;  %v19163_v9 = vadd.f32 %v12948_v4, %v12947_v63 }
 0x5bb   :  { %v12623_v44 = vadd.f32 %v12622_v30, %v12621_v18  ;;  %v12624_v46 = vpop.f32.mrb[50].mxu0 }
 0x5bc   :  { %v12625_v40 = vpop.f32.mrb[51].mxu0 }
 0x5bd   :  { %v5792_v51 = vadd.f32 %v12623_v44, %v18969_v29  ;;  %v12626_v23 = vadd.f32 %v12625_v40, %v12624_v46  ;;  %v14424_v29 = vld [vmem:[%s22037_s6 + $0x1a0] ss:$144 sps:$4 sm:$0xff]   ;;  %v12950_v44 = vpop.f32.mrb[190].mxu1 }
 0x5be   :  { %6526 = vmatmul.mubr.bf16.vlgmr.msra.gmra.mrb[156].mxu0 %v14421_v55 }
 0x5bf   :  { %v5795_v52 = vadd.f32 %v12626_v23, %v18975_v13  ;;  %6533 = vmatprep.mubr.bf16.mxu0 %v14426_v47  ;;  %v19155_v0 = vadd.f32 %v18716_v37, %v5792_v51  ;;  %v14432_v37 = vld [vmem:[%s22037_s6 + $0x2c4] ss:$144 sps:$4 sm:$0xff]   ;;  %v12951_v47 = vpop.f32.mrb[191].mxu1  ;;  %v23781_v51 = vld [vmem:[#allocation15_spill] sm:$0xff] }
 0x5c0   :  { %v19169_v40 = vadd.f32 %v12951_v47, %v12950_v44  ;;  %v12953_v56 = vpop.f32.mrb[192].mxu1 }
 0x5c1   :  { %v12627_v35 = vpop.f32.mrb[52].mxu0  ;;  %v19158_v61 = vadd.f32 %v18728_v43, %v5795_v52 }
 0x5c2   :  { %v12628_v18 = vpop.f32.mrb[53].mxu0 }
 0x5c3   :  { %v12629_v30 = vadd.f32 %v12628_v18, %v12627_v35  ;;  %v12630_v55 = vpop.f32.mrb[54].mxu0  ;;  %v12954_v35 = vpop.f32.mrb[193].mxu1 }
 0x5c4   :  { %v12631_v13 = vpop.f32.mrb[55].mxu0  ;;  %v19181_v18 = vadd.f32 %v12954_v35, %v12953_v56 }
 0x5c5   :  { %v5800_v46 = vadd.f32 %v12629_v30, %v18999_v59  ;;  %v12632_v43 = vadd.f32 %v12631_v13, %v12630_v55  ;;  %v14430_v59 = vld [vmem:[%s22037_s6 + $0x2c0] ss:$144 sps:$4 sm:$0xff]  }
 0x5c6   :  { %6534 = vmatmul.mubr.bf16.gmra.mrb[160].mxu0 %v14424_v29 }
 0x5c7   :  { %v5803_v11 = vadd.f32 %v12632_v43, %v19005_v16  ;;  %6541 = vmatprep.mubr.bf16.mxu0 %v14432_v37  ;;  %v19173_v23 = vadd.f32 %v23781_v51, %v5800_v46  ;;  %v14438_v16 = vld [vmem:[%s22037_s6 + $0x3e4] ss:$144 sps:$4 sm:$0xff]   ;;  %v12956_v37 = vpop.f32.mrb[194].mxu1 }
 0x5c8   :  { %v12957_v44 = vpop.f32.mrb[195].mxu1 }
 0x5c9   :  { %v12633_v52 = vpop.f32.mrb[56].mxu0  ;;  %v19176_v63 = vadd.f32 %v18758_v28, %v5803_v11  ;;  %v19187_v46 = vadd.f32 %v12957_v44, %v12956_v37  ;;  %v13039_v11 = vpop.f32.mrb[196].mxu1 }
 0x5ca   :  { %v12634_v4 = vpop.f32.mrb[57].mxu0 }
 0x5cb   :  { %v12635_v29 = vadd.f32 %v12634_v4, %v12633_v52  ;;  %v12636_v30 = vpop.f32.mrb[58].mxu0  ;;  %v13040_v52 = vpop.f32.mrb[197].mxu1 }
 0x5cc   :  { %v12637_v55 = vpop.f32.mrb[59].mxu0  ;;  %v19199_v4 = vadd.f32 %v13040_v52, %v13039_v11 }
 0x5cd   :  { %v5808_v13 = vadd.f32 %v12635_v29, %v19029_v3  ;;  %v12638_v28 = vadd.f32 %v12637_v55, %v12636_v30  ;;  %v14436_v3 = vld [vmem:[%s22037_s6 + $0x3e0] ss:$144 sps:$4 sm:$0xff]   ;;  %v13042_v30 = vpop.f32.mrb[198].mxu1 }
 0x5ce   :  { %6542 = vmatmul.mubr.bf16.gmra.mrb[164].mxu0 %v14430_v59  ;;  %v13043_v55 = vpop.f32.mrb[199].mxu1 }
 0x5cf   :  { %v5811_v43 = vadd.f32 %v12638_v28, %v19035_v62  ;;  %6549 = vmatprep.mubr.bf16.mxu0 %v14438_v16  ;;  %v19191_v47 = vadd.f32 %v18782_v33, %v5808_v13  ;;  %v14444_v33 = vld [vmem:[%s22037_s6 + $0x504] ss:$144 sps:$4 sm:$0xff]   ;;  %v19205_v37 = vadd.f32 %v13043_v55, %v13042_v30  ;;  %v14448_v55 = vld [vmem:[%s22037_s6 + $0x620] ss:$144 sps:$4 sm:$0xff]  }
 0x5d1   :  { %v12719_v51 = vpop.f32.mrb[60].mxu0  ;;  %v19194_v56 = vadd.f32 %v18794_v12, %v5811_v43 }
 0x5d2   :  { %v12720_v35 = vpop.f32.mrb[61].mxu0 }
 0x5d3   :  { %v12721_v59 = vadd.f32 %v12720_v35, %v12719_v51  ;;  %v12722_v29 = vpop.f32.mrb[62].mxu0  ;;  %v14450_v35 = vld [vmem:[%s22037_s6 + $0x624] ss:$144 sps:$4 sm:$0xff]  }
 0x5d4   :  { %v12723_v62 = vpop.f32.mrb[63].mxu0 }
 0x5d5   :  { %v5946_v16 = vadd.f32 %v12721_v59, %v19059_v49  ;;  %v12724_v12 = vadd.f32 %v12723_v62, %v12722_v29  ;;  %v14442_v49 = vld [vmem:[%s22037_s6 + $0x500] ss:$144 sps:$4 sm:$0xff]  }
 0x5d6   :  { %6550 = vmatmul.mubr.bf16.gmra.mrb[168].mxu0 %v14436_v3 }
 0x5d7   :  { %v5949_v13 = vadd.f32 %v12724_v12, %v19065_v39  ;;  %6557 = vmatprep.mubr.bf16.mxu0 %v14444_v33  ;;  %v19209_v28 = vadd.f32 %v18818_v26, %v5946_v16 }
 0x5d8   :  { %v13045_v39 = vpop.f32.mrb[200].mxu1 }
 0x5d9   :  { %v12725_v44 = vpop.f32.mrb[64].mxu0  ;;  %v19212_v43 = vadd.f32 %v18830_v7, %v5949_v13  ;;  %v13046_v59 = vpop.f32.mrb[201].mxu1 }
 0x5da   :  { %v12726_v11 = vpop.f32.mrb[65].mxu0  ;;  %v19221_v33 = vadd.f32 %v13046_v59, %v13045_v39  ;;  %v13048_v7 = vpop.f32.mrb[202].mxu1 }
 0x5db   :  { %v12727_v51 = vadd.f32 %v12726_v11, %v12725_v44  ;;  %v12728_v52 = vpop.f32.mrb[66].mxu0  ;;  %v13049_v62 = vpop.f32.mrb[203].mxu1  ;;  %v14456_v44 = vld [vmem:[%s22037_s6 + $0x744] ss:$144 sps:$4 sm:$0xff]  }
 0x5dc   :  { %v12729_v3 = vpop.f32.mrb[67].mxu0  ;;  %v19227_v12 = vadd.f32 %v13049_v62, %v13048_v7 }
 0x5dd   :  { %v5954_v26 = vadd.f32 %v12727_v51, %v19083_v10  ;;  %v12730_v29 = vadd.f32 %v12729_v3, %v12728_v52  ;;  %v14466_v10 = vld [vmem:[%s22039_s8] ss:$8 sps:$4 sm:$0xff]  }
 0x5de   :  { %6558 = vmatmul.mubr.bf16.gmra.mrb[172].mxu0 %v14442_v49 }
 0x5df   :  { %v5957_v30 = vadd.f32 %v12730_v29, %v19086_v42  ;;  %6565 = vmatprep.mubr.bf16.mxu0 %v14450_v35  ;;  %v19225_v16 = vadd.f32 %v18854_v21, %v5954_v26  ;;  %v14468_v21 = vld [vmem:[%s22039_s8 + $0x4] ss:$8 sps:$4 sm:$0xff]  }
 0x5e0   :  { %6825 = vmatprep.subr.bf16.mxu0 %v14468_v21 }
 0x5e1   :  { %v12731_v13 = vpop.f32.mrb[68].mxu0  ;;  %v19239_v42 = vadd.f32 %v18866_v34, %v5957_v30  ;;  %6826 = vmatpush1.bf16.msra.mxu0 %v14466_v10  ;;  %v14469_v10 = vld [vmem:[%s22039_s8 + $0x10] ss:$8 sps:$4 sm:$0xff]  }
 0x5e2   :  { %v12732_v11 = vpop.f32.mrb[69].mxu0  ;;  %v13051_v52 = vpop.f32.mrb[204].mxu1 }
 0x5e3   :  { %v12733_v49 = vadd.f32 %v12732_v11, %v12731_v13  ;;  %v12734_v51 = vpop.f32.mrb[70].mxu0  ;;  %v13052_v39 = vpop.f32.mrb[205].mxu1  ;;  %v14462_v11 = vld [vmem:[%s22037_s6 + $0x864] ss:$144 sps:$4 sm:$0xff]  }
 0x5e4   :  { %v12735_v35 = vpop.f32.mrb[71].mxu0  ;;  %v19245_v26 = vadd.f32 %v13052_v39, %v13051_v52  ;;  %v13054_v29 = vpop.f32.mrb[206].mxu1 }
 0x5e5   :  { %v5962_v3 = vadd.f32 %v12733_v49, %v19101_v50  ;;  %v12736_v59 = vadd.f32 %v12735_v35, %v12734_v51  ;;  %v13055_v34 = vpop.f32.mrb[207].mxu1  ;;  %v14471_v50 = vld [vmem:[%s22039_s8 + $0x14] ss:$8 sps:$4 sm:$0xff]  }
 0x5e6   :  { %6566 = vmatmul.mubr.bf16.gmra.mrb[176].mxu0 %v14448_v55  ;;  %v19251_v30 = vadd.f32 %v13055_v34, %v13054_v29  ;;  %6827 = vmatprep.subr.bf16.mxu0 %v14471_v50 }
 0x5e7   :  { %v5965_v7 = vadd.f32 %v12736_v59, %v19104_v48  ;;  %6573 = vmatprep.mubr.bf16.mxu0 %v14456_v44  ;;  %v19249_v62 = vadd.f32 %v18884_v31, %v5962_v3  ;;  %v14454_v31 = vld [vmem:[%s22037_s6 + $0x740] ss:$144 sps:$4 sm:$0xff]   ;;  %6828 = vmatpush1.bf16.msra.mxu0 %v14469_v10 }
 0x5e8   :  { %v14472_v10 = vld [vmem:[%s22039_s8 + $0x20] ss:$8 sps:$4 sm:$0xff]  }
 0x5e9   :  { %v12737_v13 = vpop.f32.mrb[72].mxu0  ;;  %v19260_v55 = vadd.f32 %v18890_v25, %v5965_v7 }
 0x5ea   :  { %v12738_v48 = vpop.f32.mrb[73].mxu0  ;;  %v13057_v49 = vpop.f32.mrb[208].mxu1 }
 0x5eb   :  { %v12739_v44 = vadd.f32 %v12738_v48, %v12737_v13  ;;  %v12740_v21 = vpop.f32.mrb[74].mxu0  ;;  %v13058_v52 = vpop.f32.mrb[209].mxu1 }
 0x5ec   :  { %v12741_v51 = vpop.f32.mrb[75].mxu0  ;;  %v19269_v39 = vadd.f32 %v13058_v52, %v13057_v49  ;;  %v13060_v3 = vpop.f32.mrb[210].mxu1 }
 0x5ed   :  { %v5970_v35 = vadd.f32 %v12739_v44, %v19119_v19  ;;  %v12742_v25 = vadd.f32 %v12741_v51, %v12740_v21  ;;  %v13061_v59 = vpop.f32.mrb[211].mxu1  ;;  %v14474_v19 = vld [vmem:[%s22039_s8 + $0x24] ss:$8 sps:$4 sm:$0xff]  }
 0x5ee   :  { %6574 = vmatmul.mubr.bf16.gmra.mrb[180].mxu0 %v14454_v31  ;;  %v19275_v7 = vadd.f32 %v13061_v59, %v13060_v3  ;;  %6829 = vmatprep.subr.bf16.mxu0 %v14474_v19 }
 0x5ef   :  { %v5973_v29 = vadd.f32 %v12742_v25, %v19122_v36  ;;  %6581 = vmatprep.mubr.bf16.mxu0 %v14462_v11  ;;  %v19273_v34 = vadd.f32 %v18908_v14, %v5970_v35  ;;  %v14460_v14 = vld [vmem:[%s22037_s6 + $0x860] ss:$144 sps:$4 sm:$0xff]   ;;  %6830 = vmatpush1.bf16.msra.mxu0 %v14472_v10  ;;  %v23782_v10 = vmov 0  }
 0x5f1   :  { %v12743_v50 = vpop.f32.mrb[76].mxu0  ;;  %v19284_v13 = vadd.f32 %v18914_v24, %v5973_v29  ;;  %v14475_v29 = vld [vmem:[%s22039_s8 + $0x30] ss:$8 sps:$4 sm:$0xff]  }
 0x5f2   :  { %v12744_v36 = vpop.f32.mrb[77].mxu0  ;;  %v13063_v44 = vpop.f32.mrb[212].mxu1 }
 0x5f3   :  { %v12745_v48 = vadd.f32 %v12744_v36, %v12743_v50  ;;  %v12746_v31 = vpop.f32.mrb[78].mxu0  ;;  %v13064_v11 = vpop.f32.mrb[213].mxu1 }
 0x5f4   :  { %v12747_v21 = vpop.f32.mrb[79].mxu0  ;;  %v19290_v52 = vadd.f32 %v13064_v11, %v13063_v44  ;;  %v13066_v35 = vpop.f32.mrb[214].mxu1 }
 0x5f5   :  { %v5978_v49 = vadd.f32 %v12745_v48, %v19137_v27  ;;  %v12748_v51 = vadd.f32 %v12747_v21, %v12746_v31  ;;  %v13067_v24 = vpop.f32.mrb[215].mxu1  ;;  %v14477_v27 = vld [vmem:[%s22039_s8 + $0x34] ss:$8 sps:$4 sm:$0xff]  }
 0x5f6   :  { %6582 = vmatmul.mubr.bf16.gmra.mrb[184].mxu0 %v14460_v14  ;;  %v19296_v59 = vadd.f32 %v13067_v24, %v13066_v35  ;;  %6831 = vmatprep.subr.bf16.mxu0 %v14477_v27  ;;  %v23783_v24 = vld [vmem:[#allocation171_spill] sm:$0xff] }
 0x5f7   :  { %v5981_v25 = vadd.f32 %v12748_v51, %v19140_v20  ;;  %v19294_v3 = vadd.f32 %v18932_v45, %v5978_v49  ;;  %6857 = vmatprep.mubr.bf16.mxu0 %v23782_v10  ;;  %6832 = vmatpush1.bf16.msra.mxu0 %v14475_v29  ;;  %v14478_v29 = vld [vmem:[%s22039_s8 + $0x40] ss:$8 sps:$4 sm:$0xff]  }
 0x5f9   :  { %v12749_v19 = vpop.f32.mrb[80].mxu0  ;;  %v19306_v50 = vadd.f32 %v18938_v58, %v5981_v25 }
 0x5fa   :  { %v12750_v20 = vpop.f32.mrb[81].mxu0  ;;  %v13069_v14 = vpop.f32.mrb[216].mxu1 }
 0x5fb   :  { %v12751_v45 = vadd.f32 %v12750_v20, %v12749_v19  ;;  %v12752_v36 = vpop.f32.mrb[82].mxu0  ;;  %v13070_v31 = vpop.f32.mrb[217].mxu1 }
 0x5fc   :  { %v12753_v48 = vpop.f32.mrb[83].mxu0  ;;  %v19309_v11 = vadd.f32 %v13070_v31, %v13069_v14  ;;  %v13072_v49 = vpop.f32.mrb[218].mxu1 }
 0x5fd   :  { %v5986_v44 = vadd.f32 %v12751_v45, %v19155_v0  ;;  %v12754_v21 = vadd.f32 %v12753_v48, %v12752_v36  ;;  %v13073_v51 = vpop.f32.mrb[219].mxu1  ;;  %v14480_v0 = vld [vmem:[%s22039_s8 + $0x44] ss:$8 sps:$4 sm:$0xff]  }
 0x5fe   :  { %v19315_v25 = vadd.f32 %v13073_v51, %v13072_v49  ;;  %6833 = vmatprep.subr.bf16.mxu0 %v14480_v0 }
 0x5ff   :  { %v5989_v35 = vadd.f32 %v12754_v21, %v19158_v61  ;;  %v19313_v58 = vadd.f32 %v23783_v24, %v5986_v44  ;;  %6834 = vmatpush1.bf16.msra.mxu0 %v14478_v29  ;;  %v14481_v29 = vld [vmem:[%s22039_s8 + $0x50] ss:$8 sps:$4 sm:$0xff]  }
 0x601   :  { %v12755_v27 = vpop.f32.mrb[84].mxu0  ;;  %v19324_v19 = vadd.f32 %v18962_v60, %v5989_v35 }
 0x602   :  { %v12756_v20 = vpop.f32.mrb[85].mxu0  ;;  %v13075_v36 = vpop.f32.mrb[220].mxu1 }
 0x603   :  { %v12757_v61 = vadd.f32 %v12756_v20, %v12755_v27  ;;  %v12758_v45 = vpop.f32.mrb[86].mxu0  ;;  %v13076_v48 = vpop.f32.mrb[221].mxu1 }
 0x604   :  { %v12759_v14 = vpop.f32.mrb[87].mxu0  ;;  %v19327_v21 = vadd.f32 %v13076_v48, %v13075_v36  ;;  %v13078_v49 = vpop.f32.mrb[222].mxu1 }
 0x605   :  { %v5994_v31 = vadd.f32 %v12757_v61, %v19173_v23  ;;  %v12760_v44 = vadd.f32 %v12759_v14, %v12758_v45  ;;  %v13079_v51 = vpop.f32.mrb[223].mxu1  ;;  %v14483_v23 = vld [vmem:[%s22039_s8 + $0x54] ss:$8 sps:$4 sm:$0xff]  }
 0x606   :  { %v19333_v35 = vadd.f32 %v13079_v51, %v13078_v49  ;;  %6835 = vmatprep.subr.bf16.mxu0 %v14483_v23 }
 0x607   :  { %v5997_v24 = vadd.f32 %v12760_v44, %v19176_v63  ;;  %v19331_v60 = vadd.f32 %v18980_v2, %v5994_v31  ;;  %6836 = vmatpush1.bf16.msra.mxu0 %v14481_v29  ;;  %v14484_v29 = vld [vmem:[%s22039_s8 + $0x60] ss:$8 sps:$4 sm:$0xff]  }
 0x609   :  { %v12761_v0 = vpop.f32.mrb[88].mxu0  ;;  %v19342_v27 = vadd.f32 %v18992_v15, %v5997_v24 }
 0x60a   :  { %v12762_v20 = vpop.f32.mrb[89].mxu0  ;;  %v13081_v61 = vpop.f32.mrb[224].mxu1 }
 0x60b   :  { %v12763_v63 = vadd.f32 %v12762_v20, %v12761_v0  ;;  %v12764_v2 = vpop.f32.mrb[90].mxu0  ;;  %v13082_v36 = vpop.f32.mrb[225].mxu1  ;;  %v23786_v0 = vld [vmem:[#allocation167_spill] sm:$0xff] }
 0x60c   :  { %v12765_v45 = vpop.f32.mrb[91].mxu0  ;;  %v19345_v31 = vadd.f32 %v13082_v36, %v13081_v61  ;;  %v13084_v44 = vpop.f32.mrb[226].mxu1 }
 0x60d   :  { %v6002_v14 = vadd.f32 %v12763_v63, %v19191_v47  ;;  %v12766_v48 = vadd.f32 %v12765_v45, %v12764_v2  ;;  %v13085_v49 = vpop.f32.mrb[227].mxu1  ;;  %v14486_v47 = vld [vmem:[%s22039_s8 + $0x64] ss:$8 sps:$4 sm:$0xff]  }
 0x60e   :  { %23784 = vst [vmem:[#allocation17_spill] sm:$0xff] %v19345_v31  ;;  %v19351_v24 = vadd.f32 %v13085_v49, %v13084_v44  ;;  %6837 = vmatprep.subr.bf16.mxu0 %v14486_v47 }
 0x60f   :  { %v6005_v51 = vadd.f32 %v12766_v48, %v19194_v56  ;;  %v19349_v15 = vadd.f32 %v19010_v6, %v6002_v14  ;;  %6838 = vmatpush1.bf16.msra.mxu0 %v14484_v29 }
 0x610   :  { %23785 = vst [vmem:[#allocation4_spill] sm:$0xff] %v19351_v24  ;;  %v23787_v24 = vld [vmem:[#allocation198_spill] sm:$0xff] }
 0x611   :  { %v12847_v23 = vpop.f32.mrb[92].mxu0  ;;  %v19360_v20 = vadd.f32 %v23786_v0, %v6005_v51 }
 0x612   :  { %v12848_v63 = vpop.f32.mrb[93].mxu0 }
 0x613   :  { %v12849_v56 = vadd.f32 %v12848_v63, %v12847_v23  ;;  %v12850_v6 = vpop.f32.mrb[94].mxu0  ;;  %v13167_v2 = vpop.f32.mrb[228].mxu1 }
 0x614   :  { %v12851_v61 = vpop.f32.mrb[95].mxu0  ;;  %v13168_v45 = vpop.f32.mrb[229].mxu1 }
 0x615   :  { %v6140_v36 = vadd.f32 %v12849_v56, %v19209_v28  ;;  %v12852_v14 = vadd.f32 %v12851_v61, %v12850_v6  ;;  %v19363_v48 = vadd.f32 %v13168_v45, %v13167_v2  ;;  %v13170_v44 = vpop.f32.mrb[230].mxu1 }
 0x616   :  { %v13171_v49 = vpop.f32.mrb[231].mxu1 }
 0x617   :  { %v6143_v10 = vadd.f32 %v12852_v14, %v19212_v43  ;;  %v19367_v51 = vadd.f32 %v23787_v24, %v6140_v36  ;;  %v19369_v47 = vadd.f32 %v13171_v49, %v13170_v44  ;;  %v14489_v43 = vld [vmem:[%s22039_s8 + $0x74] ss:$8 sps:$4 sm:$0xff]   ;;  %v14487_v24 = vld [vmem:[%s22039_s8 + $0x70] ss:$8 sps:$4 sm:$0xff]  }
 0x618   :  { %6839 = vmatprep.subr.bf16.mxu0 %v14489_v43 }
 0x619   :  { %v12853_v29 = vpop.f32.mrb[96].mxu0  ;;  %v19372_v23 = vadd.f32 %v19052_v5, %v6143_v10  ;;  %6840 = vmatpush1.bf16.msra.mxu0 %v14487_v24 }
 0x61a   :  { %v12854_v0 = vpop.f32.mrb[97].mxu0 }
 0x61b   :  { %v12855_v63 = vadd.f32 %v12854_v0, %v12853_v29  ;;  %v12856_v31 = vpop.f32.mrb[98].mxu0  ;;  %v13173_v2 = vpop.f32.mrb[232].mxu1 }
 0x61c   :  { %v12857_v28 = vpop.f32.mrb[99].mxu0  ;;  %v13174_v61 = vpop.f32.mrb[233].mxu1 }
 0x61d   :  { %v6148_v56 = vadd.f32 %v12855_v63, %v19225_v16  ;;  %v12858_v6 = vadd.f32 %v12857_v28, %v12856_v31  ;;  %v19385_v45 = vadd.f32 %v13174_v61, %v13173_v2  ;;  %v13176_v16 = vpop.f32.mrb[234].mxu1 }
 0x61e   :  { %v13177_v31 = vpop.f32.mrb[235].mxu1 }
 0x61f   :  { %v6151_v5 = vadd.f32 %v12858_v6, %v19239_v42  ;;  %v19383_v10 = vadd.f32 %v19070_v32, %v6148_v56  ;;  %v19390_v44 = vadd.f32 %v13177_v31, %v13176_v16 }
 0x621   :  { %v12859_v36 = vpop.f32.mrb[100].mxu0  ;;  %v19388_v14 = vadd.f32 %v19079_v8, %v6151_v5 }
 0x622   :  { %v12860_v49 = vpop.f32.mrb[101].mxu0 }
 0x623   :  { %v12861_v29 = vadd.f32 %v12860_v49, %v12859_v36  ;;  %v12862_v0 = vpop.f32.mrb[102].mxu0  ;;  %v13179_v28 = vpop.f32.mrb[236].mxu1 }
 0x624   :  { %v12863_v63 = vpop.f32.mrb[103].mxu0  ;;  %v13180_v56 = vpop.f32.mrb[237].mxu1 }
 0x625   :  { %v6156_v42 = vadd.f32 %v12861_v29, %v19249_v62  ;;  %v12864_v32 = vadd.f32 %v12863_v63, %v12862_v0  ;;  %v19397_v2 = vadd.f32 %v13180_v56, %v13179_v28  ;;  %v13182_v8 = vpop.f32.mrb[238].mxu1 }
 0x626   :  { %v13183_v24 = vpop.f32.mrb[239].mxu1 }
 0x627   :  { %v6159_v6 = vadd.f32 %v12864_v32, %v19260_v55  ;;  %v19395_v43 = vadd.f32 %v19091_v54, %v6156_v42  ;;  %v19402_v16 = vadd.f32 %v13183_v24, %v13182_v8 }
 0x629   :  { %v12865_v61 = vpop.f32.mrb[104].mxu0  ;;  %v19400_v5 = vadd.f32 %v19097_v53, %v6159_v6 }
 0x62a   :  { %v12866_v31 = vpop.f32.mrb[105].mxu0 }
 0x62b   :  { %v12867_v62 = vadd.f32 %v12866_v31, %v12865_v61  ;;  %v12868_v36 = vpop.f32.mrb[106].mxu0  ;;  %v13185_v0 = vpop.f32.mrb[240].mxu1 }
 0x62c   :  { %v12869_v49 = vpop.f32.mrb[107].mxu0  ;;  %v13186_v54 = vpop.f32.mrb[241].mxu1 }
 0x62d   :  { %v6164_v29 = vadd.f32 %v12867_v62, %v19273_v34  ;;  %v12870_v55 = vadd.f32 %v12869_v49, %v12868_v36  ;;  %v19409_v32 = vadd.f32 %v13186_v54, %v13185_v0  ;;  %v13188_v53 = vpop.f32.mrb[242].mxu1 }
 0x62e   :  { %v13189_v28 = vpop.f32.mrb[243].mxu1 }
 0x62f   :  { %v6167_v63 = vadd.f32 %v12870_v55, %v19284_v13  ;;  %v19407_v42 = vadd.f32 %v19109_v22, %v6164_v29  ;;  %v19414_v8 = vadd.f32 %v13189_v28, %v13188_v53 }
 0x631   :  { %v12871_v56 = vpop.f32.mrb[108].mxu0  ;;  %v19412_v6 = vadd.f32 %v19115_v38, %v6167_v63 }
 0x632   :  { %v12872_v24 = vpop.f32.mrb[109].mxu0 }
 0x633   :  { %v12873_v34 = vadd.f32 %v12872_v24, %v12871_v56  ;;  %v12874_v61 = vpop.f32.mrb[110].mxu0  ;;  %v13191_v36 = vpop.f32.mrb[244].mxu1 }
 0x634   :  { %v12875_v31 = vpop.f32.mrb[111].mxu0  ;;  %v13192_v22 = vpop.f32.mrb[245].mxu1 }
 0x635   :  { %v6172_v62 = vadd.f32 %v12873_v34, %v19294_v3  ;;  %v12876_v13 = vadd.f32 %v12875_v31, %v12874_v61  ;;  %v19421_v55 = vadd.f32 %v13192_v22, %v13191_v36  ;;  %v13194_v38 = vpop.f32.mrb[246].mxu1 }
 0x636   :  { %v13195_v0 = vpop.f32.mrb[247].mxu1 }
 0x637   :  { %v6175_v49 = vadd.f32 %v12876_v13, %v19306_v50  ;;  %v19419_v29 = vadd.f32 %v19127_v17, %v6172_v62  ;;  %v19426_v53 = vadd.f32 %v13195_v0, %v13194_v38 }
 0x639   :  { %v12877_v54 = vpop.f32.mrb[112].mxu0  ;;  %v19424_v63 = vadd.f32 %v19133_v1, %v6175_v49 }
 0x63a   :  { %v12878_v28 = vpop.f32.mrb[113].mxu0 }
 0x63b   :  { %v12879_v3 = vadd.f32 %v12878_v28, %v12877_v54  ;;  %v12880_v56 = vpop.f32.mrb[114].mxu0  ;;  %v13197_v61 = vpop.f32.mrb[248].mxu1 }
 0x63c   :  { %v12881_v24 = vpop.f32.mrb[115].mxu0  ;;  %v13198_v17 = vpop.f32.mrb[249].mxu1 }
 0x63d   :  { %v6180_v34 = vadd.f32 %v12879_v3, %v19313_v58  ;;  %v12882_v50 = vadd.f32 %v12881_v24, %v12880_v56  ;;  %v19433_v13 = vadd.f32 %v13198_v17, %v13197_v61  ;;  %v13200_v1 = vpop.f32.mrb[250].mxu1 }
 0x63e   :  { %v13201_v36 = vpop.f32.mrb[251].mxu1 }
 0x63f   :  { %v6183_v31 = vadd.f32 %v12882_v50, %v19324_v19  ;;  %v19431_v62 = vadd.f32 %v19145_v57, %v6180_v34  ;;  %v19438_v38 = vadd.f32 %v13201_v36, %v13200_v1 }
 0x641   :  { %v12883_v22 = vpop.f32.mrb[116].mxu0  ;;  %v19436_v49 = vadd.f32 %v19151_v41, %v6183_v31 }
 0x642   :  { %v12884_v0 = vpop.f32.mrb[117].mxu0 }
 0x643   :  { %v12885_v58 = vadd.f32 %v12884_v0, %v12883_v22  ;;  %v12886_v54 = vpop.f32.mrb[118].mxu0  ;;  %v13203_v56 = vpop.f32.mrb[252].mxu1 }
 0x644   :  { %v12887_v28 = vpop.f32.mrb[119].mxu0  ;;  %v13204_v57 = vpop.f32.mrb[253].mxu1 }
 0x645   :  { %v6188_v3 = vadd.f32 %v12885_v58, %v19331_v60  ;;  %v12888_v19 = vadd.f32 %v12887_v28, %v12886_v54  ;;  %v19445_v50 = vadd.f32 %v13204_v57, %v13203_v56  ;;  %v13206_v41 = vpop.f32.mrb[254].mxu1 }
 0x646   :  { %v13207_v61 = vpop.f32.mrb[255].mxu1 }
 0x647   :  { %v6191_v24 = vadd.f32 %v12888_v19, %v19342_v27  ;;  %v19443_v34 = vadd.f32 %v19163_v9, %v6188_v3  ;;  %v19450_v1 = vadd.f32 %v13207_v61, %v13206_v41 }
 0x649   :  { %v12889_v17 = vpop.f32.mrb[120].mxu0  ;;  %v19448_v31 = vadd.f32 %v19169_v40, %v6191_v24 }
 0x64a   :  { %v12890_v36 = vpop.f32.mrb[121].mxu0 }
 0x64b   :  { %v12891_v60 = vadd.f32 %v12890_v36, %v12889_v17  ;;  %v12892_v22 = vpop.f32.mrb[122].mxu0  ;;  %v13209_v54 = vpop.f32.mrb[0].mxu1 }
 0x64c   :  { %v12893_v0 = vpop.f32.mrb[123].mxu0  ;;  %v13210_v9 = vpop.f32.mrb[1].mxu1 }
 0x64d   :  { %v6196_v58 = vadd.f32 %v12891_v60, %v19349_v15  ;;  %v12894_v27 = vadd.f32 %v12893_v0, %v12892_v22  ;;  %v19457_v19 = vadd.f32 %v13210_v9, %v13209_v54  ;;  %v13212_v40 = vpop.f32.mrb[2].mxu1 }
 0x64e   :  { %v13213_v56 = vpop.f32.mrb[3].mxu1 }
 0x64f   :  { %v6199_v28 = vadd.f32 %v12894_v27, %v19360_v20  ;;  %v19455_v3 = vadd.f32 %v19181_v18, %v6196_v58  ;;  %v19462_v41 = vadd.f32 %v13213_v56, %v13212_v40  ;;  %v14490_v27 = vld [vmem:[%s22040_s9] sm:$0xff]  }
 0x650   :  { %13538 = vmatprep.subr.bf16.mxu1 %v14490_v27 }
 0x651   :  { %v12975_v57 = vpop.f32.mrb[124].mxu0  ;;  %v19460_v24 = vadd.f32 %v19187_v46, %v6199_v28  ;;  %13539 = vmatpush3.bf16.msra.mxu1 %v14490_v27 }
 0x652   :  { %v12976_v61 = vpop.f32.mrb[125].mxu0 }
 0x653   :  { %v12977_v15 = vadd.f32 %v12976_v61, %v12975_v57  ;;  %v12978_v17 = vpop.f32.mrb[126].mxu0 }
 0x654   :  { %v12979_v36 = vpop.f32.mrb[127].mxu0 }
 0x655   :  { %v6334_v60 = vadd.f32 %v12977_v15, %v19367_v51  ;;  %v12980_v20 = vadd.f32 %v12979_v36, %v12978_v17  ;;  %v14491_v51 = vld [vmem:[%s22040_s9 + $0x8] sm:$0xff]  }
 0x656   :  { %13540 = vmatprep.subr.bf16.mxu1 %v14491_v51 }
 0x657   :  { %v6337_v18 = vadd.f32 %v12980_v20, %v19372_v23  ;;  %v19467_v22 = vadd.f32 %v19199_v4, %v6334_v60  ;;  %13541 = vmatpush3.bf16.msra.mxu1 %v14491_v51 }
 0x659   :  { %v12981_v0 = vpop.f32.mrb[128].mxu0  ;;  %v19470_v58 = vadd.f32 %v19205_v37, %v6337_v18  ;;  %v14492_v37 = vld [vmem:[%s22040_s9 + $0x10] sm:$0xff]  }
 0x65a   :  { %v12982_v46 = vpop.f32.mrb[129].mxu0  ;;  %13542 = vmatprep.subr.bf16.mxu1 %v14492_v37 }
 0x65b   :  { %v12983_v54 = vadd.f32 %v12982_v46, %v12981_v0  ;;  %v12984_v9 = vpop.f32.mrb[130].mxu0  ;;  %13543 = vmatpush3.bf16.msra.mxu1 %v14492_v37 }
 0x65c   :  { %v12985_v28 = vpop.f32.mrb[131].mxu0 }
 0x65d   :  { %v6342_v4 = vadd.f32 %v12983_v54, %v19383_v10  ;;  %v12986_v23 = vadd.f32 %v12985_v28, %v12984_v9  ;;  %v14493_v10 = vld [vmem:[%s22040_s9 + $0x18] sm:$0xff]  }
 0x65e   :  { %13544 = vmatprep.subr.bf16.mxu1 %v14493_v10 }
 0x65f   :  { %v6345_v40 = vadd.f32 %v12986_v23, %v19388_v14  ;;  %v19484_v56 = vadd.f32 %v19221_v33, %v6342_v4  ;;  %v14494_v33 = vld [vmem:[%s22040_s9 + $0x20] sm:$0xff]   ;;  %13545 = vmatpush3.bf16.msra.mxu1 %v14493_v10 }
 0x660   :  { %13546 = vmatprep.subr.bf16.mxu1 %v14494_v33 }
 0x661   :  { %v12987_v57 = vpop.f32.mrb[132].mxu0  ;;  %v19487_v61 = vadd.f32 %v19227_v12, %v6345_v40 }
 0x662   :  { %v12988_v15 = vpop.f32.mrb[133].mxu0 }
 0x663   :  { %v12989_v17 = vadd.f32 %v12988_v15, %v12987_v57  ;;  %v12990_v36 = vpop.f32.mrb[134].mxu0  ;;  %13547 = vmatpush3.bf16.msra.mxu1 %v14494_v33 }
 0x664   :  { %v12991_v60 = vpop.f32.mrb[135].mxu0 }
 0x665   :  { %v6350_v20 = vadd.f32 %v12989_v17, %v19395_v43  ;;  %v12992_v14 = vadd.f32 %v12991_v60, %v12990_v36  ;;  %v14495_v43 = vld [vmem:[%s22040_s9 + $0x28] sm:$0xff]  }
 0x666   :  { %13548 = vmatprep.subr.bf16.mxu1 %v14495_v43 }
 0x667   :  { %v6353_v12 = vadd.f32 %v12992_v14, %v19400_v5  ;;  %v19498_v18 = vadd.f32 %v19245_v26, %v6350_v20  ;;  %13549 = vmatpush3.bf16.msra.mxu1 %v14495_v43 }
 0x669   :  { %v12993_v0 = vpop.f32.mrb[136].mxu0  ;;  %v19501_v46 = vadd.f32 %v19251_v30, %v6353_v12 }
 0x66a   :  { %v12994_v27 = vpop.f32.mrb[137].mxu0 }
 0x66b   :  { %v12995_v54 = vadd.f32 %v12994_v27, %v12993_v0  ;;  %v12996_v9 = vpop.f32.mrb[138].mxu0 }
 0x66c   :  { %v12997_v51 = vpop.f32.mrb[139].mxu0 }
 0x66d   :  { %v6358_v28 = vadd.f32 %v12995_v54, %v19407_v42  ;;  %v12998_v5 = vadd.f32 %v12997_v51, %v12996_v9 }
 0x66f   :  { %v6361_v26 = vadd.f32 %v12998_v5, %v19412_v6  ;;  %v19509_v30 = vadd.f32 %v19269_v39, %v6358_v28 }
 0x671   :  { %v12999_v4 = vpop.f32.mrb[140].mxu0  ;;  %v19512_v23 = vadd.f32 %v19275_v7, %v6361_v26 }
 0x672   :  { %v13000_v37 = vpop.f32.mrb[141].mxu0 }
 0x673   :  { %v13001_v40 = vadd.f32 %v13000_v37, %v12999_v4  ;;  %v13002_v57 = vpop.f32.mrb[142].mxu0 }
 0x674   :  { %v13003_v15 = vpop.f32.mrb[143].mxu0 }
 0x675   :  { %v6366_v10 = vadd.f32 %v13001_v40, %v19419_v29  ;;  %v13004_v42 = vadd.f32 %v13003_v15, %v13002_v57 }
 0x677   :  { %v6369_v17 = vadd.f32 %v13004_v42, %v19424_v63  ;;  %v19517_v36 = vadd.f32 %v19290_v52, %v6366_v10  ;;  %v23789_v10 = vld [vmem:[#allocation4_spill] sm:$0xff] }
 0x679   :  { %v13005_v6 = vpop.f32.mrb[144].mxu0  ;;  %v19520_v39 = vadd.f32 %v19296_v59, %v6369_v17 }
 0x67a   :  { %v13006_v60 = vpop.f32.mrb[145].mxu0 }
 0x67b   :  { %v13007_v7 = vadd.f32 %v13006_v60, %v13005_v6  ;;  %v13008_v20 = vpop.f32.mrb[146].mxu0 }
 0x67c   :  { %v13009_v14 = vpop.f32.mrb[147].mxu0 }
 0x67d   :  { %v6374_v33 = vadd.f32 %v13007_v7, %v19431_v62  ;;  %v13010_v12 = vadd.f32 %v13009_v14, %v13008_v20 }
 0x67f   :  { %v6377_v0 = vadd.f32 %v13010_v12, %v19436_v49  ;;  %v19525_v29 = vadd.f32 %v19309_v11, %v6374_v33  ;;  %v19553_v12 = vld [vmem:[%s22041_s7] sm:$0xff] }
 0x681   :  { %v13011_v63 = vpop.f32.mrb[148].mxu0  ;;  %v19528_v52 = vadd.f32 %v19315_v25, %v6377_v0  ;;  %v19558_v0 = vld [vmem:[%s22041_s7 + $0x8] sm:$0xff] }
 0x682   :  { %v13012_v27 = vpop.f32.mrb[149].mxu0 }
 0x683   :  { %v13013_v43 = vadd.f32 %v13012_v27, %v13011_v63  ;;  %v13014_v59 = vpop.f32.mrb[150].mxu0 }
 0x684   :  { %v13015_v54 = vpop.f32.mrb[151].mxu0 }
 0x685   :  { %v6382_v9 = vadd.f32 %v13013_v43, %v19443_v34  ;;  %v13016_v51 = vadd.f32 %v13015_v54, %v13014_v59  ;;  %v23788_v34 = vld [vmem:[#allocation17_spill] sm:$0xff] }
 0x687   :  { %v6385_v28 = vadd.f32 %v13016_v51, %v19448_v31  ;;  %v19533_v62 = vadd.f32 %v19327_v21, %v6382_v9 }
 0x689   :  { %v13017_v49 = vpop.f32.mrb[152].mxu0  ;;  %v19536_v11 = vadd.f32 %v19333_v35, %v6385_v28 }
 0x68a   :  { %v13018_v5 = vpop.f32.mrb[153].mxu0 }
 0x68b   :  { %v13019_v26 = vadd.f32 %v13018_v5, %v13017_v49  ;;  %v13020_v25 = vpop.f32.mrb[154].mxu0 }
 0x68c   :  { %v13021_v4 = vpop.f32.mrb[155].mxu0 }
 0x68d   :  { %v6390_v37 = vadd.f32 %v13019_v26, %v19455_v3  ;;  %v13022_v40 = vadd.f32 %v13021_v4, %v13020_v25  ;;  %v23790_v4 = vmov 0  }
 0x68f   :  { %v6393_v57 = vadd.f32 %v13022_v40, %v19460_v24  ;;  %v19541_v15 = vadd.f32 %v23788_v34, %v6390_v37 }
 0x691   :  { %v13103_v31 = vpop.f32.mrb[156].mxu0  ;;  %v19544_v21 = vadd.f32 %v23789_v10, %v6393_v57 }
 0x692   :  { %v13104_v42 = vpop.f32.mrb[157].mxu0 }
 0x693   :  { %v13105_v17 = vadd.f32 %v13104_v42, %v13103_v31  ;;  %v13106_v35 = vpop.f32.mrb[158].mxu0 }
 0x694   :  { %v13107_v6 = vpop.f32.mrb[159].mxu0 }
 0x695   :  { %v6528_v60 = vadd.f32 %v13105_v17, %v19467_v22  ;;  %v13108_v7 = vadd.f32 %v13107_v6, %v13106_v35 }
 0x697   :  { %v6625_v20 = vadd.f32 %v19363_v48, %v6528_v60  ;;  %v6531_v3 = vadd.f32 %v13108_v7, %v19470_v58 }
 0x699   :  { %v6687_v14 = vmax.f32 %v6625_v20, 0.0  ;;  %v6628_v24 = vadd.f32 %v19369_v47, %v6531_v3  ;;  %v13109_v33 = vpop.f32.mrb[160].mxu0 }
 0x69a   :  { %v13110_v22 = vpop.f32.mrb[161].mxu0 }
 0x69b   :  { %v6688_v63 = vmax.f32 %v6628_v24, 0.0  ;;  %v13111_v27 = vadd.f32 %v13110_v22, %v13109_v33  ;;  %v13112_v48 = vpop.f32.mrb[162].mxu0  ;;  %v6705_v58 = vadd.f32 %v19553_v12, %v6687_v14 }
 0x69c   :  { %v13113_v43 = vpop.f32.mrb[163].mxu0 }
 0x69d   :  { %v6706_v47 = vadd.f32 %v19558_v0, %v6688_v63  ;;  %v6536_v59 = vadd.f32 %v13111_v27, %v19484_v56  ;;  %v13114_v54 = vadd.f32 %v13113_v43, %v13112_v48 }
 0x69f   :  { %v6721_v9 = vpack.c.bf16 %v6706_v47, %v6705_v58  ;;  %v6539_v51 = vadd.f32 %v13114_v54, %v19487_v61  ;;  %v6633_v28 = vadd.f32 %v19385_v45, %v6536_v59 }
 0x6a1   :  { %v6689_v49 = vmax.f32 %v6633_v28, 0.0  ;;  %v6636_v5 = vadd.f32 %v19390_v44, %v6539_v51  ;;  %v13115_v26 = vpop.f32.mrb[164].mxu0  ;;  %6858 = vmatmul.mubr.bf16.vlgmr.msra.gmra.mrb[188].mxu0 %v6721_v9 }
 0x6a2   :  { %v13116_v25 = vpop.f32.mrb[165].mxu0  ;;  %6867 = vmatprep.mubr.bf16.mxu0 %v23790_v4 }
 0x6a3   :  { %v6690_v37 = vmax.f32 %v6636_v5, 0.0  ;;  %v13117_v40 = vadd.f32 %v13116_v25, %v13115_v26  ;;  %v13118_v57 = vpop.f32.mrb[166].mxu0  ;;  %v6707_v56 = vadd.f32 %v19553_v12, %v6689_v49 }
 0x6a4   :  { %v13119_v34 = vpop.f32.mrb[167].mxu0 }
 0x6a5   :  { %v6708_v31 = vadd.f32 %v19558_v0, %v6690_v37  ;;  %v6544_v61 = vadd.f32 %v13117_v40, %v19498_v18  ;;  %v13120_v10 = vadd.f32 %v13119_v34, %v13118_v57 }
 0x6a7   :  { %v6722_v45 = vpack.c.bf16 %v6708_v31, %v6707_v56  ;;  %v6547_v42 = vadd.f32 %v13120_v10, %v19501_v46  ;;  %v6641_v44 = vadd.f32 %v19397_v2, %v6544_v61 }
 0x6a9   :  { %v6691_v17 = vmax.f32 %v6641_v44, 0.0  ;;  %v6644_v35 = vadd.f32 %v19402_v16, %v6547_v42  ;;  %v13121_v6 = vpop.f32.mrb[168].mxu0  ;;  %6868 = vmatmul.mubr.bf16.gmra.mrb[192].mxu0 %v6722_v45 }
 0x6aa   :  { %v13122_v60 = vpop.f32.mrb[169].mxu0  ;;  %6877 = vmatprep.mubr.bf16.mxu0 %v23790_v4 }
 0x6ab   :  { %v6692_v7 = vmax.f32 %v6644_v35, 0.0  ;;  %v13123_v20 = vadd.f32 %v13122_v60, %v13121_v6  ;;  %v13124_v3 = vpop.f32.mrb[170].mxu0  ;;  %v6709_v18 = vadd.f32 %v19553_v12, %v6691_v17 }
 0x6ac   :  { %v13125_v14 = vpop.f32.mrb[171].mxu0 }
 0x6ad   :  { %v6710_v24 = vadd.f32 %v19558_v0, %v6692_v7  ;;  %v6552_v46 = vadd.f32 %v13123_v20, %v19509_v30  ;;  %v13126_v33 = vadd.f32 %v13125_v14, %v13124_v3 }
 0x6af   :  { %v6723_v2 = vpack.c.bf16 %v6710_v24, %v6709_v18  ;;  %v6555_v22 = vadd.f32 %v13126_v33, %v19512_v23  ;;  %v6649_v16 = vadd.f32 %v19409_v32, %v6552_v46 }
 0x6b1   :  { %v6693_v63 = vmax.f32 %v6649_v16, 0.0  ;;  %v6652_v27 = vadd.f32 %v19414_v8, %v6555_v22  ;;  %v13127_v48 = vpop.f32.mrb[172].mxu0  ;;  %6878 = vmatmul.mubr.bf16.gmra.mrb[196].mxu0 %v6723_v2 }
 0x6b2   :  { %v13128_v43 = vpop.f32.mrb[173].mxu0  ;;  %6887 = vmatprep.mubr.bf16.mxu0 %v23790_v4 }
 0x6b3   :  { %v6694_v58 = vmax.f32 %v6652_v27, 0.0  ;;  %v13129_v47 = vadd.f32 %v13128_v43, %v13127_v48  ;;  %v13130_v59 = vpop.f32.mrb[174].mxu0  ;;  %v6711_v30 = vadd.f32 %v19553_v12, %v6693_v63 }
 0x6b4   :  { %v13131_v54 = vpop.f32.mrb[175].mxu0 }
 0x6b5   :  { %v6712_v9 = vadd.f32 %v19558_v0, %v6694_v58  ;;  %v6560_v23 = vadd.f32 %v13129_v47, %v19517_v36  ;;  %v13132_v51 = vadd.f32 %v13131_v54, %v13130_v59 }
 0x6b7   :  { %v6724_v32 = vpack.c.bf16 %v6712_v9, %v6711_v30  ;;  %v6563_v28 = vadd.f32 %v13132_v51, %v19520_v39  ;;  %v6657_v8 = vadd.f32 %v19421_v55, %v6560_v23  ;;  %v22491_v9 = vlaneseq  ;;  %v6938_v51 = vld [vmem:[%s22042_s1] sm:$0xff] }
 0x6b9   :  { %v6695_v49 = vmax.f32 %v6657_v8, 0.0  ;;  %v6660_v5 = vadd.f32 %v19426_v53, %v6563_v28  ;;  %v13133_v26 = vpop.f32.mrb[176].mxu0  ;;  %6888 = vmatmul.mubr.bf16.gmra.mrb[200].mxu0 %v6724_v32 }
 0x6ba   :  { %v13134_v25 = vpop.f32.mrb[177].mxu0  ;;  %6897 = vmatprep.mubr.bf16.mxu0 %v23790_v4 }
 0x6bb   :  { %v6696_v37 = vmax.f32 %v6660_v5, 0.0  ;;  %v13135_v40 = vadd.f32 %v13134_v25, %v13133_v26  ;;  %v13136_v57 = vpop.f32.mrb[178].mxu0  ;;  %v6713_v36 = vadd.f32 %v19553_v12, %v6695_v49 }
 0x6bc   :  { %v13137_v34 = vpop.f32.mrb[179].mxu0 }
 0x6bd   :  { %v6714_v56 = vadd.f32 %v19558_v0, %v6696_v37  ;;  %v6568_v39 = vadd.f32 %v13135_v40, %v19525_v29  ;;  %v13138_v31 = vadd.f32 %v13137_v34, %v13136_v57 }
 0x6bf   :  { %v6725_v55 = vpack.c.bf16 %v6714_v56, %v6713_v36  ;;  %v6571_v61 = vadd.f32 %v13138_v31, %v19528_v52  ;;  %v6665_v53 = vadd.f32 %v19433_v13, %v6568_v39 }
 0x6c1   :  { %v6697_v10 = vmax.f32 %v6665_v53, 0.0  ;;  %v6668_v45 = vadd.f32 %v19438_v38, %v6571_v61  ;;  %v13139_v42 = vpop.f32.mrb[180].mxu0  ;;  %6898 = vmatmul.mubr.bf16.gmra.mrb[204].mxu0 %v6725_v55 }
 0x6c2   :  { %v13140_v44 = vpop.f32.mrb[181].mxu0  ;;  %6907 = vmatprep.mubr.bf16.mxu0 %v23790_v4 }
 0x6c3   :  { %v6698_v17 = vmax.f32 %v6668_v45, 0.0  ;;  %v13141_v35 = vadd.f32 %v13140_v44, %v13139_v42  ;;  %v13142_v6 = vpop.f32.mrb[182].mxu0  ;;  %v6715_v29 = vadd.f32 %v19553_v12, %v6697_v10 }
 0x6c4   :  { %v13143_v60 = vpop.f32.mrb[183].mxu0 }
 0x6c5   :  { %v6716_v7 = vadd.f32 %v19558_v0, %v6698_v17  ;;  %v6576_v52 = vadd.f32 %v13141_v35, %v19533_v62  ;;  %v13144_v20 = vadd.f32 %v13143_v60, %v13142_v6 }
 0x6c7   :  { %v6726_v13 = vpack.c.bf16 %v6716_v7, %v6715_v29  ;;  %v6579_v3 = vadd.f32 %v13144_v20, %v19536_v11  ;;  %v6673_v38 = vadd.f32 %v19445_v50, %v6576_v52 }
 0x6c9   :  { %v6699_v14 = vmax.f32 %v6673_v38, 0.0  ;;  %v6676_v18 = vadd.f32 %v19450_v1, %v6579_v3  ;;  %v13145_v24 = vpop.f32.mrb[184].mxu0  ;;  %6908 = vmatmul.mubr.bf16.gmra.mrb[208].mxu0 %v6726_v13  ;;  %v6940_v38 = vcombine.high %v6938_v51, %v6938_v51 }
 0x6ca   :  { %v13146_v46 = vpop.f32.mrb[185].mxu0  ;;  %6917 = vmatprep.mubr.bf16.mxu0 %v23790_v4 }
 0x6cb   :  { %v6700_v33 = vmax.f32 %v6676_v18, 0.0  ;;  %v13147_v2 = vadd.f32 %v13146_v46, %v13145_v24  ;;  %v13148_v22 = vpop.f32.mrb[186].mxu0  ;;  %v6717_v62 = vadd.f32 %v19553_v12, %v6699_v14 }
 0x6cc   :  { %v13149_v16 = vpop.f32.mrb[187].mxu0 }
 0x6cd   :  { %v6718_v63 = vadd.f32 %v19558_v0, %v6700_v33  ;;  %v6584_v11 = vadd.f32 %v13147_v2, %v19541_v15  ;;  %v13150_v27 = vadd.f32 %v13149_v16, %v13148_v22  ;;  %v14496_v15 = vld [vmem:[%s22040_s9 + $0x30] sm:$0xff]  }
 0x6ce   :  { %13550 = vmatprep.subr.bf16.mxu1 %v14496_v15 }
 0x6cf   :  { %v6727_v50 = vpack.c.bf16 %v6718_v63, %v6717_v62  ;;  %v6587_v48 = vadd.f32 %v13150_v27, %v19544_v21  ;;  %v6681_v1 = vadd.f32 %v19457_v19, %v6584_v11  ;;  %13551 = vmatpush3.bf16.msra.mxu1 %v14496_v15  ;;  %v14497_v19 = vld [vmem:[%s22040_s9 + $0x38] sm:$0xff]  }
 0x6d0   :  { %13552 = vmatprep.subr.bf16.mxu1 %v14497_v19 }
 0x6d1   :  { %v6701_v43 = vmax.f32 %v6681_v1, 0.0  ;;  %v6684_v58 = vadd.f32 %v19462_v41, %v6587_v48  ;;  %6918 = vmatmul.mubr.bf16.gmra.mrb[212].mxu0 %v6727_v50  ;;  %v14530_v41 = vmov 1966171168  }
 0x6d2   :  { %6927 = vmatprep.mubr.bf16.mxu0 %v23790_v4  ;;  %v6942_v21 = vunpack.c.l.s4 %v14530_v41 }
 0x6d3   :  { %v6702_v47 = vmax.f32 %v6684_v58, 0.0  ;;  %v6719_v59 = vadd.f32 %v19553_v12, %v6701_v43  ;;  %13553 = vmatpush3.bf16.msra.mxu1 %v14497_v19 }
 0x6d4   :  { %v6943_v12 = vunpack.c.0.s8 %v6942_v21 }
 0x6d5   :  { %v6720_v54 = vadd.f32 %v19558_v0, %v6702_v47  ;;  %v6945_v0 = vshrl.u32 %v22491_v9, 7 }
 0x6d7   :  { %v6728_v30 = vpack.c.bf16 %v6720_v54, %v6719_v59  ;;  %v19618_v23 = vsub.s32 %v6943_v12, %v6945_v0  ;;  %v19625_v8 = vsub.s32 0, %v6945_v0 }
 0x6d9   :  { %6928 = vmatmul.mubr.bf16.gmra.mrb[216].mxu0 %v6728_v30  ;;  %v6947_v32 = vrot.slane %v6938_v51, %v19618_v23  ;;  %v6954_v58 = vrot.slane %v6940_v38, %v19618_v23 }
 0x6db   :  { %v6963_v28 = vrot.slane %v6947_v32, %v19618_v23  ;;  %v6955_v31 = vcombine.high %v6947_v32, %v6947_v32  ;;  %v6956_v19 = vcombine.high %v6954_v58, %v6954_v58 }
 0x6dd   :  { %v6992_v5 = vrot.slane %v6963_v28, %v19625_v8  ;;  %v6977_v45 = vrot.slane %v6955_v31, %v19618_v23  ;;  %v6985_v44 = vcombine.high %v6963_v28, %v6963_v28 }
 0x6df   :  { %v6996_v60 = vrot.slane %v6977_v45, %v19625_v8  ;;  %v7000_v52 = vrot.slane %v6985_v44, %v19625_v8  ;;  %v6987_v28 = vcombine.high %v6977_v45, %v6977_v45 }
 0x774   :  { %v6859_v49 = vpop.f32.mrb[188].mxu0 }
 0x775   :  { %v6861_v26 = vpop.f32.mrb[189].mxu0 }
 0x776   :  { %v6863_v25 = vpop.f32.mrb[190].mxu0  ;;  %v7029_v57 = vadd.f32 %v6992_v5, %v6861_v26 }
 0x777   :  { %v7045_v37 = vpack.c.bf16 %v6863_v25, %v6859_v49  ;;  %v6865_v40 = vpop.f32.mrb[191].mxu0  ;;  %v11875_v61 = vpack.c.bf16 %v6863_v25, %v6863_v25  ;;  %v6970_v49 = vrot.slane %v6954_v58, %v19618_v23 }
 0x778   :  { %v7030_v34 = vadd.f32 %v6992_v5, %v6865_v40  ;;  %v19699_v40 = vrot.slane %v6956_v19, %v19618_v23 }
 0x779   :  { %v7068_v10 = vrot.slane %v7045_v37, %v19618_v23  ;;  %v7075_v42 = vrot.slane %v11875_v61, %v19618_v23  ;;  %v19711_v44 = vrot.slane %v6970_v49, %v19625_v8 }
 0x77a   :  { %v19628_v36 = vpack.c.bf16 %v7030_v34, %v7029_v57 }
 0x77b   :  { %v7076_v6 = vcombine.high %v7068_v10, %v7068_v10  ;;  %v7077_v7 = vcombine.high %v7075_v42, %v7075_v42  ;;  %v19642_v13 = vrot.slane %v7068_v10, %v19618_v23  ;;  %v19645_v3 = vrot.slane %v7075_v42, %v19618_v23 }
 0x77c   :  { %v6869_v56 = vpop.f32.mrb[192].mxu0  ;;  %v19708_v42 = vrot.slane %v6987_v28, %v19625_v8 }
 0x77d   :  { %v6871_v39 = vpop.f32.mrb[193].mxu0  ;;  %v19648_v14 = vrot.slane %v7076_v6, %v19618_v23  ;;  %v19652_v33 = vrot.slane %v7077_v7, %v19618_v23  ;;  %v19658_v62 = vcombine.high %v19642_v13, %v19642_v13  ;;  %v19670_v48 = vcombine.high %v19645_v3, %v19645_v3 }
 0x77e   :  { %v19630_v55 = vpop.f32.mrb[194].mxu0  ;;  %v7031_v18 = vadd.f32 %v6996_v60, %v6871_v39  ;;  %v7454_v54 = vunpack.i.h.s16 %v19642_v13  ;;  %v7462_v41 = vunpack.i.h.s16 %v19645_v3  ;;  %v6986_v39 = vcombine.high %v6970_v49, %v6970_v49 }
 0x77f   :  { %v6875_v53 = vpop.f32.mrb[195].mxu0  ;;  %v7046_v24 = vpack.c.bf16 %v19630_v55, %v6869_v56  ;;  %23793 = vst [vmem:[#allocation61_spill] sm:$0xff] %v19670_v48  ;;  %v19674_v1 = vcombine.high %v19648_v14, %v19648_v14  ;;  %v19681_v47 = vcombine.high %v19652_v33, %v19652_v33  ;;  %v7456_v30 = vunpack.i.h.s16 %v19648_v14 }
 0x780   :  { %v7032_v46 = vadd.f32 %v6996_v60, %v6875_v53  ;;  %v7458_v15 = vunpack.i.h.s16 %v19658_v62  ;;  %v7464_v12 = vunpack.i.h.s16 %v19652_v33  ;;  %v7466_v0 = vunpack.i.h.s16 %v19670_v48 }
 0x781   :  { %23794 = vst [vmem:[#allocation189_spill] sm:$0xff] %v19681_v47  ;;  %v7460_v21 = vunpack.i.h.s16 %v19674_v1  ;;  %v7468_v51 = vunpack.i.h.s16 %v19681_v47  ;;  %v11876_v32 = vpack.c.bf16 %v19630_v55, %v19630_v55  ;;  %v7590_v5 = vpack.i.b16 %v7454_v54, %v7454_v54 }
 0x782   :  { %v19660_v63 = vpack.c.bf16 %v7032_v46, %v7031_v18  ;;  %v7592_v26 = vpack.i.b16 %v7456_v30, %v7456_v30  ;;  %v7594_v25 = vpack.i.b16 %v7458_v15, %v7458_v15  ;;  %v7598_v57 = vpack.i.b16 %v7462_v41, %v7462_v41 }
 0x783   :  { %v7117_v34 = vrot.slane %v7046_v24, %v19618_v23  ;;  %v7596_v31 = vpack.i.b16 %v7460_v21, %v7460_v21  ;;  %v7600_v61 = vpack.i.b16 %v7464_v12, %v7464_v12  ;;  %v7602_v55 = vpack.i.b16 %v7466_v0, %v7466_v0 }
 0x784   :  { %v19635_v17 = vpop.f32.mrb[196].mxu0  ;;  %23791 = vst [vmem:[#allocation63_spill] sm:$0xff] %v19660_v63  ;;  %v7604_v10 = vpack.i.b16 %v7468_v51, %v7468_v51  ;;  %v7124_v45 = vrot.slane %v11876_v32, %v19618_v23  ;;  %v7724_v6 = vrot.slane %v7590_v5, %v19625_v8  ;;  %v7732_v60 = vrot.slane %v7592_v26, %v19625_v8 }
 0x785   :  { %v6881_v35 = vpop.f32.mrb[197].mxu0  ;;  %v7740_v7 = vrot.slane %v7594_v25, %v19625_v8  ;;  %v7125_v38 = vcombine.high %v7117_v34, %v7117_v34  ;;  %v19724_v18 = vrot.slane %v6986_v39, %v19625_v8  ;;  %v11883_v46 = vpack.i.b16 %v19642_v13, %v19642_v13 }
 0x786   :  { %v19638_v29 = vpop.f32.mrb[198].mxu0  ;;  %v7033_v2 = vadd.f32 %v7000_v52, %v6881_v35  ;;  %v7772_v58 = vrot.slane %v7602_v55, %v19625_v8  ;;  %v7780_v15 = vrot.slane %v7604_v10, %v19625_v8  ;;  %v7126_v19 = vcombine.high %v7124_v45, %v7124_v45 }
 0x787   :  { %v6885_v20 = vpop.f32.mrb[199].mxu0  ;;  %v7047_v22 = vpack.c.bf16 %v19638_v29, %v19635_v17  ;;  %v8237_v41 = vpack.i.b16 %v7724_v6, %v7724_v6  ;;  %v8251_v21 = vpack.i.b16 %v7732_v60, %v7732_v60  ;;  %v8265_v12 = vpack.i.b16 %v7740_v7, %v7740_v7 }
 0x788   :  { %v7034_v16 = vadd.f32 %v7000_v52, %v6885_v20  ;;  %v19720_v52 = vrot.slane %v19699_v40, %v19625_v8  ;;  %v7756_v20 = vrot.slane %v7598_v57, %v19625_v8  ;;  %v19739_v13 = vrot.slane %v7117_v34, %v19618_v23 }
 0x789   :  { %v19746_v28 = vrot.slane %v7125_v38, %v19618_v23  ;;  %v11877_v49 = vpack.c.bf16 %v19638_v29, %v19638_v29  ;;  %v8321_v57 = vpack.i.b16 %v7772_v58, %v7772_v58  ;;  %v19753_v34 = vrot.slane %v7124_v45, %v19618_v23 }
 0x78a   :  { %v19664_v27 = vpack.c.bf16 %v7034_v16, %v7033_v2  ;;  %v7748_v2 = vrot.slane %v7596_v31, %v19625_v8  ;;  %v7764_v16 = vrot.slane %v7600_v61, %v19625_v8  ;;  %23795 = vst [vmem:[#allocation185_spill] sm:$0xff] %v19739_v13  ;;  %v8293_v32 = vpack.i.b16 %v7756_v20, %v7756_v20 }
 0x78b   :  { %23796 = vst [vmem:[#allocation88_spill] sm:$0xff] %v19746_v28  ;;  %23797 = vst [vmem:[#allocation99_spill] sm:$0xff] %v19753_v34  ;;  %v8335_v55 = vpack.i.b16 %v7780_v15, %v7780_v15  ;;  %v19762_v10 = vrot.slane %v7126_v19, %v19618_v23  ;;  %v19767_v60 = vrot.slane %v8237_v41, %v19625_v8  ;;  %v7470_v29 = vunpack.i.h.s16 %v19739_v13 }
 0x78c   :  { %v19662_v11 = vpop.f32.mrb[200].mxu0  ;;  %23792 = vst [vmem:[#allocation6_spill] sm:$0xff] %v19664_v27  ;;  %v8279_v26 = vpack.i.b16 %v7748_v2, %v7748_v2  ;;  %v8307_v25 = vpack.i.b16 %v7764_v16, %v7764_v16  ;;  %v19770_v45 = vrot.slane %v8251_v21, %v19625_v8  ;;  %v19773_v7 = vrot.slane %v8265_v12, %v19625_v8 }
 0x78d   :  { %v19666_v50 = vpop.f32.mrb[201].mxu0  ;;  %23798 = vst [vmem:[#allocation195_spill] sm:$0xff] %v19762_v10  ;;  %v19777_v20 = vcombine.high %v19739_v13, %v19739_v13  ;;  %v19780_v38 = vrot.slane %v8293_v32, %v19625_v8  ;;  %v19784_v2 = vcombine.high %v19746_v28, %v19746_v28  ;;  %v7166_v16 = vrot.slane %v7047_v22, %v19618_v23 }
 0x78e   :  { %v19676_v43 = vpop.f32.mrb[202].mxu0  ;;  %v7173_v58 = vrot.slane %v11877_v49, %v19618_v23  ;;  %v19792_v15 = vrot.slane %v8279_v26, %v19625_v8  ;;  %v19795_v19 = vrot.slane %v8307_v25, %v19625_v8  ;;  %v19798_v41 = vrot.slane %v8321_v57, %v19625_v8 }
 0x78f   :  { %v19683_v59 = vpop.f32.mrb[203].mxu0  ;;  %23799 = vst [vmem:[#allocation191_spill] sm:$0xff] %v19777_v20  ;;  %23800 = vst [vmem:[#allocation92_spill] sm:$0xff] %v19784_v2  ;;  %v19802_v21 = vcombine.high %v19753_v34, %v19753_v34  ;;  %v19805_v12 = vrot.slane %v8335_v55, %v19625_v8  ;;  %v19809_v17 = vcombine.high %v19762_v10, %v19762_v10  ;;  %v7472_v32 = vunpack.i.h.s16 %v19746_v28 }
 0x790   :  { %23801 = vst [vmem:[#allocation105_spill] sm:$0xff] %v19795_v19  ;;  %23802 = vst [vmem:[#allocation201_spill] sm:$0xff] %v19798_v41  ;;  %v7720_v22 = vrot.slane %v11883_v46, %v19625_v8  ;;  %v7474_v49 = vunpack.i.h.s16 %v19777_v20  ;;  %v7478_v26 = vunpack.i.h.s16 %v19753_v34  ;;  %v9126_v25 = vadd.bf16 %v19767_v60, %v19628_v36 }
 0x791   :  { %23803 = vst [vmem:[#allocation197_spill] sm:$0xff] %v19802_v21  ;;  %23804 = vst [vmem:[#allocation96_spill] sm:$0xff] %v19805_v12  ;;  %v7476_v55 = vunpack.i.h.s16 %v19784_v2  ;;  %v7480_v9 = vunpack.i.h.s16 %v19762_v10  ;;  %v7174_v61 = vcombine.high %v7166_v16, %v7166_v16  ;;  %v7175_v24 = vcombine.high %v7173_v58, %v7173_v58 }
 0x792   :  { %23805 = vst [vmem:[#allocation111_spill] sm:$0xff] %v19809_v17  ;;  %v7482_v46 = vunpack.i.h.s16 %v19802_v21  ;;  %v19828_v51 = vrot.slane %v7166_v16, %v19618_v23  ;;  %v19831_v60 = vrot.slane %v7173_v58, %v19618_v23  ;;  %v7484_v27 = vunpack.i.h.s16 %v19809_v17 }
 0x793   :  { %v7606_v2 = vpack.i.b16 %v7470_v29, %v7470_v29  ;;  %v7608_v30 = vpack.i.b16 %v7472_v32, %v7472_v32  ;;  %v7610_v13 = vpack.i.b16 %v7474_v49, %v7474_v49  ;;  %v7614_v58 = vpack.i.b16 %v7478_v26, %v7478_v26 }
 0x794   :  { %v19696_v37 = vpop.f32.mrb[204].mxu0  ;;  %v7612_v47 = vpack.i.b16 %v7476_v55, %v7476_v55  ;;  %v7616_v17 = vpack.i.b16 %v7480_v9, %v7480_v9  ;;  %v7618_v12 = vpack.i.b16 %v7482_v46, %v7482_v46  ;;  %v8230_v28 = vpack.i.b16 %v7720_v22, %v7720_v22 }
 0x795   :  { %v19702_v56 = vpop.f32.mrb[205].mxu0  ;;  %v23806_v63 = vpack.i.b16 %v19648_v14, %v19648_v14  ;;  %v7035_v16 = vadd.f32 %v19708_v42, %v19666_v50  ;;  %v7620_v49 = vpack.i.b16 %v7484_v27, %v7484_v27  ;;  %v7788_v26 = vrot.slane %v7606_v2, %v19625_v8 }
 0x796   :  { %v19704_v53 = vpop.f32.mrb[206].mxu0  ;;  %v7048_v55 = vpack.c.bf16 %v19676_v43, %v19662_v11  ;;  %v7036_v9 = vadd.f32 %v19708_v42, %v19683_v59  ;;  %v7796_v46 = vrot.slane %v7608_v30, %v19625_v8  ;;  %v7804_v22 = vrot.slane %v7610_v13, %v19625_v8 }
 0x797   :  { %v19713_v35 = vpop.f32.mrb[207].mxu0  ;;  %v7728_v32 = vrot.slane %v23806_v63, %v19625_v8  ;;  %v8235_v29 = vrot.slane %v8230_v28, %v19625_v8  ;;  %v7812_v50 = vrot.slane %v7612_v47, %v19625_v8  ;;  %v7820_v27 = vrot.slane %v7614_v58, %v19625_v8 }
 0x798   :  { %v19867_v2 = vrot.slane %v7174_v61, %v19618_v23  ;;  %v19869_v11 = vpack.c.bf16 %v7036_v9, %v7035_v16  ;;  %v19874_v59 = vrot.slane %v7175_v24, %v19618_v23  ;;  %v7828_v28 = vrot.slane %v7616_v17, %v19625_v8 }
 0x799   :  { %v8244_v14 = vpack.i.b16 %v7728_v32, %v7728_v32  ;;  %v9125_v42 = vadd.bf16 %v8235_v29, %v19628_v36  ;;  %v7836_v61 = vrot.slane %v7618_v12, %v19625_v8  ;;  %v7844_v16 = vrot.slane %v7620_v49, %v19625_v8 }
 0x79a   :  { %23807 = vst [vmem:[#allocation205_spill] sm:$0xff] %v19869_v11  ;;  %23809 = vst [vmem:[#allocation100_spill] sm:$0xff] %v19874_v59  ;;  %v9254_v58 = vmax.bf16 %v23790_v4, %v9126_v25  ;;  %v8349_v24 = vpack.i.b16 %v7788_v26, %v7788_v26  ;;  %v19890_v29 = vcombine.high %v19828_v51, %v19828_v51  ;;  %v7486_v21 = vunpack.i.h.s16 %v19828_v51 }
 0x79b   :  { %v8249_v30 = vrot.slane %v8244_v14, %v19625_v8  ;;  %v9253_v9 = vmax.bf16 %v23790_v4, %v9125_v42  ;;  %v8363_v13 = vpack.i.b16 %v7796_v46, %v7796_v46  ;;  %v8377_v11 = vpack.i.b16 %v7804_v22, %v7804_v22 }
 0x79c   :  { %v19741_v0 = vpop.f32.mrb[208].mxu0  ;;  %v8405_v17 = vpack.i.b16 %v7820_v27, %v7820_v27  ;;  %v19896_v12 = vcombine.high %v19867_v2, %v19867_v2  ;;  %v19900_v25 = vcombine.high %v19831_v60, %v19831_v60  ;;  %v19904_v49 = vcombine.high %v19874_v59, %v19874_v59 }
 0x79d   :  { %v19750_v5 = vpop.f32.mrb[209].mxu0  ;;  %v9127_v14 = vadd.bf16 %v8249_v30, %v19628_v36  ;;  %13554 = vmatprep.mubr.bf16.mxu1 %v9253_v9  ;;  %v23815_v46 = vpack.i.b16 %v19658_v62, %v19658_v62  ;;  %v8391_v27 = vpack.i.b16 %v7812_v50, %v7812_v50  ;;  %v8419_v42 = vpack.i.b16 %v7828_v28, %v7828_v28 }
 0x79e   :  { %v19755_v39 = vpop.f32.mrb[210].mxu0  ;;  %23812 = vst [vmem:[#allocation207_spill] sm:$0xff] %v19896_v12  ;;  %23813 = vst [vmem:[#allocation59_spill] sm:$0xff] %v19900_v25  ;;  %v8433_v30 = vpack.i.b16 %v7836_v61, %v7836_v61  ;;  %13555 = vmatmul.mubr.bf16.vlgmr.msra.gmra.mrb[4].mxu1 %v9254_v58  ;;  %v19913_v10 = vrot.slane %v8349_v24, %v19625_v8  ;;  %v8447_v34 = vpack.i.b16 %v7844_v16, %v7844_v16 }
 0x79f   :  { %v19764_v6 = vpop.f32.mrb[211].mxu0  ;;  %23814 = vst [vmem:[#allocation213_spill] sm:$0xff] %v19904_v49  ;;  %v9255_v26 = vmax.bf16 %v23790_v4, %v9127_v14  ;;  %v7736_v22 = vrot.slane %v23815_v46, %v19625_v8  ;;  %v7488_v20 = vunpack.i.h.s16 %v19867_v2  ;;  %v7490_v9 = vunpack.i.h.s16 %v19890_v29 }
 0x7a0   :  { %23816 = vst [vmem:[#allocation211_spill] sm:$0xff] %v19913_v10  ;;  %v7492_v14 = vunpack.i.h.s16 %v19896_v12  ;;  %v7494_v62 = vunpack.i.h.s16 %v19831_v60  ;;  %v7496_v50 = vunpack.i.h.s16 %v19874_v59  ;;  %v9128_v28 = vadd.bf16 %v19770_v45, %v19628_v36 }
 0x7a1   :  { %13558 = vmatprep.mubr.bf16.mxu1 %v9255_v26  ;;  %v7498_v61 = vunpack.i.h.s16 %v19900_v25  ;;  %v7500_v58 = vunpack.i.h.s16 %v19904_v49  ;;  %v11878_v16 = vpack.c.bf16 %v19676_v43, %v19676_v43  ;;  %v8258_v24 = vpack.i.b16 %v7736_v22, %v7736_v22 }
 0x7a2   :  { %v19927_v46 = vrot.slane %v8363_v13, %v19625_v8  ;;  %v19930_v26 = vrot.slane %v8377_v11, %v19625_v8  ;;  %v19933_v12 = vrot.slane %v8405_v17, %v19625_v8  ;;  %v7622_v10 = vpack.i.b16 %v7486_v21, %v7486_v21 }
 0x7a3   :  { %v19936_v45 = vrot.slane %v8391_v27, %v19625_v8  ;;  %v7624_v19 = vpack.i.b16 %v7488_v20, %v7488_v20  ;;  %v7215_v49 = vrot.slane %v7048_v55, %v19618_v23  ;;  %v7630_v43 = vpack.i.b16 %v7494_v62, %v7494_v62 }
 0x7a4   :  { %v19818_v57 = vpop.f32.mrb[212].mxu0  ;;  %23817 = vst [vmem:[#allocation56_spill] sm:$0xff] %v19927_v46  ;;  %v7632_v22 = vpack.i.b16 %v7496_v50, %v7496_v50  ;;  %v9256_v13 = vmax.bf16 %v23790_v4, %v9128_v28  ;;  %v7634_v46 = vpack.i.b16 %v7498_v61, %v7498_v61  ;;  %v7222_v11 = vrot.slane %v11878_v16, %v19618_v23 }
 0x7a5   :  { %v19822_v31 = vpop.f32.mrb[213].mxu0  ;;  %v8263_v17 = vrot.slane %v8258_v24, %v19625_v8  ;;  %v19943_v21 = vrot.slane %v8419_v42, %v19625_v8  ;;  %v19946_v27 = vrot.slane %v8433_v30, %v19625_v8  ;;  %v19949_v20 = vrot.slane %v8447_v34, %v19625_v8 }
 0x7a6   :  { %v19833_v54 = vpop.f32.mrb[214].mxu0  ;;  %v7852_v55 = vrot.slane %v7622_v10, %v19625_v8  ;;  %13559 = vmatmul.mubr.bf16.gmra.mrb[8].mxu1 %v9256_v13  ;;  %v7860_v62 = vrot.slane %v7624_v19, %v19625_v8  ;;  %v7223_v50 = vcombine.high %v7215_v49, %v7215_v49  ;;  %v7884_v28 = vrot.slane %v7630_v43, %v19625_v8 }
 0x7a7   :  { %v19840_v41 = vpop.f32.mrb[215].mxu0  ;;  %v7892_v34 = vrot.slane %v7632_v22, %v19625_v8  ;;  %v7900_v10 = vrot.slane %v7634_v46, %v19625_v8  ;;  %v9129_v16 = vadd.bf16 %v8263_v17, %v19628_v36  ;;  %v7037_v19 = vadd.f32 %v19711_v44, %v19702_v56 }
 0x7a8   :  { %v8461_v24 = vpack.i.b16 %v7852_v55, %v7852_v55  ;;  %v8475_v43 = vpack.i.b16 %v7860_v62, %v7860_v62  ;;  %v19971_v22 = vrot.slane %v7215_v49, %v19618_v23  ;;  %v19974_v46 = vrot.slane %v7223_v50, %v19618_v23 }
 0x7a9   :  { %v19978_v17 = vrot.slane %v7222_v11, %v19618_v23  ;;  %v8517_v50 = vpack.i.b16 %v7884_v28, %v7884_v28 }
 0x7aa   :  { %23818 = vst [vmem:[#allocation125_spill] sm:$0xff] %v19974_v46 }
 0x7ab   :  { %23819 = vst [vmem:[#allocation121_spill] sm:$0xff] %v19978_v17  ;;  %v20013_v28 = vcombine.high %v19978_v17, %v19978_v17 }
 0x7ac   :  { %v19862_v63 = vpop.f32.mrb[216].mxu0 }
 0x7ad   :  { %v19871_v48 = vpop.f32.mrb[217].mxu0  ;;  %23825 = vst [vmem:[#allocation133_spill] sm:$0xff] %v20013_v28 }
 0x7ae   :  { %23808 = vst [vmem:[#allocation203_spill] sm:$0xff] %v19871_v48  ;;  %v19880_v47 = vpop.f32.mrb[218].mxu0  ;;  %v7628_v48 = vpack.i.b16 %v7492_v14, %v7492_v14 }
 0x7af   :  { %23810 = vst [vmem:[#allocation117_spill] sm:$0xff] %v19880_v47  ;;  %v19886_v32 = vpop.f32.mrb[219].mxu0  ;;  %v7636_v47 = vpack.i.b16 %v7500_v58, %v7500_v58  ;;  %v7224_v58 = vcombine.high %v7222_v11, %v7222_v11  ;;  %v11886_v11 = vpack.i.b16 %v19674_v1, %v19674_v1  ;;  %v23832_v1 = vpack.c.bf16 %v19704_v53, %v19696_v37 }
 0x7b0   :  { %23811 = vst [vmem:[#allocation209_spill] sm:$0xff] %v19886_v32  ;;  %v7626_v32 = vpack.i.b16 %v7490_v9, %v7490_v9  ;;  %v7876_v30 = vrot.slane %v7628_v48, %v19625_v8  ;;  %v9130_v48 = vadd.bf16 %v19773_v7, %v19628_v36 }
 0x7b1   :  { %v7908_v61 = vrot.slane %v7636_v47, %v19625_v8  ;;  %v9257_v47 = vmax.bf16 %v23790_v4, %v9129_v16  ;;  %v19990_v55 = vrot.slane %v7224_v58, %v19618_v23  ;;  %v8545_v16 = vpack.i.b16 %v7900_v10, %v7900_v10 }
 0x7b2   :  { %v7868_v42 = vrot.slane %v7626_v32, %v19625_v8  ;;  %v7038_v32 = vadd.f32 %v19711_v44, %v19713_v35  ;;  %v9258_v44 = vmax.bf16 %v23790_v4, %v9130_v48  ;;  %v8503_v62 = vpack.i.b16 %v7876_v30, %v7876_v30 }
 0x7b3   :  { %23821 = vst [vmem:[#allocation85_spill] sm:$0xff] %v19990_v55  ;;  %13562 = vmatprep.mubr.bf16.mxu1 %v9257_v47  ;;  %v20000_v48 = vcombine.high %v19974_v46, %v19974_v46  ;;  %v20003_v58 = vrot.slane %v8461_v24, %v19625_v8  ;;  %v20006_v47 = vrot.slane %v8475_v43, %v19625_v8  ;;  %v7502_v10 = vunpack.i.h.s16 %v19971_v22 }
 0x7b4   :  { %v8489_v13 = vpack.i.b16 %v7868_v42, %v7868_v42  ;;  %v19980_v56 = vpack.c.bf16 %v7038_v32, %v7037_v19  ;;  %v8531_v42 = vpack.i.b16 %v7892_v34, %v7892_v34  ;;  %13563 = vmatmul.mubr.bf16.gmra.mrb[12].mxu1 %v9258_v44  ;;  %v8559_v19 = vpack.i.b16 %v7908_v61, %v7908_v61 }
 0x7b5   :  { %v19996_v32 = vcombine.high %v19971_v22, %v19971_v22  ;;  %23823 = vst [vmem:[#allocation36_spill] sm:$0xff] %v20000_v48  ;;  %v20017_v34 = vcombine.high %v19990_v55, %v19990_v55  ;;  %v7504_v61 = vunpack.i.h.s16 %v19974_v46  ;;  %v11879_v24 = vpack.c.bf16 %v19704_v53, %v19704_v53 }
 0x7b6   :  { %23820 = vst [vmem:[#allocation69_spill] sm:$0xff] %v19980_v56  ;;  %v20009_v30 = vrot.slane %v8489_v13, %v19625_v8  ;;  %v20024_v43 = vrot.slane %v8503_v62, %v19625_v8  ;;  %v20027_v13 = vrot.slane %v8517_v50, %v19625_v8  ;;  %v20030_v44 = vrot.slane %v8531_v42, %v19625_v8 }
 0x7b7   :  { %23822 = vst [vmem:[#allocation42_spill] sm:$0xff] %v19996_v32  ;;  %23826 = vst [vmem:[#allocation129_spill] sm:$0xff] %v20017_v34  ;;  %v20035_v49 = vrot.slane %v8545_v16, %v19625_v8  ;;  %v7506_v14 = vunpack.i.h.s16 %v19996_v32  ;;  %v7508_v7 = vunpack.i.h.s16 %v20000_v48  ;;  %v7510_v35 = vunpack.i.h.s16 %v19978_v17 }
 0x7b8   :  { %23824 = vst [vmem:[#allocation214_spill] sm:$0xff] %v20009_v30  ;;  %23827 = vst [vmem:[#allocation75_spill] sm:$0xff] %v20024_v43  ;;  %v20041_v62 = vrot.slane %v8559_v19, %v19625_v8  ;;  %v7512_v50 = vunpack.i.h.s16 %v19990_v55  ;;  %v7514_v42 = vunpack.i.h.s16 %v20013_v28  ;;  %v7264_v9 = vrot.slane %v23832_v1, %v19618_v23 }
 0x7b9   :  { %23828 = vst [vmem:[#allocation89_spill] sm:$0xff] %v20027_v13  ;;  %23829 = vst [vmem:[#allocation48_spill] sm:$0xff] %v20030_v44  ;;  %v7516_v16 = vunpack.i.h.s16 %v20017_v34  ;;  %v7638_v56 = vpack.i.b16 %v7502_v10, %v7502_v10  ;;  %v7271_v48 = vrot.slane %v11879_v24, %v19618_v23  ;;  %v7744_v44 = vrot.slane %v11886_v11, %v19625_v8  ;;  %v23929_v13 = vld [vmem:[#allocation213_spill] sm:$0xff] }
 0x7ba   :  { %23830 = vst [vmem:[#allocation79_spill] sm:$0xff] %v20035_v49  ;;  %23831 = vst [vmem:[#allocation141_spill] sm:$0xff] %v20041_v62  ;;  %v7640_v49 = vpack.i.b16 %v7504_v61, %v7504_v61  ;;  %v7642_v59 = vpack.i.b16 %v7506_v14, %v7506_v14  ;;  %v7644_v37 = vpack.i.b16 %v7508_v7, %v7508_v7 }
 0x7bb   :  { %v7646_v10 = vpack.i.b16 %v7510_v35, %v7510_v35  ;;  %v7648_v24 = vpack.i.b16 %v7512_v50, %v7512_v50  ;;  %v7650_v1 = vpack.i.b16 %v7514_v42, %v7514_v42  ;;  %v7272_v25 = vcombine.high %v7264_v9, %v7264_v9 }
 0x7bc   :  { %v7652_v34 = vpack.i.b16 %v7516_v16, %v7516_v16  ;;  %v7916_v19 = vrot.slane %v7638_v56, %v19625_v8  ;;  %v7924_v46 = vrot.slane %v7640_v49, %v19625_v8  ;;  %v7273_v62 = vcombine.high %v7271_v48, %v7271_v48 }
 0x7bd   :  { %v8272_v32 = vpack.i.b16 %v7744_v44, %v7744_v44  ;;  %v7039_v14 = vadd.f32 %v19720_v52, %v19750_v5  ;;  %v7050_v7 = vpack.c.bf16 %v19755_v39, %v19741_v0  ;;  %v7040_v35 = vadd.f32 %v19720_v52, %v19764_v6 }
 0x7be   :  { %v7932_v11 = vrot.slane %v7642_v59, %v19625_v8  ;;  %v7940_v50 = vrot.slane %v7644_v37, %v19625_v8  ;;  %v20074_v56 = vadd.f32 %v19724_v18, %v19822_v31  ;;  %v20079_v44 = vrot.slane %v7264_v9, %v19618_v23  ;;  %v23939_v43 = vld [vmem:[#allocation42_spill] sm:$0xff] }
 0x7bf   :  { %v20082_v5 = vrot.slane %v7272_v25, %v19618_v23  ;;  %v8277_v0 = vrot.slane %v8272_v32, %v19625_v8  ;;  %v20085_v52 = vpack.c.bf16 %v7040_v35, %v7039_v14  ;;  %v20090_v59 = vrot.slane %v7271_v48, %v19618_v23 }
 0x7c0   :  { %v20093_v31 = vrot.slane %v7273_v62, %v19618_v23  ;;  %v9132_v9 = vadd.bf16 %v19792_v15, %v19628_v36  ;;  %v7948_v42 = vrot.slane %v7646_v10, %v19625_v8  ;;  %v7956_v25 = vrot.slane %v7648_v24, %v19625_v8 }
 0x7c1   :  { %23833 = vst [vmem:[#allocation137_spill] sm:$0xff] %v20085_v52  ;;  %23834 = vst [vmem:[#allocation176_spill] sm:$0xff] %v20090_v59  ;;  %v7964_v32 = vrot.slane %v7650_v1, %v19625_v8  ;;  %v9131_v16 = vadd.bf16 %v8277_v0, %v19628_v36  ;;  %v7972_v37 = vrot.slane %v7652_v34, %v19625_v8  ;;  %v7518_v0 = vunpack.i.h.s16 %v20079_v44 }
 0x7c2   :  { %23835 = vst [vmem:[#allocation12_spill] sm:$0xff] %v20093_v31  ;;  %v8573_v14 = vpack.i.b16 %v7916_v19, %v7916_v19  ;;  %v8587_v35 = vpack.i.b16 %v7924_v46, %v7924_v46  ;;  %v8601_v48 = vpack.i.b16 %v7932_v11, %v7932_v11  ;;  %v8615_v6 = vpack.i.b16 %v7940_v50, %v7940_v50 }
 0x7c3   :  { %v20104_v62 = vcombine.high %v20079_v44, %v20079_v44  ;;  %v20108_v15 = vcombine.high %v20082_v5, %v20082_v5  ;;  %v9259_v10 = vmax.bf16 %v23790_v4, %v9131_v16  ;;  %v20113_v24 = vcombine.high %v20090_v59, %v20090_v59 }
 0x7c4   :  { %v20117_v34 = vcombine.high %v20093_v31, %v20093_v31  ;;  %v9260_v46 = vmax.bf16 %v23790_v4, %v9132_v9  ;;  %v23839_v19 = vpack.i.b16 %v19645_v3, %v19645_v3  ;;  %v8629_v11 = vpack.i.b16 %v7948_v42, %v7948_v42 }
 0x7c5   :  { %23836 = vst [vmem:[#allocation149_spill] sm:$0xff] %v20108_v15  ;;  %23837 = vst [vmem:[#allocation145_spill] sm:$0xff] %v20113_v24  ;;  %v8643_v50 = vpack.i.b16 %v7956_v25, %v7956_v25  ;;  %v7520_v16 = vunpack.i.h.s16 %v20082_v5  ;;  %13566 = vmatprep.mubr.bf16.mxu1 %v9259_v10  ;;  %v20127_v61 = vrot.slane %v8573_v14, %v19625_v8  ;;  %v7522_v3 = vunpack.i.h.s16 %v20104_v62 }
 0x7c6   :  { %23838 = vst [vmem:[#allocation182_spill] sm:$0xff] %v20117_v34  ;;  %v7752_v1 = vrot.slane %v23839_v19, %v19625_v8  ;;  %v20130_v53 = vrot.slane %v8587_v35, %v19625_v8  ;;  %v8657_v49 = vpack.i.b16 %v7964_v32, %v7964_v32  ;;  %v11880_v9 = vpack.c.bf16 %v19755_v39, %v19755_v39 }
 0x7c7   :  { %23840 = vst [vmem:[#allocation178_spill] sm:$0xff] %v20127_v61  ;;  %13567 = vmatmul.mubr.bf16.gmra.mrb[16].mxu1 %v9260_v46  ;;  %v7524_v42 = vunpack.i.h.s16 %v20108_v15  ;;  %v7526_v25 = vunpack.i.h.s16 %v20090_v59  ;;  %v7528_v19 = vunpack.i.h.s16 %v20093_v31  ;;  %v20139_v10 = vrot.slane %v8601_v48, %v19625_v8  ;;  %v23942_v61 = vld [vmem:[#allocation36_spill] sm:$0xff] }
 0x7c8   :  { %23841 = vst [vmem:[#allocation157_spill] sm:$0xff] %v20130_v53  ;;  %v7530_v14 = vunpack.i.h.s16 %v20113_v24  ;;  %v7532_v35 = vunpack.i.h.s16 %v20117_v34  ;;  %v8286_v32 = vpack.i.b16 %v7752_v1, %v7752_v1  ;;  %v8671_v52 = vpack.i.b16 %v7972_v37, %v7972_v37 }
 0x7c9   :  { %23842 = vst [vmem:[#allocation153_spill] sm:$0xff] %v20139_v10  ;;  %v7654_v28 = vpack.i.b16 %v7518_v0, %v7518_v0  ;;  %v7656_v39 = vpack.i.b16 %v7520_v16, %v7520_v16  ;;  %v7313_v46 = vrot.slane %v7050_v7, %v19618_v23  ;;  %v20145_v55 = vrot.slane %v8615_v6, %v19625_v8 }
 0x7ca   :  { %v20148_v15 = vrot.slane %v8629_v11, %v19625_v8  ;;  %v20151_v17 = vrot.slane %v8643_v50, %v19625_v8  ;;  %v7320_v48 = vrot.slane %v11880_v9, %v19618_v23  ;;  %v7658_v10 = vpack.i.b16 %v7522_v3, %v7522_v3 }
 0x7cb   :  { %23843 = vst [vmem:[#allocation188_spill] sm:$0xff] %v20145_v55  ;;  %v7660_v53 = vpack.i.b16 %v7524_v42, %v7524_v42  ;;  %v7662_v34 = vpack.i.b16 %v7526_v25, %v7526_v25  ;;  %v7664_v1 = vpack.i.b16 %v7528_v19, %v7528_v19  ;;  %v20155_v37 = vrot.slane %v8657_v49, %v19625_v8  ;;  %v23947_v55 = vld [vmem:[#allocation85_spill] sm:$0xff] }
 0x7cc   :  { %23844 = vst [vmem:[#allocation184_spill] sm:$0xff] %v20148_v15  ;;  %23845 = vst [vmem:[#allocation165_spill] sm:$0xff] %v20151_v17  ;;  %v7666_v0 = vpack.i.b16 %v7530_v14, %v7530_v14  ;;  %v7668_v7 = vpack.i.b16 %v7532_v35, %v7532_v35  ;;  %v8291_v6 = vrot.slane %v8286_v32, %v19625_v8 }
 0x7cd   :  { %23846 = vst [vmem:[#allocation161_spill] sm:$0xff] %v20155_v37  ;;  %v20159_v16 = vrot.slane %v8671_v52, %v19625_v8  ;;  %v7980_v11 = vrot.slane %v7654_v28, %v19625_v8  ;;  %v7988_v50 = vrot.slane %v7656_v39, %v19625_v8  ;;  %v7321_v17 = vcombine.high %v7313_v46, %v7313_v46 }
 0x7ce   :  { %v7322_v42 = vcombine.high %v7320_v48, %v7320_v48  ;;  %v7996_v25 = vrot.slane %v7658_v10, %v19625_v8  ;;  %v8004_v52 = vrot.slane %v7660_v53, %v19625_v8  ;;  %v8012_v19 = vrot.slane %v7662_v34, %v19625_v8 }
 0x7cf   :  { %23847 = vst [vmem:[#allocation194_spill] sm:$0xff] %v20159_v16  ;;  %v8020_v28 = vrot.slane %v7664_v1, %v19625_v8  ;;  %v8028_v14 = vrot.slane %v7666_v0, %v19625_v8  ;;  %v8036_v35 = vrot.slane %v7668_v7, %v19625_v8  ;;  %v20176_v32 = vrot.slane %v7313_v46, %v19618_v23 }
 0x7d0   :  { %v9133_v39 = vadd.bf16 %v8291_v6, %v19628_v36  ;;  %v8685_v3 = vpack.i.b16 %v7980_v11, %v7980_v11  ;;  %v8699_v49 = vpack.i.b16 %v7988_v50, %v7988_v50  ;;  %v20180_v9 = vrot.slane %v7321_v17, %v19618_v23 }
 0x7d1   :  { %23848 = vst [vmem:[#allocation190_spill] sm:$0xff] %v20176_v32  ;;  %v7042_v53 = vadd.f32 %v19724_v18, %v19840_v41  ;;  %v20187_v10 = vrot.slane %v7320_v48, %v19618_v23  ;;  %v20190_v1 = vrot.slane %v7322_v42, %v19618_v23  ;;  %v8713_v7 = vpack.i.b16 %v7996_v25, %v7996_v25 }
 0x7d2   :  { %23849 = vst [vmem:[#allocation52_spill] sm:$0xff] %v20180_v9  ;;  %v9261_v46 = vmax.bf16 %v23790_v4, %v9133_v39  ;;  %v8727_v17 = vpack.i.b16 %v8004_v52, %v8004_v52  ;;  %v8741_v6 = vpack.i.b16 %v8012_v19, %v8012_v19  ;;  %v8755_v41 = vpack.i.b16 %v8020_v28, %v8020_v28 }
 0x7d3   :  { %23850 = vst [vmem:[#allocation169_spill] sm:$0xff] %v20187_v10  ;;  %23851 = vst [vmem:[#allocation200_spill] sm:$0xff] %v20190_v1  ;;  %v8769_v11 = vpack.i.b16 %v8028_v14, %v8028_v14  ;;  %v20199_v48 = vcombine.high %v20176_v32, %v20176_v32  ;;  %v20202_v50 = vrot.slane %v8685_v3, %v19625_v8  ;;  %v7534_v18 = vunpack.i.h.s16 %v20176_v32 }
 0x7d4   :  { %13570 = vmatprep.mubr.bf16.mxu1 %v9261_v46  ;;  %v20205_v42 = vrot.slane %v8699_v49, %v19625_v8  ;;  %v8783_v39 = vpack.i.b16 %v8036_v35, %v8036_v35  ;;  %v20209_v25 = vcombine.high %v20180_v9, %v20180_v9  ;;  %v20213_v52 = vcombine.high %v20187_v10, %v20187_v10 }
 0x7d5   :  { %23852 = vst [vmem:[#allocation196_spill] sm:$0xff] %v20199_v48  ;;  %23853 = vst [vmem:[#allocation55_spill] sm:$0xff] %v20202_v50  ;;  %v20217_v19 = vcombine.high %v20190_v1, %v20190_v1  ;;  %v11881_v3 = vpack.c.bf16 %v19833_v54, %v19833_v54  ;;  %v23858_v49 = vpack.c.bf16 %v19833_v54, %v19818_v57  ;;  %v7536_v54 = vunpack.i.h.s16 %v20180_v9 }
 0x7d6   :  { %23854 = vst [vmem:[#allocation26_spill] sm:$0xff] %v20205_v42  ;;  %23855 = vst [vmem:[#allocation164_spill] sm:$0xff] %v20209_v25  ;;  %v20226_v14 = vrot.slane %v8713_v7, %v19625_v8  ;;  %v20229_v35 = vrot.slane %v8727_v17, %v19625_v8  ;;  %v20232_v46 = vrot.slane %v8741_v6, %v19625_v8  ;;  %v7538_v57 = vunpack.i.h.s16 %v20199_v48 }
 0x7d7   :  { %23856 = vst [vmem:[#allocation160_spill] sm:$0xff] %v20213_v52  ;;  %23857 = vst [vmem:[#allocation104_spill] sm:$0xff] %v20217_v19  ;;  %v7362_v28 = vrot.slane %v23858_v49, %v19618_v23  ;;  %v20236_v0 = vrot.slane %v8755_v41, %v19625_v8  ;;  %v20239_v34 = vrot.slane %v8769_v11, %v19625_v8  ;;  %v7540_v17 = vunpack.i.h.s16 %v20209_v25 }
 0x7d8   :  { %23859 = vst [vmem:[#allocation101_spill] sm:$0xff] %v20226_v14  ;;  %23860 = vst [vmem:[#allocation172_spill] sm:$0xff] %v20229_v35  ;;  %v20244_v7 = vrot.slane %v8783_v39, %v19625_v8  ;;  %v7542_v6 = vunpack.i.h.s16 %v20187_v10  ;;  %v7544_v49 = vunpack.i.h.s16 %v20190_v1  ;;  %v7546_v24 = vunpack.i.h.s16 %v20213_v52  ;;  %v23886_v10 = vld [vmem:[#allocation189_spill] sm:$0xff] }
 0x7d9   :  { %23861 = vst [vmem:[#allocation168_spill] sm:$0xff] %v20232_v46  ;;  %23862 = vst [vmem:[#allocation110_spill] sm:$0xff] %v20236_v0  ;;  %v7548_v41 = vunpack.i.h.s16 %v20217_v19  ;;  %v7369_v11 = vrot.slane %v11881_v3, %v19618_v23  ;;  %v7670_v31 = vpack.i.b16 %v7534_v18, %v7534_v18  ;;  %v9134_v25 = vadd.bf16 %v19780_v38, %v19628_v36  ;;  %v23871_v46 = vld [vmem:[#allocation209_spill] sm:$0xff] }
 0x7da   :  { %23863 = vst [vmem:[#allocation107_spill] sm:$0xff] %v20239_v34  ;;  %23864 = vst [vmem:[#allocation58_spill] sm:$0xff] %v20244_v7  ;;  %v7370_v34 = vcombine.high %v7362_v28, %v7362_v28  ;;  %v7672_v7 = vpack.i.b16 %v7536_v54, %v7536_v54  ;;  %v7674_v59 = vpack.i.b16 %v7538_v57, %v7538_v57 }
 0x7db   :  { %v7676_v3 = vpack.i.b16 %v7540_v17, %v7540_v17  ;;  %v7678_v35 = vpack.i.b16 %v7542_v6, %v7542_v6  ;;  %v7680_v18 = vpack.i.b16 %v7544_v49, %v7544_v49  ;;  %v7682_v9 = vpack.i.b16 %v7546_v24, %v7546_v24 }
 0x7dc   :  { %v7684_v32 = vpack.i.b16 %v7548_v41, %v7548_v41  ;;  %v7371_v38 = vcombine.high %v7369_v11, %v7369_v11  ;;  %v20267_v54 = vpack.c.bf16 %v7042_v53, %v20074_v56  ;;  %v9262_v57 = vmax.bf16 %v23790_v4, %v9134_v25  ;;  %v23868_v56 = vld [vmem:[#allocation117_spill] sm:$0xff] }
 0x7dd   :  { %v23866_v17 = vpack.i.b16 %v19652_v33, %v19652_v33  ;;  %v23867_v49 = vcombine.high %v19699_v40, %v19699_v40  ;;  %v8044_v39 = vrot.slane %v7670_v31, %v19625_v8  ;;  %v8052_v24 = vrot.slane %v7672_v7, %v19625_v8 }
 0x7de   :  { %23865 = vst [vmem:[#allocation2_spill] sm:$0xff] %v20267_v54  ;;  %v8060_v41 = vrot.slane %v7674_v59, %v19625_v8  ;;  %v20284_v25 = vrot.slane %v7362_v28, %v19618_v23  ;;  %13571 = vmatmul.mubr.bf16.gmra.mrb[20].mxu1 %v9262_v57  ;;  %v8068_v40 = vrot.slane %v7676_v3, %v19625_v8 }
 0x7df   :  { %v7760_v6 = vrot.slane %v23866_v17, %v19625_v8  ;;  %v7020_v0 = vrot.slane %v23867_v49, %v19625_v8  ;;  %v23870_v17 = vld [vmem:[#allocation203_spill] sm:$0xff]  ;;  %v8076_v31 = vrot.slane %v7678_v35, %v19625_v8  ;;  %v8084_v7 = vrot.slane %v7680_v18, %v19625_v8  ;;  %v23876_v35 = vld [vmem:[#allocation105_spill] sm:$0xff] }
 0x7e0   :  { %23869 = vst [vmem:[#allocation116_spill] sm:$0xff] %v20284_v25  ;;  %v20292_v59 = vrot.slane %v7370_v34, %v19618_v23  ;;  %v20295_v49 = vrot.slane %v7369_v11, %v19618_v23  ;;  %v20298_v28 = vrot.slane %v7371_v38, %v19618_v23  ;;  %v8811_v3 = vpack.i.b16 %v8052_v24, %v8052_v24  ;;  %v23881_v24 = vld [vmem:[#allocation61_spill] sm:$0xff] }
 0x7e1   :  { %v8300_v33 = vpack.i.b16 %v7760_v6, %v7760_v6  ;;  %v7043_v19 = vadd.f32 %v7020_v0, %v23870_v17  ;;  %v7044_v54 = vadd.f32 %v7020_v0, %v23871_v46  ;;  %v8092_v0 = vrot.slane %v7682_v9, %v19625_v8 }
 0x7e2   :  { %23872 = vst [vmem:[#allocation113_spill] sm:$0xff] %v20292_v59  ;;  %23873 = vst [vmem:[#allocation32_spill] sm:$0xff] %v20295_v49  ;;  %v8797_v46 = vpack.i.b16 %v8044_v39, %v8044_v39  ;;  %v9136_v18 = vadd.bf16 %v23876_v35, %v19628_v36  ;;  %v8100_v34 = vrot.slane %v7684_v32, %v19625_v8  ;;  %v7550_v52 = vunpack.i.h.s16 %v20284_v25 }
 0x7e3   :  { %23874 = vst [vmem:[#allocation64_spill] sm:$0xff] %v20298_v28  ;;  %v8305_v57 = vrot.slane %v8300_v33, %v19625_v8  ;;  %v20301_v6 = vpack.c.bf16 %v7044_v54, %v7043_v19  ;;  %v8825_v17 = vpack.i.b16 %v8060_v41, %v8060_v41  ;;  %v20309_v11 = vcombine.high %v20284_v25, %v20284_v25  ;;  %v23903_v25 = vld [vmem:[#allocation92_spill] sm:$0xff] }
 0x7e4   :  { %v8839_v53 = vpack.i.b16 %v8068_v40, %v8068_v40  ;;  %v8853_v33 = vpack.i.b16 %v8076_v31, %v8076_v31  ;;  %v8867_v19 = vpack.i.b16 %v8084_v7, %v8084_v7  ;;  %v20314_v9 = vcombine.high %v20292_v59, %v20292_v59 }
 0x7e5   :  { %23875 = vst [vmem:[#allocation124_spill] sm:$0xff] %v20301_v6  ;;  %23877 = vst [vmem:[#allocation120_spill] sm:$0xff] %v20309_v11  ;;  %v9135_v38 = vadd.bf16 %v8305_v57, %v19628_v36  ;;  %v20318_v39 = vcombine.high %v20295_v49, %v20295_v49  ;;  %v20322_v32 = vcombine.high %v20298_v28, %v20298_v28  ;;  %v7552_v1 = vunpack.i.h.s16 %v20292_v59 }
 0x7e6   :  { %23878 = vst [vmem:[#allocation5_spill] sm:$0xff] %v20314_v9  ;;  %v23882_v41 = vpack.i.b16 %v23881_v24, %v23881_v24  ;;  %v20330_v31 = vrot.slane %v8797_v46, %v19625_v8  ;;  %v20333_v7 = vrot.slane %v8811_v3, %v19625_v8  ;;  %v8881_v57 = vpack.i.b16 %v8092_v0, %v8092_v0 }
 0x7e7   :  { %23879 = vst [vmem:[#allocation38_spill] sm:$0xff] %v20318_v39  ;;  %23880 = vst [vmem:[#allocation132_spill] sm:$0xff] %v20322_v32  ;;  %v9263_v54 = vmax.bf16 %v23790_v4, %v9135_v38  ;;  %v9264_v35 = vmax.bf16 %v23790_v4, %v9136_v18  ;;  %v8895_v6 = vpack.i.b16 %v8100_v34, %v8100_v34  ;;  %v7554_v38 = vunpack.i.h.s16 %v20309_v11 }
 0x7e8   :  { %v7768_v40 = vrot.slane %v23882_v41, %v19625_v8  ;;  %23883 = vst [vmem:[#allocation128_spill] sm:$0xff] %v20330_v31  ;;  %23884 = vst [vmem:[#allocation49_spill] sm:$0xff] %v20333_v7  ;;  %v20340_v24 = vrot.slane %v8825_v17, %v19625_v8  ;;  %v7556_v46 = vunpack.i.h.s16 %v20314_v9  ;;  %v7558_v41 = vunpack.i.h.s16 %v20295_v49 }
 0x7e9   :  { %13574 = vmatprep.mubr.bf16.mxu1 %v9263_v54  ;;  %v7560_v3 = vunpack.i.h.s16 %v20298_v28  ;;  %v7562_v0 = vunpack.i.h.s16 %v20318_v39  ;;  %v7564_v18 = vunpack.i.h.s16 %v20322_v32  ;;  %v11890_v48 = vpack.i.b16 %v23886_v10, %v23886_v10  ;;  %v23897_v10 = vld [vmem:[#allocation88_spill] sm:$0xff] }
 0x7ea   :  { %23885 = vst [vmem:[#allocation82_spill] sm:$0xff] %v20340_v24  ;;  %13575 = vmatmul.mubr.bf16.gmra.mrb[24].mxu1 %v9264_v35  ;;  %v8314_v34 = vpack.i.b16 %v7768_v40, %v7768_v40  ;;  %v20350_v54 = vrot.slane %v8839_v53, %v19625_v8  ;;  %v20353_v17 = vrot.slane %v8853_v33, %v19625_v8  ;;  %v23899_v39 = vld [vmem:[#allocation56_spill] sm:$0xff] }
 0x7eb   :  { %v20356_v9 = vrot.slane %v8867_v19, %v19625_v8  ;;  %v20359_v24 = vrot.slane %v8881_v57, %v19625_v8  ;;  %v20362_v35 = vrot.slane %v8895_v6, %v19625_v8  ;;  %v7686_v32 = vpack.i.b16 %v7550_v52, %v7550_v52  ;;  %v23895_v52 = vld [vmem:[#allocation63_spill] sm:$0xff] }
 0x7ec   :  { %23887 = vst [vmem:[#allocation140_spill] sm:$0xff] %v20350_v54  ;;  %23888 = vst [vmem:[#allocation136_spill] sm:$0xff] %v20353_v17  ;;  %v7688_v40 = vpack.i.b16 %v7552_v1, %v7552_v1  ;;  %v7690_v7 = vpack.i.b16 %v7554_v38, %v7554_v38  ;;  %v7692_v53 = vpack.i.b16 %v7556_v46, %v7556_v46 }
 0x7ed   :  { %23889 = vst [vmem:[#allocation175_spill] sm:$0xff] %v20356_v9  ;;  %23890 = vst [vmem:[#allocation9_spill] sm:$0xff] %v20359_v24  ;;  %v7694_v54 = vpack.i.b16 %v7558_v41, %v7558_v41  ;;  %v7696_v31 = vpack.i.b16 %v7560_v3, %v7560_v3  ;;  %v7698_v33 = vpack.i.b16 %v7562_v0, %v7562_v0 }
 0x7ee   :  { %23891 = vst [vmem:[#allocation148_spill] sm:$0xff] %v20362_v35  ;;  %v7700_v17 = vpack.i.b16 %v7564_v18, %v7564_v18  ;;  %v8319_v19 = vrot.slane %v8314_v34, %v19625_v8  ;;  %v7776_v9 = vrot.slane %v11890_v48, %v19625_v8  ;;  %v20379_v46 = vrot.slane %v7686_v32, %v19625_v8  ;;  %v23892_v34 = vld [vmem:[#allocation201_spill] sm:$0xff] }
 0x7ef   :  { %v20382_v48 = vrot.slane %v7688_v40, %v19625_v8  ;;  %v20385_v41 = vrot.slane %v7690_v7, %v19625_v8  ;;  %v20388_v3 = vrot.slane %v7692_v53, %v19625_v8  ;;  %v20391_v0 = vrot.slane %v7694_v54, %v19625_v8  ;;  %v23893_v53 = vld [vmem:[#allocation185_spill] sm:$0xff] }
 0x7f0   :  { %v20394_v18 = vrot.slane %v7696_v31, %v19625_v8  ;;  %v9138_v38 = vadd.bf16 %v23892_v34, %v19628_v36  ;;  %v20399_v32 = vrot.slane %v7698_v33, %v19625_v8  ;;  %v20402_v40 = vrot.slane %v7700_v17, %v19625_v8  ;;  %v23896_v31 = vld [vmem:[#allocation211_spill] sm:$0xff] }
 0x7f1   :  { %v9137_v7 = vadd.bf16 %v8319_v19, %v19628_v36  ;;  %v8328_v6 = vpack.i.b16 %v7776_v9, %v7776_v9  ;;  %v23894_v54 = vpack.i.b16 %v23893_v53, %v23893_v53  ;;  %v23898_v34 = vpack.i.b16 %v23897_v10, %v23897_v10  ;;  %v23900_v19 = vld [vmem:[#allocation191_spill] sm:$0xff] }
 0x7f2   :  { %v23901_v53 = vpack.i.b16 %v23900_v19, %v23900_v19  ;;  %v8909_v49 = vpack.i.b16 %v20379_v46, %v20379_v46  ;;  %v9266_v10 = vmax.bf16 %v23790_v4, %v9138_v38  ;;  %v11894_v19 = vpack.i.b16 %v23903_v25, %v23903_v25 }
 0x7f3   :  { %v7784_v1 = vrot.slane %v23894_v54, %v19625_v8  ;;  %v7792_v33 = vrot.slane %v23898_v34, %v19625_v8  ;;  %v9265_v28 = vmax.bf16 %v23790_v4, %v9137_v7  ;;  %v8333_v9 = vrot.slane %v8328_v6, %v19625_v8  ;;  %v23902_v6 = vld [vmem:[#allocation96_spill] sm:$0xff] }
 0x7f4   :  { %v7800_v54 = vrot.slane %v23901_v53, %v19625_v8  ;;  %v9140_v17 = vadd.bf16 %v23902_v6, %v19628_v36  ;;  %v7808_v25 = vrot.slane %v11894_v19, %v19625_v8  ;;  %v23906_v19 = vld [vmem:[#allocation195_spill] sm:$0xff] }
 0x7f5   :  { %v8342_v34 = vpack.i.b16 %v7784_v1, %v7784_v1  ;;  %v8356_v11 = vpack.i.b16 %v7792_v33, %v7792_v33  ;;  %13578 = vmatprep.mubr.bf16.mxu1 %v9265_v28  ;;  %v9139_v7 = vadd.bf16 %v8333_v9, %v19628_v36  ;;  %v23904_v28 = vld [vmem:[#allocation99_spill] sm:$0xff] }
 0x7f6   :  { %v8370_v59 = vpack.i.b16 %v7800_v54, %v7800_v54  ;;  %13579 = vmatmul.mubr.bf16.gmra.mrb[28].mxu1 %v9266_v10  ;;  %v23905_v38 = vpack.i.b16 %v23904_v28, %v23904_v28  ;;  %v8384_v6 = vpack.i.b16 %v7808_v25, %v7808_v25  ;;  %v23907_v28 = vpack.i.b16 %v23906_v19, %v23906_v19  ;;  %v23908_v19 = vld [vmem:[#allocation197_spill] sm:$0xff] }
 0x7f7   :  { %v8347_v53 = vrot.slane %v8342_v34, %v19625_v8  ;;  %v20435_v57 = vrot.slane %v8356_v11, %v19625_v8  ;;  %v9267_v36 = vmax.bf16 %v23790_v4, %v9139_v7  ;;  %v8923_v11 = vpack.i.b16 %v20382_v48, %v20382_v48 }
 0x7f8   :  { %v7816_v46 = vrot.slane %v23905_v38, %v19625_v8  ;;  %v20445_v33 = vrot.slane %v8370_v59, %v19625_v8  ;;  %v8937_v7 = vpack.i.b16 %v20385_v41, %v20385_v41  ;;  %v7824_v38 = vrot.slane %v23907_v28, %v19625_v8  ;;  %v23910_v41 = vld [vmem:[#allocation111_spill] sm:$0xff] }
 0x7f9   :  { %v9141_v54 = vadd.bf16 %v8347_v53, %v23895_v52  ;;  %v9143_v10 = vadd.bf16 %v20435_v57, %v23895_v52  ;;  %13582 = vmatprep.mubr.bf16.mxu1 %v9267_v36  ;;  %v8951_v48 = vpack.i.b16 %v20388_v3, %v20388_v3  ;;  %v8965_v57 = vpack.i.b16 %v20391_v0, %v20391_v0 }
 0x7fa   :  { %v8398_v34 = vpack.i.b16 %v7816_v46, %v7816_v46  ;;  %v9268_v46 = vmax.bf16 %v23790_v4, %v9140_v17  ;;  %v20474_v36 = vrot.slane %v8384_v6, %v19625_v8  ;;  %v8412_v25 = vpack.i.b16 %v7824_v38, %v7824_v38 }
 0x7fb   :  { %v23909_v28 = vpack.i.b16 %v23908_v19, %v23908_v19  ;;  %v9269_v9 = vmax.bf16 %v23790_v4, %v9141_v54  ;;  %v11898_v17 = vpack.i.b16 %v23910_v41, %v23910_v41  ;;  %v8979_v54 = vpack.i.b16 %v20394_v18, %v20394_v18  ;;  %v23913_v19 = vld [vmem:[#allocation6_spill] sm:$0xff] }
 0x7fc   :  { %v20468_v53 = vrot.slane %v8398_v34, %v19625_v8  ;;  %v20490_v38 = vrot.slane %v8412_v25, %v19625_v8  ;;  %v23911_v41 = vpack.i.b16 %v19828_v51, %v19828_v51  ;;  %v20504_v25 = vrot.slane %v8909_v49, %v19625_v8 }
 0x7fd   :  { %v7832_v3 = vrot.slane %v23909_v28, %v19625_v8  ;;  %v8993_v28 = vpack.i.b16 %v20399_v32, %v20399_v32  ;;  %v7840_v34 = vrot.slane %v11898_v17, %v19625_v8  ;;  %v23914_v51 = vpack.i.b16 %v19867_v2, %v19867_v2 }
 0x7fe   :  { %13583 = vmatmul.mubr.bf16.gmra.mrb[32].mxu1 %v9268_v46  ;;  %v7848_v0 = vrot.slane %v23911_v41, %v19625_v8  ;;  %23912 = vst [vmem:[#allocation144_spill] sm:$0xff] %v20504_v25  ;;  %v20520_v41 = vrot.slane %v8923_v11, %v19625_v8  ;;  %v11882_v6 = vpack.c.bf16 %v23868_v56, %v23868_v56 }
 0x7ff   :  { %v8426_v1 = vpack.i.b16 %v7832_v3, %v7832_v3  ;;  %v9007_v3 = vpack.i.b16 %v20402_v40, %v20402_v40  ;;  %13586 = vmatprep.mubr.bf16.mxu1 %v9269_v9  ;;  %v8440_v46 = vpack.i.b16 %v7840_v34, %v7840_v34  ;;  %v7856_v49 = vrot.slane %v23914_v51, %v19625_v8 }
 0x800   :  { %v8454_v17 = vpack.i.b16 %v7848_v0, %v7848_v0  ;;  %v23915_v9 = vpack.i.b16 %v19890_v29, %v19890_v29  ;;  %v20531_v34 = vrot.slane %v8937_v7, %v19625_v8  ;;  %v23918_v7 = vpack.i.b16 %v19831_v60, %v19831_v60 }
 0x801   :  { %v20511_v32 = vrot.slane %v8426_v1, %v19625_v8  ;;  %v20534_v2 = vrot.slane %v8440_v46, %v19625_v8  ;;  %v8468_v51 = vpack.i.b16 %v7856_v49, %v7856_v49  ;;  %v23916_v1 = vadd.bf16 %v23896_v31, %v23895_v52 }
 0x802   :  { %v7864_v0 = vrot.slane %v23915_v9, %v19625_v8  ;;  %v20537_v11 = vrot.slane %v8454_v17, %v19625_v8  ;;  %v23917_v9 = vld [vmem:[#allocation207_spill] sm:$0xff]  ;;  %v9271_v31 = vmax.bf16 %v23790_v4, %v9143_v10  ;;  %v7880_v46 = vrot.slane %v23918_v7, %v19625_v8 }
 0x803   :  { %v9270_v40 = vmax.bf16 %v23790_v4, %v23916_v1  ;;  %v20552_v49 = vrot.slane %v8468_v51, %v19625_v8  ;;  %v11902_v18 = vpack.i.b16 %v23917_v9, %v23917_v9  ;;  %v20567_v17 = vrot.slane %v8951_v48, %v19625_v8 }
 0x804   :  { %v8482_v29 = vpack.i.b16 %v7864_v0, %v7864_v0  ;;  %v23919_v51 = vpack.c.bf16 %v23868_v56, %v19862_v63  ;;  %v20577_v0 = vrot.slane %v8965_v57, %v19625_v8  ;;  %v8510_v48 = vpack.i.b16 %v7880_v46, %v7880_v46 }
 0x805   :  { %v20584_v63 = vrot.slane %v8979_v54, %v19625_v8  ;;  %v7418_v46 = vrot.slane %v11882_v6, %v19618_v23  ;;  %v23926_v54 = vld [vmem:[#allocation59_spill] sm:$0xff]  ;;  %v23933_v30 = vadd.bf16 %v20445_v33, %v23895_v52  ;;  %v23972_v42 = vadd.bf16 %v20490_v38, %v23895_v52  ;;  %v23977_v38 = vld [vmem:[#allocation145_spill] sm:$0xff] }
 0x806   :  { %v20558_v1 = vrot.slane %v8482_v29, %v19625_v8  ;;  %v7411_v9 = vrot.slane %v23919_v51, %v19618_v23  ;;  %13587 = vmatmul.mubr.bf16.gmra.mrb[36].mxu1 %v9270_v40  ;;  %v7872_v29 = vrot.slane %v11902_v18, %v19625_v8  ;;  %23920 = vst [vmem:[#allocation181_spill] sm:$0xff] %v20577_v0  ;;  %v23922_v40 = vld [vmem:[#allocation100_spill] sm:$0xff] }
 0x807   :  { %13590 = vmatprep.mubr.bf16.mxu1 %v9271_v31  ;;  %23921 = vst [vmem:[#allocation14_spill] sm:$0xff] %v20584_v63  ;;  %v23923_v51 = vpack.i.b16 %v23922_v40, %v23922_v40  ;;  %v20593_v31 = vrot.slane %v8993_v28, %v19625_v8  ;;  %v20597_v60 = vrot.slane %v8510_v48, %v19625_v8  ;;  %v24033_v0 = vld [vmem:[#allocation132_spill] sm:$0xff] }
 0x808   :  { %v8496_v56 = vpack.i.b16 %v7872_v29, %v7872_v29  ;;  %v23927_v29 = vpack.i.b16 %v23926_v54, %v23926_v54  ;;  %v7419_v59 = vcombine.high %v7411_v9, %v7411_v9  ;;  %v11906_v48 = vpack.i.b16 %v23929_v13, %v23929_v13 }
 0x809   :  { %v7888_v18 = vrot.slane %v23923_v51, %v19625_v8  ;;  %23925 = vst [vmem:[#allocation156_spill] sm:$0xff] %v20597_v60  ;;  %v23931_v54 = vadd.bf16 %v23899_v39, %v23895_v52  ;;  %v7420_v13 = vcombine.high %v7418_v46, %v7418_v46  ;;  %v9273_v28 = vmax.bf16 %v23790_v4, %v23933_v30 }
 0x80a   :  { %v7896_v7 = vrot.slane %v23927_v29, %v19625_v8  ;;  %v20604_v40 = vrot.slane %v8496_v56, %v19625_v8  ;;  %v20651_v60 = vrot.slane %v7411_v9, %v19618_v23  ;;  %v24022_v25 = vadd.bf16 %v19949_v20, %v23895_v52 }
 0x80b   :  { %v8524_v51 = vpack.i.b16 %v7888_v18, %v7888_v18  ;;  %v9272_v56 = vmax.bf16 %v23790_v4, %v23931_v54  ;;  %v7904_v54 = vrot.slane %v11906_v48, %v19625_v8  ;;  %v20636_v18 = vrot.slane %v9007_v3, %v19625_v8 }
 0x80c   :  { %v8538_v6 = vpack.i.b16 %v7896_v7, %v7896_v7  ;;  %v23932_v7 = vpack.i.b16 %v19971_v22, %v19971_v22 }
 0x80d   :  { %v20621_v29 = vrot.slane %v8524_v51, %v19625_v8  ;;  %v8552_v33 = vpack.i.b16 %v7904_v54, %v7904_v54  ;;  %v23940_v54 = vpack.i.b16 %v23939_v43, %v23939_v43  ;;  %v11910_v43 = vpack.i.b16 %v23942_v61, %v23942_v61 }
 0x80e   :  { %v7912_v57 = vrot.slane %v23932_v7, %v19625_v8  ;;  %v20632_v39 = vrot.slane %v8538_v6, %v19625_v8  ;;  %13591 = vmatmul.mubr.bf16.gmra.mrb[40].mxu1 %v9272_v56  ;;  %v23934_v7 = vld [vmem:[#allocation205_spill] sm:$0xff]  ;;  %v23945_v61 = vadd.bf16 %v19930_v26, %v23895_v52  ;;  %v23948_v51 = vpack.i.b16 %v23947_v55, %v23947_v55 }
 0x80f   :  { %13594 = vmatprep.mubr.bf16.mxu1 %v9273_v28  ;;  %v23935_v6 = vld [vmem:[#allocation125_spill] sm:$0xff]  ;;  %v7928_v30 = vrot.slane %v23940_v54, %v19625_v8  ;;  %v20670_v9 = vrot.slane %v8552_v33, %v19625_v8  ;;  %v20691_v54 = vcombine.high %v20651_v60, %v20651_v60 }
 0x810   :  { %v8566_v22 = vpack.i.b16 %v7912_v57, %v7912_v57  ;;  %v23936_v48 = vpack.i.b16 %v23935_v6, %v23935_v6  ;;  %v20654_v57 = vrot.slane %v7418_v46, %v19618_v23  ;;  %v20664_v6 = vrot.slane %v7419_v59, %v19618_v23 }
 0x811   :  { %v9274_v3 = vmax.bf16 %v23790_v4, %v23945_v61  ;;  %v7936_v46 = vrot.slane %v11910_v43, %v19625_v8  ;;  %v23958_v43 = vadd.bf16 %v20468_v53, %v23895_v52  ;;  %v7570_v53 = vunpack.i.h.s16 %v20691_v54 }
 0x812   :  { %v7920_v10 = vrot.slane %v23936_v48, %v19625_v8  ;;  %v20657_v28 = vrot.slane %v8566_v22, %v19625_v8  ;;  %v20667_v48 = vrot.slane %v7420_v13, %v19618_v23  ;;  %v8594_v22 = vpack.i.b16 %v7928_v30, %v7928_v30 }
 0x813   :  { %v20703_v13 = vcombine.high %v20654_v57, %v20654_v57  ;;  %v8608_v61 = vpack.i.b16 %v7936_v46, %v7936_v46  ;;  %v9277_v16 = vmax.bf16 %v23790_v4, %v23958_v43 }
 0x814   :  { %23938 = vst [vmem:[#allocation152_spill] sm:$0xff] %v20657_v28  ;;  %v8580_v56 = vpack.i.b16 %v7920_v10, %v7920_v10  ;;  %v23943_v10 = vld [vmem:[#allocation121_spill] sm:$0xff]  ;;  %v7952_v28 = vrot.slane %v23948_v51, %v19625_v8  ;;  %v20754_v15 = vcombine.high %v20667_v48, %v20667_v48 }
 0x815   :  { %v23944_v33 = vpack.i.b16 %v23943_v10, %v23943_v10  ;;  %v23946_v10 = vadd.bf16 %v20474_v36, %v23895_v52  ;;  %v7566_v36 = vunpack.i.h.s16 %v20651_v60  ;;  %v20733_v51 = vrot.slane %v8608_v61, %v19625_v8  ;;  %v23954_v61 = vld [vmem:[#allocation129_spill] sm:$0xff] }
 0x816   :  { %v20681_v23 = vrot.slane %v8580_v56, %v19625_v8  ;;  %v20698_v56 = vrot.slane %v8594_v22, %v19625_v8  ;;  %13595 = vmatmul.mubr.bf16.gmra.mrb[44].mxu1 %v9274_v3  ;;  %v23951_v22 = vld [vmem:[#allocation133_spill] sm:$0xff] }
 0x817   :  { %v7944_v30 = vrot.slane %v23944_v33, %v19625_v8  ;;  %v9275_v33 = vmax.bf16 %v23790_v4, %v23946_v10  ;;  %v23952_v46 = vpack.i.b16 %v23951_v22, %v23951_v22  ;;  %23953 = vst [vmem:[#allocation162_spill] sm:$0xff] %v20733_v51  ;;  %v20795_v50 = vpack.i.b16 %v7566_v36, %v7566_v36 }
 0x819   :  { %v8622_v26 = vpack.i.b16 %v7944_v30, %v7944_v30  ;;  %13598 = vmatprep.mubr.bf16.mxu1 %v9275_v33  ;;  %v7960_v59 = vrot.slane %v23952_v46, %v19625_v8  ;;  %v8636_v33 = vpack.i.b16 %v7952_v28, %v7952_v28  ;;  %v11914_v28 = vpack.i.b16 %v23954_v61, %v23954_v61 }
 0x81a   :  { %v23957_v61 = vadd.bf16 %v19936_v45, %v23895_v52  ;;  %v23960_v45 = vpack.i.b16 %v20082_v5, %v20082_v5 }
 0x81b   :  { %v20721_v10 = vrot.slane %v8622_v26, %v19625_v8  ;;  %v20737_v26 = vcombine.high %v20664_v6, %v20664_v6  ;;  %v8650_v3 = vpack.i.b16 %v7960_v59, %v7960_v59  ;;  %v20746_v55 = vrot.slane %v8636_v33, %v19625_v8 }
 0x81c   :  { %v7568_v59 = vunpack.i.h.s16 %v20664_v6  ;;  %v23956_v33 = vpack.i.b16 %v20079_v44, %v20079_v44  ;;  %v9276_v46 = vmax.bf16 %v23790_v4, %v23957_v61  ;;  %v7984_v61 = vrot.slane %v23960_v45, %v19625_v8 }
 0x81d   :  { %23949 = vst [vmem:[#allocation166_spill] sm:$0xff] %v20721_v10  ;;  %v20758_v22 = vrot.slane %v8650_v3, %v19625_v8  ;;  %v7968_v3 = vrot.slane %v11914_v28, %v19625_v8  ;;  %v23961_v28 = vpack.i.b16 %v20104_v62, %v20104_v62  ;;  %v23968_v62 = vld [vmem:[#allocation176_spill] sm:$0xff]  ;;  %v7572_v10 = vunpack.i.h.s16 %v20737_v26 }
 0x81e   :  { %v7976_v30 = vrot.slane %v23956_v33, %v19625_v8  ;;  %v23959_v33 = vld [vmem:[#allocation69_spill] sm:$0xff]  ;;  %13599 = vmatmul.mubr.bf16.gmra.mrb[48].mxu1 %v9276_v46  ;;  %v8692_v45 = vpack.i.b16 %v7984_v61, %v7984_v61  ;;  %v7706_v61 = vpack.i.b16 %v7570_v53, %v7570_v53 }
 0x81f   :  { %23955 = vst [vmem:[#allocation106_spill] sm:$0xff] %v20758_v22  ;;  %v8664_v43 = vpack.i.b16 %v7968_v3, %v7968_v3  ;;  %13602 = vmatprep.mubr.bf16.mxu1 %v9277_v16  ;;  %v23965_v16 = vld [vmem:[#allocation149_spill] sm:$0xff]  ;;  %v7704_v22 = vpack.i.b16 %v7568_v59, %v7568_v59 }
 0x820   :  { %v8678_v44 = vpack.i.b16 %v7976_v30, %v7976_v30  ;;  %v7992_v30 = vrot.slane %v23961_v28, %v19625_v8  ;;  %v20805_v28 = vrot.slane %v8692_v45, %v19625_v8  ;;  %v23969_v45 = vpack.i.b16 %v23968_v62, %v23968_v62  ;;  %v23988_v62 = vld [vmem:[#allocation137_spill] sm:$0xff] }
 0x821   :  { %v20798_v46 = vrot.slane %v8664_v43, %v19625_v8 }
 0x822   :  { %v20793_v5 = vrot.slane %v8678_v44, %v19625_v8  ;;  %v8706_v3 = vpack.i.b16 %v7992_v30, %v7992_v30  ;;  %23964 = vst [vmem:[#allocation170_spill] sm:$0xff] %v20805_v28  ;;  %v11918_v44 = vpack.i.b16 %v23965_v16, %v23965_v16  ;;  %v8008_v51 = vrot.slane %v23969_v45, %v19625_v8 }
 0x823   :  { %23963 = vst [vmem:[#allocation66_spill] sm:$0xff] %v20798_v46  ;;  %v7580_v16 = vunpack.i.h.s16 %v20754_v15  ;;  %v23970_v30 = vadd.bf16 %v19933_v12, %v23895_v52  ;;  %v23985_v46 = vunpack.i.h.s16 %v20654_v57 }
 0x824   :  { %23962 = vst [vmem:[#allocation103_spill] sm:$0xff] %v20793_v5  ;;  %v20816_v37 = vrot.slane %v8706_v3, %v19625_v8  ;;  %v8000_v43 = vrot.slane %v11918_v44, %v19625_v8  ;;  %v8734_v14 = vpack.i.b16 %v8008_v51, %v8008_v51  ;;  %v9279_v5 = vmax.bf16 %v23790_v4, %v23972_v42  ;;  %v23973_v44 = vld [vmem:[#allocation12_spill] sm:$0xff] }
 0x825   :  { %v9278_v3 = vmax.bf16 %v23790_v4, %v23970_v30  ;;  %v23974_v28 = vpack.i.b16 %v23973_v44, %v23973_v44  ;;  %v23978_v42 = vpack.i.b16 %v23977_v38, %v23977_v38  ;;  %v23995_v38 = vld [vmem:[#allocation196_spill] sm:$0xff] }
 0x826   :  { %23967 = vst [vmem:[#allocation112_spill] sm:$0xff] %v20816_v37  ;;  %v8720_v36 = vpack.i.b16 %v8000_v43, %v8000_v43  ;;  %v20848_v45 = vrot.slane %v8734_v14, %v19625_v8  ;;  %v23981_v14 = vld [vmem:[#allocation182_spill] sm:$0xff] }
 0x827   :  { %v8016_v12 = vrot.slane %v23974_v28, %v19625_v8  ;;  %13603 = vmatmul.mubr.bf16.gmra.mrb[52].mxu1 %v9278_v3  ;;  %v8024_v43 = vrot.slane %v23978_v42, %v19625_v8  ;;  %v11922_v30 = vpack.i.b16 %v23981_v14, %v23981_v14  ;;  %v7710_v14 = vpack.i.b16 %v23985_v46, %v23985_v46 }
 0x828   :  { %23976 = vst [vmem:[#allocation109_spill] sm:$0xff] %v20848_v45  ;;  %13606 = vmatprep.mubr.bf16.mxu1 %v9279_v5  ;;  %v20855_v28 = vrot.slane %v8720_v36, %v19625_v8 }
 0x829   :  { %v8748_v44 = vpack.i.b16 %v8016_v12, %v8016_v12  ;;  %v8762_v51 = vpack.i.b16 %v8024_v43, %v8024_v43  ;;  %v23983_v12 = vld [vmem:[#allocation190_spill] sm:$0xff]  ;;  %v8032_v5 = vrot.slane %v11922_v30, %v19625_v8 }
 0x82a   :  { %23979 = vst [vmem:[#allocation91_spill] sm:$0xff] %v20855_v28  ;;  %v23984_v42 = vpack.i.b16 %v23983_v12, %v23983_v12  ;;  %v23993_v12 = vadd.bf16 %v20511_v32, %v23895_v52 }
 0x82b   :  { %v20870_v36 = vrot.slane %v8748_v44, %v19625_v8  ;;  %v20882_v3 = vrot.slane %v8762_v51, %v19625_v8  ;;  %v23987_v44 = vadd.bf16 %v19943_v21, %v23895_v52  ;;  %v8776_v45 = vpack.i.b16 %v8032_v5, %v8032_v5  ;;  %v23990_v51 = vld [vmem:[#allocation52_spill] sm:$0xff] }
 0x82c   :  { %v8040_v43 = vrot.slane %v23984_v42, %v19625_v8  ;;  %v23991_v30 = vpack.i.b16 %v23990_v51, %v23990_v51  ;;  %v23996_v5 = vpack.i.b16 %v23995_v38, %v23995_v38  ;;  %v23997_v51 = vunpack.i.h.s16 %v20667_v48  ;;  %v24000_v21 = vld [vmem:[#allocation164_spill] sm:$0xff] }
 0x82d   :  { %23986 = vst [vmem:[#allocation30_spill] sm:$0xff] %v20882_v3  ;;  %v9280_v53 = vmax.bf16 %v23790_v4, %v23987_v44  ;;  %v7708_v44 = vpack.i.b16 %v7572_v10, %v7572_v10  ;;  %v20918_v32 = vrot.slane %v8776_v45, %v19625_v8  ;;  %v11926_v3 = vpack.i.b16 %v24000_v21, %v24000_v21 }
 0x82e   :  { %v8790_v42 = vpack.i.b16 %v8040_v43, %v8040_v43  ;;  %v8048_v28 = vrot.slane %v23991_v30, %v19625_v8  ;;  %v9281_v43 = vmax.bf16 %v23790_v4, %v23993_v12  ;;  %v8056_v59 = vrot.slane %v23996_v5, %v19625_v8 }
 0x82f   :  { %v7712_v30 = vpack.i.b16 %v23997_v51, %v23997_v51  ;;  %13607 = vmatmul.mubr.bf16.gmra.mrb[56].mxu1 %v9280_v53  ;;  %23998 = vst [vmem:[#allocation34_spill] sm:$0xff] %v20918_v32  ;;  %v24004_v10 = vunpack.i.h.s16 %v20703_v13  ;;  %v7716_v38 = vpack.i.b16 %v7580_v16, %v7580_v16  ;;  %v8064_v51 = vrot.slane %v11926_v3, %v19625_v8  ;;  %v24007_v3 = vld [vmem:[#allocation200_spill] sm:$0xff] }
 0x830   :  { %v20906_v46 = vrot.slane %v8790_v42, %v19625_v8  ;;  %v8804_v12 = vpack.i.b16 %v8048_v28, %v8048_v28  ;;  %13610 = vmatprep.mubr.bf16.mxu1 %v9281_v43  ;;  %v8818_v37 = vpack.i.b16 %v8056_v59, %v8056_v59  ;;  %v24002_v43 = vld [vmem:[#allocation169_spill] sm:$0xff]  ;;  %v20949_v28 = vrot.slane %v7704_v22, %v19625_v8 }
 0x831   :  { %v24003_v42 = vpack.i.b16 %v24002_v43, %v24002_v43  ;;  %v7714_v5 = vpack.i.b16 %v24004_v10, %v24004_v10  ;;  %v8832_v16 = vpack.i.b16 %v8064_v51, %v8064_v51  ;;  %v24009_v22 = vadd.bf16 %v19946_v27, %v23895_v52  ;;  %v24011_v51 = vld [vmem:[#allocation160_spill] sm:$0xff] }
 0x832   :  { %23994 = vst [vmem:[#allocation24_spill] sm:$0xff] %v20906_v46  ;;  %v20929_v53 = vrot.slane %v8804_v12, %v19625_v8  ;;  %v20941_v21 = vrot.slane %v8818_v37, %v19625_v8  ;;  %v20946_v12 = vrot.slane %v20795_v50, %v19625_v8  ;;  %v24008_v46 = vpack.i.b16 %v24007_v3, %v24007_v3 }
 0x833   :  { %v8072_v59 = vrot.slane %v24003_v42, %v19625_v8  ;;  %v9282_v32 = vmax.bf16 %v23790_v4, %v24009_v22  ;;  %v24012_v45 = vpack.i.b16 %v24011_v51, %v24011_v51  ;;  %v20982_v3 = vrot.slane %v8832_v16, %v19625_v8  ;;  %v24014_v16 = vld [vmem:[#allocation104_spill] sm:$0xff] }
 0x834   :  { %24005 = vst [vmem:[#allocation83_spill] sm:$0xff] %v20941_v21  ;;  %v8080_v50 = vrot.slane %v24008_v46, %v19625_v8  ;;  %v20975_v21 = vrot.slane %v7706_v61, %v19625_v8  ;;  %v24013_v46 = vadd.bf16 %v20534_v2, %v23895_v52  ;;  %v20985_v22 = vrot.slane %v7708_v44, %v19625_v8  ;;  %v24015_v61 = vld [vmem:[#allocation116_spill] sm:$0xff]  ;;  %v24017_v2 = vld [vmem:[#allocation2_spill] sm:$0xff] }
 0x835   :  { %v8846_v43 = vpack.i.b16 %v8072_v59, %v8072_v59  ;;  %v24010_v59 = vld [vmem:[#allocation175_spill] sm:$0xff]  ;;  %v8088_v37 = vrot.slane %v24012_v45, %v19625_v8  ;;  %v21014_v51 = vrot.slane %v7714_v5, %v19625_v8  ;;  %v9035_v35 = vpack.i.b16 %v20949_v28, %v20949_v28 }
 0x836   :  { %v9283_v27 = vmax.bf16 %v23790_v4, %v24013_v46 }
 0x837   :  { %v20966_v42 = vrot.slane %v8846_v43, %v19625_v8  ;;  %v8860_v43 = vpack.i.b16 %v8080_v50, %v8080_v50  ;;  %13611 = vmatmul.mubr.bf16.gmra.mrb[60].mxu1 %v9282_v32  ;;  %v8874_v45 = vpack.i.b16 %v8088_v37, %v8088_v37  ;;  %v11930_v50 = vpack.i.b16 %v24014_v16, %v24014_v16 }
 0x838   :  { %13614 = vmatprep.mubr.bf16.mxu1 %v9283_v27  ;;  %v21001_v32 = vrot.slane %v7710_v14, %v19625_v8  ;;  %v21004_v37 = vrot.slane %v7712_v30, %v19625_v8  ;;  %v21017_v16 = vrot.slane %v7716_v38, %v19625_v8  ;;  %v9021_v38 = vpack.i.b16 %v20946_v12, %v20946_v12 }
 0x839   :  { %v20994_v46 = vrot.slane %v8860_v43, %v19625_v8  ;;  %v21007_v27 = vrot.slane %v8874_v45, %v19625_v8  ;;  %v24016_v43 = vpack.i.b16 %v24015_v61, %v24015_v61  ;;  %v8096_v30 = vrot.slane %v11930_v50, %v19625_v8  ;;  %v24018_v61 = vld [vmem:[#allocation113_spill] sm:$0xff]  ;;  %v24020_v50 = vld [vmem:[#allocation120_spill] sm:$0xff] }
 0x83a   :  { %v24019_v5 = vpack.i.b16 %v24018_v61, %v24018_v61  ;;  %v24021_v45 = vpack.i.b16 %v24020_v50, %v24020_v50  ;;  %v9284_v61 = vmax.bf16 %v23790_v4, %v24022_v25  ;;  %v24024_v25 = vld [vmem:[#allocation5_spill] sm:$0xff] }
 0x83b   :  { %v8104_v10 = vrot.slane %v24016_v43, %v19625_v8  ;;  %v8888_v24 = vpack.i.b16 %v8096_v30, %v8096_v30  ;;  %v24023_v30 = vadd.bf16 %v20537_v11, %v23913_v19  ;;  %v9077_v11 = vpack.i.b16 %v21001_v32, %v21001_v32  ;;  %v24027_v32 = vld [vmem:[#allocation64_spill] sm:$0xff] }
 0x83c   :  { %v8112_v43 = vrot.slane %v24019_v5, %v19625_v8 }
 0x83d   :  { %v8902_v44 = vpack.i.b16 %v8104_v10, %v8104_v10  ;;  %v8120_v10 = vrot.slane %v24021_v45, %v19625_v8  ;;  %v9285_v14 = vmax.bf16 %v23790_v4, %v24023_v30  ;;  %v21052_v50 = vrot.slane %v8888_v24, %v19625_v8 }
 0x83e   :  { %v8916_v12 = vpack.i.b16 %v8112_v43, %v8112_v43  ;;  %v9049_v24 = vpack.i.b16 %v20975_v21, %v20975_v21  ;;  %v24028_v21 = vpack.i.b16 %v24027_v32, %v24027_v32 }
 0x83f   :  { %v21045_v5 = vrot.slane %v8902_v44, %v19625_v8  ;;  %v8930_v45 = vpack.i.b16 %v8120_v10, %v8120_v10  ;;  %13615 = vmatmul.mubr.bf16.gmra.mrb[64].mxu1 %v9284_v61  ;;  %v11934_v44 = vpack.i.b16 %v24024_v25, %v24024_v25  ;;  %v24025_v61 = vld [vmem:[#allocation32_spill] sm:$0xff]  ;;  %v9063_v25 = vpack.i.b16 %v20985_v22, %v20985_v22 }
 0x840   :  { %v21059_v52 = vrot.slane %v8916_v12, %v19625_v8  ;;  %13618 = vmatprep.mubr.bf16.mxu1 %v9285_v14  ;;  %v24026_v12 = vpack.i.b16 %v24025_v61, %v24025_v61  ;;  %v21090_v22 = vrot.slane %v9021_v38, %v19625_v8  ;;  %v8144_v43 = vrot.slane %v24028_v21, %v19625_v8 }
 0x841   :  { %v21070_v10 = vrot.slane %v8930_v45, %v19625_v8  ;;  %v8128_v14 = vrot.slane %v11934_v44, %v19625_v8  ;;  %v9091_v45 = vpack.i.b16 %v21004_v37, %v21004_v37  ;;  %v21099_v37 = vrot.slane %v9035_v35, %v19625_v8 }
 0x842   :  { %v8136_v30 = vrot.slane %v24026_v12, %v19625_v8  ;;  %v24032_v21 = vadd.bf16 %v20552_v49, %v23913_v19  ;;  %v8972_v63 = vpack.i.b16 %v8144_v43, %v8144_v43  ;;  %v9105_v49 = vpack.i.b16 %v21014_v51, %v21014_v51 }
 0x843   :  { %v8944_v12 = vpack.i.b16 %v8128_v14, %v8128_v14  ;;  %v24030_v14 = vld [vmem:[#allocation38_spill] sm:$0xff] }
 0x844   :  { %v8958_v20 = vpack.i.b16 %v8136_v30, %v8136_v30  ;;  %v24029_v30 = vadd.bf16 %v20003_v58, %v23913_v19  ;;  %v24031_v28 = vpack.i.b16 %v24030_v14, %v24030_v14  ;;  %v9287_v44 = vmax.bf16 %v23790_v4, %v24032_v21 }
 0x845   :  { %v21117_v35 = vrot.slane %v8944_v12, %v19625_v8  ;;  %v11938_v14 = vpack.i.b16 %v24033_v0, %v24033_v0  ;;  %v21132_v12 = vrot.slane %v8972_v63, %v19625_v8  ;;  %v21139_v0 = vrot.slane %v9049_v24, %v19625_v8 }
 0x846   :  { %v9286_v61 = vmax.bf16 %v23790_v4, %v24029_v30  ;;  %v21106_v38 = vrot.slane %v8958_v20, %v19625_v8  ;;  %v8152_v32 = vrot.slane %v24031_v28, %v19625_v8  ;;  %v9119_v28 = vpack.i.b16 %v21017_v16, %v21017_v16 }
 0x847   :  { %v21148_v63 = vrot.slane %v9063_v25, %v19625_v8 }
 0x848   :  { %v8986_v30 = vpack.i.b16 %v8152_v32, %v8152_v32  ;;  %13619 = vmatmul.mubr.bf16.gmra.mrb[68].mxu1 %v9286_v61  ;;  %v24034_v32 = vpack.i.b16 %v20651_v60, %v20651_v60  ;;  %v8160_v61 = vrot.slane %v11938_v14, %v19625_v8  ;;  %v21163_v14 = vrot.slane %v9077_v11, %v19625_v8 }
 0x849   :  { %13622 = vmatprep.mubr.bf16.mxu1 %v9287_v44  ;;  %v24036_v44 = vpack.i.b16 %v20664_v6, %v20664_v6  ;;  %v24039_v6 = vadd.bf16 %v20006_v47, %v23913_v19  ;;  %v24040_v11 = vadd.bf16 %v20558_v1, %v23913_v19  ;;  %v11942_v47 = vpack.i.b16 %v20737_v26, %v20737_v26 }
 0x84a   :  { %v8168_v21 = vrot.slane %v24034_v32, %v19625_v8  ;;  %v21144_v51 = vrot.slane %v8986_v30, %v19625_v8  ;;  %v24035_v32 = vld [vmem:[#allocation124_spill] sm:$0xff]  ;;  %v9000_v16 = vpack.i.b16 %v8160_v61, %v8160_v61  ;;  %v24038_v61 = vpack.i.b16 %v20691_v54, %v20691_v54 }
 0x84b   :  { %v8176_v30 = vrot.slane %v24036_v44, %v19625_v8  ;;  %v9288_v44 = vmax.bf16 %v23790_v4, %v24039_v6  ;;  %v9289_v25 = vmax.bf16 %v23790_v4, %v24040_v11  ;;  %v8192_v26 = vrot.slane %v11942_v47, %v19625_v8 }
 0x84c   :  { %v9014_v60 = vpack.i.b16 %v8168_v21, %v8168_v21  ;;  %v21166_v21 = vrot.slane %v9091_v45, %v19625_v8  ;;  %v8184_v20 = vrot.slane %v24038_v61, %v19625_v8  ;;  %v21184_v45 = vrot.slane %v9000_v16, %v19625_v8 }
 0x84d   :  { %v21208_v11 = vrot.slane %v9105_v49, %v19625_v8  ;;  %v24044_v49 = vpack.i.b16 %v20667_v48, %v20667_v48 }
 0x84e   :  { %24037 = vst [vmem:[#allocation118_spill] sm:$0xff] %v21166_v21  ;;  %v21169_v24 = vrot.slane %v9014_v60, %v19625_v8  ;;  %v9028_v60 = vpack.i.b16 %v8176_v30, %v8176_v30  ;;  %v9042_v43 = vpack.i.b16 %v8184_v20, %v8184_v20  ;;  %v24041_v30 = vpack.i.b16 %v20654_v57, %v20654_v57  ;;  %v24046_v57 = vld [vmem:[#allocation214_spill] sm:$0xff] }
 0x84f   :  { %24042 = vst [vmem:[#allocation115_spill] sm:$0xff] %v21208_v11  ;;  %v8208_v47 = vrot.slane %v24044_v49, %v19625_v8  ;;  %v24047_v16 = vadd.bf16 %v24046_v57, %v23913_v19 }
 0x850   :  { %v21195_v1 = vrot.slane %v9028_v60, %v19625_v8  ;;  %v8200_v20 = vrot.slane %v24041_v30, %v19625_v8  ;;  %13623 = vmatmul.mubr.bf16.gmra.mrb[72].mxu1 %v9288_v44  ;;  %v21204_v6 = vrot.slane %v9042_v43, %v19625_v8  ;;  %v21211_v60 = vrot.slane %v9119_v28, %v19625_v8 }
 0x851   :  { %13626 = vmatprep.mubr.bf16.mxu1 %v9289_v25  ;;  %v9056_v44 = vpack.i.b16 %v8192_v26, %v8192_v26  ;;  %v24045_v30 = vpack.i.b16 %v20703_v13, %v20703_v13  ;;  %v9084_v43 = vpack.i.b16 %v8208_v47, %v8208_v47  ;;  %v9290_v48 = vmax.bf16 %v23790_v4, %v24047_v16  ;;  %v24053_v13 = vld [vmem:[#allocation156_spill] sm:$0xff] }
 0x852   :  { %24043 = vst [vmem:[#allocation127_spill] sm:$0xff] %v21211_v60  ;;  %v9070_v54 = vpack.i.b16 %v8200_v20, %v8200_v20  ;;  %v24048_v16 = vadd.bf16 %v20604_v40, %v23913_v19  ;;  %v24051_v40 = vld [vmem:[#allocation75_spill] sm:$0xff]  ;;  %v24054_v25 = vadd.bf16 %v24053_v13, %v23913_v19 }
 0x853   :  { %v8216_v20 = vrot.slane %v24045_v30, %v19625_v8  ;;  %v21233_v26 = vrot.slane %v9056_v44, %v19625_v8  ;;  %v21246_v30 = vrot.slane %v9084_v43, %v19625_v8  ;;  %v11946_v44 = vpack.i.b16 %v20754_v15, %v20754_v15 }
 0x854   :  { %v21224_v28 = vrot.slane %v9070_v54, %v19625_v8  ;;  %v9291_v47 = vmax.bf16 %v23790_v4, %v24048_v16  ;;  %v24052_v16 = vadd.bf16 %v24051_v40, %v23913_v19 }
 0x855   :  { %v9098_v49 = vpack.i.b16 %v8216_v20, %v8216_v20  ;;  %v8224_v43 = vrot.slane %v11946_v44, %v19625_v8  ;;  %v9293_v44 = vmax.bf16 %v23790_v4, %v24054_v25  ;;  %v24060_v25 = vadd.bf16 %v20632_v39, %v23913_v19 }
 0x856   :  { %v24063_v39 = vadd.bf16 %v20670_v9, %v23913_v19 }
 0x857   :  { %v21257_v20 = vrot.slane %v9098_v49, %v19625_v8  ;;  %v9112_v54 = vpack.i.b16 %v8224_v43, %v8224_v43  ;;  %v9292_v49 = vmax.bf16 %v23790_v4, %v24052_v16  ;;  %v24058_v16 = vld [vmem:[#allocation48_spill] sm:$0xff] }
 0x858   :  { %13627 = vmatmul.mubr.bf16.gmra.mrb[76].mxu1 %v9290_v48  ;;  %v24059_v48 = vadd.bf16 %v24058_v16, %v23913_v19  ;;  %v9299_v16 = vmax.bf16 %v23790_v4, %v24063_v39 }
 0x859   :  { %24049 = vst [vmem:[#allocation70_spill] sm:$0xff] %v21257_v20  ;;  %13630 = vmatprep.mubr.bf16.mxu1 %v9291_v47  ;;  %v21265_v57 = vrot.slane %v9112_v54, %v19625_v8  ;;  %v24055_v47 = vld [vmem:[#allocation89_spill] sm:$0xff]  ;;  %v24057_v54 = vadd.bf16 %v20621_v29, %v23913_v19  ;;  %v21296_v29 = vld [vmem:[%s22043_s10] ss:$0 sm:$0xff] }
 0x85a   :  { %v24056_v43 = vadd.bf16 %v24055_v47, %v23913_v19  ;;  %v9296_v13 = vmax.bf16 %v23790_v4, %v24059_v48 }
 0x85b   :  { %24050 = vst [vmem:[#allocation3_spill] sm:$0xff] %v21265_v57  ;;  %v9295_v40 = vmax.bf16 %v23790_v4, %v24057_v54  ;;  %v24064_v57 = vld [vmem:[#allocation141_spill] sm:$0xff] }
 0x85c   :  { %v9294_v8 = vmax.bf16 %v23790_v4, %v24056_v43  ;;  %v24061_v43 = vld [vmem:[#allocation79_spill] sm:$0xff]  ;;  %v24065_v9 = vadd.bf16 %v24064_v57, %v23913_v19 }
 0x85e   :  { %v9300_v39 = vmax.bf16 %v23790_v4, %v24065_v9 }
 0x860   :  { %13631 = vmatmul.mubr.bf16.gmra.mrb[80].mxu1 %v9292_v49  ;;  %v9297_v49 = vmax.bf16 %v23790_v4, %v24060_v25 }
 0x861   :  { %13634 = vmatprep.mubr.bf16.mxu1 %v9293_v44 }
 0x868   :  { %13635 = vmatmul.mubr.bf16.gmra.mrb[84].mxu1 %v9294_v8  ;;  %v24062_v8 = vadd.bf16 %v24061_v43, %v23913_v19 }
 0x869   :  { %13638 = vmatprep.mubr.bf16.mxu1 %v9295_v40 }
 0x86a   :  { %v9298_v54 = vmax.bf16 %v23790_v4, %v24062_v8 }
 0x870   :  { %13639 = vmatmul.mubr.bf16.gmra.mrb[88].mxu1 %v9296_v13 }
 0x871   :  { %13642 = vmatprep.mubr.bf16.mxu1 %v9297_v49  ;;  %v13556_v44 = vpop.f32.mrb[4].mxu1 }
 0x872   :  { %v9486_v47 = vpop.f32.mrb[5].mxu1  ;;  %v9495_v25 = vadd.f32 %v13556_v44, %v21296_v29 }
 0x873   :  { %v9487_v48 = vadd.f32 %v21296_v29, %v9486_v47  ;;  %v13557_v40 = vpop.f32.mrb[6].mxu1 }
 0x874   :  { %v9489_v13 = vpop.f32.mrb[7].mxu1  ;;  %v9498_v43 = vadd.f32 %v13557_v40, %v21296_v29  ;;  %v10511_v8 = vmax.f32 %v9495_v25, 0.0 }
 0x875   :  { %v9490_v49 = vadd.f32 %v21296_v29, %v9489_v13  ;;  %v10509_v15 = vmax.f32 %v9487_v48, 0.0  ;;  %v24066_v13 = vld [vmem:[#allocation152_spill] sm:$0xff] }
 0x876   :  { %v10512_v11 = vmax.f32 %v9498_v43, 0.0  ;;  %v24067_v48 = vadd.bf16 %v24066_v13, %v23934_v7  ;;  %v24068_v13 = vld [vmem:[#allocation178_spill] sm:$0xff] }
 0x877   :  { %v10510_v58 = vmax.f32 %v9490_v49, 0.0 }
 0x878   :  { %13643 = vmatmul.mubr.bf16.gmra.mrb[92].mxu1 %v9298_v54  ;;  %v9301_v40 = vmax.bf16 %v23790_v4, %v24067_v48  ;;  %v24069_v48 = vadd.bf16 %v24068_v13, %v23934_v7 }
 0x879   :  { %13646 = vmatprep.mubr.bf16.mxu1 %v9299_v16  ;;  %v10765_v61 = vadd.f32 %v10510_v58, %v10509_v15  ;;  %v13560_v47 = vpop.f32.mrb[8].mxu1 }
 0x87a   :  { %v9502_v60 = vpop.f32.mrb[9].mxu1  ;;  %v9511_v58 = vadd.f32 %v13560_v47, %v21296_v29 }
 0x87b   :  { %v10766_v54 = vadd.f32 %v10765_v61, %v10511_v8  ;;  %v9503_v44 = vadd.f32 %v21296_v29, %v9502_v60  ;;  %v13561_v20 = vpop.f32.mrb[10].mxu1 }
 0x87c   :  { %v9505_v16 = vpop.f32.mrb[11].mxu1  ;;  %v9514_v61 = vadd.f32 %v13561_v20, %v21296_v29  ;;  %v10515_v60 = vmax.f32 %v9511_v58, 0.0 }
 0x87d   :  { %v10513_v15 = vmax.f32 %v9503_v44, 0.0  ;;  %v10767_v25 = vadd.f32 %v10766_v54, %v10512_v11  ;;  %v9506_v19 = vadd.f32 %v21296_v29, %v9505_v16  ;;  %v24070_v44 = vadd.bf16 %v20681_v23, %v23934_v7 }
 0x87e   :  { %v10516_v21 = vmax.f32 %v9514_v61, 0.0 }
 0x87f   :  { %v10768_v57 = vadd.f32 %v10767_v25, %v10513_v15  ;;  %v10514_v49 = vmax.f32 %v9506_v19, 0.0  ;;  %v9303_v20 = vmax.bf16 %v23790_v4, %v24070_v44  ;;  %v24076_v44 = vld [vmem:[#allocation162_spill] sm:$0xff] }
 0x880   :  { %13647 = vmatmul.mubr.bf16.gmra.mrb[96].mxu1 %v9300_v39  ;;  %v9302_v39 = vmax.bf16 %v23790_v4, %v24069_v48 }
 0x881   :  { %13650 = vmatprep.mubr.bf16.mxu1 %v9301_v40  ;;  %v10769_v43 = vadd.f32 %v10768_v57, %v10514_v49 }
 0x883   :  { %v10770_v47 = vadd.f32 %v10769_v43, %v10515_v60  ;;  %v24071_v43 = vld [vmem:[#allocation157_spill] sm:$0xff] }
 0x884   :  { %v24072_v23 = vadd.bf16 %v24071_v43, %v23934_v7 }
 0x885   :  { %v10771_v15 = vadd.f32 %v10770_v47, %v10516_v21  ;;  %v24074_v47 = vld [vmem:[#allocation153_spill] sm:$0xff] }
 0x887   :  { %v13564_v8 = vpop.f32.mrb[12].mxu1 }
 0x888   :  { %v9518_v9 = vpop.f32.mrb[13].mxu1  ;;  %13651 = vmatmul.mubr.bf16.gmra.mrb[100].mxu1 %v9302_v39  ;;  %v9527_v16 = vadd.f32 %v13564_v8, %v21296_v29  ;;  %v24073_v8 = vadd.bf16 %v20698_v56, %v23934_v7 }
 0x889   :  { %v9519_v11 = vadd.f32 %v21296_v29, %v9518_v9  ;;  %v13565_v54 = vpop.f32.mrb[14].mxu1  ;;  %13654 = vmatprep.mubr.bf16.mxu1 %v9303_v20  ;;  %v9304_v9 = vmax.bf16 %v23790_v4, %v24072_v23  ;;  %v24077_v20 = vadd.bf16 %v24076_v44, %v23934_v7  ;;  %v24080_v23 = vld [vmem:[#allocation166_spill] sm:$0xff] }
 0x88a   :  { %v9521_v40 = vpop.f32.mrb[15].mxu1  ;;  %v9530_v57 = vadd.f32 %v13565_v54, %v21296_v29  ;;  %v10519_v49 = vmax.f32 %v9527_v16, 0.0  ;;  %v9305_v21 = vmax.bf16 %v23790_v4, %v24073_v8 }
 0x88b   :  { %v10517_v58 = vmax.f32 %v9519_v11, 0.0  ;;  %v9522_v25 = vadd.f32 %v21296_v29, %v9521_v40  ;;  %v24075_v11 = vadd.bf16 %v24074_v47, %v23934_v7  ;;  %v9307_v40 = vmax.bf16 %v23790_v4, %v24077_v20 }
 0x88c   :  { %v10520_v13 = vmax.f32 %v9530_v57, 0.0 }
 0x88d   :  { %v10772_v19 = vadd.f32 %v10771_v15, %v10517_v58  ;;  %v10518_v61 = vmax.f32 %v9522_v25, 0.0  ;;  %v9306_v54 = vmax.bf16 %v23790_v4, %v24075_v11 }
 0x88f   :  { %v10773_v60 = vadd.f32 %v10772_v19, %v10518_v61 }
 0x890   :  { %13655 = vmatmul.mubr.bf16.gmra.mrb[104].mxu1 %v9304_v9  ;;  %v24081_v9 = vadd.bf16 %v24080_v23, %v23934_v7  ;;  %v24089_v23 = vld [vmem:[#allocation161_spill] sm:$0xff] }
 0x891   :  { %v10774_v48 = vadd.f32 %v10773_v60, %v10519_v49  ;;  %13658 = vmatprep.mubr.bf16.mxu1 %v9305_v21  ;;  %v24078_v49 = vld [vmem:[#allocation188_spill] sm:$0xff] }
 0x892   :  { %v24079_v60 = vadd.bf16 %v24078_v49, %v23934_v7 }
 0x893   :  { %v10775_v39 = vadd.f32 %v10774_v48, %v10520_v13  ;;  %v9309_v13 = vmax.bf16 %v23790_v4, %v24081_v9 }
 0x894   :  { %v9308_v43 = vmax.bf16 %v23790_v4, %v24079_v60 }
 0x898   :  { %13659 = vmatmul.mubr.bf16.gmra.mrb[108].mxu1 %v9306_v54 }
 0x899   :  { %13662 = vmatprep.mubr.bf16.mxu1 %v9307_v40  ;;  %v24082_v40 = vld [vmem:[#allocation184_spill] sm:$0xff] }
 0x89a   :  { %v13568_v16 = vpop.f32.mrb[16].mxu1 }
 0x89b   :  { %v9534_v58 = vpop.f32.mrb[17].mxu1  ;;  %v9543_v19 = vadd.f32 %v13568_v16, %v21296_v29  ;;  %v24083_v16 = vadd.bf16 %v24082_v40, %v23934_v7 }
 0x89c   :  { %v9535_v56 = vadd.f32 %v21296_v29, %v9534_v58  ;;  %v13569_v15 = vpop.f32.mrb[18].mxu1 }
 0x89d   :  { %v9537_v25 = vpop.f32.mrb[19].mxu1  ;;  %v9546_v8 = vadd.f32 %v13569_v15, %v21296_v29  ;;  %v10523_v47 = vmax.f32 %v9543_v19, 0.0  ;;  %v9310_v58 = vmax.bf16 %v23790_v4, %v24083_v16  ;;  %v24085_v15 = vld [vmem:[#allocation165_spill] sm:$0xff] }
 0x89e   :  { %v10521_v57 = vmax.f32 %v9535_v56, 0.0  ;;  %v9538_v61 = vadd.f32 %v21296_v29, %v9537_v25  ;;  %v24084_v56 = vadd.bf16 %v20746_v55, %v23934_v7  ;;  %v24086_v25 = vadd.bf16 %v24085_v15, %v23934_v7 }
 0x89f   :  { %v10524_v54 = vmax.f32 %v9546_v8, 0.0  ;;  %v24090_v55 = vadd.bf16 %v24089_v23, %v23934_v7  ;;  %v24091_v8 = vld [vmem:[#allocation66_spill] sm:$0xff] }
 0x8a0   :  { %v10776_v48 = vadd.f32 %v10775_v39, %v10521_v57  ;;  %v10522_v21 = vmax.f32 %v9538_v61, 0.0  ;;  %13663 = vmatmul.mubr.bf16.gmra.mrb[112].mxu1 %v9308_v43  ;;  %v9311_v39 = vmax.bf16 %v23790_v4, %v24084_v56  ;;  %v9312_v19 = vmax.bf16 %v23790_v4, %v24086_v25  ;;  %v24087_v57 = vld [vmem:[#allocation106_spill] sm:$0xff] }
 0x8a1   :  { %13666 = vmatprep.mubr.bf16.mxu1 %v9309_v13  ;;  %v24088_v61 = vadd.bf16 %v24087_v57, %v23934_v7  ;;  %v9314_v9 = vmax.bf16 %v23790_v4, %v24090_v55 }
 0x8a2   :  { %v10777_v11 = vadd.f32 %v10776_v48, %v10522_v21  ;;  %v24092_v21 = vadd.bf16 %v24091_v8, %v23934_v7 }
 0x8a3   :  { %v9313_v49 = vmax.bf16 %v23790_v4, %v24088_v61  ;;  %v24093_v61 = vld [vmem:[#allocation194_spill] sm:$0xff] }
 0x8a4   :  { %v10778_v44 = vadd.f32 %v10777_v11, %v10523_v47  ;;  %v9315_v47 = vmax.bf16 %v23790_v4, %v24092_v21 }
 0x8a6   :  { %v10779_v20 = vadd.f32 %v10778_v44, %v10524_v54 }
 0x8a8   :  { %13667 = vmatmul.mubr.bf16.gmra.mrb[116].mxu1 %v9310_v58 }
 0x8a9   :  { %13670 = vmatprep.mubr.bf16.mxu1 %v9311_v39 }
 0x8b0   :  { %13671 = vmatmul.mubr.bf16.gmra.mrb[120].mxu1 %v9312_v19 }
 0x8b1   :  { %13674 = vmatprep.mubr.bf16.mxu1 %v9313_v49  ;;  %v13572_v60 = vpop.f32.mrb[20].mxu1  ;;  %v24094_v49 = vadd.bf16 %v24093_v61, %v23934_v7 }
 0x8b2   :  { %v9550_v43 = vpop.f32.mrb[21].mxu1  ;;  %v9559_v54 = vadd.f32 %v13572_v60, %v21296_v29  ;;  %v24095_v60 = vld [vmem:[#allocation103_spill] sm:$0xff] }
 0x8b3   :  { %v9551_v13 = vadd.f32 %v21296_v29, %v9550_v43  ;;  %v13573_v48 = vpop.f32.mrb[22].mxu1  ;;  %v9316_v43 = vmax.bf16 %v23790_v4, %v24094_v49  ;;  %v24096_v55 = vadd.bf16 %v24095_v60, %v23959_v33 }
 0x8b4   :  { %v9553_v11 = vpop.f32.mrb[23].mxu1  ;;  %v9562_v58 = vadd.f32 %v13573_v48, %v21296_v29  ;;  %v10527_v39 = vmax.f32 %v9559_v54, 0.0 }
 0x8b5   :  { %v10525_v44 = vmax.f32 %v9551_v13, 0.0  ;;  %v9554_v40 = vadd.f32 %v21296_v29, %v9553_v11 }
 0x8b6   :  { %v10528_v19 = vmax.f32 %v9562_v58, 0.0  ;;  %v24097_v58 = vld [vmem:[#allocation55_spill] sm:$0xff] }
 0x8b7   :  { %v10780_v16 = vadd.f32 %v10779_v20, %v10525_v44  ;;  %v10526_v56 = vmax.f32 %v9554_v40, 0.0 }
 0x8b8   :  { %13675 = vmatmul.mubr.bf16.gmra.mrb[124].mxu1 %v9314_v9  ;;  %v9317_v9 = vmax.bf16 %v23790_v4, %v24096_v55 }
 0x8b9   :  { %13678 = vmatprep.mubr.bf16.mxu1 %v9315_v47  ;;  %v10781_v15 = vadd.f32 %v10780_v16, %v10526_v56  ;;  %v24098_v56 = vadd.bf16 %v24097_v58, %v23959_v33 }
 0x8bb   :  { %v10782_v57 = vadd.f32 %v10781_v15, %v10527_v39  ;;  %v9318_v39 = vmax.bf16 %v23790_v4, %v24098_v56 }
 0x8bd   :  { %v13576_v25 = vpop.f32.mrb[24].mxu1  ;;  %v10783_v48 = vadd.f32 %v10782_v57, %v10528_v19  ;;  %v24099_v57 = vld [vmem:[#allocation170_spill] sm:$0xff] }
 0x8be   :  { %v9566_v23 = vpop.f32.mrb[25].mxu1  ;;  %v9575_v21 = vadd.f32 %v13576_v25, %v21296_v29  ;;  %v24100_v61 = vadd.bf16 %v24099_v57, %v23959_v33 }
 0x8bf   :  { %v9567_v20 = vadd.f32 %v21296_v29, %v9566_v23  ;;  %v13577_v13 = vpop.f32.mrb[26].mxu1 }
 0x8c0   :  { %13679 = vmatmul.mubr.bf16.gmra.mrb[128].mxu1 %v9316_v43  ;;  %v9569_v8 = vpop.f32.mrb[27].mxu1  ;;  %v9578_v54 = vadd.f32 %v13577_v13, %v21296_v29  ;;  %v10531_v40 = vmax.f32 %v9575_v21, 0.0  ;;  %v9319_v25 = vmax.bf16 %v23790_v4, %v24100_v61 }
 0x8c1   :  { %13682 = vmatprep.mubr.bf16.mxu1 %v9317_v9  ;;  %v10529_v47 = vmax.f32 %v9567_v20, 0.0  ;;  %v9570_v7 = vadd.f32 %v21296_v29, %v9569_v8  ;;  %v24101_v20 = vld [vmem:[#allocation26_spill] sm:$0xff] }
 0x8c2   :  { %v10532_v15 = vmax.f32 %v9578_v54, 0.0  ;;  %v24102_v13 = vadd.bf16 %v24101_v20, %v23959_v33 }
 0x8c3   :  { %v10784_v11 = vadd.f32 %v10783_v48, %v10529_v47  ;;  %v10530_v44 = vmax.f32 %v9570_v7, 0.0  ;;  %v24103_v7 = vld [vmem:[#allocation112_spill] sm:$0xff] }
 0x8c4   :  { %v9320_v48 = vmax.bf16 %v23790_v4, %v24102_v13 }
 0x8c5   :  { %v10785_v16 = vadd.f32 %v10784_v11, %v10530_v44  ;;  %v24104_v11 = vadd.bf16 %v24103_v7, %v23959_v33 }
 0x8c7   :  { %v10786_v19 = vadd.f32 %v10785_v16, %v10531_v40  ;;  %v9321_v54 = vmax.bf16 %v23790_v4, %v24104_v11 }
 0x8c8   :  { %13683 = vmatmul.mubr.bf16.gmra.mrb[132].mxu1 %v9318_v39 }
 0x8c9   :  { %13686 = vmatprep.mubr.bf16.mxu1 %v9319_v25  ;;  %v10787_v49 = vadd.f32 %v10786_v19, %v10532_v15  ;;  %v13580_v43 = vpop.f32.mrb[28].mxu1 }
 0x8ca   :  { %v9582_v23 = vpop.f32.mrb[29].mxu1  ;;  %v9591_v8 = vadd.f32 %v13580_v43, %v21296_v29 }
 0x8cb   :  { %v9583_v60 = vadd.f32 %v21296_v29, %v9582_v23  ;;  %v13581_v55 = vpop.f32.mrb[30].mxu1  ;;  %v24105_v23 = vld [vmem:[#allocation101_spill] sm:$0xff] }
 0x8cc   :  { %v9585_v9 = vpop.f32.mrb[31].mxu1  ;;  %v9594_v40 = vadd.f32 %v13581_v55, %v21296_v29  ;;  %v10535_v58 = vmax.f32 %v9591_v8, 0.0 }
 0x8cd   :  { %v10533_v21 = vmax.f32 %v9583_v60, 0.0  ;;  %v9586_v47 = vadd.f32 %v21296_v29, %v9585_v9  ;;  %v24106_v60 = vadd.bf16 %v24105_v23, %v23959_v33 }
 0x8ce   :  { %v10536_v19 = vmax.f32 %v9594_v40, 0.0 }
 0x8cf   :  { %v10788_v44 = vadd.f32 %v10787_v49, %v10533_v21  ;;  %v10534_v16 = vmax.f32 %v9586_v47, 0.0  ;;  %v9322_v9 = vmax.bf16 %v23790_v4, %v24106_v60  ;;  %v24107_v49 = vld [vmem:[#allocation91_spill] sm:$0xff] }
 0x8d0   :  { %13687 = vmatmul.mubr.bf16.gmra.mrb[136].mxu1 %v9320_v48  ;;  %v24108_v55 = vadd.bf16 %v24107_v49, %v23959_v33 }
 0x8d1   :  { %13690 = vmatprep.mubr.bf16.mxu1 %v9321_v54  ;;  %v10789_v56 = vadd.f32 %v10788_v44, %v10534_v16  ;;  %v13584_v39 = vpop.f32.mrb[32].mxu1 }
 0x8d2   :  { %v9598_v15 = vpop.f32.mrb[33].mxu1  ;;  %v9323_v20 = vmax.bf16 %v23790_v4, %v24108_v55  ;;  %v9607_v13 = vadd.f32 %v13584_v39, %v21296_v29 }
 0x8d3   :  { %v10790_v57 = vadd.f32 %v10789_v56, %v10535_v58  ;;  %v9599_v61 = vadd.f32 %v21296_v29, %v9598_v15  ;;  %v13585_v25 = vpop.f32.mrb[34].mxu1 }
 0x8d4   :  { %v9601_v43 = vpop.f32.mrb[35].mxu1  ;;  %v9610_v7 = vadd.f32 %v13585_v25, %v21296_v29  ;;  %v10539_v54 = vmax.f32 %v9607_v13, 0.0 }
 0x8d5   :  { %v10537_v48 = vmax.f32 %v9599_v61, 0.0  ;;  %v10791_v8 = vadd.f32 %v10790_v57, %v10536_v19  ;;  %v9602_v21 = vadd.f32 %v21296_v29, %v9601_v43  ;;  %v24109_v61 = vld [vmem:[#allocation172_spill] sm:$0xff] }
 0x8d6   :  { %v10540_v58 = vmax.f32 %v9610_v7, 0.0  ;;  %v24110_v19 = vadd.bf16 %v24109_v61, %v23959_v33 }
 0x8d7   :  { %v10792_v47 = vadd.f32 %v10791_v8, %v10537_v48  ;;  %v10538_v11 = vmax.f32 %v9602_v21, 0.0 }
 0x8d8   :  { %13691 = vmatmul.mubr.bf16.gmra.mrb[140].mxu1 %v9322_v9  ;;  %v9324_v57 = vmax.bf16 %v23790_v4, %v24110_v19  ;;  %v24111_v9 = vld [vmem:[#allocation109_spill] sm:$0xff] }
 0x8d9   :  { %13694 = vmatprep.mubr.bf16.mxu1 %v9323_v20  ;;  %v10793_v44 = vadd.f32 %v10792_v47, %v10538_v11  ;;  %v13588_v40 = vpop.f32.mrb[36].mxu1  ;;  %v24112_v49 = vadd.bf16 %v24111_v9, %v23959_v33 }
 0x8da   :  { %v9614_v16 = vpop.f32.mrb[37].mxu1  ;;  %v9623_v25 = vadd.f32 %v13588_v40, %v21296_v29 }
 0x8db   :  { %v10794_v56 = vadd.f32 %v10793_v44, %v10539_v54  ;;  %v9615_v15 = vadd.f32 %v21296_v29, %v9614_v16  ;;  %v13589_v23 = vpop.f32.mrb[38].mxu1  ;;  %v9325_v55 = vmax.bf16 %v23790_v4, %v24112_v49 }
 0x8dc   :  { %v9617_v39 = vpop.f32.mrb[39].mxu1  ;;  %v9626_v13 = vadd.f32 %v13589_v23, %v21296_v29  ;;  %v10543_v8 = vmax.f32 %v9623_v25, 0.0 }
 0x8dd   :  { %v21439_v43 = vadd.f32 %v10794_v56, %v10540_v58  ;;  %v9618_v60 = vadd.f32 %v21296_v29, %v9617_v39  ;;  %v10541_v20 = vmax.f32 %v9615_v15, 0.0  ;;  %v24113_v58 = vld [vmem:[#allocation168_spill] sm:$0xff]  ;;  %v24115_v15 = vadd.bf16 %v20870_v36, %v23959_v33 }
 0x8de   :  { %v10544_v11 = vmax.f32 %v9626_v13, 0.0  ;;  %v24114_v56 = vadd.bf16 %v24113_v58, %v23959_v33 }
 0x8df   :  { %v10542_v48 = vmax.f32 %v9618_v60, 0.0  ;;  %v9327_v23 = vmax.bf16 %v23790_v4, %v24115_v15 }
 0x8e0   :  { %13695 = vmatmul.mubr.bf16.gmra.mrb[144].mxu1 %v9324_v57  ;;  %v9326_v39 = vmax.bf16 %v23790_v4, %v24114_v56 }
 0x8e1   :  { %13698 = vmatprep.mubr.bf16.mxu1 %v9325_v55  ;;  %v10802_v21 = vadd.f32 %v10542_v48, %v10541_v20  ;;  %v13592_v47 = vpop.f32.mrb[40].mxu1 }
 0x8e2   :  { %v9630_v7 = vpop.f32.mrb[41].mxu1  ;;  %v9639_v61 = vadd.f32 %v13592_v47, %v21296_v29 }
 0x8e3   :  { %v10803_v54 = vadd.f32 %v10802_v21, %v10543_v8  ;;  %v9631_v44 = vadd.f32 %v21296_v29, %v9630_v7  ;;  %v13593_v40 = vpop.f32.mrb[42].mxu1 }
 0x8e4   :  { %v9633_v16 = vpop.f32.mrb[43].mxu1  ;;  %v9642_v9 = vadd.f32 %v13593_v40, %v21296_v29  ;;  %v10547_v55 = vmax.f32 %v9639_v61, 0.0 }
 0x8e5   :  { %v10545_v19 = vmax.f32 %v9631_v44, 0.0  ;;  %v10804_v57 = vadd.f32 %v10803_v54, %v10544_v11  ;;  %v9634_v25 = vadd.f32 %v21296_v29, %v9633_v16  ;;  %v24116_v44 = vld [vmem:[#allocation110_spill] sm:$0xff] }
 0x8e6   :  { %v10548_v8 = vmax.f32 %v9642_v9, 0.0  ;;  %v24117_v11 = vadd.bf16 %v24116_v44, %v23959_v33  ;;  %v24118_v16 = vld [vmem:[#allocation30_spill] sm:$0xff] }
 0x8e7   :  { %v10805_v60 = vadd.f32 %v10804_v57, %v10545_v19  ;;  %v10546_v49 = vmax.f32 %v9634_v25, 0.0  ;;  %v24119_v40 = vadd.bf16 %v24118_v16, %v23959_v33 }
 0x8e8   :  { %13699 = vmatmul.mubr.bf16.gmra.mrb[148].mxu1 %v9326_v39  ;;  %v9328_v54 = vmax.bf16 %v23790_v4, %v24117_v11 }
 0x8e9   :  { %13702 = vmatprep.mubr.bf16.mxu1 %v9327_v23  ;;  %v10806_v20 = vadd.f32 %v10805_v60, %v10546_v49  ;;  %v13596_v13 = vpop.f32.mrb[44].mxu1  ;;  %v9329_v58 = vmax.bf16 %v23790_v4, %v24119_v40 }
 0x8ea   :  { %v9646_v48 = vpop.f32.mrb[45].mxu1  ;;  %v9655_v56 = vadd.f32 %v13596_v13, %v21296_v29 }
 0x8eb   :  { %v10807_v36 = vadd.f32 %v10806_v20, %v10547_v55  ;;  %v9647_v21 = vadd.f32 %v21296_v29, %v9646_v48  ;;  %v13597_v7 = vpop.f32.mrb[46].mxu1 }
 0x8ec   :  { %v9649_v47 = vpop.f32.mrb[47].mxu1  ;;  %v9658_v19 = vadd.f32 %v13597_v7, %v21296_v29  ;;  %v10551_v25 = vmax.f32 %v9655_v56, 0.0 }
 0x8ed   :  { %v10549_v39 = vmax.f32 %v9647_v21, 0.0  ;;  %v10808_v15 = vadd.f32 %v10807_v36, %v10548_v8  ;;  %v9650_v23 = vadd.f32 %v21296_v29, %v9649_v47  ;;  %v24120_v21 = vld [vmem:[#allocation107_spill] sm:$0xff]  ;;  %v24122_v47 = vld [vmem:[#allocation34_spill] sm:$0xff] }
 0x8ee   :  { %v10552_v55 = vmax.f32 %v9658_v19, 0.0  ;;  %v24121_v8 = vadd.bf16 %v24120_v21, %v23959_v33  ;;  %v24123_v7 = vadd.bf16 %v24122_v47, %v23959_v33 }
 0x8ef   :  { %v10809_v61 = vadd.f32 %v10808_v15, %v10549_v39  ;;  %v10550_v57 = vmax.f32 %v9650_v23, 0.0 }
 0x8f0   :  { %13703 = vmatmul.mubr.bf16.gmra.mrb[152].mxu1 %v9328_v54  ;;  %v9330_v36 = vmax.bf16 %v23790_v4, %v24121_v8  ;;  %v9331_v11 = vmax.bf16 %v23790_v4, %v24123_v7 }
 0x8f1   :  { %13706 = vmatprep.mubr.bf16.mxu1 %v9329_v58  ;;  %v10810_v60 = vadd.f32 %v10809_v61, %v10550_v57  ;;  %v13600_v9 = vpop.f32.mrb[48].mxu1 }
 0x8f2   :  { %v9662_v49 = vpop.f32.mrb[49].mxu1  ;;  %v9671_v54 = vadd.f32 %v13600_v9, %v21296_v29 }
 0x8f3   :  { %v10811_v20 = vadd.f32 %v10810_v60, %v10551_v25  ;;  %v9663_v48 = vadd.f32 %v21296_v29, %v9662_v49  ;;  %v13601_v44 = vpop.f32.mrb[50].mxu1 }
 0x8f4   :  { %v9665_v13 = vpop.f32.mrb[51].mxu1  ;;  %v9674_v39 = vadd.f32 %v13601_v44, %v21296_v29  ;;  %v10555_v23 = vmax.f32 %v9671_v54, 0.0 }
 0x8f5   :  { %v10553_v16 = vmax.f32 %v9663_v48, 0.0  ;;  %v10812_v40 = vadd.f32 %v10811_v20, %v10552_v55  ;;  %v9666_v58 = vadd.f32 %v21296_v29, %v9665_v13  ;;  %v24124_v48 = vld [vmem:[#allocation58_spill] sm:$0xff]  ;;  %v24126_v13 = vld [vmem:[#allocation24_spill] sm:$0xff] }
 0x8f6   :  { %v10556_v25 = vmax.f32 %v9674_v39, 0.0  ;;  %v24125_v55 = vadd.bf16 %v24124_v48, %v23959_v33  ;;  %v24127_v44 = vadd.bf16 %v24126_v13, %v23988_v62 }
 0x8f7   :  { %v10813_v56 = vadd.f32 %v10812_v40, %v10553_v16  ;;  %v10554_v15 = vmax.f32 %v9666_v58, 0.0 }
 0x8f8   :  { %13707 = vmatmul.mubr.bf16.gmra.mrb[156].mxu1 %v9330_v36  ;;  %v9332_v20 = vmax.bf16 %v23790_v4, %v24125_v55  ;;  %v9333_v8 = vmax.bf16 %v23790_v4, %v24127_v44 }
 0x8f9   :  { %13710 = vmatprep.mubr.bf16.mxu1 %v9331_v11  ;;  %v10814_v61 = vadd.f32 %v10813_v56, %v10554_v15 }
 0x8fa   :  { %v13604_v19 = vpop.f32.mrb[52].mxu1 }
 0x8fb   :  { %v9678_v57 = vpop.f32.mrb[53].mxu1  ;;  %v10815_v60 = vadd.f32 %v10814_v61, %v10555_v23  ;;  %v9687_v36 = vadd.f32 %v13604_v19, %v21296_v29 }
 0x8fc   :  { %v9679_v49 = vadd.f32 %v21296_v29, %v9678_v57  ;;  %v13605_v21 = vpop.f32.mrb[54].mxu1 }
 0x8fd   :  { %v9681_v9 = vpop.f32.mrb[55].mxu1  ;;  %v10816_v7 = vadd.f32 %v10815_v60, %v10556_v25  ;;  %v9690_v16 = vadd.f32 %v13605_v21, %v21296_v29  ;;  %v10559_v33 = vmax.f32 %v9687_v36, 0.0  ;;  %v24130_v21 = vadd.bf16 %v20929_v53, %v23988_v62 }
 0x8fe   :  { %v10557_v47 = vmax.f32 %v9679_v49, 0.0  ;;  %v9682_v11 = vadd.f32 %v21296_v29, %v9681_v9  ;;  %v24128_v49 = vld [vmem:[#allocation128_spill] sm:$0xff] }
 0x8ff   :  { %v10560_v15 = vmax.f32 %v9690_v16, 0.0  ;;  %v24129_v25 = vadd.bf16 %v24128_v49, %v23988_v62  ;;  %v9335_v9 = vmax.bf16 %v23790_v4, %v24130_v21 }
 0x900   :  { %13711 = vmatmul.mubr.bf16.gmra.mrb[160].mxu1 %v9332_v20  ;;  %v10817_v54 = vadd.f32 %v10816_v7, %v10557_v47  ;;  %v10558_v40 = vmax.f32 %v9682_v11, 0.0 }
 0x901   :  { %13714 = vmatprep.mubr.bf16.mxu1 %v9333_v8  ;;  %v9334_v60 = vmax.bf16 %v23790_v4, %v24129_v25 }
 0x902   :  { %v10818_v58 = vadd.f32 %v10817_v54, %v10558_v40  ;;  %v13608_v56 = vpop.f32.mrb[56].mxu1 }
 0x903   :  { %v9694_v39 = vpop.f32.mrb[57].mxu1  ;;  %v9703_v48 = vadd.f32 %v13608_v56, %v21296_v29  ;;  %v24131_v56 = vld [vmem:[#allocation49_spill] sm:$0xff] }
 0x904   :  { %v10819_v23 = vadd.f32 %v10818_v58, %v10559_v33  ;;  %v9695_v61 = vadd.f32 %v21296_v29, %v9694_v39  ;;  %v13609_v57 = vpop.f32.mrb[58].mxu1  ;;  %v24132_v39 = vadd.bf16 %v24131_v56, %v23988_v62 }
 0x905   :  { %v9697_v19 = vpop.f32.mrb[59].mxu1  ;;  %v9706_v8 = vadd.f32 %v13609_v57, %v21296_v29  ;;  %v10563_v47 = vmax.f32 %v9703_v48, 0.0 }
 0x906   :  { %v10561_v55 = vmax.f32 %v9695_v61, 0.0  ;;  %v10820_v20 = vadd.f32 %v10819_v23, %v10560_v15  ;;  %v9698_v13 = vadd.f32 %v21296_v29, %v9697_v19  ;;  %v9336_v15 = vmax.bf16 %v23790_v4, %v24132_v39  ;;  %v24133_v23 = vld [vmem:[#allocation83_spill] sm:$0xff] }
 0x907   :  { %v10564_v16 = vmax.f32 %v9706_v8, 0.0  ;;  %v24134_v61 = vadd.bf16 %v24133_v23, %v23988_v62 }
 0x908   :  { %13715 = vmatmul.mubr.bf16.gmra.mrb[164].mxu1 %v9334_v60  ;;  %v10821_v44 = vadd.f32 %v10820_v20, %v10561_v55  ;;  %v10562_v36 = vmax.f32 %v9698_v13, 0.0  ;;  %v10796_v55 = vrot.slane %v21439_v43, 4 }
 0x909   :  { %13718 = vmatprep.mubr.bf16.mxu1 %v9335_v9  ;;  %v9337_v57 = vmax.bf16 %v23790_v4, %v24134_v61 }
 0x90a   :  { %v10822_v7 = vadd.f32 %v10821_v44, %v10562_v36  ;;  %v13612_v11 = vpop.f32.mrb[60].mxu1 }
 0x90b   :  { %v9710_v54 = vpop.f32.mrb[61].mxu1  ;;  %v9719_v19 = vadd.f32 %v13612_v11, %v21296_v29 }
 0x90c   :  { %v10823_v53 = vadd.f32 %v10822_v7, %v10563_v47  ;;  %v9711_v40 = vadd.f32 %v21296_v29, %v9710_v54  ;;  %v13613_v33 = vpop.f32.mrb[62].mxu1  ;;  %v10797_v54 = vadd.f32 %v10796_v55, %v21439_v43 }
 0x90d   :  { %v9713_v58 = vpop.f32.mrb[63].mxu1  ;;  %v9722_v9 = vadd.f32 %v13613_v33, %v21296_v29  ;;  %v10567_v20 = vmax.f32 %v9719_v19, 0.0 }
 0x90e   :  { %v10565_v49 = vmax.f32 %v9711_v40, 0.0  ;;  %v10824_v25 = vadd.f32 %v10823_v53, %v10564_v16  ;;  %v9714_v60 = vadd.f32 %v21296_v29, %v9713_v58  ;;  %v24135_v53 = vld [vmem:[#allocation82_spill] sm:$0xff]  ;;  %v24137_v58 = vadd.bf16 %v20982_v3, %v23988_v62 }
 0x90f   :  { %v10568_v36 = vmax.f32 %v9722_v9, 0.0  ;;  %v24136_v40 = vadd.bf16 %v24135_v53, %v23988_v62  ;;  %v24140_v53 = vadd.bf16 %v20966_v42, %v23988_v62 }
 0x910   :  { %13719 = vmatmul.mubr.bf16.gmra.mrb[168].mxu1 %v9336_v15  ;;  %v10825_v21 = vadd.f32 %v10824_v25, %v10565_v49  ;;  %v10566_v48 = vmax.f32 %v9714_v60, 0.0  ;;  %v9339_v56 = vmax.bf16 %v23790_v4, %v24137_v58  ;;  %v10798_v49 = vrot.slane %v10797_v54, 2 }
 0x911   :  { %13722 = vmatprep.mubr.bf16.mxu1 %v9337_v57  ;;  %v9338_v33 = vmax.bf16 %v23790_v4, %v24136_v40  ;;  %v9341_v40 = vmax.bf16 %v23790_v4, %v24140_v53 }
 0x912   :  { %v10826_v13 = vadd.f32 %v10825_v21, %v10566_v48  ;;  %v13616_v44 = vpop.f32.mrb[64].mxu1 }
 0x913   :  { %v9726_v8 = vpop.f32.mrb[65].mxu1  ;;  %v9735_v39 = vadd.f32 %v13616_v44, %v21296_v29 }
 0x914   :  { %v10827_v47 = vadd.f32 %v10826_v13, %v10567_v20  ;;  %v9727_v7 = vadd.f32 %v21296_v29, %v9726_v8  ;;  %v13617_v11 = vpop.f32.mrb[66].mxu1  ;;  %v10799_v13 = vadd.f32 %v10798_v49, %v10797_v54  ;;  %v24138_v8 = vld [vmem:[#allocation140_spill] sm:$0xff] }
 0x915   :  { %v9729_v16 = vpop.f32.mrb[67].mxu1  ;;  %v9738_v43 = vadd.f32 %v13617_v11, %v21296_v29  ;;  %v10571_v25 = vmax.f32 %v9735_v39, 0.0 }
 0x916   :  { %v10569_v15 = vmax.f32 %v9727_v7, 0.0  ;;  %v10828_v23 = vadd.f32 %v10827_v47, %v10568_v36  ;;  %v9730_v61 = vadd.f32 %v21296_v29, %v9729_v16  ;;  %v24139_v36 = vadd.bf16 %v24138_v8, %v23988_v62 }
 0x917   :  { %v10572_v3 = vmax.f32 %v9738_v43, 0.0  ;;  %v10800_v39 = vrot.slane %v10799_v13, 1 }
 0x918   :  { %13723 = vmatmul.mubr.bf16.gmra.mrb[172].mxu1 %v9338_v33  ;;  %v10829_v57 = vadd.f32 %v10828_v23, %v10569_v15  ;;  %v10570_v19 = vmax.f32 %v9730_v61, 0.0  ;;  %v9340_v47 = vmax.bf16 %v23790_v4, %v24139_v36 }
 0x919   :  { %13726 = vmatprep.mubr.bf16.mxu1 %v9339_v56 }
 0x91a   :  { %v10830_v60 = vadd.f32 %v10829_v57, %v10570_v19 }
 0x91b   :  { %v13620_v21 = vpop.f32.mrb[68].mxu1 }
 0x91c   :  { %v9742_v9 = vpop.f32.mrb[69].mxu1  ;;  %v10831_v48 = vadd.f32 %v10830_v60, %v10571_v25  ;;  %v9751_v11 = vadd.f32 %v13620_v21, %v21296_v29  ;;  %v10801_v21 = vadd.f32 %v10800_v39, %v10799_v13 }
 0x91d   :  { %v9743_v55 = vadd.f32 %v21296_v29, %v9742_v9  ;;  %v13621_v20 = vpop.f32.mrb[70].mxu1 }
 0x91e   :  { %v9745_v44 = vpop.f32.mrb[71].mxu1  ;;  %v10832_v7 = vadd.f32 %v10831_v48, %v10572_v3  ;;  %v9754_v54 = vadd.f32 %v13621_v20, %v21296_v29  ;;  %v10575_v23 = vmax.f32 %v9751_v11, 0.0  ;;  %v24141_v48 = vld [vmem:[#allocation136_spill] sm:$0xff] }
 0x91f   :  { %v9746_v16 = vadd.f32 %v21296_v29, %v9745_v44  ;;  %v10573_v58 = vmax.f32 %v9743_v55, 0.0  ;;  %v24142_v55 = vadd.bf16 %v24141_v48, %v23988_v62  ;;  %v24143_v44 = vadd.bf16 %v20994_v46, %v23988_v62 }
 0x920   :  { %13727 = vmatmul.mubr.bf16.gmra.mrb[176].mxu1 %v9340_v47  ;;  %v10833_v33 = vrot.slane %v10832_v7, 4  ;;  %v10576_v49 = vmax.f32 %v9754_v54, 0.0 }
 0x921   :  { %v10574_v56 = vmax.f32 %v9746_v16, 0.0  ;;  %13730 = vmatprep.mubr.bf16.mxu1 %v9341_v40  ;;  %v9342_v20 = vmax.bf16 %v23790_v4, %v24142_v55  ;;  %v9343_v8 = vmax.bf16 %v23790_v4, %v24143_v44 }
 0x922   :  { %v10834_v15 = vadd.f32 %v10833_v33, %v10832_v7  ;;  %v11061_v33 = vpack.c.bf16 %v10801_v21, %v10801_v21  ;;  %v24145_v21 = vadd.bf16 %v21007_v27, %v23988_v62 }
 0x923   :  { %v10839_v61 = vadd.f32 %v10574_v56, %v10573_v58  ;;  %v13624_v57 = vpop.f32.mrb[72].mxu1 }
 0x924   :  { %v9758_v43 = vpop.f32.mrb[73].mxu1  ;;  %v10835_v19 = vrot.slane %v10834_v15, 2  ;;  %v9767_v9 = vadd.f32 %v13624_v57, %v21296_v29 }
 0x925   :  { %v10840_v25 = vadd.f32 %v10839_v61, %v10575_v23  ;;  %v9759_v42 = vadd.f32 %v21296_v29, %v9758_v43  ;;  %v13625_v60 = vpop.f32.mrb[74].mxu1 }
 0x926   :  { %v9761_v3 = vpop.f32.mrb[75].mxu1  ;;  %v10836_v36 = vadd.f32 %v10835_v19, %v10834_v15  ;;  %v9770_v53 = vadd.f32 %v13625_v60, %v21296_v29  ;;  %v10579_v54 = vmax.f32 %v9767_v9, 0.0  ;;  %v24144_v15 = vadd.bf16 %v24010_v59, %v23988_v62 }
 0x927   :  { %v10577_v47 = vmax.f32 %v9759_v42, 0.0  ;;  %v10841_v7 = vadd.f32 %v10840_v25, %v10576_v49  ;;  %v9762_v11 = vadd.f32 %v21296_v29, %v9761_v3  ;;  %v11100_v25 = vunpack.c.l.b16 %v11061_v33 }
 0x928   :  { %13731 = vmatmul.mubr.bf16.gmra.mrb[180].mxu1 %v9342_v20  ;;  %v10837_v13 = vrot.slane %v10836_v36, 1  ;;  %v9344_v23 = vmax.bf16 %v23790_v4, %v24144_v15  ;;  %v10580_v57 = vmax.f32 %v9770_v53, 0.0  ;;  %v9345_v9 = vmax.bf16 %v23790_v4, %v24145_v21 }
 0x929   :  { %v10842_v16 = vadd.f32 %v10841_v7, %v10577_v47  ;;  %v10578_v40 = vmax.f32 %v9762_v11, 0.0  ;;  %13734 = vmatprep.mubr.bf16.mxu1 %v9343_v8 }
 0x92a   :  { %v10838_v58 = vadd.f32 %v10837_v13, %v10836_v36 }
 0x92b   :  { %v10843_v56 = vadd.f32 %v10842_v16, %v10578_v40  ;;  %v13628_v39 = vpop.f32.mrb[76].mxu1 }
 0x92c   :  { %v9774_v46 = vpop.f32.mrb[77].mxu1  ;;  %v11062_v61 = vpack.c.bf16 %v10838_v58, %v10838_v58  ;;  %v9783_v42 = vadd.f32 %v13628_v39, %v21296_v29  ;;  %v24146_v58 = vld [vmem:[#allocation9_spill] sm:$0xff]  ;;  %v24148_v39 = vadd.bf16 %v21052_v50, %v23988_v62 }
 0x92d   :  { %v10844_v43 = vadd.f32 %v10843_v56, %v10579_v54  ;;  %v9775_v19 = vadd.f32 %v21296_v29, %v9774_v46  ;;  %v13629_v49 = vpop.f32.mrb[78].mxu1  ;;  %v24147_v54 = vadd.bf16 %v24146_v58, %v23988_v62 }
 0x92e   :  { %v9777_v60 = vpop.f32.mrb[79].mxu1  ;;  %v11101_v3 = vunpack.c.l.b16 %v11062_v61  ;;  %v9786_v8 = vadd.f32 %v13629_v49, %v21296_v29  ;;  %v10583_v47 = vmax.f32 %v9783_v42, 0.0  ;;  %v9347_v46 = vmax.bf16 %v23790_v4, %v24148_v39 }
 0x92f   :  { %v10581_v59 = vmax.f32 %v9775_v19, 0.0  ;;  %v10845_v48 = vadd.f32 %v10844_v43, %v10580_v57  ;;  %v9778_v55 = vadd.f32 %v21296_v29, %v9777_v60  ;;  %v9346_v56 = vmax.bf16 %v23790_v4, %v24147_v54 }
 0x930   :  { %13735 = vmatmul.mubr.bf16.gmra.mrb[184].mxu1 %v9344_v23  ;;  %v21569_v20 = vsel %vm11108_vm0, %v11101_v3, %v11100_v25  ;;  %v10584_v27 = vmax.f32 %v9786_v8, 0.0 }
 0x931   :  { %v10846_v44 = vadd.f32 %v10845_v48, %v10581_v59  ;;  %v10582_v36 = vmax.f32 %v9778_v55, 0.0  ;;  %13738 = vmatprep.mubr.bf16.mxu1 %v9345_v9  ;;  %v24149_v55 = vld [vmem:[#allocation148_spill] sm:$0xff] }
 0x933   :  { %v10847_v7 = vadd.f32 %v10846_v44, %v10582_v36  ;;  %v13632_v11 = vpop.f32.mrb[80].mxu1  ;;  %v24150_v44 = vadd.bf16 %v24149_v55, %v23988_v62  ;;  %v24151_v36 = vadd.bf16 %v21045_v5, %v24017_v2 }
 0x934   :  { %v9790_v13 = vpop.f32.mrb[81].mxu1  ;;  %v9799_v15 = vadd.f32 %v13632_v11, %v21296_v29 }
 0x935   :  { %v10848_v16 = vadd.f32 %v10847_v7, %v10583_v47  ;;  %v9791_v53 = vadd.f32 %v21296_v29, %v9790_v13  ;;  %v13633_v40 = vpop.f32.mrb[82].mxu1  ;;  %v9348_v8 = vmax.bf16 %v23790_v4, %v24150_v44  ;;  %v9349_v47 = vmax.bf16 %v23790_v4, %v24151_v36 }
 0x936   :  { %v9793_v33 = vpop.f32.mrb[83].mxu1  ;;  %v9802_v19 = vadd.f32 %v13633_v40, %v21296_v29  ;;  %v10587_v25 = vmax.f32 %v9799_v15, 0.0 }
 0x937   :  { %v10585_v23 = vmax.f32 %v9791_v53, 0.0  ;;  %v10849_v61 = vadd.f32 %v10848_v16, %v10584_v27  ;;  %v9794_v57 = vadd.f32 %v21296_v29, %v9793_v33 }
 0x938   :  { %13739 = vmatmul.mubr.bf16.gmra.mrb[188].mxu1 %v9346_v56  ;;  %v10588_v9 = vmax.f32 %v9802_v19, 0.0 }
 0x939   :  { %v10850_v43 = vadd.f32 %v10849_v61, %v10585_v23  ;;  %v10586_v49 = vmax.f32 %v9794_v57, 0.0  ;;  %13742 = vmatprep.mubr.bf16.mxu1 %v9347_v46  ;;  %v24152_v23 = vld [vmem:[#allocation144_spill] sm:$0xff] }
 0x93a   :  { %v24153_v61 = vadd.bf16 %v24152_v23, %v24017_v2 }
 0x93b   :  { %v10851_v42 = vadd.f32 %v10850_v43, %v10586_v49  ;;  %v13636_v60 = vpop.f32.mrb[84].mxu1  ;;  %v24154_v43 = vadd.bf16 %v21059_v52, %v24017_v2 }
 0x93c   :  { %v9806_v21 = vpop.f32.mrb[85].mxu1  ;;  %v9815_v7 = vadd.f32 %v13636_v60, %v21296_v29  ;;  %v9350_v57 = vmax.bf16 %v23790_v4, %v24153_v61 }
 0x93d   :  { %v10852_v50 = vadd.f32 %v10851_v42, %v10587_v25  ;;  %v9807_v3 = vadd.f32 %v21296_v29, %v9806_v21  ;;  %v13637_v59 = vpop.f32.mrb[86].mxu1  ;;  %v9351_v19 = vmax.bf16 %v23790_v4, %v24154_v43 }
 0x93e   :  { %v9809_v48 = vpop.f32.mrb[87].mxu1  ;;  %v9818_v53 = vadd.f32 %v13637_v59, %v21296_v29  ;;  %v10591_v62 = vmax.f32 %v9815_v7, 0.0  ;;  %v24155_v7 = vadd.bf16 %v20520_v41, %v24017_v2 }
 0x93f   :  { %v10589_v11 = vmax.f32 %v9807_v3, 0.0  ;;  %v10853_v13 = vadd.f32 %v10852_v50, %v10588_v9  ;;  %v9810_v27 = vadd.f32 %v21296_v29, %v9809_v48 }
 0x940   :  { %13743 = vmatmul.mubr.bf16.gmra.mrb[192].mxu1 %v9348_v8  ;;  %v10592_v56 = vmax.f32 %v9818_v53, 0.0 }
 0x941   :  { %v10854_v16 = vadd.f32 %v10853_v13, %v10589_v11  ;;  %v10590_v40 = vmax.f32 %v9810_v27, 0.0  ;;  %13746 = vmatprep.mubr.bf16.mxu1 %v9349_v47  ;;  %v9352_v11 = vmax.bf16 %v23790_v4, %v24155_v7  ;;  %v24156_v13 = vadd.bf16 %v21070_v10, %v24017_v2 }
 0x943   :  { %v10855_v33 = vadd.f32 %v10854_v16, %v10590_v40  ;;  %v13640_v58 = vpop.f32.mrb[88].mxu1  ;;  %v9353_v27 = vmax.bf16 %v23790_v4, %v24156_v13 }
 0x944   :  { %v9822_v54 = vpop.f32.mrb[89].mxu1  ;;  %v9831_v49 = vadd.f32 %v13640_v58, %v21296_v29 }
 0x945   :  { %v10856_v5 = vadd.f32 %v10855_v33, %v10591_v62  ;;  %v9823_v39 = vadd.f32 %v21296_v29, %v9822_v54  ;;  %v13641_v46 = vpop.f32.mrb[90].mxu1 }
 0x946   :  { %v9825_v15 = vpop.f32.mrb[91].mxu1  ;;  %v9834_v9 = vadd.f32 %v13641_v46, %v21296_v29  ;;  %v10595_v3 = vmax.f32 %v9831_v49, 0.0 }
 0x947   :  { %v10593_v25 = vmax.f32 %v9823_v39, 0.0  ;;  %v10857_v42 = vadd.f32 %v10856_v5, %v10592_v56  ;;  %v9826_v60 = vadd.f32 %v21296_v29, %v9825_v15 }
 0x948   :  { %13747 = vmatmul.mubr.bf16.gmra.mrb[196].mxu1 %v9350_v57  ;;  %v10596_v44 = vmax.f32 %v9834_v9, 0.0  ;;  %v24157_v57 = vadd.bf16 %v20531_v34, %v24017_v2 }
 0x949   :  { %v10858_v21 = vadd.f32 %v10857_v42, %v10593_v25  ;;  %v10594_v50 = vmax.f32 %v9826_v60, 0.0  ;;  %13750 = vmatprep.mubr.bf16.mxu1 %v9351_v19  ;;  %v24158_v19 = vadd.bf16 %v21117_v35, %v24017_v2 }
 0x94a   :  { %v9354_v43 = vmax.bf16 %v23790_v4, %v24157_v57  ;;  %v24161_v57 = vld [vmem:[#allocation181_spill] sm:$0xff] }
 0x94b   :  { %v10859_v59 = vadd.f32 %v10858_v21, %v10594_v50  ;;  %v13644_v48 = vpop.f32.mrb[92].mxu1  ;;  %v9355_v49 = vmax.bf16 %v23790_v4, %v24158_v19 }
 0x94c   :  { %v9838_v55 = vpop.f32.mrb[93].mxu1  ;;  %v9847_v16 = vadd.f32 %v13644_v48, %v21296_v29 }
 0x94d   :  { %v10860_v52 = vadd.f32 %v10859_v59, %v10595_v3  ;;  %v9839_v8 = vadd.f32 %v21296_v29, %v9838_v55  ;;  %v13645_v36 = vpop.f32.mrb[94].mxu1 }
 0x94e   :  { %v9841_v47 = vpop.f32.mrb[95].mxu1  ;;  %v9850_v58 = vadd.f32 %v13645_v36, %v21296_v29  ;;  %v10599_v41 = vmax.f32 %v9847_v16, 0.0  ;;  %v24160_v16 = vadd.bf16 %v21106_v38, %v24017_v2 }
 0x94f   :  { %v10597_v53 = vmax.f32 %v9839_v8, 0.0  ;;  %v10861_v40 = vadd.f32 %v10860_v52, %v10596_v44  ;;  %v9842_v62 = vadd.f32 %v21296_v29, %v9841_v47  ;;  %v21635_v52 = vld [vmem:[%s22043_s10] ss:$0 sm:$0xff] }
 0x950   :  { %13751 = vmatmul.mubr.bf16.gmra.mrb[200].mxu1 %v9352_v11  ;;  %v10600_v46 = vmax.f32 %v9850_v58, 0.0 }
 0x951   :  { %v10862_v33 = vadd.f32 %v10861_v40, %v10597_v53  ;;  %v10598_v54 = vmax.f32 %v9842_v62, 0.0  ;;  %13754 = vmatprep.mubr.bf16.mxu1 %v9353_v27  ;;  %v9357_v53 = vmax.bf16 %v23790_v4, %v24160_v16 }
 0x953   :  { %v10863_v56 = vadd.f32 %v10862_v33, %v10598_v54  ;;  %v13648_v5 = vpop.f32.mrb[96].mxu1 }
 0x954   :  { %v9854_v39 = vpop.f32.mrb[97].mxu1  ;;  %v9863_v25 = vadd.f32 %v13648_v5, %v21296_v29 }
 0x955   :  { %v10864_v10 = vadd.f32 %v10863_v56, %v10599_v41  ;;  %v9855_v15 = vadd.f32 %v21296_v29, %v9854_v39  ;;  %v13649_v23 = vpop.f32.mrb[98].mxu1 }
 0x956   :  { %v9857_v61 = vpop.f32.mrb[99].mxu1  ;;  %v9866_v50 = vadd.f32 %v13649_v23, %v21296_v29  ;;  %v10603_v34 = vmax.f32 %v9863_v25, 0.0 }
 0x957   :  { %v10601_v42 = vmax.f32 %v9855_v15, 0.0  ;;  %v10865_v60 = vadd.f32 %v10864_v10, %v10600_v46  ;;  %v9858_v21 = vadd.f32 %v21296_v29, %v9857_v61  ;;  %v24159_v29 = vadd.bf16 %v20567_v17, %v24017_v2 }
 0x958   :  { %13755 = vmatmul.mubr.bf16.gmra.mrb[204].mxu1 %v9354_v43  ;;  %v10604_v44 = vmax.f32 %v9866_v50, 0.0  ;;  %v24162_v43 = vadd.bf16 %v24161_v57, %v24017_v2 }
 0x959   :  { %v10866_v9 = vadd.f32 %v10865_v60, %v10601_v42  ;;  %v10602_v3 = vmax.f32 %v9858_v21, 0.0  ;;  %13758 = vmatprep.mubr.bf16.mxu1 %v9355_v49  ;;  %v9356_v7 = vmax.bf16 %v23790_v4, %v24159_v29  ;;  %v24163_v49 = vadd.bf16 %v21132_v12, %v24017_v2 }
 0x95a   :  { %v9358_v19 = vmax.bf16 %v23790_v4, %v24162_v43 }
 0x95b   :  { %v10867_v59 = vadd.f32 %v10866_v9, %v10602_v3  ;;  %v13652_v48 = vpop.f32.mrb[100].mxu1  ;;  %v9359_v25 = vmax.bf16 %v23790_v4, %v24163_v49  ;;  %v24168_v49 = vadd.bf16 %v21184_v45, %v24017_v2 }
 0x95c   :  { %v9870_v55 = vpop.f32.mrb[101].mxu1  ;;  %v9879_v13 = vadd.f32 %v21635_v52, %v13652_v48 }
 0x95d   :  { %v10868_v35 = vadd.f32 %v10867_v59, %v10603_v34  ;;  %v9871_v8 = vadd.f32 %v21635_v52, %v9870_v55  ;;  %v13653_v36 = vpop.f32.mrb[102].mxu1 }
 0x95e   :  { %v9873_v47 = vpop.f32.mrb[103].mxu1  ;;  %v9882_v33 = vadd.f32 %v21635_v52, %v13653_v36  ;;  %v10607_v54 = vmax.f32 %v9879_v13, 0.0 }
 0x95f   :  { %v10869_v11 = vadd.f32 %v10868_v35, %v10604_v44  ;;  %v9874_v27 = vadd.f32 %v21635_v52, %v9873_v47  ;;  %v10605_v62 = vmax.f32 %v9871_v8, 0.0 }
 0x960   :  { %13759 = vmatmul.mubr.bf16.gmra.mrb[208].mxu1 %v9356_v7  ;;  %v10608_v46 = vmax.f32 %v9882_v33, 0.0 }
 0x961   :  { %v10870_v40 = vrot.slane %v10869_v11, 4  ;;  %v10606_v58 = vmax.f32 %v9874_v27, 0.0  ;;  %13762 = vmatprep.mubr.bf16.mxu1 %v9357_v53  ;;  %v24164_v27 = vld [vmem:[#allocation14_spill] sm:$0xff] }
 0x962   :  { %v24165_v16 = vadd.bf16 %v24164_v27, %v24017_v2 }
 0x963   :  { %v10871_v17 = vadd.f32 %v10870_v40, %v10869_v11  ;;  %v10876_v41 = vadd.f32 %v10606_v58, %v10605_v62  ;;  %v13656_v56 = vpop.f32.mrb[104].mxu1  ;;  %v24166_v40 = vadd.bf16 %v21144_v51, %v24017_v2 }
 0x964   :  { %v9886_v5 = vpop.f32.mrb[105].mxu1  ;;  %v9895_v23 = vadd.f32 %v21635_v52, %v13656_v56  ;;  %v9360_v53 = vmax.bf16 %v23790_v4, %v24165_v16 }
 0x965   :  { %v10872_v39 = vrot.slane %v10871_v17, 2  ;;  %v10877_v10 = vadd.f32 %v10876_v41, %v10607_v54  ;;  %v9887_v15 = vadd.f32 %v21635_v52, %v9886_v5  ;;  %v13657_v38 = vpop.f32.mrb[106].mxu1  ;;  %v9361_v62 = vmax.bf16 %v23790_v4, %v24166_v40 }
 0x966   :  { %v9889_v61 = vpop.f32.mrb[107].mxu1  ;;  %v9898_v34 = vadd.f32 %v21635_v52, %v13657_v38  ;;  %v10611_v55 = vmax.f32 %v9895_v23, 0.0 }
 0x967   :  { %v10873_v42 = vadd.f32 %v10872_v39, %v10871_v17  ;;  %v10609_v60 = vmax.f32 %v9887_v15, 0.0  ;;  %v10878_v21 = vadd.f32 %v10877_v10, %v10608_v46  ;;  %v9890_v9 = vadd.f32 %v21635_v52, %v9889_v61 }
 0x968   :  { %13763 = vmatmul.mubr.bf16.gmra.mrb[212].mxu1 %v9358_v19  ;;  %v10612_v36 = vmax.f32 %v9898_v34, 0.0  ;;  %v24167_v19 = vadd.bf16 %v20593_v31, %v24017_v2 }
 0x969   :  { %v10874_v50 = vrot.slane %v10873_v42, 1  ;;  %v10879_v3 = vadd.f32 %v10878_v21, %v10609_v60  ;;  %v10610_v59 = vmax.f32 %v9890_v9, 0.0  ;;  %13766 = vmatprep.mubr.bf16.mxu1 %v9359_v25  ;;  %v9363_v25 = vmax.bf16 %v23790_v4, %v24168_v49 }
 0x96b   :  { %v10875_v48 = vadd.f32 %v10874_v50, %v10873_v42  ;;  %v10880_v44 = vadd.f32 %v10879_v3, %v10610_v59  ;;  %v13660_v35 = vpop.f32.mrb[108].mxu1 }
 0x96c   :  { %v9902_v8 = vpop.f32.mrb[109].mxu1  ;;  %v9911_v11 = vadd.f32 %v21635_v52, %v13660_v35 }
 0x96d   :  { %v11063_v12 = vpack.c.bf16 %v10875_v48, %v10875_v48  ;;  %v10881_v47 = vadd.f32 %v10880_v44, %v10611_v55  ;;  %v9903_v29 = vadd.f32 %v21635_v52, %v9902_v8  ;;  %v13661_v7 = vpop.f32.mrb[110].mxu1 }
 0x96e   :  { %v9905_v13 = vpop.f32.mrb[111].mxu1  ;;  %v9914_v5 = vadd.f32 %v21635_v52, %v13661_v7  ;;  %v10615_v46 = vmax.f32 %v9911_v11, 0.0 }
 0x96f   :  { %v11102_v33 = vunpack.c.l.b16 %v11063_v12  ;;  %v10613_v58 = vmax.f32 %v9903_v29, 0.0  ;;  %v10882_v17 = vadd.f32 %v10881_v47, %v10612_v36  ;;  %v9906_v54 = vadd.f32 %v21635_v52, %v9905_v13 }
 0x970   :  { %13767 = vmatmul.mubr.bf16.gmra.mrb[216].mxu1 %v9360_v53  ;;  %v10616_v38 = vmax.f32 %v9914_v5, 0.0  ;;  %v24169_v36 = vadd.bf16 %v20636_v18, %v24017_v2  ;;  %v24170_v29 = vadd.bf16 %v21169_v24, %v24035_v32 }
 0x971   :  { %v21673_v41 = vsel %vm11110_vm1, %v11102_v33, %v21569_v20  ;;  %v10883_v56 = vadd.f32 %v10882_v17, %v10613_v58  ;;  %v10614_v39 = vmax.f32 %v9906_v54, 0.0  ;;  %13770 = vmatprep.mubr.bf16.mxu1 %v9361_v62  ;;  %v9362_v20 = vmax.bf16 %v23790_v4, %v24167_v19 }
 0x972   :  { %v9364_v47 = vmax.bf16 %v23790_v4, %v24169_v36  ;;  %v9365_v7 = vmax.bf16 %v23790_v4, %v24170_v29 }
 0x973   :  { %v10884_v10 = vadd.f32 %v10883_v56, %v10614_v39  ;;  %v13664_v15 = vpop.f32.mrb[112].mxu1  ;;  %v24171_v39 = vadd.bf16 %v21090_v22, %v24035_v32 }
 0x974   :  { %v9918_v51 = vpop.f32.mrb[113].mxu1  ;;  %v9927_v42 = vadd.f32 %v21635_v52, %v13664_v15 }
 0x975   :  { %v10885_v23 = vadd.f32 %v10884_v10, %v10615_v46  ;;  %v9919_v61 = vadd.f32 %v21635_v52, %v9918_v51  ;;  %v13665_v57 = vpop.f32.mrb[114].mxu1  ;;  %v9366_v46 = vmax.bf16 %v23790_v4, %v24171_v39  ;;  %v24172_v10 = vadd.bf16 %v21195_v1, %v24035_v32 }
 0x976   :  { %v9921_v43 = vpop.f32.mrb[115].mxu1  ;;  %v9930_v3 = vadd.f32 %v21635_v52, %v13665_v57  ;;  %v10619_v31 = vmax.f32 %v9927_v42, 0.0 }
 0x977   :  { %v10617_v60 = vmax.f32 %v9919_v61, 0.0  ;;  %v10886_v21 = vadd.f32 %v10885_v23, %v10616_v38  ;;  %v9922_v9 = vadd.f32 %v21635_v52, %v9921_v43  ;;  %v9367_v15 = vmax.bf16 %v23790_v4, %v24172_v10 }
 0x978   :  { %13771 = vmatmul.mubr.bf16.gmra.mrb[220].mxu1 %v9362_v20  ;;  %v10620_v44 = vmax.f32 %v9930_v3, 0.0 }
 0x979   :  { %v10887_v50 = vadd.f32 %v10886_v21, %v10617_v60  ;;  %v10618_v34 = vmax.f32 %v9922_v9, 0.0  ;;  %13774 = vmatprep.mubr.bf16.mxu1 %v9363_v25 }
 0x97b   :  { %v10888_v59 = vadd.f32 %v10887_v50, %v10618_v34  ;;  %v13668_v48 = vpop.f32.mrb[116].mxu1  ;;  %v24173_v50 = vadd.bf16 %v21099_v37, %v24035_v32  ;;  %v24174_v34 = vadd.bf16 %v21204_v6, %v24035_v32 }
 0x97c   :  { %v9934_v55 = vpop.f32.mrb[117].mxu1  ;;  %v9943_v11 = vadd.f32 %v21635_v52, %v13668_v48 }
 0x97d   :  { %v10889_v45 = vadd.f32 %v10888_v59, %v10619_v31  ;;  %v9935_v35 = vadd.f32 %v21635_v52, %v9934_v55  ;;  %v13669_v8 = vpop.f32.mrb[118].mxu1  ;;  %v9368_v3 = vmax.bf16 %v23790_v4, %v24173_v50  ;;  %v9369_v31 = vmax.bf16 %v23790_v4, %v24174_v34 }
 0x97e   :  { %v9937_v12 = vpop.f32.mrb[119].mxu1  ;;  %v9946_v40 = vadd.f32 %v21635_v52, %v13669_v8  ;;  %v10623_v18 = vmax.f32 %v9943_v11, 0.0 }
 0x97f   :  { %v10621_v13 = vmax.f32 %v9935_v35, 0.0  ;;  %v10890_v27 = vadd.f32 %v10889_v45, %v10620_v44  ;;  %v9938_v16 = vadd.f32 %v21635_v52, %v9937_v12 }
 0x980   :  { %13775 = vmatmul.mubr.bf16.gmra.mrb[224].mxu1 %v9364_v47  ;;  %v10624_v17 = vmax.f32 %v9946_v40, 0.0 }
 0x981   :  { %v10891_v53 = vadd.f32 %v10890_v27, %v10621_v13  ;;  %v10622_v62 = vmax.f32 %v9938_v16, 0.0  ;;  %13778 = vmatprep.mubr.bf16.mxu1 %v9365_v7  ;;  %v24175_v27 = vadd.bf16 %v21139_v0, %v24035_v32 }
 0x983   :  { %v10892_v2 = vadd.f32 %v10891_v53, %v10622_v62  ;;  %v13672_v33 = vpop.f32.mrb[120].mxu1  ;;  %v9370_v16 = vmax.bf16 %v23790_v4, %v24175_v27  ;;  %v24176_v53 = vadd.bf16 %v21233_v26, %v24035_v32 }
 0x984   :  { %v9950_v58 = vpop.f32.mrb[121].mxu1  ;;  %v9959_v51 = vadd.f32 %v21635_v52, %v13672_v33 }
 0x985   :  { %v10893_v24 = vadd.f32 %v10892_v2, %v10623_v18  ;;  %v9951_v54 = vadd.f32 %v21635_v52, %v9950_v58  ;;  %v13673_v56 = vpop.f32.mrb[122].mxu1  ;;  %v9371_v40 = vmax.bf16 %v23790_v4, %v24176_v53 }
 0x986   :  { %v9953_v5 = vpop.f32.mrb[123].mxu1  ;;  %v9962_v43 = vadd.f32 %v21635_v52, %v13673_v56  ;;  %v10627_v22 = vmax.f32 %v9959_v51, 0.0  ;;  %v24177_v51 = vadd.bf16 %v21148_v63, %v24035_v32 }
 0x987   :  { %v10625_v38 = vmax.f32 %v9951_v54, 0.0  ;;  %v10894_v23 = vadd.f32 %v10893_v24, %v10624_v17  ;;  %v9954_v61 = vadd.f32 %v21635_v52, %v9953_v5 }
 0x988   :  { %13779 = vmatmul.mubr.bf16.gmra.mrb[228].mxu1 %v9366_v46  ;;  %v10628_v42 = vmax.f32 %v9962_v43, 0.0  ;;  %v24178_v43 = vadd.bf16 %v21224_v28, %v24035_v32 }
 0x989   :  { %v10895_v57 = vadd.f32 %v10894_v23, %v10625_v38  ;;  %v10626_v19 = vmax.f32 %v9954_v61, 0.0  ;;  %13782 = vmatprep.mubr.bf16.mxu1 %v9367_v15  ;;  %v9372_v38 = vmax.bf16 %v23790_v4, %v24177_v51 }
 0x98b   :  { %v10896_v20 = vadd.f32 %v10895_v57, %v10626_v19  ;;  %v13676_v49 = vpop.f32.mrb[124].mxu1  ;;  %v9373_v19 = vmax.bf16 %v23790_v4, %v24178_v43 }
 0x98c   :  { %v9966_v25 = vpop.f32.mrb[125].mxu1  ;;  %v9975_v59 = vadd.f32 %v21635_v52, %v13676_v49 }
 0x98d   :  { %v10897_v1 = vadd.f32 %v10896_v20, %v10627_v22  ;;  %v9967_v60 = vadd.f32 %v21635_v52, %v9966_v25  ;;  %v13677_v21 = vpop.f32.mrb[126].mxu1 }
 0x98e   :  { %v9969_v9 = vpop.f32.mrb[127].mxu1  ;;  %v9978_v35 = vadd.f32 %v21635_v52, %v13677_v21  ;;  %v10631_v37 = vmax.f32 %v9975_v59, 0.0 }
 0x98f   :  { %v10629_v48 = vmax.f32 %v9967_v60, 0.0  ;;  %v10898_v55 = vadd.f32 %v10897_v1, %v10628_v42  ;;  %v9970_v44 = vadd.f32 %v21635_v52, %v9969_v9 }
 0x990   :  { %13783 = vmatmul.mubr.bf16.gmra.mrb[232].mxu1 %v9368_v3  ;;  %v10632_v29 = vmax.f32 %v9978_v35, 0.0 }
 0x991   :  { %v10899_v45 = vadd.f32 %v10898_v55, %v10629_v48  ;;  %v10630_v8 = vmax.f32 %v9970_v44, 0.0  ;;  %13786 = vmatprep.mubr.bf16.mxu1 %v9369_v31  ;;  %v24179_v48 = vadd.bf16 %v21163_v14, %v24035_v32  ;;  %v24180_v44 = vadd.bf16 %v21246_v30, %v24035_v32 }
 0x993   :  { %v10900_v12 = vadd.f32 %v10899_v45, %v10630_v8  ;;  %v13680_v36 = vpop.f32.mrb[128].mxu1  ;;  %v9374_v55 = vmax.bf16 %v23790_v4, %v24179_v48  ;;  %v9375_v45 = vmax.bf16 %v23790_v4, %v24180_v44 }
 0x994   :  { %v9982_v47 = vpop.f32.mrb[129].mxu1  ;;  %v9991_v62 = vadd.f32 %v21635_v52, %v13680_v36 }
 0x995   :  { %v10901_v6 = vadd.f32 %v10900_v12, %v10631_v37  ;;  %v9983_v7 = vadd.f32 %v21635_v52, %v9982_v47  ;;  %v13681_v11 = vpop.f32.mrb[130].mxu1 }
 0x996   :  { %v9985_v13 = vpop.f32.mrb[131].mxu1  ;;  %v9994_v17 = vadd.f32 %v21635_v52, %v13681_v11  ;;  %v10635_v0 = vmax.f32 %v9991_v62, 0.0 }
 0x997   :  { %v10633_v18 = vmax.f32 %v9983_v7, 0.0  ;;  %v10902_v2 = vadd.f32 %v10901_v6, %v10632_v29  ;;  %v9986_v33 = vadd.f32 %v21635_v52, %v9985_v13 }
 0x998   :  { %13787 = vmatmul.mubr.bf16.gmra.mrb[236].mxu1 %v9370_v16  ;;  %v10636_v39 = vmax.f32 %v9994_v17, 0.0 }
 0x999   :  { %v10903_v58 = vadd.f32 %v10902_v2, %v10633_v18  ;;  %v10634_v24 = vmax.f32 %v9986_v33, 0.0  ;;  %13790 = vmatprep.mubr.bf16.mxu1 %v9371_v40  ;;  %v24181_v33 = vld [vmem:[#allocation118_spill] sm:$0xff] }
 0x99b   :  { %v10904_v54 = vadd.f32 %v10903_v58, %v10634_v24  ;;  %v13684_v56 = vpop.f32.mrb[132].mxu1  ;;  %v24182_v58 = vadd.bf16 %v24181_v33, %v24035_v32  ;;  %v24183_v24 = vld [vmem:[#allocation70_spill] sm:$0xff] }
 0x99c   :  { %v9998_v5 = vpop.f32.mrb[133].mxu1  ;;  %v10007_v61 = vadd.f32 %v21635_v52, %v13684_v56 }
 0x99d   :  { %v10905_v26 = vadd.f32 %v10904_v54, %v10635_v0  ;;  %v9999_v46 = vadd.f32 %v21635_v52, %v9998_v5  ;;  %v13685_v10 = vpop.f32.mrb[134].mxu1  ;;  %v9376_v17 = vmax.bf16 %v23790_v4, %v24182_v58  ;;  %v24184_v0 = vadd.bf16 %v24183_v24, %v24035_v32 }
 0x99e   :  { %v10001_v15 = vpop.f32.mrb[135].mxu1  ;;  %v10010_v49 = vadd.f32 %v21635_v52, %v13685_v10  ;;  %v10639_v42 = vmax.f32 %v10007_v61, 0.0 }
 0x99f   :  { %v10906_v23 = vadd.f32 %v10905_v26, %v10636_v39  ;;  %v10002_v57 = vadd.f32 %v21635_v52, %v10001_v15  ;;  %v10637_v20 = vmax.f32 %v9999_v46, 0.0  ;;  %v9377_v54 = vmax.bf16 %v23790_v4, %v24184_v0 }
 0x9a0   :  { %13791 = vmatmul.mubr.bf16.gmra.mrb[240].mxu1 %v9372_v38  ;;  %v10640_v50 = vmax.f32 %v10010_v49, 0.0 }
 0x9a1   :  { %v10907_v22 = vrot.slane %v10906_v23, 4  ;;  %v10638_v25 = vmax.f32 %v10002_v57, 0.0  ;;  %13794 = vmatprep.mubr.bf16.mxu1 %v9373_v19 }
 0x9a3   :  { %v10908_v63 = vadd.f32 %v10907_v22, %v10906_v23  ;;  %v10913_v1 = vadd.f32 %v10638_v25, %v10637_v20  ;;  %v13688_v60 = vpop.f32.mrb[136].mxu1  ;;  %v24185_v25 = vld [vmem:[#allocation115_spill] sm:$0xff] }
 0x9a4   :  { %v10014_v21 = vpop.f32.mrb[137].mxu1  ;;  %v10023_v31 = vadd.f32 %v21635_v52, %v13688_v60 }
 0x9a5   :  { %v10909_v9 = vrot.slane %v10908_v63, 2  ;;  %v10914_v3 = vadd.f32 %v10913_v1, %v10639_v42  ;;  %v10015_v34 = vadd.f32 %v21635_v52, %v10014_v21  ;;  %v13689_v28 = vpop.f32.mrb[138].mxu1  ;;  %v24187_v42 = vld [vmem:[#allocation3_spill] sm:$0xff] }
 0x9a6   :  { %v10017_v59 = vpop.f32.mrb[139].mxu1  ;;  %v10026_v29 = vadd.f32 %v21635_v52, %v13689_v28  ;;  %v10643_v7 = vmax.f32 %v10023_v31, 0.0  ;;  %v24188_v1 = vadd.bf16 %v24187_v42, %v24035_v32 }
 0x9a7   :  { %v10910_v35 = vadd.f32 %v10909_v9, %v10908_v63  ;;  %v10641_v8 = vmax.f32 %v10015_v34, 0.0  ;;  %v10915_v37 = vadd.f32 %v10914_v3, %v10640_v50  ;;  %v10018_v12 = vadd.f32 %v21635_v52, %v10017_v59 }
 0x9a8   :  { %13795 = vmatmul.mubr.bf16.gmra.mrb[244].mxu1 %v9374_v55  ;;  %v10644_v16 = vmax.f32 %v10026_v29, 0.0  ;;  %v24186_v63 = vadd.bf16 %v24185_v25, %v24035_v32  ;;  %v9379_v60 = vmax.bf16 %v23790_v4, %v24188_v1 }
 0x9a9   :  { %v10911_v36 = vrot.slane %v10910_v35, 1  ;;  %v10916_v47 = vadd.f32 %v10915_v37, %v10641_v8  ;;  %v10642_v6 = vmax.f32 %v10018_v12, 0.0  ;;  %13798 = vmatprep.mubr.bf16.mxu1 %v9375_v45 }
 0x9ab   :  { %v10912_v14 = vadd.f32 %v10911_v36, %v10910_v35  ;;  %v10917_v11 = vadd.f32 %v10916_v47, %v10642_v6  ;;  %v13692_v13 = vpop.f32.mrb[140].mxu1  ;;  %v24189_v36 = vld [vmem:[#allocation127_spill] sm:$0xff] }
 0x9ac   :  { %v10030_v27 = vpop.f32.mrb[141].mxu1  ;;  %v10039_v18 = vadd.f32 %v21635_v52, %v13692_v13  ;;  %v24190_v47 = vadd.bf16 %v24189_v36, %v24035_v32 }
 0x9ad   :  { %v11064_v30 = vpack.c.bf16 %v10912_v14, %v10912_v14  ;;  %v10918_v53 = vadd.f32 %v10917_v11, %v10643_v7  ;;  %v10031_v40 = vadd.f32 %v21635_v52, %v10030_v27  ;;  %v13693_v62 = vpop.f32.mrb[142].mxu1 }
 0x9ae   :  { %v10033_v2 = vpop.f32.mrb[143].mxu1  ;;  %v10042_v15 = vadd.f32 %v21635_v52, %v13693_v62  ;;  %v10647_v38 = vmax.f32 %v10039_v18, 0.0  ;;  %v9380_v29 = vmax.bf16 %v23790_v4, %v24190_v47 }
 0x9af   :  { %v11103_v56 = vunpack.c.l.b16 %v11064_v30  ;;  %v10645_v5 = vmax.f32 %v10031_v40, 0.0  ;;  %v10919_v39 = vadd.f32 %v10918_v53, %v10644_v16  ;;  %v10034_v26 = vadd.f32 %v21635_v52, %v10033_v2 }
 0x9b0   :  { %13799 = vmatmul.mubr.bf16.gmra.mrb[248].mxu1 %v9376_v17  ;;  %v10648_v43 = vmax.f32 %v10042_v15, 0.0 }
 0x9b1   :  { %v21772_v46 = vsel %vm11112_vm2, %v11103_v56, %v21673_v41  ;;  %v10920_v10 = vadd.f32 %v10919_v39, %v10645_v5  ;;  %v10646_v51 = vmax.f32 %v10034_v26, 0.0  ;;  %13802 = vmatprep.mubr.bf16.mxu1 %v9377_v54  ;;  %v9378_v41 = vmax.bf16 %v23790_v4, %v24186_v63 }
 0x9b3   :  { %v10921_v23 = vadd.f32 %v10920_v10, %v10646_v51  ;;  %v13696_v61 = vpop.f32.mrb[144].mxu1 }
 0x9b4   :  { %v10046_v57 = vpop.f32.mrb[145].mxu1  ;;  %v10055_v21 = vadd.f32 %v21635_v52, %v13696_v61 }
 0x9b5   :  { %v10922_v19 = vadd.f32 %v10921_v23, %v10647_v38  ;;  %v10047_v22 = vadd.f32 %v21635_v52, %v10046_v57  ;;  %v13697_v20 = vpop.f32.mrb[146].mxu1 }
 0x9b6   :  { %v10049_v49 = vpop.f32.mrb[147].mxu1  ;;  %v10058_v28 = vadd.f32 %v21635_v52, %v13697_v20  ;;  %v10651_v59 = vmax.f32 %v10055_v21, 0.0 }
 0x9b7   :  { %v10649_v9 = vmax.f32 %v10047_v22, 0.0  ;;  %v10923_v50 = vadd.f32 %v10922_v19, %v10648_v43  ;;  %v10050_v3 = vadd.f32 %v21635_v52, %v10049_v49 }
 0x9b8   :  { %13803 = vmatmul.mubr.bf16.gmra.mrb[252].mxu1 %v9378_v41  ;;  %v10652_v45 = vmax.f32 %v10058_v28, 0.0 }
 0x9b9   :  { %v10924_v34 = vadd.f32 %v10923_v50, %v10649_v9  ;;  %v10650_v31 = vmax.f32 %v10050_v3, 0.0  ;;  %13806 = vmatprep.mubr.bf16.mxu1 %v9379_v60 }
 0x9bb   :  { %v10925_v48 = vadd.f32 %v10924_v34, %v10650_v31  ;;  %v13700_v55 = vpop.f32.mrb[148].mxu1 }
 0x9bc   :  { %v10062_v44 = vpop.f32.mrb[149].mxu1  ;;  %v10071_v6 = vadd.f32 %v21635_v52, %v13700_v55 }
 0x9bd   :  { %v10926_v35 = vadd.f32 %v10925_v48, %v10651_v59  ;;  %v10063_v8 = vadd.f32 %v21635_v52, %v10062_v44  ;;  %v13701_v37 = vpop.f32.mrb[150].mxu1 }
 0x9be   :  { %v10065_v12 = vpop.f32.mrb[151].mxu1  ;;  %v10074_v27 = vadd.f32 %v21635_v52, %v13701_v37  ;;  %v10655_v16 = vmax.f32 %v10071_v6, 0.0 }
 0x9bf   :  { %v10653_v14 = vmax.f32 %v10063_v8, 0.0  ;;  %v10927_v7 = vadd.f32 %v10926_v35, %v10652_v45  ;;  %v10066_v11 = vadd.f32 %v21635_v52, %v10065_v12 }
 0x9c0   :  { %13807 = vmatmul.mubr.bf16.gmra.mrb[0].mxu1 %v9380_v29  ;;  %v10656_v18 = vmax.f32 %v10074_v27, 0.0 }
 0x9c1   :  { %v10928_v13 = vadd.f32 %v10927_v7, %v10653_v14  ;;  %v10654_v30 = vmax.f32 %v10066_v11, 0.0 }
 0x9c3   :  { %v10929_v53 = vadd.f32 %v10928_v13, %v10654_v30  ;;  %v13704_v40 = vpop.f32.mrb[152].mxu1 }
 0x9c4   :  { %v10078_v62 = vpop.f32.mrb[153].mxu1  ;;  %v10087_v58 = vadd.f32 %v21635_v52, %v13704_v40 }
 0x9c5   :  { %v10930_v2 = vadd.f32 %v10929_v53, %v10655_v16  ;;  %v10079_v32 = vadd.f32 %v21635_v52, %v10078_v62  ;;  %v13705_v4 = vpop.f32.mrb[154].mxu1 }
 0x9c6   :  { %v10081_v33 = vpop.f32.mrb[155].mxu1  ;;  %v10090_v56 = vadd.f32 %v21635_v52, %v13705_v4  ;;  %v10659_v39 = vmax.f32 %v10087_v58, 0.0 }
 0x9c7   :  { %v10657_v17 = vmax.f32 %v10079_v32, 0.0  ;;  %v10931_v24 = vadd.f32 %v10930_v2, %v10656_v18  ;;  %v10082_v0 = vadd.f32 %v21635_v52, %v10081_v33 }
 0x9c8   :  { %v10660_v51 = vmax.f32 %v10090_v56, 0.0 }
 0x9c9   :  { %v10932_v54 = vadd.f32 %v10931_v24, %v10657_v17  ;;  %v10658_v5 = vmax.f32 %v10082_v0, 0.0 }
 0x9cb   :  { %v10933_v26 = vadd.f32 %v10932_v54, %v10658_v5  ;;  %v13708_v10 = vpop.f32.mrb[156].mxu1 }
 0x9cc   :  { %v10094_v15 = vpop.f32.mrb[157].mxu1  ;;  %v10103_v43 = vadd.f32 %v21635_v52, %v13708_v10 }
 0x9cd   :  { %v10934_v38 = vadd.f32 %v10933_v26, %v10659_v39  ;;  %v10095_v23 = vadd.f32 %v21635_v52, %v10094_v15  ;;  %v13709_v61 = vpop.f32.mrb[158].mxu1 }
 0x9ce   :  { %v10097_v57 = vpop.f32.mrb[159].mxu1  ;;  %v10106_v25 = vadd.f32 %v21635_v52, %v13709_v61  ;;  %v10663_v41 = vmax.f32 %v10103_v43, 0.0 }
 0x9cf   :  { %v10661_v19 = vmax.f32 %v10095_v23, 0.0  ;;  %v10935_v22 = vadd.f32 %v10934_v38, %v10660_v51  ;;  %v10098_v20 = vadd.f32 %v21635_v52, %v10097_v57 }
 0x9d0   :  { %v10664_v21 = vmax.f32 %v10106_v25, 0.0 }
 0x9d1   :  { %v10936_v49 = vadd.f32 %v10935_v22, %v10661_v19  ;;  %v10662_v63 = vmax.f32 %v10098_v20, 0.0 }
 0x9d3   :  { %v10937_v42 = vadd.f32 %v10936_v49, %v10662_v63  ;;  %v13712_v1 = vpop.f32.mrb[160].mxu1 }
 0x9d4   :  { %v10110_v60 = vpop.f32.mrb[161].mxu1  ;;  %v10119_v28 = vadd.f32 %v21635_v52, %v13712_v1 }
 0x9d5   :  { %v10938_v9 = vadd.f32 %v10937_v42, %v10663_v41  ;;  %v10111_v50 = vadd.f32 %v21635_v52, %v10110_v60  ;;  %v13713_v3 = vpop.f32.mrb[162].mxu1 }
 0x9d6   :  { %v10113_v34 = vpop.f32.mrb[163].mxu1  ;;  %v10122_v44 = vadd.f32 %v21635_v52, %v13713_v3  ;;  %v10667_v35 = vmax.f32 %v10119_v28, 0.0 }
 0x9d7   :  { %v10665_v31 = vmax.f32 %v10111_v50, 0.0  ;;  %v10939_v59 = vadd.f32 %v10938_v9, %v10664_v21  ;;  %v10114_v48 = vadd.f32 %v21635_v52, %v10113_v34 }
 0x9d8   :  { %v10668_v36 = vmax.f32 %v10122_v44, 0.0 }
 0x9d9   :  { %v10940_v55 = vadd.f32 %v10939_v59, %v10665_v31  ;;  %v10666_v45 = vmax.f32 %v10114_v48, 0.0 }
 0x9db   :  { %v10941_v8 = vadd.f32 %v10940_v55, %v10666_v45  ;;  %v13716_v37 = vpop.f32.mrb[164].mxu1 }
 0x9dc   :  { %v10126_v12 = vpop.f32.mrb[165].mxu1  ;;  %v10135_v11 = vadd.f32 %v21635_v52, %v13716_v37 }
 0x9dd   :  { %v10942_v47 = vadd.f32 %v10941_v8, %v10667_v35  ;;  %v10127_v29 = vadd.f32 %v21635_v52, %v10126_v12  ;;  %v13717_v6 = vpop.f32.mrb[166].mxu1 }
 0x9de   :  { %v10129_v14 = vpop.f32.mrb[167].mxu1  ;;  %v10138_v16 = vadd.f32 %v21635_v52, %v13717_v6  ;;  %v10671_v62 = vmax.f32 %v10135_v11, 0.0  ;;  %v14499_v11 = vld [vmem:[%s22044_s11] sm:$0xff]  }
 0x9df   :  { %v10943_v7 = vadd.f32 %v10942_v47, %v10668_v36  ;;  %v10130_v13 = vadd.f32 %v21635_v52, %v10129_v14  ;;  %v10669_v30 = vmax.f32 %v10127_v29, 0.0  ;;  %v14531_v29 = vmov 0.0  }
 0x9e0   :  { %v10672_v33 = vmax.f32 %v10138_v16, 0.0  ;;  %13810 = vmatprep.subr.bf16.mxu0 %v14531_v29  ;;  %13826 = vmatprep.mubr.msk.bf16.mxu0 %vm14532_vm5, %v14531_v29 }
 0x9e1   :  { %v10944_v27 = vrot.slane %v10943_v7, 4  ;;  %v10670_v53 = vmax.f32 %v10130_v13, 0.0  ;;  %13811 = vmatpush3.bf16.msra.mxu0 %v14499_v11 }
 0x9e2   :  { %13812 = vmatprep.subr.bf16.mxu0 %v14531_v29 }
 0x9e3   :  { %v10945_v40 = vadd.f32 %v10944_v27, %v10943_v7  ;;  %v10950_v18 = vadd.f32 %v10670_v53, %v10669_v30  ;;  %v13720_v2 = vpop.f32.mrb[168].mxu1 }
 0x9e4   :  { %v10142_v32 = vpop.f32.mrb[169].mxu1  ;;  %v10151_v0 = vadd.f32 %v21635_v52, %v13720_v2 }
 0x9e5   :  { %v10946_v4 = vrot.slane %v10945_v40, 2  ;;  %v10951_v58 = vadd.f32 %v10950_v18, %v10671_v62  ;;  %v10143_v17 = vadd.f32 %v21635_v52, %v10142_v32  ;;  %v13721_v24 = vpop.f32.mrb[170].mxu1 }
 0x9e6   :  { %v10145_v54 = vpop.f32.mrb[171].mxu1  ;;  %v10154_v51 = vadd.f32 %v21635_v52, %v13721_v24  ;;  %v10675_v61 = vmax.f32 %v10151_v0, 0.0 }
 0x9e7   :  { %v10947_v56 = vadd.f32 %v10946_v4, %v10945_v40  ;;  %v10673_v5 = vmax.f32 %v10143_v17, 0.0  ;;  %v10952_v39 = vadd.f32 %v10951_v58, %v10672_v33  ;;  %v10146_v26 = vadd.f32 %v21635_v52, %v10145_v54  ;;  %v14500_v54 = vld [vmem:[%s22044_s11 + $0x8] sm:$0xff]  }
 0x9e8   :  { %v10676_v20 = vmax.f32 %v10154_v51, 0.0  ;;  %13813 = vmatpush3.bf16.msra.mxu0 %v14500_v54 }
 0x9e9   :  { %v10948_v10 = vrot.slane %v10947_v56, 1  ;;  %v10953_v15 = vadd.f32 %v10952_v39, %v10673_v5  ;;  %v10674_v38 = vmax.f32 %v10146_v26, 0.0  ;;  %13814 = vmatprep.subr.bf16.mxu0 %v14531_v29 }
 0x9eb   :  { %v10949_v23 = vadd.f32 %v10948_v10, %v10947_v56  ;;  %v10954_v57 = vadd.f32 %v10953_v15, %v10674_v38  ;;  %v13724_v43 = vpop.f32.mrb[172].mxu1 }
 0x9ec   :  { %v10158_v19 = vpop.f32.mrb[173].mxu1  ;;  %v10167_v41 = vadd.f32 %v21635_v52, %v13724_v43 }
 0x9ed   :  { %v11065_v22 = vpack.c.bf16 %v10949_v23, %v10949_v23  ;;  %v10955_v49 = vadd.f32 %v10954_v57, %v10675_v61  ;;  %v10159_v25 = vadd.f32 %v21635_v52, %v10158_v19  ;;  %v13725_v63 = vpop.f32.mrb[174].mxu1 }
 0x9ee   :  { %v10161_v42 = vpop.f32.mrb[175].mxu1  ;;  %v10170_v34 = vadd.f32 %v21635_v52, %v13725_v63  ;;  %v10679_v31 = vmax.f32 %v10167_v41, 0.0 }
 0x9ef   :  { %v11104_v1 = vunpack.c.l.b16 %v11065_v22  ;;  %v10677_v60 = vmax.f32 %v10159_v25, 0.0  ;;  %v10956_v21 = vadd.f32 %v10955_v49, %v10676_v20  ;;  %v10162_v9 = vadd.f32 %v21635_v52, %v10161_v42  ;;  %v14501_v25 = vld [vmem:[%s22044_s11 + $0x10] sm:$0xff]  }
 0x9f0   :  { %v10680_v44 = vmax.f32 %v10170_v34, 0.0  ;;  %13815 = vmatpush3.bf16.msra.mxu0 %v14501_v25 }
 0x9f1   :  { %v21819_v50 = vsel %vm11114_vm3, %v11104_v1, %v21772_v46  ;;  %v10957_v3 = vadd.f32 %v10956_v21, %v10677_v60  ;;  %v10678_v28 = vmax.f32 %v10162_v9, 0.0  ;;  %13816 = vmatprep.subr.bf16.mxu0 %v14531_v29 }
 0x9f3   :  { %v10958_v59 = vadd.f32 %v10957_v3, %v10678_v28  ;;  %v13728_v48 = vpop.f32.mrb[176].mxu1 }
 0x9f4   :  { %v10174_v55 = vpop.f32.mrb[177].mxu1  ;;  %v10183_v12 = vadd.f32 %v21635_v52, %v13728_v48 }
 0x9f5   :  { %v10959_v45 = vadd.f32 %v10958_v59, %v10679_v31  ;;  %v10175_v35 = vadd.f32 %v21635_v52, %v10174_v55  ;;  %v13729_v8 = vpop.f32.mrb[178].mxu1 }
 0x9f6   :  { %v10177_v37 = vpop.f32.mrb[179].mxu1  ;;  %v10186_v14 = vadd.f32 %v21635_v52, %v13729_v8  ;;  %v10683_v13 = vmax.f32 %v10183_v12, 0.0 }
 0x9f7   :  { %v10681_v36 = vmax.f32 %v10175_v35, 0.0  ;;  %v10960_v47 = vadd.f32 %v10959_v45, %v10680_v44  ;;  %v10178_v46 = vadd.f32 %v21635_v52, %v10177_v37  ;;  %v14502_v35 = vld [vmem:[%s22044_s11 + $0x18] sm:$0xff]  }
 0x9f8   :  { %v10684_v53 = vmax.f32 %v10186_v14, 0.0  ;;  %13817 = vmatpush3.bf16.msra.mxu0 %v14502_v35 }
 0x9f9   :  { %v10961_v6 = vadd.f32 %v10960_v47, %v10681_v36  ;;  %v10682_v7 = vmax.f32 %v10178_v46, 0.0  ;;  %13818 = vmatprep.subr.bf16.mxu0 %v14531_v29 }
 0x9fb   :  { %v10962_v27 = vadd.f32 %v10961_v6, %v10682_v7  ;;  %v13732_v30 = vpop.f32.mrb[180].mxu1 }
 0x9fc   :  { %v10190_v16 = vpop.f32.mrb[181].mxu1  ;;  %v10199_v32 = vadd.f32 %v21635_v52, %v13732_v30 }
 0x9fd   :  { %v10963_v40 = vadd.f32 %v10962_v27, %v10683_v13  ;;  %v10191_v62 = vadd.f32 %v21635_v52, %v10190_v16  ;;  %v13733_v18 = vpop.f32.mrb[182].mxu1 }
 0x9fe   :  { %v10193_v2 = vpop.f32.mrb[183].mxu1  ;;  %v10202_v24 = vadd.f32 %v21635_v52, %v13733_v18  ;;  %v10687_v56 = vmax.f32 %v10199_v32, 0.0 }
 0x9ff   :  { %v10685_v4 = vmax.f32 %v10191_v62, 0.0  ;;  %v10964_v33 = vadd.f32 %v10963_v40, %v10684_v53  ;;  %v10194_v58 = vadd.f32 %v21635_v52, %v10193_v2  ;;  %v14503_v62 = vld [vmem:[%s22044_s11 + $0x20] sm:$0xff]  }
 0xa00   :  { %v10688_v10 = vmax.f32 %v10202_v24, 0.0  ;;  %13819 = vmatpush3.bf16.msra.mxu0 %v14503_v62 }
 0xa01   :  { %v10965_v17 = vadd.f32 %v10964_v33, %v10685_v4  ;;  %v10686_v0 = vmax.f32 %v10194_v58, 0.0  ;;  %13820 = vmatprep.subr.bf16.mxu0 %v14531_v29 }
 0xa03   :  { %v10966_v5 = vadd.f32 %v10965_v17, %v10686_v0  ;;  %v13736_v39 = vpop.f32.mrb[184].mxu1 }
 0xa04   :  { %v10206_v26 = vpop.f32.mrb[185].mxu1  ;;  %v10215_v61 = vadd.f32 %v21635_v52, %v13736_v39 }
 0xa05   :  { %v10967_v15 = vadd.f32 %v10966_v5, %v10687_v56  ;;  %v10207_v51 = vadd.f32 %v21635_v52, %v10206_v26  ;;  %v13737_v38 = vpop.f32.mrb[186].mxu1 }
 0xa06   :  { %v10209_v23 = vpop.f32.mrb[187].mxu1  ;;  %v10218_v20 = vadd.f32 %v21635_v52, %v13737_v38  ;;  %v10691_v63 = vmax.f32 %v10215_v61, 0.0 }
 0xa07   :  { %v10689_v57 = vmax.f32 %v10207_v51, 0.0  ;;  %v10968_v43 = vadd.f32 %v10967_v15, %v10688_v10  ;;  %v10210_v19 = vadd.f32 %v21635_v52, %v10209_v23 }
 0xa08   :  { %v10692_v60 = vmax.f32 %v10218_v20, 0.0  ;;  %v21870_v20 = vld [vmem:[%s22043_s10] ss:$0 sm:$0xff] }
 0xa09   :  { %v10969_v22 = vadd.f32 %v10968_v43, %v10689_v57  ;;  %v10690_v49 = vmax.f32 %v10210_v19, 0.0 }
 0xa0b   :  { %v10970_v41 = vadd.f32 %v10969_v22, %v10690_v49  ;;  %v13740_v42 = vpop.f32.mrb[188].mxu1 }
 0xa0c   :  { %v10222_v1 = vpop.f32.mrb[189].mxu1  ;;  %v10231_v28 = vadd.f32 %v21635_v52, %v13740_v42 }
 0xa0d   :  { %v10971_v21 = vadd.f32 %v10970_v41, %v10691_v63  ;;  %v10223_v9 = vadd.f32 %v21635_v52, %v10222_v1  ;;  %v13741_v3 = vpop.f32.mrb[190].mxu1 }
 0xa0e   :  { %v10225_v34 = vpop.f32.mrb[191].mxu1  ;;  %v10234_v44 = vadd.f32 %v21635_v52, %v13741_v3  ;;  %v10695_v8 = vmax.f32 %v10231_v28, 0.0 }
 0xa0f   :  { %v10693_v31 = vmax.f32 %v10223_v9, 0.0  ;;  %v10972_v59 = vadd.f32 %v10971_v21, %v10692_v60  ;;  %v10226_v48 = vadd.f32 %v21635_v52, %v10225_v34 }
 0xa10   :  { %v10696_v47 = vmax.f32 %v10234_v44, 0.0 }
 0xa11   :  { %v10973_v55 = vadd.f32 %v10972_v59, %v10693_v31  ;;  %v10694_v45 = vmax.f32 %v10226_v48, 0.0 }
 0xa13   :  { %v10974_v37 = vadd.f32 %v10973_v55, %v10694_v45  ;;  %v13744_v12 = vpop.f32.mrb[192].mxu1 }
 0xa14   :  { %v10238_v36 = vpop.f32.mrb[193].mxu1  ;;  %v10247_v11 = vadd.f32 %v21635_v52, %v13744_v12 }
 0xa15   :  { %v10975_v46 = vadd.f32 %v10974_v37, %v10695_v8  ;;  %v10239_v6 = vadd.f32 %v21635_v52, %v10238_v36  ;;  %v13745_v14 = vpop.f32.mrb[194].mxu1 }
 0xa16   :  { %v10241_v7 = vpop.f32.mrb[195].mxu1  ;;  %v10250_v53 = vadd.f32 %v21635_v52, %v13745_v14  ;;  %v10699_v18 = vmax.f32 %v10247_v11, 0.0 }
 0xa17   :  { %v10697_v13 = vmax.f32 %v10239_v6, 0.0  ;;  %v10976_v27 = vadd.f32 %v10975_v46, %v10696_v47  ;;  %v10242_v30 = vadd.f32 %v21635_v52, %v10241_v7 }
 0xa18   :  { %v10700_v33 = vmax.f32 %v10250_v53, 0.0 }
 0xa19   :  { %v10977_v16 = vadd.f32 %v10976_v27, %v10697_v13  ;;  %v10698_v40 = vmax.f32 %v10242_v30, 0.0  ;;  %v14504_v30 = vld [vmem:[%s22044_s11 + $0x28] sm:$0xff]  }
 0xa1a   :  { %13821 = vmatpush3.bf16.msra.mxu0 %v14504_v30 }
 0xa1b   :  { %v10978_v2 = vadd.f32 %v10977_v16, %v10698_v40  ;;  %v13748_v32 = vpop.f32.mrb[196].mxu1  ;;  %13822 = vmatprep.subr.bf16.mxu0 %v14531_v29 }
 0xa1c   :  { %v10254_v4 = vpop.f32.mrb[197].mxu1  ;;  %v10263_v56 = vadd.f32 %v21635_v52, %v13748_v32 }
 0xa1d   :  { %v10979_v58 = vadd.f32 %v10978_v2, %v10699_v18  ;;  %v10255_v17 = vadd.f32 %v21635_v52, %v10254_v4  ;;  %v13749_v24 = vpop.f32.mrb[198].mxu1 }
 0xa1e   :  { %v10257_v0 = vpop.f32.mrb[199].mxu1  ;;  %v10266_v10 = vadd.f32 %v21635_v52, %v13749_v24  ;;  %v10703_v38 = vmax.f32 %v10263_v56, 0.0 }
 0xa1f   :  { %v10980_v54 = vadd.f32 %v10979_v58, %v10700_v33  ;;  %v10258_v5 = vadd.f32 %v21635_v52, %v10257_v0  ;;  %v10701_v26 = vmax.f32 %v10255_v17, 0.0 }
 0xa20   :  { %v10704_v19 = vmax.f32 %v10266_v10, 0.0 }
 0xa21   :  { %v10981_v39 = vrot.slane %v10980_v54, 4  ;;  %v10702_v15 = vmax.f32 %v10258_v5, 0.0 }
 0xa23   :  { %v10982_v51 = vadd.f32 %v10981_v39, %v10980_v54  ;;  %v10987_v23 = vadd.f32 %v10702_v15, %v10701_v26  ;;  %v13752_v61 = vpop.f32.mrb[200].mxu1  ;;  %v14506_v54 = vld [vmem:[%s22044_s11 + $0x38] sm:$0xff]  }
 0xa24   :  { %v10270_v57 = vpop.f32.mrb[201].mxu1  ;;  %v10279_v63 = vadd.f32 %v21870_v20, %v13752_v61 }
 0xa25   :  { %v10983_v43 = vrot.slane %v10982_v51, 2  ;;  %v10988_v22 = vadd.f32 %v10987_v23, %v10703_v38  ;;  %v10271_v49 = vadd.f32 %v21870_v20, %v10270_v57  ;;  %v13753_v25 = vpop.f32.mrb[202].mxu1 }
 0xa26   :  { %v10273_v52 = vpop.f32.mrb[203].mxu1  ;;  %v10282_v3 = vadd.f32 %v21870_v20, %v13753_v25  ;;  %v10707_v31 = vmax.f32 %v10279_v63, 0.0 }
 0xa27   :  { %v10984_v41 = vadd.f32 %v10983_v43, %v10982_v51  ;;  %v10705_v42 = vmax.f32 %v10271_v49, 0.0  ;;  %v10989_v1 = vadd.f32 %v10988_v22, %v10704_v19  ;;  %v10274_v60 = vadd.f32 %v21870_v20, %v10273_v52 }
 0xa28   :  { %v10708_v45 = vmax.f32 %v10282_v3, 0.0 }
 0xa29   :  { %v10985_v21 = vrot.slane %v10984_v41, 1  ;;  %v10990_v9 = vadd.f32 %v10989_v1, %v10705_v42  ;;  %v10706_v34 = vmax.f32 %v10274_v60, 0.0 }
 0xa2b   :  { %v10986_v28 = vadd.f32 %v10985_v21, %v10984_v41  ;;  %v10991_v59 = vadd.f32 %v10990_v9, %v10706_v34  ;;  %v13756_v48 = vpop.f32.mrb[204].mxu1 }
 0xa2c   :  { %v10286_v55 = vpop.f32.mrb[205].mxu1  ;;  %v10295_v12 = vadd.f32 %v21870_v20, %v13756_v48 }
 0xa2d   :  { %v11066_v44 = vpack.c.bf16 %v10986_v28, %v10986_v28  ;;  %v10992_v35 = vadd.f32 %v10991_v59, %v10707_v31  ;;  %v10287_v8 = vadd.f32 %v21870_v20, %v10286_v55  ;;  %v13757_v37 = vpop.f32.mrb[206].mxu1 }
 0xa2e   :  { %v10289_v36 = vpop.f32.mrb[207].mxu1  ;;  %v10298_v13 = vadd.f32 %v21870_v20, %v13757_v37  ;;  %v10711_v16 = vmax.f32 %v10295_v12, 0.0 }
 0xa2f   :  { %v11105_v47 = vunpack.c.l.b16 %v11066_v44  ;;  %v10709_v46 = vmax.f32 %v10287_v8, 0.0  ;;  %v10993_v6 = vadd.f32 %v10992_v35, %v10708_v45  ;;  %v10290_v14 = vadd.f32 %v21870_v20, %v10289_v36 }
 0xa30   :  { %v10712_v18 = vmax.f32 %v10298_v13, 0.0 }
 0xa31   :  { %v21880_v7 = vsel %vm11116_vm4, %v11105_v47, %v21819_v50  ;;  %v10994_v11 = vadd.f32 %v10993_v6, %v10709_v46  ;;  %v10710_v27 = vmax.f32 %v10290_v14, 0.0  ;;  %v14505_v50 = vld [vmem:[%s22044_s11 + $0x30] sm:$0xff]  }
 0xa32   :  { %13823 = vmatpush3.bf16.msra.mxu0 %v14505_v50 }
 0xa33   :  { %v10995_v53 = vadd.f32 %v10994_v11, %v10710_v27  ;;  %v13760_v40 = vpop.f32.mrb[208].mxu1  ;;  %13824 = vmatprep.subr.bf16.mxu0 %v14531_v29 }
 0xa34   :  { %v10302_v62 = vpop.f32.mrb[209].mxu1  ;;  %v10311_v58 = vadd.f32 %v21870_v20, %v13760_v40 }
 0xa35   :  { %v10996_v2 = vadd.f32 %v10995_v53, %v10711_v16  ;;  %v10303_v32 = vadd.f32 %v21870_v20, %v10302_v62  ;;  %v13761_v4 = vpop.f32.mrb[210].mxu1 }
 0xa36   :  { %v10305_v33 = vpop.f32.mrb[211].mxu1  ;;  %v10314_v5 = vadd.f32 %v21870_v20, %v13761_v4  ;;  %v10715_v26 = vmax.f32 %v10311_v58, 0.0  ;;  %13825 = vmatpush3.bf16.msra.mxu0 %v14506_v54 }
 0xa37   :  { %v10713_v17 = vmax.f32 %v10303_v32, 0.0  ;;  %v10997_v24 = vadd.f32 %v10996_v2, %v10712_v18  ;;  %v10306_v0 = vadd.f32 %v21870_v20, %v10305_v33  ;;  %13830 = vmatprep.subr.bf16.mxu0 %v14531_v29 }
 0xa38   :  { %v10716_v38 = vmax.f32 %v10314_v5, 0.0 }
 0xa39   :  { %v10998_v56 = vadd.f32 %v10997_v24, %v10713_v17  ;;  %v10714_v39 = vmax.f32 %v10306_v0, 0.0 }
 0xa3b   :  { %v10999_v10 = vadd.f32 %v10998_v56, %v10714_v39  ;;  %v13764_v15 = vpop.f32.mrb[212].mxu1 }
 0xa3c   :  { %v10318_v51 = vpop.f32.mrb[213].mxu1  ;;  %v10327_v19 = vadd.f32 %v21870_v20, %v13764_v15 }
 0xa3d   :  { %v11000_v23 = vadd.f32 %v10999_v10, %v10715_v26  ;;  %v10319_v61 = vadd.f32 %v21870_v20, %v10318_v51  ;;  %v13765_v57 = vpop.f32.mrb[214].mxu1 }
 0xa3e   :  { %v10321_v43 = vpop.f32.mrb[215].mxu1  ;;  %v10330_v52 = vadd.f32 %v21870_v20, %v13765_v57  ;;  %v10719_v42 = vmax.f32 %v10327_v19, 0.0 }
 0xa3f   :  { %v10717_v22 = vmax.f32 %v10319_v61, 0.0  ;;  %v11001_v49 = vadd.f32 %v11000_v23, %v10716_v38  ;;  %v10322_v25 = vadd.f32 %v21870_v20, %v10321_v43 }
 0xa40   :  { %v10720_v9 = vmax.f32 %v10330_v52, 0.0 }
 0xa41   :  { %v11002_v63 = vadd.f32 %v11001_v49, %v10717_v22  ;;  %v10718_v41 = vmax.f32 %v10322_v25, 0.0 }
 0xa43   :  { %v11003_v1 = vadd.f32 %v11002_v63, %v10718_v41  ;;  %v13768_v60 = vpop.f32.mrb[216].mxu1 }
 0xa44   :  { %v10334_v21 = vpop.f32.mrb[217].mxu1  ;;  %v10343_v59 = vadd.f32 %v21870_v20, %v13768_v60 }
 0xa45   :  { %v11004_v3 = vadd.f32 %v11003_v1, %v10719_v42  ;;  %v10335_v34 = vadd.f32 %v21870_v20, %v10334_v21  ;;  %v13769_v28 = vpop.f32.mrb[218].mxu1 }
 0xa46   :  { %v10337_v31 = vpop.f32.mrb[219].mxu1  ;;  %v10346_v35 = vadd.f32 %v21870_v20, %v13769_v28  ;;  %v10723_v37 = vmax.f32 %v10343_v59, 0.0 }
 0xa47   :  { %v10721_v48 = vmax.f32 %v10335_v34, 0.0  ;;  %v11005_v55 = vadd.f32 %v11004_v3, %v10720_v9  ;;  %v10338_v44 = vadd.f32 %v21870_v20, %v10337_v31 }
 0xa48   :  { %v10724_v46 = vmax.f32 %v10346_v35, 0.0 }
 0xa49   :  { %v11006_v45 = vadd.f32 %v11005_v55, %v10721_v48  ;;  %v10722_v8 = vmax.f32 %v10338_v44, 0.0 }
 0xa4b   :  { %v11007_v12 = vadd.f32 %v11006_v45, %v10722_v8  ;;  %v13772_v36 = vpop.f32.mrb[220].mxu1 }
 0xa4c   :  { %v10350_v47 = vpop.f32.mrb[221].mxu1  ;;  %v10359_v27 = vadd.f32 %v21870_v20, %v13772_v36 }
 0xa4d   :  { %v11008_v6 = vadd.f32 %v11007_v12, %v10723_v37  ;;  %v10351_v14 = vadd.f32 %v21870_v20, %v10350_v47  ;;  %v13773_v11 = vpop.f32.mrb[222].mxu1 }
 0xa4e   :  { %v10353_v13 = vpop.f32.mrb[223].mxu1  ;;  %v10362_v62 = vadd.f32 %v21870_v20, %v13773_v11  ;;  %v10727_v18 = vmax.f32 %v10359_v27, 0.0 }
 0xa4f   :  { %v10725_v30 = vmax.f32 %v10351_v14, 0.0  ;;  %v11009_v16 = vadd.f32 %v11008_v6, %v10724_v46  ;;  %v10354_v53 = vadd.f32 %v21870_v20, %v10353_v13 }
 0xa50   :  { %v10728_v33 = vmax.f32 %v10362_v62, 0.0 }
 0xa51   :  { %v11010_v40 = vadd.f32 %v11009_v16, %v10725_v30  ;;  %v10726_v50 = vmax.f32 %v10354_v53, 0.0 }
 0xa53   :  { %v11011_v2 = vadd.f32 %v11010_v40, %v10726_v50  ;;  %v13776_v32 = vpop.f32.mrb[224].mxu1 }
 0xa54   :  { %v10366_v4 = vpop.f32.mrb[225].mxu1  ;;  %v10375_v54 = vadd.f32 %v21870_v20, %v13776_v32 }
 0xa55   :  { %v11012_v58 = vadd.f32 %v11011_v2, %v10727_v18  ;;  %v10367_v17 = vadd.f32 %v21870_v20, %v10366_v4  ;;  %v13777_v24 = vpop.f32.mrb[226].mxu1 }
 0xa56   :  { %v10369_v0 = vpop.f32.mrb[227].mxu1  ;;  %v10378_v10 = vadd.f32 %v21870_v20, %v13777_v24  ;;  %v10731_v51 = vmax.f32 %v10375_v54, 0.0 }
 0xa57   :  { %v10729_v56 = vmax.f32 %v10367_v17, 0.0  ;;  %v11013_v5 = vadd.f32 %v11012_v58, %v10728_v33  ;;  %v10370_v39 = vadd.f32 %v21870_v20, %v10369_v0 }
 0xa58   :  { %v10732_v57 = vmax.f32 %v10378_v10, 0.0 }
 0xa59   :  { %v11014_v26 = vadd.f32 %v11013_v5, %v10729_v56  ;;  %v10730_v15 = vmax.f32 %v10370_v39, 0.0 }
 0xa5b   :  { %v11015_v38 = vadd.f32 %v11014_v26, %v10730_v15  ;;  %v13780_v23 = vpop.f32.mrb[228].mxu1 }
 0xa5c   :  { %v10382_v61 = vpop.f32.mrb[229].mxu1  ;;  %v10391_v63 = vadd.f32 %v21870_v20, %v13780_v23 }
 0xa5d   :  { %v11016_v43 = vadd.f32 %v11015_v38, %v10731_v51  ;;  %v10383_v19 = vadd.f32 %v21870_v20, %v10382_v61  ;;  %v13781_v22 = vpop.f32.mrb[230].mxu1 }
 0xa5e   :  { %v10385_v49 = vpop.f32.mrb[231].mxu1  ;;  %v10394_v1 = vadd.f32 %v21870_v20, %v13781_v22  ;;  %v10735_v9 = vmax.f32 %v10391_v63, 0.0 }
 0xa5f   :  { %v11017_v25 = vadd.f32 %v11016_v43, %v10732_v57  ;;  %v10386_v52 = vadd.f32 %v21870_v20, %v10385_v49  ;;  %v10733_v42 = vmax.f32 %v10383_v19, 0.0 }
 0xa60   :  { %v10736_v59 = vmax.f32 %v10394_v1, 0.0 }
 0xa61   :  { %v11018_v41 = vrot.slane %v11017_v25, 4  ;;  %v10734_v60 = vmax.f32 %v10386_v52, 0.0 }
 0xa63   :  { %v11019_v21 = vadd.f32 %v11018_v41, %v11017_v25  ;;  %v11024_v3 = vadd.f32 %v10734_v60, %v10733_v42  ;;  %v13784_v34 = vpop.f32.mrb[232].mxu1 }
 0xa64   :  { %v10398_v28 = vpop.f32.mrb[233].mxu1  ;;  %v10407_v45 = vadd.f32 %v21870_v20, %v13784_v34 }
 0xa65   :  { %v11020_v31 = vrot.slane %v11019_v21, 2  ;;  %v11025_v48 = vadd.f32 %v11024_v3, %v10735_v9  ;;  %v10399_v55 = vadd.f32 %v21870_v20, %v10398_v28  ;;  %v13785_v44 = vpop.f32.mrb[234].mxu1 }
 0xa66   :  { %v10401_v35 = vpop.f32.mrb[235].mxu1  ;;  %v10410_v6 = vadd.f32 %v21870_v20, %v13785_v44  ;;  %v10739_v13 = vmax.f32 %v10407_v45, 0.0 }
 0xa67   :  { %v11021_v8 = vadd.f32 %v11020_v31, %v11019_v21  ;;  %v10737_v37 = vmax.f32 %v10399_v55, 0.0  ;;  %v11026_v12 = vadd.f32 %v11025_v48, %v10736_v59  ;;  %v10402_v36 = vadd.f32 %v21870_v20, %v10401_v35 }
 0xa68   :  { %v10740_v40 = vmax.f32 %v10410_v6, 0.0 }
 0xa69   :  { %v11022_v47 = vrot.slane %v11021_v8, 1  ;;  %v11027_v46 = vadd.f32 %v11026_v12, %v10737_v37  ;;  %v10738_v14 = vmax.f32 %v10402_v36, 0.0 }
 0xa6b   :  { %v11023_v11 = vadd.f32 %v11022_v47, %v11021_v8  ;;  %v11028_v27 = vadd.f32 %v11027_v46, %v10738_v14  ;;  %v13788_v30 = vpop.f32.mrb[236].mxu1 }
 0xa6c   :  { %v10414_v16 = vpop.f32.mrb[237].mxu1  ;;  %v10423_v2 = vadd.f32 %v21870_v20, %v13788_v30 }
 0xa6d   :  { %v11067_v53 = vpack.c.bf16 %v11023_v11, %v11023_v11  ;;  %v11029_v62 = vadd.f32 %v11028_v27, %v10739_v13  ;;  %v10415_v50 = vadd.f32 %v21870_v20, %v10414_v16  ;;  %v13789_v18 = vpop.f32.mrb[238].mxu1 }
 0xa6e   :  { %v10417_v32 = vpop.f32.mrb[239].mxu1  ;;  %v10426_v54 = vadd.f32 %v21870_v20, %v13789_v18  ;;  %v10743_v5 = vmax.f32 %v10423_v2, 0.0 }
 0xa6f   :  { %v11106_v4 = vunpack.c.l.b16 %v11067_v53  ;;  %v10741_v33 = vmax.f32 %v10415_v50, 0.0  ;;  %v11030_v58 = vadd.f32 %v11029_v62, %v10740_v40  ;;  %v10418_v17 = vadd.f32 %v21870_v20, %v10417_v32 }
 0xa70   :  { %v10744_v15 = vmax.f32 %v10426_v54, 0.0 }
 0xa71   :  { %v21929_v24 = vsel %vm11118_vm6, %v11106_v4, %v21880_v7  ;;  %v11031_v0 = vadd.f32 %v11030_v58, %v10741_v33  ;;  %v10742_v56 = vmax.f32 %v10418_v17, 0.0 }
 0xa73   :  { %v11032_v39 = vadd.f32 %v11031_v0, %v10742_v56  ;;  %v13792_v26 = vpop.f32.mrb[240].mxu1 }
 0xa74   :  { %v10430_v10 = vpop.f32.mrb[241].mxu1  ;;  %v10439_v57 = vadd.f32 %v21870_v20, %v13792_v26 }
 0xa75   :  { %v11033_v51 = vadd.f32 %v11032_v39, %v10743_v5  ;;  %v10431_v38 = vadd.f32 %v21870_v20, %v10430_v10  ;;  %v13793_v23 = vpop.f32.mrb[242].mxu1 }
 0xa76   :  { %v10433_v61 = vpop.f32.mrb[243].mxu1  ;;  %v10442_v49 = vadd.f32 %v21870_v20, %v13793_v23  ;;  %v10747_v63 = vmax.f32 %v10439_v57, 0.0 }
 0xa77   :  { %v10745_v43 = vmax.f32 %v10431_v38, 0.0  ;;  %v11034_v19 = vadd.f32 %v11033_v51, %v10744_v15  ;;  %v10434_v7 = vadd.f32 %v21870_v20, %v10433_v61 }
 0xa78   :  { %v10748_v1 = vmax.f32 %v10442_v49, 0.0 }
 0xa79   :  { %v11035_v22 = vadd.f32 %v11034_v19, %v10745_v43  ;;  %v10746_v25 = vmax.f32 %v10434_v7, 0.0 }
 0xa7b   :  { %v11036_v52 = vadd.f32 %v11035_v22, %v10746_v25  ;;  %v13796_v41 = vpop.f32.mrb[244].mxu1 }
 0xa7c   :  { %v10446_v42 = vpop.f32.mrb[245].mxu1  ;;  %v10455_v34 = vadd.f32 %v21870_v20, %v13796_v41 }
 0xa7d   :  { %v11037_v60 = vadd.f32 %v11036_v52, %v10747_v63  ;;  %v10447_v21 = vadd.f32 %v21870_v20, %v10446_v42  ;;  %v13797_v9 = vpop.f32.mrb[246].mxu1 }
 0xa7e   :  { %v10449_v3 = vpop.f32.mrb[247].mxu1  ;;  %v10458_v55 = vadd.f32 %v21870_v20, %v13797_v9  ;;  %v10751_v45 = vmax.f32 %v10455_v34, 0.0 }
 0xa7f   :  { %v10749_v28 = vmax.f32 %v10447_v21, 0.0  ;;  %v11038_v31 = vadd.f32 %v11037_v60, %v10748_v1  ;;  %v10450_v59 = vadd.f32 %v21870_v20, %v10449_v3 }
 0xa80   :  { %v10752_v12 = vmax.f32 %v10458_v55, 0.0 }
 0xa81   :  { %v11039_v48 = vadd.f32 %v11038_v31, %v10749_v28  ;;  %v10750_v44 = vmax.f32 %v10450_v59, 0.0 }
 0xa83   :  { %v11040_v35 = vadd.f32 %v11039_v48, %v10750_v44  ;;  %v13800_v8 = vpop.f32.mrb[248].mxu1 }
 0xa84   :  { %v10462_v37 = vpop.f32.mrb[249].mxu1  ;;  %v10471_v14 = vadd.f32 %v21870_v20, %v13800_v8  ;;  %v14508_v8 = vld [vmem:[%s22045_s13 + $0x8] sm:$0xff]  }
 0xa85   :  { %v11041_v36 = vadd.f32 %v11040_v35, %v10751_v45  ;;  %v10463_v47 = vadd.f32 %v21870_v20, %v10462_v37  ;;  %v13801_v46 = vpop.f32.mrb[250].mxu1  ;;  %v14510_v37 = vld [vmem:[%s22045_s13 + $0x18] sm:$0xff]  }
 0xa86   :  { %v10465_v6 = vpop.f32.mrb[251].mxu1  ;;  %v10474_v16 = vadd.f32 %v21870_v20, %v13801_v46  ;;  %v10755_v40 = vmax.f32 %v10471_v14, 0.0  ;;  %v14514_v46 = vld [vmem:[%s22045_s13 + $0x38] sm:$0xff]  }
 0xa87   :  { %v10753_v11 = vmax.f32 %v10463_v47, 0.0  ;;  %v11042_v13 = vadd.f32 %v11041_v36, %v10752_v12  ;;  %v10466_v27 = vadd.f32 %v21870_v20, %v10465_v6  ;;  %v14511_v12 = vld [vmem:[%s22045_s13 + $0x20] sm:$0xff]   ;;  %v14512_v36 = vld [vmem:[%s22045_s13 + $0x28] sm:$0xff]   ;;  %v14513_v47 = vld [vmem:[%s22045_s13 + $0x30] sm:$0xff]  }
 0xa88   :  { %v10756_v2 = vmax.f32 %v10474_v16, 0.0  ;;  %v11956_v6 = vld [vmem:[%s22047_s12] ss:$0 sm:$0xff] }
 0xa89   :  { %v11043_v30 = vadd.f32 %v11042_v13, %v10753_v11  ;;  %v10754_v53 = vmax.f32 %v10466_v27, 0.0 }
 0xa8b   :  { %v11044_v62 = vadd.f32 %v11043_v30, %v10754_v53  ;;  %v13804_v50 = vpop.f32.mrb[252].mxu1  ;;  %v14515_v53 = vld [vmem:[%s22046_s15] sm:$0xff]  }
 0xa8c   :  { %v10478_v18 = vpop.f32.mrb[253].mxu1  ;;  %v10487_v17 = vadd.f32 %v21870_v20, %v13804_v50  ;;  %v14517_v50 = vld [vmem:[%s22046_s15 + $0x10] sm:$0xff]  }
 0xa8d   :  { %v11045_v32 = vadd.f32 %v11044_v62, %v10755_v40  ;;  %v10479_v4 = vadd.f32 %v21870_v20, %v10478_v18  ;;  %v13805_v33 = vpop.f32.mrb[254].mxu1  ;;  %v14516_v62 = vld [vmem:[%s22046_s15 + $0x8] sm:$0xff]   ;;  %v14518_v18 = vld [vmem:[%s22046_s15 + $0x18] sm:$0xff]  }
 0xa8e   :  { %v10481_v58 = vpop.f32.mrb[255].mxu1  ;;  %v10490_v39 = vadd.f32 %v21870_v20, %v13805_v33  ;;  %v10759_v10 = vmax.f32 %v10487_v17, 0.0  ;;  %v14522_v33 = vld [vmem:[%s22046_s15 + $0x38] sm:$0xff]  }
 0xa8f   :  { %v10757_v0 = vmax.f32 %v10479_v4, 0.0  ;;  %v11046_v54 = vadd.f32 %v11045_v32, %v10756_v2  ;;  %v10482_v56 = vadd.f32 %v21870_v20, %v10481_v58  ;;  %v14519_v2 = vld [vmem:[%s22046_s15 + $0x20] sm:$0xff]   ;;  %v14520_v32 = vld [vmem:[%s22046_s15 + $0x28] sm:$0xff]   ;;  %v14521_v4 = vld [vmem:[%s22046_s15 + $0x30] sm:$0xff]  }
 0xa90   :  { %v10760_v23 = vmax.f32 %v10490_v39, 0.0  ;;  %v11965_v58 = vld [vmem:[%s22048_s14] ss:$0 sm:$0xff] }
 0xa91   :  { %v11047_v5 = vadd.f32 %v11046_v54, %v10757_v0  ;;  %v10758_v26 = vmax.f32 %v10482_v56, 0.0 }
 0xa93   :  { %v11048_v15 = vadd.f32 %v11047_v5, %v10758_v26  ;;  %v13808_v51 = vpop.f32.mrb[0].mxu1 }
 0xa94   :  { %v10494_v38 = vpop.f32.mrb[1].mxu1  ;;  %v10503_v7 = vadd.f32 %v21870_v20, %v13808_v51  ;;  %v11974_v51 = vld [vmem:[%s22049_s16] ss:$0 sm:$0xff] }
 0xa95   :  { %v11049_v61 = vadd.f32 %v11048_v15, %v10759_v10  ;;  %v10495_v57 = vadd.f32 %v21870_v20, %v10494_v38  ;;  %v13809_v43 = vpop.f32.mrb[2].mxu1  ;;  %v24191_v10 = vlaneseq }
 0xa96   :  { %v10497_v19 = vpop.f32.mrb[3].mxu1  ;;  %v10506_v52 = vadd.f32 %v21870_v20, %v13809_v43  ;;  %v10763_v42 = vmax.f32 %v10503_v7, 0.0 }
 0xa97   :  { %v10761_v22 = vmax.f32 %v10495_v57, 0.0  ;;  %v11050_v49 = vadd.f32 %v11049_v61, %v10760_v23  ;;  %v10498_v25 = vadd.f32 %v21870_v20, %v10497_v19  ;;  %v14507_v20 = vld [vmem:[%s22045_s13] sm:$0xff]   ;;  %v11439_v15 = vand.u32 127, %v24191_v10 }
 0xa98   :  { %v10764_v60 = vmax.f32 %v10506_v52, 0.0 }
 0xa99   :  { %v11051_v63 = vadd.f32 %v11050_v49, %v10761_v22  ;;  %v10762_v41 = vmax.f32 %v10498_v25, 0.0  ;;  %vm11440_vm8 = vcmp.lt.s32.totalorder %v11439_v15, 10 }
 0xa9b   :  { %v11052_v1 = vadd.f32 %v11051_v63, %v10762_v41 }
 0xa9d   :  { %v11053_v21 = vadd.f32 %v11052_v1, %v10763_v42 }
 0xa9f   :  { %v11054_v9 = vadd.f32 %v11053_v21, %v10764_v60 }
 0xaa1   :  { %v11055_v3 = vrot.slane %v11054_v9, 4 }
 0xaa3   :  { %v11056_v34 = vadd.f32 %v11055_v3, %v11054_v9 }
 0xaa5   :  { %v11057_v28 = vrot.slane %v11056_v34, 2 }
 0xaa7   :  { %v11058_v31 = vadd.f32 %v11057_v28, %v11056_v34 }
 0xaa9   :  { %v11059_v59 = vrot.slane %v11058_v31, 1 }
 0xaab   :  { %v11060_v48 = vadd.f32 %v11059_v59, %v11058_v31 }
 0xaad   :  { %v11068_v55 = vpack.c.bf16 %v11060_v48, %v11060_v48 }
 0xaaf   :  { %v11107_v44 = vunpack.c.l.b16 %v11068_v55 }
 0xab1   :  { %v11121_v45 = vsel %vm11120_vm7, %v11107_v44, %v21929_v24  ;;  %v14509_v24 = vld [vmem:[%s22045_s13 + $0x10] sm:$0xff]  }
 0xab2   :  { %v11122_v35 = vpack.c.b16 %v11121_v45, %v11121_v45 }
 0xab4   :  { %13827 = vmatmul.mubr.bf16.vlgmr.msra.gmra.mrb[220].mxu0 %v11122_v35 }
 0xab5   :  { %13831 = vmatpush3.bf16.msra.mxu0 %v14507_v20  ;;  %13846 = vmatprep.mubr.msk.bf16.mxu0 %vm14532_vm5, %v14531_v29 }
 0xab6   :  { %13832 = vmatprep.subr.bf16.mxu0 %v14531_v29 }
 0xab9   :  { %13833 = vmatpush3.bf16.msra.mxu0 %v14508_v8 }
 0xaba   :  { %13834 = vmatprep.subr.bf16.mxu0 %v14531_v29 }
 0xabd   :  { %13835 = vmatpush3.bf16.msra.mxu0 %v14509_v24 }
 0xabe   :  { %13836 = vmatprep.subr.bf16.mxu0 %v14531_v29 }
 0xac1   :  { %13837 = vmatpush3.bf16.msra.mxu0 %v14510_v37 }
 0xac2   :  { %13838 = vmatprep.subr.bf16.mxu0 %v14531_v29 }
 0xac5   :  { %13839 = vmatpush3.bf16.msra.mxu0 %v14511_v12 }
 0xac6   :  { %13840 = vmatprep.subr.bf16.mxu0 %v14531_v29 }
 0xac9   :  { %13841 = vmatpush3.bf16.msra.mxu0 %v14512_v36 }
 0xaca   :  { %13842 = vmatprep.subr.bf16.mxu0 %v14531_v29 }
 0xacd   :  { %13843 = vmatpush3.bf16.msra.mxu0 %v14513_v47 }
 0xace   :  { %13844 = vmatprep.subr.bf16.mxu0 %v14531_v29 }
 0xad1   :  { %13845 = vmatpush3.bf16.msra.mxu0 %v14514_v46 }
 0xad2   :  { %13850 = vmatprep.subr.bf16.mxu0 %v14531_v29 }
 0xb87   :  { %v11206_v14 = vpop.f32.mrb[220].mxu0 }
 0xb88   :  { %v11207_v11 = vadd.f32 %v11956_v6, %v11206_v14  ;;  %v13828_v13 = vpop.f32.mrb[221].mxu0 }
 0xb89   :  { %v11209_v27 = vpop.f32.mrb[222].mxu0 }
 0xb8a   :  { %v11212_v30 = vmax.f32 %v11207_v11, 0.0  ;;  %v13829_v16 = vpop.f32.mrb[223].mxu0 }
 0xb8c   :  { %v11213_v40 = vpack.c.bf16 %v11212_v30, %v11212_v30 }
 0xb8e   :  { %13847 = vmatmul.mubr.bf16.vlgmr.msra.gmra.mrb[224].mxu0 %v11213_v40 }
 0xb8f   :  { %13851 = vmatpush3.bf16.msra.mxu0 %v14515_v53  ;;  %13866 = vmatprep.mubr.msk.bf16.mxu0 %vm14532_vm5, %v14531_v29 }
 0xb90   :  { %13852 = vmatprep.subr.bf16.mxu0 %v14531_v29 }
 0xb93   :  { %13853 = vmatpush3.bf16.msra.mxu0 %v14516_v62 }
 0xb94   :  { %13854 = vmatprep.subr.bf16.mxu0 %v14531_v29 }
 0xb97   :  { %13855 = vmatpush3.bf16.msra.mxu0 %v14517_v50 }
 0xb98   :  { %13856 = vmatprep.subr.bf16.mxu0 %v14531_v29 }
 0xb9b   :  { %13857 = vmatpush3.bf16.msra.mxu0 %v14518_v18 }
 0xb9c   :  { %13858 = vmatprep.subr.bf16.mxu0 %v14531_v29 }
 0xb9f   :  { %13859 = vmatpush3.bf16.msra.mxu0 %v14519_v2 }
 0xba0   :  { %13860 = vmatprep.subr.bf16.mxu0 %v14531_v29 }
 0xba3   :  { %13861 = vmatpush3.bf16.msra.mxu0 %v14520_v32 }
 0xba4   :  { %13862 = vmatprep.subr.bf16.mxu0 %v14531_v29 }
 0xba7   :  { %13863 = vmatpush3.bf16.msra.mxu0 %v14521_v4 }
 0xba8   :  { %13864 = vmatprep.subr.bf16.mxu0 %v14531_v29 }
 0xbab   :  { %13865 = vmatpush3.bf16.msra.mxu0 %v14522_v33 }
 0xc61   :  { %v11319_v17 = vpop.f32.mrb[224].mxu0 }
 0xc62   :  { %v11320_v0 = vadd.f32 %v11965_v58, %v11319_v17  ;;  %v13848_v54 = vpop.f32.mrb[225].mxu0 }
 0xc63   :  { %v11322_v56 = vpop.f32.mrb[226].mxu0 }
 0xc64   :  { %v11325_v5 = vmax.f32 %v11320_v0, 0.0  ;;  %v13849_v39 = vpop.f32.mrb[227].mxu0 }
 0xc66   :  { %v11326_v26 = vpack.c.bf16 %v11325_v5, %v11325_v5 }
 0xc68   :  { %13867 = vmatmul.mubr.bf16.vlgmr.msra.gmra.mrb[228].mxu0 %v11326_v26 }
 0xd3b   :  { %v11432_v29 = vpop.f32.mrb[228].mxu0 }
 0xd3c   :  { %v11433_v38 = vadd.f32 %v11974_v51, %v11432_v29  ;;  %v13868_v23 = vpop.f32.mrb[229].mxu0 }
 0xd3d   :  { %v11435_v61 = vpop.f32.mrb[230].mxu0 }
 0xd3e   :  { %v13869_v57 = vpop.f32.mrb[231].mxu0  ;;  %v11441_v43 = vsel %vm11440_vm8, %v11433_v38, -1e+30 }
 0xd3f   :  { %11442 = vmax.xlane.f32.xlu0 %v11441_v43 }
 0xdcc   :  { %v11443_v19 = vpop.xlane.xlu0 %11442 }
 0xdcd   :  { %v11444_v7 = vsub.f32 %v11441_v43, %v11443_v19 }
 0xdcf   :  { %v11445_v22 = vmul.f32 1.442695, %v11444_v7 }
 0xdd1   :  { %14523 = vpow2.f32 %v11445_v22 }
 0xddb   :  { %v14524_v49 = vpop.eup %14523 }
 0xddc   :  { %11447 = vadd.xlane.f32.xlu0 %v14524_v49 }
 0xe69   :  { %v11448_v25 = vpop.xlane.xlu0 %11447 }
 0xe6a   :  { %14525 = vlog2.f32 %v11448_v25 }
 0xe74   :  { %v14526_v63 = vpop.eup %14525 }
 0xe75   :  { %v11450_v52 = vmul.f32 0.6931472, %v14526_v63 }
 0xe77   :  { %v11451_v41 = vsub.f32 %v11444_v7, %v11450_v52 }
 0xe79   :  { %11452 = vst [vmem:[%s22050_s17] sm:$0xff] %v11451_v41 }

</bundles_post_ra>
